<compile_context>
chip_gen: v5e
topology: v5e:2x2
jax: 0.10.0
libtpu: 0.0.40
codegen_flags: <defaults>
</compile_context>

<pallas_src>
import functools
import math

import jax
import jax.numpy as jnp
from jax import lax
from jax.experimental import pallas as pl
from jax.experimental.pallas import tpu as pltpu


# ---------------------------------------------------------------------------
# Kernel 1: one STAttentionBlock, fully fused (one program per batch element).
# ---------------------------------------------------------------------------
def _st_attention_block_kernel(
    x_ref, tc1_w_ref, tc1_b_ref, align_w_ref, align_b_ref, gso_kron_ref,
    cheb_w_ref, cheb_b_ref, qkv_w_ref, qkv_b_ref, attn_ow_ref, attn_ob_ref,
    tc2_w_ref, tc2_b_ref, ln_avg_ref, ln_g_ref, ln_b_ref, o_ref,
    *, kt, ks, heads, eps):
  x = x_ref[0]                                          # (N, T, C0), f32
  n = x.shape[0]

  def tconv_glu(h, w_ref, b_ref):
    """Temporal conv + GLU gate + residual, fused (conv = Kt MXU matmuls)."""
    _, th, cin = h.shape
    c_out = w_ref.shape[2] // 2
    t_out = th - kt + 1
    acc = jnp.zeros((n * t_out, 2 * c_out), jnp.float32)
    for k in range(kt):                                 # static unroll
      hk = h[:, k:k + t_out, :].reshape(n * t_out, cin)
      acc = acc + jnp.dot(hk, w_ref[k], preferred_element_type=jnp.float32)
    acc = acc + b_ref[...]
    p, q = acc[:, :c_out], acc[:, c_out:]
    res = h[:, kt - 1:, :].reshape(n * t_out, cin)
    if cin == c_out:
      p = p + res
    elif cin < c_out:
      # Align zero-pads channels in the reference -> add residual only on the
      # first cin channels (no zero-pad concat / HBM round-trip).
      p = jnp.concatenate([p[:, :cin] + res, p[:, cin:]], axis=1)
    else:
      # TODO(synk): Align 1x1-conv branch (c_in > c_out) never occurs for this config.
      pass
    out = p * jax.nn.sigmoid(q)
    return out.reshape(n, t_out, c_out), t_out

  # ---- temporal conv 1 (GLU) ----------------------------------------------
  h1, t1 = tconv_glu(x, tc1_w_ref, tc1_b_ref)           # (N, T1, C1)
  c1 = h1.shape[2]

  # ---- graph conv: align + Chebyshev recurrence + residual + ReLU ----------
  cg = align_w_ref.shape[1]
  x_al = jnp.dot(h1.reshape(n * t1, c1), align_w_ref[...],
                 preferred_element_type=jnp.float32) + align_b_ref[...]
  # gso applied per time step via a host-precomputed (gso ⊗ I_T1) matrix so the
  # whole Cheb recurrence is plain 2-D MXU matmuls (no in-kernel relayouts).
  g = gso_kron_ref[...]                                 # (N*T1, N*T1)
  cheb = [x_al]
  if ks > 1:
    cheb.append(jnp.dot(g, x_al, preferred_element_type=jnp.float32))
  for _ in range(2, ks):
    cheb.append(2.0 * jnp.dot(g, cheb[-1], preferred_element_type=jnp.float32)
                - cheb[-2])
  stacked = jnp.concatenate(cheb, axis=1)               # (N*T1, Ks*Cg)
  x_gc = jnp.dot(stacked, cheb_w_ref[...],
                 preferred_element_type=jnp.float32) + cheb_b_ref[...]
  h2 = jnp.maximum(x_gc + x_al, 0.0)                    # residual + ReLU

  # ---- temporal multi-head self-attention (per vertex, over time), residual -
  qkv = jnp.dot(h2, qkv_w_ref[...],
                preferred_element_type=jnp.float32) + qkv_b_ref[...]
  q3 = qkv[:, :cg].reshape(n, t1, cg)
  k3 = qkv[:, cg:2 * cg].reshape(n, t1, cg)
  v3 = qkv[:, 2 * cg:].reshape(n, t1, cg)
  dh = cg // heads
  scale = 1.0 / math.sqrt(dh)
  lane = lax.broadcasted_iota(jnp.int32, (1, 1, cg), 2)
  attn = jnp.zeros((n, t1, cg), jnp.float32)
  for hh in range(heads):                               # head split via lane masks
    m = ((lane >= hh * dh) & (lane < (hh + 1) * dh)).astype(jnp.float32)
    s = jnp.einsum("ntd,nsd->nts", q3 * (m * scale), k3,
                   preferred_element_type=jnp.float32)  # batched MXU matmul
    s = s - jnp.max(s, axis=-1, keepdims=True)
    e = jnp.exp(s)
    p = e * pl.reciprocal(jnp.sum(e, axis=-1, keepdims=True), approx=True)
    attn = attn + jnp.einsum("nts,nsd->ntd", p, v3 * m,
                             preferred_element_type=jnp.float32)
  attn = jnp.dot(attn.reshape(n * t1, cg), attn_ow_ref[...],
                 preferred_element_type=jnp.float32) + attn_ob_ref[...]
  h3 = (h2 + attn).reshape(n, t1, cg)                   # attention residual

  # ---- temporal conv 2 (GLU) ----------------------------------------------
  h4, t2 = tconv_glu(h3, tc2_w_ref, tc2_b_ref)          # (N, T2, C3)
  c3 = h4.shape[2]
  h4 = h4.reshape(n * t2, c3)                           # rows ordered (vertex, time)

  # ---- LayerNorm over (n_vertex, C3) per time step (eps = 1e-5, PyTorch) ----
  # Per-time mean/var computed with a precomputed averaging matrix (MXU matmul)
  # -> zero transposes / cross-lane relayouts inside the kernel.
  rs = jnp.sum(h4, axis=1, keepdims=True)               # (R, 1)
  mu = jnp.dot(ln_avg_ref[...], rs, preferred_element_type=jnp.float32)
  xc = h4 - mu
  vs = jnp.sum(xc * xc, axis=1, keepdims=True)
  var = jnp.dot(ln_avg_ref[...], vs, preferred_element_type=jnp.float32)
  y = xc * lax.rsqrt(var + eps)
  y = y * ln_g_ref[...] + ln_b_ref[...]
  o_ref[0] = y                                          # dropout: eval -> identity


# ---------------------------------------------------------------------------
# Kernel 2: OutputBlock + expression projection head, fully fused.
# ---------------------------------------------------------------------------
def _output_proj_kernel(
    h_ref, tc_w_ref, tc_b_ref, ln_g_ref, ln_b_ref,
    fc1_w_ref, fc1_b_ref, fc2_w_ref, fc2_b_ref,
    p1_w_ref, p1_b_ref, p2_w_ref, p2_b_ref, p3_w_ref, p3_b_ref,
    o_ref, *, ko, eps):
  c3 = tc_w_ref.shape[1]
  co = tc_w_ref.shape[2] // 2
  r = h_ref.shape[1]
  n = r // ko
  h = h_ref[0].reshape(n, ko, c3)                       # rows were (vertex, time)

  # temporal GLU conv collapsing the remaining Ko steps to a single step
  acc = jnp.zeros((n, 2 * co), jnp.float32)
  for k in range(ko):
    acc = acc + jnp.dot(h[:, k, :], tc_w_ref[k], preferred_element_type=jnp.float32)
  acc = acc + tc_b_ref[...]
  p, q = acc[:, :co], acc[:, co:]
  res = h[:, ko - 1, :]
  if c3 == co:
    p = p + res
  elif c3 < co:
    p = jnp.concatenate([p[:, :c3] + res, p[:, c3:]], axis=1)
  y = p * jax.nn.sigmoid(q)                             # (N, Co)

  # LayerNorm over (n_vertex, Co)  (eps = 1e-5, PyTorch default)
  denom = 1.0 / float(y.shape[0] * y.shape[1])
  rs = jnp.sum(y, axis=1, keepdims=True)
  mu = jnp.sum(rs, axis=0, keepdims=True) * denom       # (1, 1)
  xc = y - mu
  vs = jnp.sum(xc * xc, axis=1, keepdims=True)
  var = jnp.sum(vs, axis=0, keepdims=True) * denom
  y = xc * lax.rsqrt(var + eps)
  y = y * ln_g_ref[...] + ln_b_ref[...]

  # OutputBlock head: fc1 -> ReLU -> (dropout: eval) -> fc2
  y = jnp.maximum(jnp.dot(y, fc1_w_ref[...], preferred_element_type=jnp.float32)
                  + fc1_b_ref[...], 0.0)
  y = jnp.dot(y, fc2_w_ref[...], preferred_element_type=jnp.float32) + fc2_b_ref[...]

  # expression_proj: Linear(end, 16) -> ReLU -> Linear(16, 8) -> ReLU -> Linear(8, 1)
  y = jnp.maximum(jnp.dot(y, p1_w_ref[...], preferred_element_type=jnp.float32)
                  + p1_b_ref[...], 0.0)
  y = jnp.maximum(jnp.dot(y, p2_w_ref[...], preferred_element_type=jnp.float32)
                  + p2_b_ref[...], 0.0)
  y = jnp.dot(y, p3_w_ref[...], preferred_element_type=jnp.float32) + p3_b_ref[...]
  o_ref[0] = y                                          # (N, 1)


# ---------------------------------------------------------------------------
# Wrappers
# ---------------------------------------------------------------------------
def _const_map(ndim):
  return lambda b: (0,) * ndim


def _weight_specs(weights):
  # Weights are tiny -> full-array blocks, broadcast to every grid step.
  return [pl.BlockSpec(w.shape, _const_map(w.ndim)) for w in weights]


def st_attention_block(x_bntc, p, *, kt, ks, heads):
  """x_bntc: (B, N, T, C_in) -> (B, N, T2, C3)."""
  B, N, T, C0 = x_bntc.shape
  C3 = p["tc2_w"].shape[2] // 2
  T2 = T - 2 * (kt - 1)
  weights = [p["tc1_w"], p["tc1_b"], p["align_w"], p["align_b"], p["gso_kron"],
             p["cheb_w"], p["cheb_b"], p["qkv_w"], p["qkv_b"],
             p["attn_out_w"], p["attn_out_b"], p["tc2_w"], p["tc2_b"],
             p["ln_avg"], p["ln_g"], p["ln_b"]]
  out = pl.pallas_call(
      functools.partial(_st_attention_block_kernel,
                        kt=kt, ks=ks, heads=heads, eps=1e-5),
      grid=(B,),
      out_shape=jax.ShapeDtypeStruct((B, N * T2, C3), jnp.float32),
      in_specs=[pl.BlockSpec((1, N, T, C0), lambda b: (b, 0, 0, 0))]
      + _weight_specs(weights),
      out_specs=pl.BlockSpec((1, N * T2, C3), lambda b: (b, 0, 0)),
      compiler_params=pltpu.CompilerParams(dimension_semantics=("parallel",)),
  )(x_bntc, *weights)
  return out.reshape(B, N, T2, C3)


def output_and_proj(h_bntc, p_out, p_proj, *, ko):
  """h_bntc: (B, N, Ko, C3) -> (B, N, 1)."""
  B, N, T, C3 = h_bntc.shape
  assert T == ko
  h = h_bntc.reshape(B, N * T, C3)
  weights = [p_out["tc_w"], p_out["tc_b"], p_out["ln_g"], p_out["ln_b"],
             p_out["fc1_w"], p_out["fc1_b"], p_out["fc2_w"], p_out["fc2_b"],
             p_proj["p1_w"], p_proj["p1_b"], p_proj["p2_w"], p_proj["p2_b"],
             p_proj["p3_w"], p_proj["p3_b"]]
  return pl.pallas_call(
      functools.partial(_output_proj_kernel, ko=ko, eps=1e-5),
      grid=(B,),
      out_shape=jax.ShapeDtypeStruct((B, N, 1), jnp.float32),
      in_specs=[pl.BlockSpec((1, N * T, C3), lambda b: (b, 0, 0))]
      + _weight_specs(weights),
      out_specs=pl.BlockSpec((1, N, 1), lambda b: (b, 0, 0)),
      compiler_params=pltpu.CompilerParams(dimension_semantics=("parallel",)),
  )(h, *weights)


def forward(x, params, cfg):
  """x: (B, C0, T, N) NCHW as in the PyTorch module; returns (B, 1, 1, N)."""
  B, _, T, N = x.shape
  kt, ks, heads, ko = cfg["Kt"], cfg["Ks"], cfg["attn_heads"], cfg["Ko"]
  h = jnp.transpose(x, (0, 3, 2, 1))                    # single relayout into (B, N, T, C)
  for blk in params["st_blocks"]:
    h = st_attention_block(h, blk, kt=kt, ks=ks, heads=heads)
  y = output_and_proj(h, params["out"], params["proj"], ko=ko)   # (B, N, 1)
  return jnp.transpose(y, (0, 2, 1)).reshape(B, 1, 1, N)


# ---------------------------------------------------------------------------
# Deterministic parameter construction (synthetic stand-in for trained weights)
# ---------------------------------------------------------------------------
def init_params(key, n_vertex, n_his, kt, ks, blocks):
  keys = jax.random.split(key, 64)
  it = iter(range(64))

  def w(shape, scale=0.2):
    return (scale * jax.random.normal(keys[next(it)], shape)).astype(jnp.float32)

  zeros = lambda s: jnp.zeros(s, jnp.float32)
  ones = lambda s: jnp.ones(s, jnp.float32)

  # deterministic symmetric-normalised ring-graph shift operator (args.gso stand-in)
  eye = jnp.eye(n_vertex, dtype=jnp.float32)
  adj = eye + jnp.roll(eye, 1, axis=0) + jnp.roll(eye, -1, axis=0)
  deg = jnp.sum(adj, axis=1)
  gso = adj / jnp.sqrt(deg[:, None] * deg[None, :])

  st_blocks = []
  t_cur = n_his
  for l in range(len(blocks) - 3):
    c_in = blocks[l][-1]
    c1, cg, c3 = blocks[l + 1]
    t1 = t_cur - (kt - 1)
    t2 = t1 - (kt - 1)
    r2 = n_vertex * t2
    # per-time averaging matrix for the (N, C) LayerNorm, done as an MXU matmul
    tid = jnp.arange(r2) % t2
    ln_avg = (tid[:, None] == tid[None, :]).astype(jnp.float32) / float(n_vertex * c3)
    st_blocks.append(dict(
        # conv weights stored as (Kt, C_in, 2*C_out)  == PyTorch (2*C_out, C_in, Kt, 1)
        tc1_w=w((kt, c_in, 2 * c1)), tc1_b=zeros((1, 2 * c1)),
        align_w=w((c1, cg)), align_b=zeros((1, cg)),
        gso_kron=jnp.kron(gso, jnp.eye(t1, dtype=jnp.float32)),   # gso ⊗ I_T1
        cheb_w=w((ks * cg, cg)), cheb_b=zeros((1, cg)),           # (Ks, C, C) flattened
        qkv_w=w((cg, 3 * cg)), qkv_b=zeros((1, 3 * cg)),          # in_proj (transposed)
        attn_out_w=w((cg, cg)), attn_out_b=zeros((1, cg)),
        tc2_w=w((kt, cg, 2 * c3)), tc2_b=zeros((1, 2 * c3)),
        ln_avg=ln_avg,
        # LayerNorm([n_vertex, C3]) gamma/beta, pre-repeated over the time rows
        ln_g=ones((r2, c3)), ln_b=zeros((r2, c3)),
    ))
    t_cur = t2

  ko = t_cur
  c3 = blocks[-3][-1]
  co1, co2 = blocks[-2]
  ce = blocks[-1][0]
  out = dict(
      tc_w=w((ko, c3, 2 * co1)), tc_b=zeros((1, 2 * co1)),
      ln_g=ones((n_vertex, co1)), ln_b=zeros((n_vertex, co1)),
      fc1_w=w((co1, co2)), fc1_b=zeros((1, co2)),
      fc2_w=w((co2, ce)), fc2_b=zeros((1, ce)),
  )
  proj = dict(
      p1_w=w((ce, 16)), p1_b=zeros((1, 16)),
      p2_w=w((16, 8)), p2_b=zeros((1, 8)),
      p3_w=w((8, 1)), p3_b=zeros((1, 1)),
  )
  return dict(st_blocks=st_blocks, out=out, proj=proj)


# ---------------------------------------------------------------------------
if __name__ == "__main__":
  B, n_vertex, n_his = 2, 16, 8
  Kt, Ks, attn_heads = 3, 3, 4
  # blocks: [[in], [ST block channels], [output block channels], [end channel]]
  blocks = [[4], [16, 8, 16], [16, 8], [8]]
  Ko = n_his - (len(blocks) - 3) * 2 * (Kt - 1)        # = 4 > 1 -> OutputBlock path
  assert Ko > 1

  key = jax.random.PRNGKey(0)
  pkey, xkey = jax.random.split(key)
  params = init_params(pkey, n_vertex, n_his, Kt, Ks, blocks)
  x = jax.random.normal(xkey, (B, blocks[0][-1], n_his, n_vertex), dtype=jnp.float32)

  cfg = dict(Kt=Kt, Ks=Ks, Ko=Ko, attn_heads=attn_heads)
  fwd = jax.jit(functools.partial(forward, cfg=cfg))
  y = fwd(x, params)
  jax.block_until_ready(y)
  assert y.shape == (B, 1, 1, n_vertex), y.shape
  assert bool(jnp.all(jnp.isfinite(y)))
  print("KERNEL_OK")
</pallas_src>

<mosaic_0001>
module attributes {stable_mosaic.version = 11 : i64} {
  func.func @_output_proj_kernel(%arg0: i32, %arg1: memref<1x64x16xf32, #tpu.memory_space<vmem>>, %arg2: memref<4x16x32xf32, #tpu.memory_space<vmem>>, %arg3: memref<1x32xf32, #tpu.memory_space<vmem>>, %arg4: memref<16x16xf32, #tpu.memory_space<vmem>>, %arg5: memref<16x16xf32, #tpu.memory_space<vmem>>, %arg6: memref<16x8xf32, #tpu.memory_space<vmem>>, %arg7: memref<1x8xf32, #tpu.memory_space<vmem>>, %arg8: memref<8x8xf32, #tpu.memory_space<vmem>>, %arg9: memref<1x8xf32, #tpu.memory_space<vmem>>, %arg10: memref<8x16xf32, #tpu.memory_space<vmem>>, %arg11: memref<1x16xf32, #tpu.memory_space<vmem>>, %arg12: memref<16x8xf32, #tpu.memory_space<vmem>>, %arg13: memref<1x8xf32, #tpu.memory_space<vmem>>, %arg14: memref<8x1xf32, #tpu.memory_space<vmem>>, %arg15: memref<1x1xf32, #tpu.memory_space<vmem>>, %arg16: memref<1x16x1xf32, #tpu.memory_space<vmem>>) attributes {dimension_semantics = [#tpu.dimension_semantics<parallel>], iteration_bounds = array<i64: 2>, scalar_prefetch = 0 : i64, scratch_operands = 0 : i64, tpu.core_type = #tpu.core_type<tc>, window_params = [{transform_indices = @transform_0, window_bounds = array<i64: 1, 64, 16>}, {pipeline_mode = #tpu.pipeline_mode<synchronous>, transform_indices = @transform_1, window_bounds = array<i64: 4, 16, 32>}, {pipeline_mode = #tpu.pipeline_mode<synchronous>, transform_indices = @transform_2, window_bounds = array<i64: 1, 32>}, {pipeline_mode = #tpu.pipeline_mode<synchronous>, transform_indices = @transform_3, window_bounds = array<i64: 16, 16>}, {pipeline_mode = #tpu.pipeline_mode<synchronous>, transform_indices = @transform_4, window_bounds = array<i64: 16, 16>}, {pipeline_mode = #tpu.pipeline_mode<synchronous>, transform_indices = @transform_5, window_bounds = array<i64: 16, 8>}, {pipeline_mode = #tpu.pipeline_mode<synchronous>, transform_indices = @transform_6, window_bounds = array<i64: 1, 8>}, {pipeline_mode = #tpu.pipeline_mode<synchronous>, transform_indices = @transform_7, window_bounds = array<i64: 8, 8>}, {pipeline_mode = #tpu.pipeline_mode<synchronous>, transform_indices = @transform_8, window_bounds = array<i64: 1, 8>}, {pipeline_mode = #tpu.pipeline_mode<synchronous>, transform_indices = @transform_9, window_bounds = array<i64: 8, 16>}, {pipeline_mode = #tpu.pipeline_mode<synchronous>, transform_indices = @transform_10, window_bounds = array<i64: 1, 16>}, {pipeline_mode = #tpu.pipeline_mode<synchronous>, transform_indices = @transform_11, window_bounds = array<i64: 16, 8>}, {pipeline_mode = #tpu.pipeline_mode<synchronous>, transform_indices = @transform_12, window_bounds = array<i64: 1, 8>}, {pipeline_mode = #tpu.pipeline_mode<synchronous>, transform_indices = @transform_13, window_bounds = array<i64: 8, 1>}, {pipeline_mode = #tpu.pipeline_mode<synchronous>, transform_indices = @transform_14, window_bounds = array<i64: 1, 1>}, {transform_indices = @transform_15, window_bounds = array<i64: 1, 16, 1>}]} {
    %c0 = arith.constant 0 : index
    %c0_0 = arith.constant 0 : index
    %c0_1 = arith.constant 0 : index
    %0 = vector.load %arg1[%c0, %c0_0, %c0_1] : memref<1x64x16xf32, #tpu.memory_space<vmem>>, vector<1x64x16xf32>
    %1 = vector.shape_cast %0 : vector<1x64x16xf32> to vector<64x16xf32>
    %2 = vector.shape_cast %1 : vector<64x16xf32> to vector<16x4x16xf32>
    %cst = arith.constant 0.000000e+00 : f32
    %3 = vector.broadcast %cst : f32 to vector<16x32xf32>
    %4 = vector.extract_strided_slice %2 {offsets = [0, 0, 0], sizes = [16, 1, 16], strides = [1, 1, 1]} : vector<16x4x16xf32> to vector<16x1x16xf32>
    %5 = vector.shape_cast %4 : vector<16x1x16xf32> to vector<16x16xf32>
    %c0_2 = arith.constant 0 : index
    %c0_3 = arith.constant 0 : index
    %c0_4 = arith.constant 0 : index
    %6 = vector.load %arg2[%c0_2, %c0_3, %c0_4] : memref<4x16x32xf32, #tpu.memory_space<vmem>>, vector<1x16x32xf32>
    %7 = vector.shape_cast %6 : vector<1x16x32xf32> to vector<16x32xf32>
    %cst_5 = arith.constant dense<0.000000e+00> : vector<16x32xf32>
    %8 = tpu.matmul %5, %7, %cst_5 {dimension_numbers = #tpu.dot_dimension_numbers<[1], [0], [0], [1], [0, 0, 1, 1], [], []>} : vector<16x16xf32>, vector<16x32xf32>, vector<16x32xf32> -> vector<16x32xf32>
    %9 = arith.addf %3, %8 : vector<16x32xf32>
    %10 = vector.extract_strided_slice %2 {offsets = [0, 1, 0], sizes = [16, 1, 16], strides = [1, 1, 1]} : vector<16x4x16xf32> to vector<16x1x16xf32>
    %11 = vector.shape_cast %10 : vector<16x1x16xf32> to vector<16x16xf32>
    %c1 = arith.constant 1 : index
    %c0_6 = arith.constant 0 : index
    %c0_7 = arith.constant 0 : index
    %12 = vector.load %arg2[%c1, %c0_6, %c0_7] : memref<4x16x32xf32, #tpu.memory_space<vmem>>, vector<1x16x32xf32>
    %13 = vector.shape_cast %12 : vector<1x16x32xf32> to vector<16x32xf32>
    %cst_8 = arith.constant dense<0.000000e+00> : vector<16x32xf32>
    %14 = tpu.matmul %11, %13, %cst_8 {dimension_numbers = #tpu.dot_dimension_numbers<[1], [0], [0], [1], [0, 0, 1, 1], [], []>} : vector<16x16xf32>, vector<16x32xf32>, vector<16x32xf32> -> vector<16x32xf32>
    %15 = arith.addf %9, %14 : vector<16x32xf32>
    %16 = vector.extract_strided_slice %2 {offsets = [0, 2, 0], sizes = [16, 1, 16], strides = [1, 1, 1]} : vector<16x4x16xf32> to vector<16x1x16xf32>
    %17 = vector.shape_cast %16 : vector<16x1x16xf32> to vector<16x16xf32>
    %c2 = arith.constant 2 : index
    %c0_9 = arith.constant 0 : index
    %c0_10 = arith.constant 0 : index
    %18 = vector.load %arg2[%c2, %c0_9, %c0_10] : memref<4x16x32xf32, #tpu.memory_space<vmem>>, vector<1x16x32xf32>
    %19 = vector.shape_cast %18 : vector<1x16x32xf32> to vector<16x32xf32>
    %cst_11 = arith.constant dense<0.000000e+00> : vector<16x32xf32>
    %20 = tpu.matmul %17, %19, %cst_11 {dimension_numbers = #tpu.dot_dimension_numbers<[1], [0], [0], [1], [0, 0, 1, 1], [], []>} : vector<16x16xf32>, vector<16x32xf32>, vector<16x32xf32> -> vector<16x32xf32>
    %21 = arith.addf %15, %20 : vector<16x32xf32>
    %22 = vector.extract_strided_slice %2 {offsets = [0, 3, 0], sizes = [16, 1, 16], strides = [1, 1, 1]} : vector<16x4x16xf32> to vector<16x1x16xf32>
    %23 = vector.shape_cast %22 : vector<16x1x16xf32> to vector<16x16xf32>
    %c3 = arith.constant 3 : index
    %c0_12 = arith.constant 0 : index
    %c0_13 = arith.constant 0 : index
    %24 = vector.load %arg2[%c3, %c0_12, %c0_13] : memref<4x16x32xf32, #tpu.memory_space<vmem>>, vector<1x16x32xf32>
    %25 = vector.shape_cast %24 : vector<1x16x32xf32> to vector<16x32xf32>
    %cst_14 = arith.constant dense<0.000000e+00> : vector<16x32xf32>
    %26 = tpu.matmul %23, %25, %cst_14 {dimension_numbers = #tpu.dot_dimension_numbers<[1], [0], [0], [1], [0, 0, 1, 1], [], []>} : vector<16x16xf32>, vector<16x32xf32>, vector<16x32xf32> -> vector<16x32xf32>
    %27 = arith.addf %21, %26 : vector<16x32xf32>
    %c0_15 = arith.constant 0 : index
    %c0_16 = arith.constant 0 : index
    %28 = vector.load %arg3[%c0_15, %c0_16] : memref<1x32xf32, #tpu.memory_space<vmem>>, vector<1x32xf32>
    %29 = vector.broadcast %28 : vector<1x32xf32> to vector<16x32xf32>
    %30 = arith.addf %27, %29 : vector<16x32xf32>
    %31 = vector.extract_strided_slice %30 {offsets = [0, 0], sizes = [16, 16], strides = [1, 1]} : vector<16x32xf32> to vector<16x16xf32>
    %32 = vector.extract_strided_slice %30 {offsets = [0, 16], sizes = [16, 16], strides = [1, 1]} : vector<16x32xf32> to vector<16x16xf32>
    %33 = vector.extract_strided_slice %2 {offsets = [0, 3, 0], sizes = [16, 1, 16], strides = [1, 1, 1]} : vector<16x4x16xf32> to vector<16x1x16xf32>
    %34 = vector.shape_cast %33 : vector<16x1x16xf32> to vector<16x16xf32>
    %35 = arith.addf %31, %34 : vector<16x16xf32>
    %36 = arith.negf %32 : vector<16x16xf32>
    %37 = math.exp %36 : vector<16x16xf32>
    %cst_17 = arith.constant 1.000000e+00 : f32
    %38 = vector.broadcast %cst_17 : f32 to vector<16x16xf32>
    %39 = arith.addf %38, %37 : vector<16x16xf32>
    %40 = arith.divf %38, %39 : vector<16x16xf32>
    %41 = arith.mulf %35, %40 : vector<16x16xf32>
    %cst_18 = arith.constant dense<0.000000e+00> : vector<16xf32>
    %42 = vector.multi_reduction <add>, %41, %cst_18 [1] : vector<16x16xf32> to vector<16xf32>
    %43 = vector.shape_cast %42 : vector<16xf32> to vector<16x1xf32>
    %cst_19 = arith.constant dense<0.000000e+00> : vector<1xf32>
    %44 = vector.multi_reduction <add>, %43, %cst_19 [0] : vector<16x1xf32> to vector<1xf32>
    %45 = vector.shape_cast %44 : vector<1xf32> to vector<1x1xf32>
    %cst_20 = arith.constant 3.906250e-03 : f32
    %46 = vector.broadcast %cst_20 : f32 to vector<1x1xf32>
    %47 = arith.mulf %45, %46 : vector<1x1xf32>
    %48 = vector.broadcast %47 : vector<1x1xf32> to vector<16x16xf32>
    %49 = arith.subf %41, %48 : vector<16x16xf32>
    %50 = arith.mulf %49, %49 : vector<16x16xf32>
    %cst_21 = arith.constant dense<0.000000e+00> : vector<16xf32>
    %51 = vector.multi_reduction <add>, %50, %cst_21 [1] : vector<16x16xf32> to vector<16xf32>
    %52 = vector.shape_cast %51 : vector<16xf32> to vector<16x1xf32>
    %cst_22 = arith.constant dense<0.000000e+00> : vector<1xf32>
    %53 = vector.multi_reduction <add>, %52, %cst_22 [0] : vector<16x1xf32> to vector<1xf32>
    %54 = vector.shape_cast %53 : vector<1xf32> to vector<1x1xf32>
    %cst_23 = arith.constant 3.906250e-03 : f32
    %55 = vector.broadcast %cst_23 : f32 to vector<1x1xf32>
    %56 = arith.mulf %54, %55 : vector<1x1xf32>
    %cst_24 = arith.constant 9.99999974E-6 : f32
    %57 = vector.broadcast %cst_24 : f32 to vector<1x1xf32>
    %58 = arith.addf %56, %57 : vector<1x1xf32>
    %59 = math.rsqrt %58 : vector<1x1xf32>
    %60 = vector.broadcast %59 : vector<1x1xf32> to vector<16x16xf32>
    %61 = arith.mulf %49, %60 : vector<16x16xf32>
    %c0_25 = arith.constant 0 : index
    %c0_26 = arith.constant 0 : index
    %62 = vector.load %arg4[%c0_25, %c0_26] : memref<16x16xf32, #tpu.memory_space<vmem>>, vector<16x16xf32>
    %63 = arith.mulf %61, %62 : vector<16x16xf32>
    %c0_27 = arith.constant 0 : index
    %c0_28 = arith.constant 0 : index
    %64 = vector.load %arg5[%c0_27, %c0_28] : memref<16x16xf32, #tpu.memory_space<vmem>>, vector<16x16xf32>
    %65 = arith.addf %63, %64 : vector<16x16xf32>
    %c0_29 = arith.constant 0 : index
    %c0_30 = arith.constant 0 : index
    %66 = vector.load %arg6[%c0_29, %c0_30] : memref<16x8xf32, #tpu.memory_space<vmem>>, vector<16x8xf32>
    %cst_31 = arith.constant dense<0.000000e+00> : vector<16x8xf32>
    %67 = tpu.matmul %65, %66, %cst_31 {dimension_numbers = #tpu.dot_dimension_numbers<[1], [0], [0], [1], [0, 0, 1, 1], [], []>} : vector<16x16xf32>, vector<16x8xf32>, vector<16x8xf32> -> vector<16x8xf32>
    %c0_32 = arith.constant 0 : index
    %c0_33 = arith.constant 0 : index
    %68 = vector.load %arg7[%c0_32, %c0_33] : memref<1x8xf32, #tpu.memory_space<vmem>>, vector<1x8xf32>
    %69 = vector.broadcast %68 : vector<1x8xf32> to vector<16x8xf32>
    %70 = arith.addf %67, %69 : vector<16x8xf32>
    %cst_34 = arith.constant 0.000000e+00 : f32
    %71 = vector.broadcast %cst_34 : f32 to vector<16x8xf32>
    %72 = arith.maximumf %70, %71 : vector<16x8xf32>
    %c0_35 = arith.constant 0 : index
    %c0_36 = arith.constant 0 : index
    %73 = vector.load %arg8[%c0_35, %c0_36] : memref<8x8xf32, #tpu.memory_space<vmem>>, vector<8x8xf32>
    %cst_37 = arith.constant dense<0.000000e+00> : vector<16x8xf32>
    %74 = tpu.matmul %72, %73, %cst_37 {dimension_numbers = #tpu.dot_dimension_numbers<[1], [0], [0], [1], [0, 0, 1, 1], [], []>} : vector<16x8xf32>, vector<8x8xf32>, vector<16x8xf32> -> vector<16x8xf32>
    %c0_38 = arith.constant 0 : index
    %c0_39 = arith.constant 0 : index
    %75 = vector.load %arg9[%c0_38, %c0_39] : memref<1x8xf32, #tpu.memory_space<vmem>>, vector<1x8xf32>
    %76 = vector.broadcast %75 : vector<1x8xf32> to vector<16x8xf32>
    %77 = arith.addf %74, %76 : vector<16x8xf32>
    %c0_40 = arith.constant 0 : index
    %c0_41 = arith.constant 0 : index
    %78 = vector.load %arg10[%c0_40, %c0_41] : memref<8x16xf32, #tpu.memory_space<vmem>>, vector<8x16xf32>
    %cst_42 = arith.constant dense<0.000000e+00> : vector<16x16xf32>
    %79 = tpu.matmul %77, %78, %cst_42 {dimension_numbers = #tpu.dot_dimension_numbers<[1], [0], [0], [1], [0, 0, 1, 1], [], []>} : vector<16x8xf32>, vector<8x16xf32>, vector<16x16xf32> -> vector<16x16xf32>
    %c0_43 = arith.constant 0 : index
    %c0_44 = arith.constant 0 : index
    %80 = vector.load %arg11[%c0_43, %c0_44] : memref<1x16xf32, #tpu.memory_space<vmem>>, vector<1x16xf32>
    %81 = vector.broadcast %80 : vector<1x16xf32> to vector<16x16xf32>
    %82 = arith.addf %79, %81 : vector<16x16xf32>
    %cst_45 = arith.constant 0.000000e+00 : f32
    %83 = vector.broadcast %cst_45 : f32 to vector<16x16xf32>
    %84 = arith.maximumf %82, %83 : vector<16x16xf32>
    %c0_46 = arith.constant 0 : index
    %c0_47 = arith.constant 0 : index
    %85 = vector.load %arg12[%c0_46, %c0_47] : memref<16x8xf32, #tpu.memory_space<vmem>>, vector<16x8xf32>
    %cst_48 = arith.constant dense<0.000000e+00> : vector<16x8xf32>
    %86 = tpu.matmul %84, %85, %cst_48 {dimension_numbers = #tpu.dot_dimension_numbers<[1], [0], [0], [1], [0, 0, 1, 1], [], []>} : vector<16x16xf32>, vector<16x8xf32>, vector<16x8xf32> -> vector<16x8xf32>
    %c0_49 = arith.constant 0 : index
    %c0_50 = arith.constant 0 : index
    %87 = vector.load %arg13[%c0_49, %c0_50] : memref<1x8xf32, #tpu.memory_space<vmem>>, vector<1x8xf32>
    %88 = vector.broadcast %87 : vector<1x8xf32> to vector<16x8xf32>
    %89 = arith.addf %86, %88 : vector<16x8xf32>
    %cst_51 = arith.constant 0.000000e+00 : f32
    %90 = vector.broadcast %cst_51 : f32 to vector<16x8xf32>
    %91 = arith.maximumf %89, %90 : vector<16x8xf32>
    %c0_52 = arith.constant 0 : index
    %c0_53 = arith.constant 0 : index
    %92 = vector.load %arg14[%c0_52, %c0_53] : memref<8x1xf32, #tpu.memory_space<vmem>>, vector<8x1xf32>
    %cst_54 = arith.constant dense<0.000000e+00> : vector<16x1xf32>
    %93 = tpu.matmul %91, %92, %cst_54 {dimension_numbers = #tpu.dot_dimension_numbers<[1], [0], [0], [1], [0, 0, 1, 1], [], []>} : vector<16x8xf32>, vector<8x1xf32>, vector<16x1xf32> -> vector<16x1xf32>
    %c0_55 = arith.constant 0 : index
    %c0_56 = arith.constant 0 : index
    %94 = vector.load %arg15[%c0_55, %c0_56] : memref<1x1xf32, #tpu.memory_space<vmem>>, vector<1x1xf32>
    %95 = vector.broadcast %94 : vector<1x1xf32> to vector<16x1xf32>
    %96 = arith.addf %93, %95 : vector<16x1xf32>
    %c0_57 = arith.constant 0 : index
    %c0_58 = arith.constant 0 : index
    %c0_59 = arith.constant 0 : index
    %97 = vector.load %arg16[%c0_57, %c0_58, %c0_59] : memref<1x16x1xf32, #tpu.memory_space<vmem>>, vector<1x16x1xf32>
    %98 = vector.shape_cast %97 : vector<1x16x1xf32> to vector<16x1xf32>
    %99 = vector.shape_cast %96 : vector<16x1xf32> to vector<1x16x1xf32>
    tpu.vector_store %arg16[%c0_57, %c0_58, %c0_59], %99 {strides = array<i32>} : memref<1x16x1xf32, #tpu.memory_space<vmem>>, vector<1x16x1xf32>,
    return
  }
  func.func @transform_0(%arg0: i32) -> (i32, i32, i32) {
    %c0_i32 = arith.constant 0 : i32
    %c0_i32_0 = arith.constant 0 : i32
    %c0_i32_1 = arith.constant 0 : i32
    return %arg0, %c0_i32, %c0_i32_0 : i32, i32, i32
  }
  func.func @transform_1(%arg0: i32) -> (i32, i32, i32) {
    %c0_i32 = arith.constant 0 : i32
    %c0_i32_0 = arith.constant 0 : i32
    %c0_i32_1 = arith.constant 0 : i32
    %c0_i32_2 = arith.constant 0 : i32
    return %c0_i32, %c0_i32_0, %c0_i32_1 : i32, i32, i32
  }
  func.func @transform_2(%arg0: i32) -> (i32, i32) {
    %c0_i32 = arith.constant 0 : i32
    %c0_i32_0 = arith.constant 0 : i32
    %c0_i32_1 = arith.constant 0 : i32
    return %c0_i32, %c0_i32_0 : i32, i32
  }
  func.func @transform_3(%arg0: i32) -> (i32, i32) {
    %c0_i32 = arith.constant 0 : i32
    %c0_i32_0 = arith.constant 0 : i32
    %c0_i32_1 = arith.constant 0 : i32
    return %c0_i32, %c0_i32_0 : i32, i32
  }
  func.func @transform_4(%arg0: i32) -> (i32, i32) {
    %c0_i32 = arith.constant 0 : i32
    %c0_i32_0 = arith.constant 0 : i32
    %c0_i32_1 = arith.constant 0 : i32
    return %c0_i32, %c0_i32_0 : i32, i32
  }
  func.func @transform_5(%arg0: i32) -> (i32, i32) {
    %c0_i32 = arith.constant 0 : i32
    %c0_i32_0 = arith.constant 0 : i32
    %c0_i32_1 = arith.constant 0 : i32
    return %c0_i32, %c0_i32_0 : i32, i32
  }
  func.func @transform_6(%arg0: i32) -> (i32, i32) {
    %c0_i32 = arith.constant 0 : i32
    %c0_i32_0 = arith.constant 0 : i32
    %c0_i32_1 = arith.constant 0 : i32
    return %c0_i32, %c0_i32_0 : i32, i32
  }
  func.func @transform_7(%arg0: i32) -> (i32, i32) {
    %c0_i32 = arith.constant 0 : i32
    %c0_i32_0 = arith.constant 0 : i32
    %c0_i32_1 = arith.constant 0 : i32
    return %c0_i32, %c0_i32_0 : i32, i32
  }
  func.func @transform_8(%arg0: i32) -> (i32, i32) {
    %c0_i32 = arith.constant 0 : i32
    %c0_i32_0 = arith.constant 0 : i32
    %c0_i32_1 = arith.constant 0 : i32
    return %c0_i32, %c0_i32_0 : i32, i32
  }
  func.func @transform_9(%arg0: i32) -> (i32, i32) {
    %c0_i32 = arith.constant 0 : i32
    %c0_i32_0 = arith.constant 0 : i32
    %c0_i32_1 = arith.constant 0 : i32
    return %c0_i32, %c0_i32_0 : i32, i32
  }
  func.func @transform_10(%arg0: i32) -> (i32, i32) {
    %c0_i32 = arith.constant 0 : i32
    %c0_i32_0 = arith.constant 0 : i32
    %c0_i32_1 = arith.constant 0 : i32
    return %c0_i32, %c0_i32_0 : i32, i32
  }
  func.func @transform_11(%arg0: i32) -> (i32, i32) {
    %c0_i32 = arith.constant 0 : i32
    %c0_i32_0 = arith.constant 0 : i32
    %c0_i32_1 = arith.constant 0 : i32
    return %c0_i32, %c0_i32_0 : i32, i32
  }
  func.func @transform_12(%arg0: i32) -> (i32, i32) {
    %c0_i32 = arith.constant 0 : i32
    %c0_i32_0 = arith.constant 0 : i32
    %c0_i32_1 = arith.constant 0 : i32
    return %c0_i32, %c0_i32_0 : i32, i32
  }
  func.func @transform_13(%arg0: i32) -> (i32, i32) {
    %c0_i32 = arith.constant 0 : i32
    %c0_i32_0 = arith.constant 0 : i32
    %c0_i32_1 = arith.constant 0 : i32
    return %c0_i32, %c0_i32_0 : i32, i32
  }
  func.func @transform_14(%arg0: i32) -> (i32, i32) {
    %c0_i32 = arith.constant 0 : i32
    %c0_i32_0 = arith.constant 0 : i32
    %c0_i32_1 = arith.constant 0 : i32
    return %c0_i32, %c0_i32_0 : i32, i32
  }
  func.func @transform_15(%arg0: i32) -> (i32, i32, i32) {
    %c0_i32 = arith.constant 0 : i32
    %c0_i32_0 = arith.constant 0 : i32
    %c0_i32_1 = arith.constant 0 : i32
    return %arg0, %c0_i32, %c0_i32_0 : i32, i32, i32
  }
}

module attributes {stable_mosaic.version = 11 : i64} {
  func.func @_st_attention_block_kernel(%arg0: i32, %arg1: memref<1x16x8x4xf32, #tpu.memory_space<vmem>>, %arg2: memref<3x4x32xf32, #tpu.memory_space<vmem>>, %arg3: memref<1x32xf32, #tpu.memory_space<vmem>>, %arg4: memref<16x8xf32, #tpu.memory_space<vmem>>, %arg5: memref<1x8xf32, #tpu.memory_space<vmem>>, %arg6: memref<96x96xf32, #tpu.memory_space<vmem>>, %arg7: memref<24x8xf32, #tpu.memory_space<vmem>>, %arg8: memref<1x8xf32, #tpu.memory_space<vmem>>, %arg9: memref<8x24xf32, #tpu.memory_space<vmem>>, %arg10: memref<1x24xf32, #tpu.memory_space<vmem>>, %arg11: memref<8x8xf32, #tpu.memory_space<vmem>>, %arg12: memref<1x8xf32, #tpu.memory_space<vmem>>, %arg13: memref<3x8x32xf32, #tpu.memory_space<vmem>>, %arg14: memref<1x32xf32, #tpu.memory_space<vmem>>, %arg15: memref<64x64xf32, #tpu.memory_space<vmem>>, %arg16: memref<64x16xf32, #tpu.memory_space<vmem>>, %arg17: memref<64x16xf32, #tpu.memory_space<vmem>>, %arg18: memref<1x64x16xf32, #tpu.memory_space<vmem>>) attributes {dimension_semantics = [#tpu.dimension_semantics<parallel>], iteration_bounds = array<i64: 2>, scalar_prefetch = 0 : i64, scratch_operands = 0 : i64, tpu.core_type = #tpu.core_type<tc>, window_params = [{transform_indices = @transform_0, window_bounds = array<i64: 1, 16, 8, 4>}, {pipeline_mode = #tpu.pipeline_mode<synchronous>, transform_indices = @transform_1, window_bounds = array<i64: 3, 4, 32>}, {pipeline_mode = #tpu.pipeline_mode<synchronous>, transform_indices = @transform_2, window_bounds = array<i64: 1, 32>}, {pipeline_mode = #tpu.pipeline_mode<synchronous>, transform_indices = @transform_3, window_bounds = array<i64: 16, 8>}, {pipeline_mode = #tpu.pipeline_mode<synchronous>, transform_indices = @transform_4, window_bounds = array<i64: 1, 8>}, {pipeline_mode = #tpu.pipeline_mode<synchronous>, transform_indices = @transform_5, window_bounds = array<i64: 96, 96>}, {pipeline_mode = #tpu.pipeline_mode<synchronous>, transform_indices = @transform_6, window_bounds = array<i64: 24, 8>}, {pipeline_mode = #tpu.pipeline_mode<synchronous>, transform_indices = @transform_7, window_bounds = array<i64: 1, 8>}, {pipeline_mode = #tpu.pipeline_mode<synchronous>, transform_indices = @transform_8, window_bounds = array<i64: 8, 24>}, {pipeline_mode = #tpu.pipeline_mode<synchronous>, transform_indices = @transform_9, window_bounds = array<i64: 1, 24>}, {pipeline_mode = #tpu.pipeline_mode<synchronous>, transform_indices = @transform_10, window_bounds = array<i64: 8, 8>}, {pipeline_mode = #tpu.pipeline_mode<synchronous>, transform_indices = @transform_11, window_bounds = array<i64: 1, 8>}, {pipeline_mode = #tpu.pipeline_mode<synchronous>, transform_indices = @transform_12, window_bounds = array<i64: 3, 8, 32>}, {pipeline_mode = #tpu.pipeline_mode<synchronous>, transform_indices = @transform_13, window_bounds = array<i64: 1, 32>}, {pipeline_mode = #tpu.pipeline_mode<synchronous>, transform_indices = @transform_14, window_bounds = array<i64: 64, 64>}, {pipeline_mode = #tpu.pipeline_mode<synchronous>, transform_indices = @transform_15, window_bounds = array<i64: 64, 16>}, {pipeline_mode = #tpu.pipeline_mode<synchronous>, transform_indices = @transform_16, window_bounds = array<i64: 64, 16>}, {transform_indices = @transform_17, window_bounds = array<i64: 1, 64, 16>}]} {
    %c0 = arith.constant 0 : index
    %c0_0 = arith.constant 0 : index
    %c0_1 = arith.constant 0 : index
    %c0_2 = arith.constant 0 : index
    %0 = vector.load %arg1[%c0, %c0_0, %c0_1, %c0_2] : memref<1x16x8x4xf32, #tpu.memory_space<vmem>>, vector<1x16x8x4xf32>
    %1 = vector.shape_cast %0 : vector<1x16x8x4xf32> to vector<16x8x4xf32>
    %cst = arith.constant 0.000000e+00 : f32
    %2 = vector.broadcast %cst : f32 to vector<96x32xf32>
    %3 = vector.extract_strided_slice %1 {offsets = [0, 0, 0], sizes = [16, 6, 4], strides = [1, 1, 1]} : vector<16x8x4xf32> to vector<16x6x4xf32>
    %4 = vector.shape_cast %3 : vector<16x6x4xf32> to vector<96x4xf32>
    %c0_3 = arith.constant 0 : index
    %c0_4 = arith.constant 0 : index
    %c0_5 = arith.constant 0 : index
    %5 = vector.load %arg2[%c0_3, %c0_4, %c0_5] : memref<3x4x32xf32, #tpu.memory_space<vmem>>, vector<1x4x32xf32>
    %6 = vector.shape_cast %5 : vector<1x4x32xf32> to vector<4x32xf32>
    %cst_6 = arith.constant dense<0.000000e+00> : vector<96x32xf32>
    %7 = tpu.matmul %4, %6, %cst_6 {dimension_numbers = #tpu.dot_dimension_numbers<[1], [0], [0], [1], [0, 0, 1, 1], [], []>} : vector<96x4xf32>, vector<4x32xf32>, vector<96x32xf32> -> vector<96x32xf32>
    %8 = arith.addf %2, %7 : vector<96x32xf32>
    %9 = vector.extract_strided_slice %1 {offsets = [0, 1, 0], sizes = [16, 6, 4], strides = [1, 1, 1]} : vector<16x8x4xf32> to vector<16x6x4xf32>
    %10 = vector.shape_cast %9 : vector<16x6x4xf32> to vector<96x4xf32>
    %c1 = arith.constant 1 : index
    %c0_7 = arith.constant 0 : index
    %c0_8 = arith.constant 0 : index
    %11 = vector.load %arg2[%c1, %c0_7, %c0_8] : memref<3x4x32xf32, #tpu.memory_space<vmem>>, vector<1x4x32xf32>
    %12 = vector.shape_cast %11 : vector<1x4x32xf32> to vector<4x32xf32>
    %cst_9 = arith.constant dense<0.000000e+00> : vector<96x32xf32>
    %13 = tpu.matmul %10, %12, %cst_9 {dimension_numbers = #tpu.dot_dimension_numbers<[1], [0], [0], [1], [0, 0, 1, 1], [], []>} : vector<96x4xf32>, vector<4x32xf32>, vector<96x32xf32> -> vector<96x32xf32>
    %14 = arith.addf %8, %13 : vector<96x32xf32>
    %15 = vector.extract_strided_slice %1 {offsets = [0, 2, 0], sizes = [16, 6, 4], strides = [1, 1, 1]} : vector<16x8x4xf32> to vector<16x6x4xf32>
    %16 = vector.shape_cast %15 : vector<16x6x4xf32> to vector<96x4xf32>
    %c2 = arith.constant 2 : index
    %c0_10 = arith.constant 0 : index
    %c0_11 = arith.constant 0 : index
    %17 = vector.load %arg2[%c2, %c0_10, %c0_11] : memref<3x4x32xf32, #tpu.memory_space<vmem>>, vector<1x4x32xf32>
    %18 = vector.shape_cast %17 : vector<1x4x32xf32> to vector<4x32xf32>
    %cst_12 = arith.constant dense<0.000000e+00> : vector<96x32xf32>
    %19 = tpu.matmul %16, %18, %cst_12 {dimension_numbers = #tpu.dot_dimension_numbers<[1], [0], [0], [1], [0, 0, 1, 1], [], []>} : vector<96x4xf32>, vector<4x32xf32>, vector<96x32xf32> -> vector<96x32xf32>
    %20 = arith.addf %14, %19 : vector<96x32xf32>
    %c0_13 = arith.constant 0 : index
    %c0_14 = arith.constant 0 : index
    %21 = vector.load %arg3[%c0_13, %c0_14] : memref<1x32xf32, #tpu.memory_space<vmem>>, vector<1x32xf32>
    %22 = vector.broadcast %21 : vector<1x32xf32> to vector<96x32xf32>
    %23 = arith.addf %20, %22 : vector<96x32xf32>
    %24 = vector.extract_strided_slice %23 {offsets = [0, 0], sizes = [96, 16], strides = [1, 1]} : vector<96x32xf32> to vector<96x16xf32>
    %25 = vector.extract_strided_slice %23 {offsets = [0, 16], sizes = [96, 16], strides = [1, 1]} : vector<96x32xf32> to vector<96x16xf32>
    %26 = vector.extract_strided_slice %1 {offsets = [0, 2, 0], sizes = [16, 6, 4], strides = [1, 1, 1]} : vector<16x8x4xf32> to vector<16x6x4xf32>
    %27 = vector.shape_cast %26 : vector<16x6x4xf32> to vector<96x4xf32>
    %28 = vector.extract_strided_slice %24 {offsets = [0, 0], sizes = [96, 4], strides = [1, 1]} : vector<96x16xf32> to vector<96x4xf32>
    %29 = arith.addf %28, %27 : vector<96x4xf32>
    %30 = vector.extract_strided_slice %24 {offsets = [0, 4], sizes = [96, 12], strides = [1, 1]} : vector<96x16xf32> to vector<96x12xf32>
    %31 = tpu.concatenate %29, %30 in 1 : vector<96x4xf32>, vector<96x12xf32> -> vector<96x16xf32>
    %32 = arith.negf %25 : vector<96x16xf32>
    %33 = math.exp %32 : vector<96x16xf32>
    %cst_15 = arith.constant 1.000000e+00 : f32
    %34 = vector.broadcast %cst_15 : f32 to vector<96x16xf32>
    %35 = arith.addf %34, %33 : vector<96x16xf32>
    %36 = arith.divf %34, %35 : vector<96x16xf32>
    %37 = arith.mulf %31, %36 : vector<96x16xf32>
    %38 = vector.shape_cast %37 : vector<96x16xf32> to vector<16x6x16xf32>
    %39 = vector.shape_cast %38 : vector<16x6x16xf32> to vector<96x16xf32>
    %c0_16 = arith.constant 0 : index
    %c0_17 = arith.constant 0 : index
    %40 = vector.load %arg4[%c0_16, %c0_17] : memref<16x8xf32, #tpu.memory_space<vmem>>, vector<16x8xf32>
    %cst_18 = arith.constant dense<0.000000e+00> : vector<96x8xf32>
    %41 = tpu.matmul %39, %40, %cst_18 {dimension_numbers = #tpu.dot_dimension_numbers<[1], [0], [0], [1], [0, 0, 1, 1], [], []>} : vector<96x16xf32>, vector<16x8xf32>, vector<96x8xf32> -> vector<96x8xf32>
    %c0_19 = arith.constant 0 : index
    %c0_20 = arith.constant 0 : index
    %42 = vector.load %arg5[%c0_19, %c0_20] : memref<1x8xf32, #tpu.memory_space<vmem>>, vector<1x8xf32>
    %43 = vector.broadcast %42 : vector<1x8xf32> to vector<96x8xf32>
    %44 = arith.addf %41, %43 : vector<96x8xf32>
    %c0_21 = arith.constant 0 : index
    %c0_22 = arith.constant 0 : index
    %45 = vector.load %arg6[%c0_21, %c0_22] : memref<96x96xf32, #tpu.memory_space<vmem>>, vector<96x96xf32>
    %cst_23 = arith.constant dense<0.000000e+00> : vector<96x8xf32>
    %46 = tpu.matmul %45, %44, %cst_23 {dimension_numbers = #tpu.dot_dimension_numbers<[1], [0], [0], [1], [0, 0, 1, 1], [], []>} : vector<96x96xf32>, vector<96x8xf32>, vector<96x8xf32> -> vector<96x8xf32>
    %cst_24 = arith.constant dense<0.000000e+00> : vector<96x8xf32>
    %47 = tpu.matmul %45, %46, %cst_24 {dimension_numbers = #tpu.dot_dimension_numbers<[1], [0], [0], [1], [0, 0, 1, 1], [], []>} : vector<96x96xf32>, vector<96x8xf32>, vector<96x8xf32> -> vector<96x8xf32>
    %cst_25 = arith.constant 2.000000e+00 : f32
    %48 = vector.broadcast %cst_25 : f32 to vector<96x8xf32>
    %49 = arith.mulf %48, %47 : vector<96x8xf32>
    %50 = arith.subf %49, %44 : vector<96x8xf32>
    %51 = tpu.concatenate %44, %46, %50 in 1 : vector<96x8xf32>, vector<96x8xf32>, vector<96x8xf32> -> vector<96x24xf32>
    %c0_26 = arith.constant 0 : index
    %c0_27 = arith.constant 0 : index
    %52 = vector.load %arg7[%c0_26, %c0_27] : memref<24x8xf32, #tpu.memory_space<vmem>>, vector<24x8xf32>
    %cst_28 = arith.constant dense<0.000000e+00> : vector<96x8xf32>
    %53 = tpu.matmul %51, %52, %cst_28 {dimension_numbers = #tpu.dot_dimension_numbers<[1], [0], [0], [1], [0, 0, 1, 1], [], []>} : vector<96x24xf32>, vector<24x8xf32>, vector<96x8xf32> -> vector<96x8xf32>
    %c0_29 = arith.constant 0 : index
    %c0_30 = arith.constant 0 : index
    %54 = vector.load %arg8[%c0_29, %c0_30] : memref<1x8xf32, #tpu.memory_space<vmem>>, vector<1x8xf32>
    %55 = vector.broadcast %54 : vector<1x8xf32> to vector<96x8xf32>
    %56 = arith.addf %53, %55 : vector<96x8xf32>
    %57 = arith.addf %56, %44 : vector<96x8xf32>
    %cst_31 = arith.constant 0.000000e+00 : f32
    %58 = vector.broadcast %cst_31 : f32 to vector<96x8xf32>
    %59 = arith.maximumf %57, %58 : vector<96x8xf32>
    %c0_32 = arith.constant 0 : index
    %c0_33 = arith.constant 0 : index
    %60 = vector.load %arg9[%c0_32, %c0_33] : memref<8x24xf32, #tpu.memory_space<vmem>>, vector<8x24xf32>
    %cst_34 = arith.constant dense<0.000000e+00> : vector<96x24xf32>
    %61 = tpu.matmul %59, %60, %cst_34 {dimension_numbers = #tpu.dot_dimension_numbers<[1], [0], [0], [1], [0, 0, 1, 1], [], []>} : vector<96x8xf32>, vector<8x24xf32>, vector<96x24xf32> -> vector<96x24xf32>
    %c0_35 = arith.constant 0 : index
    %c0_36 = arith.constant 0 : index
    %62 = vector.load %arg10[%c0_35, %c0_36] : memref<1x24xf32, #tpu.memory_space<vmem>>, vector<1x24xf32>
    %63 = vector.broadcast %62 : vector<1x24xf32> to vector<96x24xf32>
    %64 = arith.addf %61, %63 : vector<96x24xf32>
    %65 = vector.extract_strided_slice %64 {offsets = [0, 0], sizes = [96, 8], strides = [1, 1]} : vector<96x24xf32> to vector<96x8xf32>
    %66 = vector.shape_cast %65 : vector<96x8xf32> to vector<16x6x8xf32>
    %67 = vector.extract_strided_slice %64 {offsets = [0, 8], sizes = [96, 8], strides = [1, 1]} : vector<96x24xf32> to vector<96x8xf32>
    %68 = vector.shape_cast %67 : vector<96x8xf32> to vector<16x6x8xf32>
    %69 = vector.extract_strided_slice %64 {offsets = [0, 16], sizes = [96, 8], strides = [1, 1]} : vector<96x24xf32> to vector<96x8xf32>
    %70 = vector.shape_cast %69 : vector<96x8xf32> to vector<16x6x8xf32>
    %71 = tpu.iota {dimensions = array<i32: 2>} : vector<1x1x8xi32>
    %cst_37 = arith.constant 0.000000e+00 : f32
    %72 = vector.broadcast %cst_37 : f32 to vector<16x6x8xf32>
    %c0_i32 = arith.constant 0 : i32
    %73 = vector.broadcast %c0_i32 : i32 to vector<1x1x8xi32>
    %74 = arith.cmpi sge, %71, %73 : vector<1x1x8xi32>
    %c2_i32 = arith.constant 2 : i32
    %75 = vector.broadcast %c2_i32 : i32 to vector<1x1x8xi32>
    %76 = arith.cmpi slt, %71, %75 : vector<1x1x8xi32>
    %77 = arith.andi %74, %76 : vector<1x1x8xi1>
    %78 = arith.extui %77 : vector<1x1x8xi1> to vector<1x1x8xi32>
    %79 = arith.sitofp %78 : vector<1x1x8xi32> to vector<1x1x8xf32>
    %cst_38 = arith.constant 0.707106769 : f32
    %80 = vector.broadcast %cst_38 : f32 to vector<1x1x8xf32>
    %81 = arith.mulf %79, %80 : vector<1x1x8xf32>
    %82 = vector.broadcast %81 : vector<1x1x8xf32> to vector<16x6x8xf32>
    %83 = arith.mulf %66, %82 : vector<16x6x8xf32>
    "tpu.trace_start"() <{level = 10 : i32, message = "ntd,nsd->nts"}> : () -> ()
    %cst_39 = arith.constant dense<0.000000e+00> : vector<16x6x6xf32>
    %84 = tpu.matmul %83, %68, %cst_39 {dimension_numbers = #tpu.dot_dimension_numbers<[2], [2], [1], [1], [0, 0, 0, 1, 1, 1], [0], [0]>} : vector<16x6x8xf32>, vector<16x6x8xf32>, vector<16x6x6xf32> -> vector<16x6x6xf32>
    "tpu.trace_stop"() : () -> ()
    %cst_40 = arith.constant dense<0xFF800000> : vector<16x6xf32>
    %85 = vector.multi_reduction <maximumf>, %84, %cst_40 [2] : vector<16x6x6xf32> to vector<16x6xf32>
    %86 = vector.shape_cast %85 : vector<16x6xf32> to vector<16x6x1xf32>
    %87 = vector.broadcast %86 : vector<16x6x1xf32> to vector<16x6x6xf32>
    %88 = arith.subf %84, %87 : vector<16x6x6xf32>
    %89 = math.exp %88 : vector<16x6x6xf32>
    %cst_41 = arith.constant dense<0.000000e+00> : vector<16x6xf32>
    %90 = vector.multi_reduction <add>, %89, %cst_41 [2] : vector<16x6x6xf32> to vector<16x6xf32>
    %91 = vector.shape_cast %90 : vector<16x6xf32> to vector<16x6x1xf32>
    %92 = tpu.reciprocal %91 {approx = true} : vector<16x6x1xf32> -> vector<16x6x1xf32>
    %93 = vector.broadcast %92 : vector<16x6x1xf32> to vector<16x6x6xf32>
    %94 = arith.mulf %89, %93 : vector<16x6x6xf32>
    %95 = vector.broadcast %79 : vector<1x1x8xf32> to vector<16x6x8xf32>
    %96 = arith.mulf %70, %95 : vector<16x6x8xf32>
    "tpu.trace_start"() <{level = 10 : i32, message = "nts,nsd->ntd"}> : () -> ()
    %cst_42 = arith.constant dense<0.000000e+00> : vector<16x6x8xf32>
    %97 = tpu.matmul %94, %96, %cst_42 {dimension_numbers = #tpu.dot_dimension_numbers<[2], [1], [1], [2], [0, 0, 0, 1, 1, 2], [0], [0]>} : vector<16x6x6xf32>, vector<16x6x8xf32>, vector<16x6x8xf32> -> vector<16x6x8xf32>
    "tpu.trace_stop"() : () -> ()
    %98 = arith.addf %72, %97 : vector<16x6x8xf32>
    %c2_i32_43 = arith.constant 2 : i32
    %99 = vector.broadcast %c2_i32_43 : i32 to vector<1x1x8xi32>
    %100 = arith.cmpi sge, %71, %99 : vector<1x1x8xi32>
    %c4_i32 = arith.constant 4 : i32
    %101 = vector.broadcast %c4_i32 : i32 to vector<1x1x8xi32>
    %102 = arith.cmpi slt, %71, %101 : vector<1x1x8xi32>
    %103 = arith.andi %100, %102 : vector<1x1x8xi1>
    %104 = arith.extui %103 : vector<1x1x8xi1> to vector<1x1x8xi32>
    %105 = arith.sitofp %104 : vector<1x1x8xi32> to vector<1x1x8xf32>
    %cst_44 = arith.constant 0.707106769 : f32
    %106 = vector.broadcast %cst_44 : f32 to vector<1x1x8xf32>
    %107 = arith.mulf %105, %106 : vector<1x1x8xf32>
    %108 = vector.broadcast %107 : vector<1x1x8xf32> to vector<16x6x8xf32>
    %109 = arith.mulf %66, %108 : vector<16x6x8xf32>
    "tpu.trace_start"() <{level = 10 : i32, message = "ntd,nsd->nts"}> : () -> ()
    %cst_45 = arith.constant dense<0.000000e+00> : vector<16x6x6xf32>
    %110 = tpu.matmul %109, %68, %cst_45 {dimension_numbers = #tpu.dot_dimension_numbers<[2], [2], [1], [1], [0, 0, 0, 1, 1, 1], [0], [0]>} : vector<16x6x8xf32>, vector<16x6x8xf32>, vector<16x6x6xf32> -> vector<16x6x6xf32>
    "tpu.trace_stop"() : () -> ()
    %cst_46 = arith.constant dense<0xFF800000> : vector<16x6xf32>
    %111 = vector.multi_reduction <maximumf>, %110, %cst_46 [2] : vector<16x6x6xf32> to vector<16x6xf32>
    %112 = vector.shape_cast %111 : vector<16x6xf32> to vector<16x6x1xf32>
    %113 = vector.broadcast %112 : vector<16x6x1xf32> to vector<16x6x6xf32>
    %114 = arith.subf %110, %113 : vector<16x6x6xf32>
    %115 = math.exp %114 : vector<16x6x6xf32>
    %cst_47 = arith.constant dense<0.000000e+00> : vector<16x6xf32>
    %116 = vector.multi_reduction <add>, %115, %cst_47 [2] : vector<16x6x6xf32> to vector<16x6xf32>
    %117 = vector.shape_cast %116 : vector<16x6xf32> to vector<16x6x1xf32>
    %118 = tpu.reciprocal %117 {approx = true} : vector<16x6x1xf32> -> vector<16x6x1xf32>
    %119 = vector.broadcast %118 : vector<16x6x1xf32> to vector<16x6x6xf32>
    %120 = arith.mulf %115, %119 : vector<16x6x6xf32>
    %121 = vector.broadcast %105 : vector<1x1x8xf32> to vector<16x6x8xf32>
    %122 = arith.mulf %70, %121 : vector<16x6x8xf32>
    "tpu.trace_start"() <{level = 10 : i32, message = "nts,nsd->ntd"}> : () -> ()
    %cst_48 = arith.constant dense<0.000000e+00> : vector<16x6x8xf32>
    %123 = tpu.matmul %120, %122, %cst_48 {dimension_numbers = #tpu.dot_dimension_numbers<[2], [1], [1], [2], [0, 0, 0, 1, 1, 2], [0], [0]>} : vector<16x6x6xf32>, vector<16x6x8xf32>, vector<16x6x8xf32> -> vector<16x6x8xf32>
    "tpu.trace_stop"() : () -> ()
    %124 = arith.addf %98, %123 : vector<16x6x8xf32>
    %c4_i32_49 = arith.constant 4 : i32
    %125 = vector.broadcast %c4_i32_49 : i32 to vector<1x1x8xi32>
    %126 = arith.cmpi sge, %71, %125 : vector<1x1x8xi32>
    %c6_i32 = arith.constant 6 : i32
    %127 = vector.broadcast %c6_i32 : i32 to vector<1x1x8xi32>
    %128 = arith.cmpi slt, %71, %127 : vector<1x1x8xi32>
    %129 = arith.andi %126, %128 : vector<1x1x8xi1>
    %130 = arith.extui %129 : vector<1x1x8xi1> to vector<1x1x8xi32>
    %131 = arith.sitofp %130 : vector<1x1x8xi32> to vector<1x1x8xf32>
    %cst_50 = arith.constant 0.707106769 : f32
    %132 = vector.broadcast %cst_50 : f32 to vector<1x1x8xf32>
    %133 = arith.mulf %131, %132 : vector<1x1x8xf32>
    %134 = vector.broadcast %133 : vector<1x1x8xf32> to vector<16x6x8xf32>
    %135 = arith.mulf %66, %134 : vector<16x6x8xf32>
    "tpu.trace_start"() <{level = 10 : i32, message = "ntd,nsd->nts"}> : () -> ()
    %cst_51 = arith.constant dense<0.000000e+00> : vector<16x6x6xf32>
    %136 = tpu.matmul %135, %68, %cst_51 {dimension_numbers = #tpu.dot_dimension_numbers<[2], [2], [1], [1], [0, 0, 0, 1, 1, 1], [0], [0]>} : vector<16x6x8xf32>, vector<16x6x8xf32>, vector<16x6x6xf32> -> vector<16x6x6xf32>
    "tpu.trace_stop"() : () -> ()
    %cst_52 = arith.constant dense<0xFF800000> : vector<16x6xf32>
    %137 = vector.multi_reduction <maximumf>, %136, %cst_52 [2] : vector<16x6x6xf32> to vector<16x6xf32>
    %138 = vector.shape_cast %137 : vector<16x6xf32> to vector<16x6x1xf32>
    %139 = vector.broadcast %138 : vector<16x6x1xf32> to vector<16x6x6xf32>
    %140 = arith.subf %136, %139 : vector<16x6x6xf32>
    %141 = math.exp %140 : vector<16x6x6xf32>
    %cst_53 = arith.constant dense<0.000000e+00> : vector<16x6xf32>
    %142 = vector.multi_reduction <add>, %141, %cst_53 [2] : vector<16x6x6xf32> to vector<16x6xf32>
    %143 = vector.shape_cast %142 : vector<16x6xf32> to vector<16x6x1xf32>
    %144 = tpu.reciprocal %143 {approx = true} : vector<16x6x1xf32> -> vector<16x6x1xf32>
    %145 = vector.broadcast %144 : vector<16x6x1xf32> to vector<16x6x6xf32>
    %146 = arith.mulf %141, %145 : vector<16x6x6xf32>
    %147 = vector.broadcast %131 : vector<1x1x8xf32> to vector<16x6x8xf32>
    %148 = arith.mulf %70, %147 : vector<16x6x8xf32>
    "tpu.trace_start"() <{level = 10 : i32, message = "nts,nsd->ntd"}> : () -> ()
    %cst_54 = arith.constant dense<0.000000e+00> : vector<16x6x8xf32>
    %149 = tpu.matmul %146, %148, %cst_54 {dimension_numbers = #tpu.dot_dimension_numbers<[2], [1], [1], [2], [0, 0, 0, 1, 1, 2], [0], [0]>} : vector<16x6x6xf32>, vector<16x6x8xf32>, vector<16x6x8xf32> -> vector<16x6x8xf32>
    "tpu.trace_stop"() : () -> ()
    %150 = arith.addf %124, %149 : vector<16x6x8xf32>
    %c6_i32_55 = arith.constant 6 : i32
    %151 = vector.broadcast %c6_i32_55 : i32 to vector<1x1x8xi32>
    %152 = arith.cmpi sge, %71, %151 : vector<1x1x8xi32>
    %c8_i32 = arith.constant 8 : i32
    %153 = vector.broadcast %c8_i32 : i32 to vector<1x1x8xi32>
    %154 = arith.cmpi slt, %71, %153 : vector<1x1x8xi32>
    %155 = arith.andi %152, %154 : vector<1x1x8xi1>
    %156 = arith.extui %155 : vector<1x1x8xi1> to vector<1x1x8xi32>
    %157 = arith.sitofp %156 : vector<1x1x8xi32> to vector<1x1x8xf32>
    %cst_56 = arith.constant 0.707106769 : f32
    %158 = vector.broadcast %cst_56 : f32 to vector<1x1x8xf32>
    %159 = arith.mulf %157, %158 : vector<1x1x8xf32>
    %160 = vector.broadcast %159 : vector<1x1x8xf32> to vector<16x6x8xf32>
    %161 = arith.mulf %66, %160 : vector<16x6x8xf32>
    "tpu.trace_start"() <{level = 10 : i32, message = "ntd,nsd->nts"}> : () -> ()
    %cst_57 = arith.constant dense<0.000000e+00> : vector<16x6x6xf32>
    %162 = tpu.matmul %161, %68, %cst_57 {dimension_numbers = #tpu.dot_dimension_numbers<[2], [2], [1], [1], [0, 0, 0, 1, 1, 1], [0], [0]>} : vector<16x6x8xf32>, vector<16x6x8xf32>, vector<16x6x6xf32> -> vector<16x6x6xf32>
    "tpu.trace_stop"() : () -> ()
    %cst_58 = arith.constant dense<0xFF800000> : vector<16x6xf32>
    %163 = vector.multi_reduction <maximumf>, %162, %cst_58 [2] : vector<16x6x6xf32> to vector<16x6xf32>
    %164 = vector.shape_cast %163 : vector<16x6xf32> to vector<16x6x1xf32>
    %165 = vector.broadcast %164 : vector<16x6x1xf32> to vector<16x6x6xf32>
    %166 = arith.subf %162, %165 : vector<16x6x6xf32>
    %167 = math.exp %166 : vector<16x6x6xf32>
    %cst_59 = arith.constant dense<0.000000e+00> : vector<16x6xf32>
    %168 = vector.multi_reduction <add>, %167, %cst_59 [2] : vector<16x6x6xf32> to vector<16x6xf32>
    %169 = vector.shape_cast %168 : vector<16x6xf32> to vector<16x6x1xf32>
    %170 = tpu.reciprocal %169 {approx = true} : vector<16x6x1xf32> -> vector<16x6x1xf32>
    %171 = vector.broadcast %170 : vector<16x6x1xf32> to vector<16x6x6xf32>
    %172 = arith.mulf %167, %171 : vector<16x6x6xf32>
    %173 = vector.broadcast %157 : vector<1x1x8xf32> to vector<16x6x8xf32>
    %174 = arith.mulf %70, %173 : vector<16x6x8xf32>
    "tpu.trace_start"() <{level = 10 : i32, message = "nts,nsd->ntd"}> : () -> ()
    %cst_60 = arith.constant dense<0.000000e+00> : vector<16x6x8xf32>
    %175 = tpu.matmul %172, %174, %cst_60 {dimension_numbers = #tpu.dot_dimension_numbers<[2], [1], [1], [2], [0, 0, 0, 1, 1, 2], [0], [0]>} : vector<16x6x6xf32>, vector<16x6x8xf32>, vector<16x6x8xf32> -> vector<16x6x8xf32>
    "tpu.trace_stop"() : () -> ()
    %176 = arith.addf %150, %175 : vector<16x6x8xf32>
    %177 = vector.shape_cast %176 : vector<16x6x8xf32> to vector<96x8xf32>
    %c0_61 = arith.constant 0 : index
    %c0_62 = arith.constant 0 : index
    %178 = vector.load %arg11[%c0_61, %c0_62] : memref<8x8xf32, #tpu.memory_space<vmem>>, vector<8x8xf32>
    %cst_63 = arith.constant dense<0.000000e+00> : vector<96x8xf32>
    %179 = tpu.matmul %177, %178, %cst_63 {dimension_numbers = #tpu.dot_dimension_numbers<[1], [0], [0], [1], [0, 0, 1, 1], [], []>} : vector<96x8xf32>, vector<8x8xf32>, vector<96x8xf32> -> vector<96x8xf32>
    %c0_64 = arith.constant 0 : index
    %c0_65 = arith.constant 0 : index
    %180 = vector.load %arg12[%c0_64, %c0_65] : memref<1x8xf32, #tpu.memory_space<vmem>>, vector<1x8xf32>
    %181 = vector.broadcast %180 : vector<1x8xf32> to vector<96x8xf32>
    %182 = arith.addf %179, %181 : vector<96x8xf32>
    %183 = arith.addf %59, %182 : vector<96x8xf32>
    %184 = vector.shape_cast %183 : vector<96x8xf32> to vector<16x6x8xf32>
    %cst_66 = arith.constant 0.000000e+00 : f32
    %185 = vector.broadcast %cst_66 : f32 to vector<64x32xf32>
    %186 = vector.extract_strided_slice %184 {offsets = [0, 0, 0], sizes = [16, 4, 8], strides = [1, 1, 1]} : vector<16x6x8xf32> to vector<16x4x8xf32>
    %187 = vector.shape_cast %186 : vector<16x4x8xf32> to vector<64x8xf32>
    %c0_67 = arith.constant 0 : index
    %c0_68 = arith.constant 0 : index
    %c0_69 = arith.constant 0 : index
    %188 = vector.load %arg13[%c0_67, %c0_68, %c0_69] : memref<3x8x32xf32, #tpu.memory_space<vmem>>, vector<1x8x32xf32>
    %189 = vector.shape_cast %188 : vector<1x8x32xf32> to vector<8x32xf32>
    %cst_70 = arith.constant dense<0.000000e+00> : vector<64x32xf32>
    %190 = tpu.matmul %187, %189, %cst_70 {dimension_numbers = #tpu.dot_dimension_numbers<[1], [0], [0], [1], [0, 0, 1, 1], [], []>} : vector<64x8xf32>, vector<8x32xf32>, vector<64x32xf32> -> vector<64x32xf32>
    %191 = arith.addf %185, %190 : vector<64x32xf32>
    %192 = vector.extract_strided_slice %184 {offsets = [0, 1, 0], sizes = [16, 4, 8], strides = [1, 1, 1]} : vector<16x6x8xf32> to vector<16x4x8xf32>
    %193 = vector.shape_cast %192 : vector<16x4x8xf32> to vector<64x8xf32>
    %c1_71 = arith.constant 1 : index
    %c0_72 = arith.constant 0 : index
    %c0_73 = arith.constant 0 : index
    %194 = vector.load %arg13[%c1_71, %c0_72, %c0_73] : memref<3x8x32xf32, #tpu.memory_space<vmem>>, vector<1x8x32xf32>
    %195 = vector.shape_cast %194 : vector<1x8x32xf32> to vector<8x32xf32>
    %cst_74 = arith.constant dense<0.000000e+00> : vector<64x32xf32>
    %196 = tpu.matmul %193, %195, %cst_74 {dimension_numbers = #tpu.dot_dimension_numbers<[1], [0], [0], [1], [0, 0, 1, 1], [], []>} : vector<64x8xf32>, vector<8x32xf32>, vector<64x32xf32> -> vector<64x32xf32>
    %197 = arith.addf %191, %196 : vector<64x32xf32>
    %198 = vector.extract_strided_slice %184 {offsets = [0, 2, 0], sizes = [16, 4, 8], strides = [1, 1, 1]} : vector<16x6x8xf32> to vector<16x4x8xf32>
    %199 = vector.shape_cast %198 : vector<16x4x8xf32> to vector<64x8xf32>
    %c2_75 = arith.constant 2 : index
    %c0_76 = arith.constant 0 : index
    %c0_77 = arith.constant 0 : index
    %200 = vector.load %arg13[%c2_75, %c0_76, %c0_77] : memref<3x8x32xf32, #tpu.memory_space<vmem>>, vector<1x8x32xf32>
    %201 = vector.shape_cast %200 : vector<1x8x32xf32> to vector<8x32xf32>
    %cst_78 = arith.constant dense<0.000000e+00> : vector<64x32xf32>
    %202 = tpu.matmul %199, %201, %cst_78 {dimension_numbers = #tpu.dot_dimension_numbers<[1], [0], [0], [1], [0, 0, 1, 1], [], []>} : vector<64x8xf32>, vector<8x32xf32>, vector<64x32xf32> -> vector<64x32xf32>
    %203 = arith.addf %197, %202 : vector<64x32xf32>
    %c0_79 = arith.constant 0 : index
    %c0_80 = arith.constant 0 : index
    %204 = vector.load %arg14[%c0_79, %c0_80] : memref<1x32xf32, #tpu.memory_space<vmem>>, vector<1x32xf32>
    %205 = vector.broadcast %204 : vector<1x32xf32> to vector<64x32xf32>
    %206 = arith.addf %203, %205 : vector<64x32xf32>
    %207 = vector.extract_strided_slice %206 {offsets = [0, 0], sizes = [64, 16], strides = [1, 1]} : vector<64x32xf32> to vector<64x16xf32>
    %208 = vector.extract_strided_slice %206 {offsets = [0, 16], sizes = [64, 16], strides = [1, 1]} : vector<64x32xf32> to vector<64x16xf32>
    %209 = vector.extract_strided_slice %184 {offsets = [0, 2, 0], sizes = [16, 4, 8], strides = [1, 1, 1]} : vector<16x6x8xf32> to vector<16x4x8xf32>
    %210 = vector.shape_cast %209 : vector<16x4x8xf32> to vector<64x8xf32>
    %211 = vector.extract_strided_slice %207 {offsets = [0, 0], sizes = [64, 8], strides = [1, 1]} : vector<64x16xf32> to vector<64x8xf32>
    %212 = arith.addf %211, %210 : vector<64x8xf32>
    %213 = vector.extract_strided_slice %207 {offsets = [0, 8], sizes = [64, 8], strides = [1, 1]} : vector<64x16xf32> to vector<64x8xf32>
    %214 = tpu.concatenate %212, %213 in 1 : vector<64x8xf32>, vector<64x8xf32> -> vector<64x16xf32>
    %215 = arith.negf %208 : vector<64x16xf32>
    %216 = math.exp %215 : vector<64x16xf32>
    %cst_81 = arith.constant 1.000000e+00 : f32
    %217 = vector.broadcast %cst_81 : f32 to vector<64x16xf32>
    %218 = arith.addf %217, %216 : vector<64x16xf32>
    %219 = arith.divf %217, %218 : vector<64x16xf32>
    %220 = arith.mulf %214, %219 : vector<64x16xf32>
    %221 = vector.shape_cast %220 : vector<64x16xf32> to vector<16x4x16xf32>
    %222 = vector.shape_cast %221 : vector<16x4x16xf32> to vector<64x16xf32>
    %cst_82 = arith.constant dense<0.000000e+00> : vector<64xf32>
    %223 = vector.multi_reduction <add>, %222, %cst_82 [1] : vector<64x16xf32> to vector<64xf32>
    %224 = vector.shape_cast %223 : vector<64xf32> to vector<64x1xf32>
    %c0_83 = arith.constant 0 : index
    %c0_84 = arith.constant 0 : index
    %225 = vector.load %arg15[%c0_83, %c0_84] : memref<64x64xf32, #tpu.memory_space<vmem>>, vector<64x64xf32>
    %cst_85 = arith.constant dense<0.000000e+00> : vector<64x1xf32>
    %226 = tpu.matmul %225, %224, %cst_85 {dimension_numbers = #tpu.dot_dimension_numbers<[1], [0], [0], [1], [0, 0, 1, 1], [], []>} : vector<64x64xf32>, vector<64x1xf32>, vector<64x1xf32> -> vector<64x1xf32>
    %227 = vector.broadcast %226 : vector<64x1xf32> to vector<64x16xf32>
    %228 = arith.subf %222, %227 : vector<64x16xf32>
    %229 = arith.mulf %228, %228 : vector<64x16xf32>
    %cst_86 = arith.constant dense<0.000000e+00> : vector<64xf32>
    %230 = vector.multi_reduction <add>, %229, %cst_86 [1] : vector<64x16xf32> to vector<64xf32>
    %231 = vector.shape_cast %230 : vector<64xf32> to vector<64x1xf32>
    %c0_87 = arith.constant 0 : index
    %c0_88 = arith.constant 0 : index
    %232 = vector.load %arg15[%c0_87, %c0_88] : memref<64x64xf32, #tpu.memory_space<vmem>>, vector<64x64xf32>
    %cst_89 = arith.constant dense<0.000000e+00> : vector<64x1xf32>
    %233 = tpu.matmul %232, %231, %cst_89 {dimension_numbers = #tpu.dot_dimension_numbers<[1], [0], [0], [1], [0, 0, 1, 1], [], []>} : vector<64x64xf32>, vector<64x1xf32>, vector<64x1xf32> -> vector<64x1xf32>
    %cst_90 = arith.constant 9.99999974E-6 : f32
    %234 = vector.broadcast %cst_90 : f32 to vector<64x1xf32>
    %235 = arith.addf %233, %234 : vector<64x1xf32>
    %236 = math.rsqrt %235 : vector<64x1xf32>
    %237 = vector.broadcast %236 : vector<64x1xf32> to vector<64x16xf32>
    %238 = arith.mulf %228, %237 : vector<64x16xf32>
    %c0_91 = arith.constant 0 : index
    %c0_92 = arith.constant 0 : index
    %239 = vector.load %arg16[%c0_91, %c0_92] : memref<64x16xf32, #tpu.memory_space<vmem>>, vector<64x16xf32>
    %240 = arith.mulf %238, %239 : vector<64x16xf32>
    %c0_93 = arith.constant 0 : index
    %c0_94 = arith.constant 0 : index
    %241 = vector.load %arg17[%c0_93, %c0_94] : memref<64x16xf32, #tpu.memory_space<vmem>>, vector<64x16xf32>
    %242 = arith.addf %240, %241 : vector<64x16xf32>
    %c0_95 = arith.constant 0 : index
    %c0_96 = arith.constant 0 : index
    %c0_97 = arith.constant 0 : index
    %243 = vector.load %arg18[%c0_95, %c0_96, %c0_97] : memref<1x64x16xf32, #tpu.memory_space<vmem>>, vector<1x64x16xf32>
    %244 = vector.shape_cast %243 : vector<1x64x16xf32> to vector<64x16xf32>
    %245 = vector.shape_cast %242 : vector<64x16xf32> to vector<1x64x16xf32>
    tpu.vector_store %arg18[%c0_95, %c0_96, %c0_97], %245 {strides = array<i32>} : memref<1x64x16xf32, #tpu.memory_space<vmem>>, vector<1x64x16xf32>,
    return
  }
  func.func @transform_0(%arg0: i32) -> (i32, i32, i32, i32) {
    %c0_i32 = arith.constant 0 : i32
    %c0_i32_0 = arith.constant 0 : i32
    %c0_i32_1 = arith.constant 0 : i32
    %c0_i32_2 = arith.constant 0 : i32
    return %arg0, %c0_i32, %c0_i32_0, %c0_i32_1 : i32, i32, i32, i32
  }
  func.func @transform_1(%arg0: i32) -> (i32, i32, i32) {
    %c0_i32 = arith.constant 0 : i32
    %c0_i32_0 = arith.constant 0 : i32
    %c0_i32_1 = arith.constant 0 : i32
    %c0_i32_2 = arith.constant 0 : i32
    return %c0_i32, %c0_i32_0, %c0_i32_1 : i32, i32, i32
  }
  func.func @transform_2(%arg0: i32) -> (i32, i32) {
    %c0_i32 = arith.constant 0 : i32
    %c0_i32_0 = arith.constant 0 : i32
    %c0_i32_1 = arith.constant 0 : i32
    return %c0_i32, %c0_i32_0 : i32, i32
  }
  func.func @transform_3(%arg0: i32) -> (i32, i32) {
    %c0_i32 = arith.constant 0 : i32
    %c0_i32_0 = arith.constant 0 : i32
    %c0_i32_1 = arith.constant 0 : i32
    return %c0_i32, %c0_i32_0 : i32, i32
  }
  func.func @transform_4(%arg0: i32) -> (i32, i32) {
    %c0_i32 = arith.constant 0 : i32
    %c0_i32_0 = arith.constant 0 : i32
    %c0_i32_1 = arith.constant 0 : i32
    return %c0_i32, %c0_i32_0 : i32, i32
  }
  func.func @transform_5(%arg0: i32) -> (i32, i32) {
    %c0_i32 = arith.constant 0 : i32
    %c0_i32_0 = arith.constant 0 : i32
    %c0_i32_1 = arith.constant 0 : i32
    return %c0_i32, %c0_i32_0 : i32, i32
  }
  func.func @transform_6(%arg0: i32) -> (i32, i32) {
    %c0_i32 = arith.constant 0 : i32
    %c0_i32_0 = arith.constant 0 : i32
    %c0_i32_1 = arith.constant 0 : i32
    return %c0_i32, %c0_i32_0 : i32, i32
  }
  func.func @transform_7(%arg0: i32) -> (i32, i32) {
    %c0_i32 = arith.constant 0 : i32
    %c0_i32_0 = arith.constant 0 : i32
    %c0_i32_1 = arith.constant 0 : i32
    return %c0_i32, %c0_i32_0 : i32, i32
  }
  func.func @transform_8(%arg0: i32) -> (i32, i32) {
    %c0_i32 = arith.constant 0 : i32
    %c0_i32_0 = arith.constant 0 : i32
    %c0_i32_1 = arith.constant 0 : i32
    return %c0_i32, %c0_i32_0 : i32, i32
  }
  func.func @transform_9(%arg0: i32) -> (i32, i32) {
    %c0_i32 = arith.constant 0 : i32
    %c0_i32_0 = arith.constant 0 : i32
    %c0_i32_1 = arith.constant 0 : i32
    return %c0_i32, %c0_i32_0 : i32, i32
  }
  func.func @transform_10(%arg0: i32) -> (i32, i32) {
    %c0_i32 = arith.constant 0 : i32
    %c0_i32_0 = arith.constant 0 : i32
    %c0_i32_1 = arith.constant 0 : i32
    return %c0_i32, %c0_i32_0 : i32, i32
  }
  func.func @transform_11(%arg0: i32) -> (i32, i32) {
    %c0_i32 = arith.constant 0 : i32
    %c0_i32_0 = arith.constant 0 : i32
    %c0_i32_1 = arith.constant 0 : i32
    return %c0_i32, %c0_i32_0 : i32, i32
  }
  func.func @transform_12(%arg0: i32) -> (i32, i32, i32) {
    %c0_i32 = arith.constant 0 : i32
    %c0_i32_0 = arith.constant 0 : i32
    %c0_i32_1 = arith.constant 0 : i32
    %c0_i32_2 = arith.constant 0 : i32
    return %c0_i32, %c0_i32_0, %c0_i32_1 : i32, i32, i32
  }
  func.func @transform_13(%arg0: i32) -> (i32, i32) {
    %c0_i32 = arith.constant 0 : i32
    %c0_i32_0 = arith.constant 0 : i32
    %c0_i32_1 = arith.constant 0 : i32
    return %c0_i32, %c0_i32_0 : i32, i32
  }
  func.func @transform_14(%arg0: i32) -> (i32, i32) {
    %c0_i32 = arith.constant 0 : i32
    %c0_i32_0 = arith.constant 0 : i32
    %c0_i32_1 = arith.constant 0 : i32
    return %c0_i32, %c0_i32_0 : i32, i32
  }
  func.func @transform_15(%arg0: i32) -> (i32, i32) {
    %c0_i32 = arith.constant 0 : i32
    %c0_i32_0 = arith.constant 0 : i32
    %c0_i32_1 = arith.constant 0 : i32
    return %c0_i32, %c0_i32_0 : i32, i32
  }
  func.func @transform_16(%arg0: i32) -> (i32, i32) {
    %c0_i32 = arith.constant 0 : i32
    %c0_i32_0 = arith.constant 0 : i32
    %c0_i32_1 = arith.constant 0 : i32
    return %c0_i32, %c0_i32_0 : i32, i32
  }
  func.func @transform_17(%arg0: i32) -> (i32, i32, i32) {
    %c0_i32 = arith.constant 0 : i32
    %c0_i32_0 = arith.constant 0 : i32
    %c0_i32_1 = arith.constant 0 : i32
    return %arg0, %c0_i32, %c0_i32_0 : i32, i32, i32
  }
}

</mosaic_0001>

<bundles_post_ra>
// kernel: forward.3
= control target key start
LH: loop header
LB: loop body
LE: loop exit
PB: predicated region body
PF: predicated region fallthrough
CT: control target
= control target key end

     0   :  { %s1278_s20 = smov 0   ;;  %s1561_s0 = inlined_call_operand.vmem [shape: f32[2,64,16], index: 0, kind: input, shape index: {}]   ;;  %s1562_s1 = inlined_call_operand.vmem [shape: f32[4,16,32], index: 1, kind: input, shape index: {}]   ;;  %s1563_s2 = inlined_call_operand.vmem [shape: f32[1,32], index: 2, kind: input, shape index: {}]   ;;  %s1564_s3 = inlined_call_operand.vmem [shape: f32[16,16], index: 3, kind: input, shape index: {}]   ;;  %s1565_s4 = inlined_call_operand.vmem [shape: f32[16,16], index: 4, kind: input, shape index: {}]   ;;  %s1566_s5 = inlined_call_operand.vmem [shape: f32[16,8], index: 5, kind: input, shape index: {}]   ;;  %s1567_s6 = inlined_call_operand.vmem [shape: f32[1,8], index: 6, kind: input, shape index: {}]   ;;  %s1568_s7 = inlined_call_operand.vmem [shape: f32[8,8], index: 7, kind: input, shape index: {}]   ;;  %s1569_s8 = inlined_call_operand.vmem [shape: f32[1,8], index: 8, kind: input, shape index: {}]   ;;  %s1570_s9 = inlined_call_operand.vmem [shape: f32[8,16], index: 9, kind: input, shape index: {}]   ;;  %s1571_s10 = inlined_call_operand.vmem [shape: f32[1,16], index: 10, kind: input, shape index: {}]   ;;  %s1572_s11 = inlined_call_operand.vmem [shape: f32[16,8], index: 11, kind: input, shape index: {}]   ;;  %s1573_s12 = inlined_call_operand.vmem [shape: f32[1,8], index: 12, kind: input, shape index: {}]   ;;  %s1574_s13 = inlined_call_operand.vmem [shape: f32[8,1], index: 13, kind: input, shape index: {}]   ;;  %s1575_s14 = inlined_call_operand.<no memory space> [shape: f32[1,1], index: 14, kind: input, shape index: {}]   ;;  %s1576_s15 = inlined_call_operand.vmem [shape: f32[2,16,1], index: 15, kind: output, shape index: {}]  }
   0x1   :  { %v20_v0 = vstv %s1575_s14 }
   0x2   :  { %21 = vst [vmem:[#allocation2] sm:$0x1] %v20_v0 }
   0x3 LB: > { %s1120_s21 = sadd.s32 4294967295, %s1192_s20   ;;  %p1124_p0 = scmp.ge.s32.totalorder %s1192_s20, 1  ;;  %s1192_s20 = sphi %s1278_s20, %s27_s20  }
   0x4   : > { %p439_p1 = scmp.lt.s32.totalorder %s1192_s20, 3 }
   0x6   : > { %p440_p2 = pnand %p1124_p0, %p439_p1 }
   0x7   : > { %p487_p3 = scmp.lt.s32.totalorder (!%p440_p2), %s1120_s21, 1  ;;  %s1194_s29 = smov (!%p440_p2), 112  }
   0x8   : > { %443 = sbr.rel (%p440_p2) target bundleno = 1303 (0x517), region = 80 }
   0xd   : > { %v1130_v1 = vld [vmem:[%s1562_s1 + $0x18] sm:$0xff]  ;;  %v1129_v2 = vld [vmem:[%s1562_s1 + $0x10] sm:$0xff]  ;;  %v522_v3 = vld [vmem:[%s1562_s1 + $0x8] sm:$0xff]  ;;  %s1578_s21 = smov (!%p487_p3, %s1120_s21), 1  ;;  %vm542_vm0 = vcmask 1041409   ;;  %vm544_vm1 = vcmask 1042434  }
   0xe   : > { %1159 = vmatpush.msra.mxu1 %v1130_v1  ;;  %v1136_v4 = vld [vmem:[%s1562_s1 + $0x28] sm:$0xff]  ;;  %582 = vmatpush.msra.mxu0 %v1130_v1  ;;  %v1135_v5 = vld [vmem:[%s1562_s1 + $0x20] sm:$0xff]  ;;  %v1140_v6 = vld [vmem:[%s1562_s1 + $0x38] sm:$0xff]  ;;  %s1157_s14 = sshll.u32 %s1578_s21, 6  ;;  %vm546_vm2 = vcmask 1043459   ;;  %vm548_vm3 = vcmask 1044484  }
   0xf   : > { %699 = vmatpush.msra.mxu2 %v1136_v4  ;;  %v521_v7 = vld [vmem:[%s1562_s1] sm:$0xff]  ;;  %761 = vmatpush.msra.mxu3 %v1140_v6  ;;  %v1139_v8 = vld [vmem:[%s1562_s1 + $0x30] sm:$0xff]  ;;  %s491_s26 = scalar_lea.vmem %s1561_s0, %s1157_s14  ;;  %vm550_vm4 = vcmask 1045509   ;;  %vm552_vm5 = vcmask 1046534   ;;  %vm554_vm6 = vcmask 1047559   ;;  %vm563_vm7 = vcmask 130048  }
  0x10   : > { %1160 = vmatpush.msra.mxu1 %v1129_v2  ;;  %583 = vmatpush.msra.mxu0 %v1129_v2  ;;  %v1316_v9 = vld [vmem:[%s491_s26 + $0x20] sm:$0xff]  ;;  %v1318_v10 = vld [vmem:[%s491_s26 + $0x28] sm:$0xff]  ;;  %v1320_v11 = vld [vmem:[%s491_s26 + $0x30] sm:$0xff]  ;;  %s1158_s17 = sshll.u32 %s1578_s21, 4 }
  0x11   : > { %700 = vmatpush.msra.mxu2 %v1135_v5  ;;  %762 = vmatpush.msra.mxu3 %v1139_v8  ;;  %v1322_v12 = vld [vmem:[%s491_s26 + $0x38] sm:$0xff]  ;;  %v1325_v13 = vrot.slane %v1316_v9, 4  ;;  %v1328_v14 = vrot.slane %v1318_v10, 4  ;;  %v1331_v15 = vrot.slane %v1320_v11, 4  ;;  %v534_v16 = vperm.slane %v1316_v9, 1  ;;  %v1334_v17 = vld [vmem:[%s491_s26] sm:$0xff]  ;;  %s496_s22 = scalar_lea.vmem %s1576_s15, %s1158_s17 }
  0x12   : > { %639 = vmatpush.msrb.mxu1 %v522_v3  ;;  %v1337_v18 = vrot.slane %v1322_v12, 4  ;;  %v536_v19 = vperm.slane %v1318_v10, 1  ;;  %v538_v20 = vperm.slane %v1320_v11, 1  ;;  %v540_v21 = vperm.slane %v1322_v12, 1  ;;  %v1342_v22 = vld [vmem:[%s491_s26 + $0x8] sm:$0xff]  ;;  %v1344_v23 = vld [vmem:[%s491_s26 + $0x10] sm:$0xff] }
  0x13   : > { %v535_v24 = vperm.slane %v1325_v13, 1  ;;  %v537_v25 = vperm.slane %v1328_v14, 1  ;;  %v539_v26 = vperm.slane %v1331_v15, 1  ;;  %v1349_v27 = vld [vmem:[%s491_s26 + $0x18] sm:$0xff]  ;;  %v1352_v28 = vrot.slane %v1334_v17, 4 }
  0x14   : > { %640 = vmatpush.msrb.mxu1 %v521_v7  ;;  %v541_v29 = vperm.slane %v1337_v18, 1  ;;  %v1356_v30 = vrot.slane %v1342_v22, 4  ;;  %v1359_v31 = vrot.slane %v1344_v23, 4  ;;  %v1362_v32 = vrot.slane %v1349_v27, 4 }
  0x15   : > { %v556_v33 = vsel %vm542_vm0, %v535_v24, %v534_v16  ;;  %v651_v34 = vperm.slane %v1334_v17, 2  ;;  %v652_v35 = vperm.slane %v1352_v28, 2  ;;  %v653_v36 = vperm.slane %v1342_v22, 2 }
  0x16   : > { %v557_v37 = vsel %vm544_vm1, %v536_v19, %v556_v33  ;;  %v654_v38 = vperm.slane %v1356_v30, 2  ;;  %v655_v39 = vperm.slane %v1344_v23, 2  ;;  %v656_v40 = vperm.slane %v1359_v31, 2 }
  0x17   : > { %v558_v41 = vsel %vm546_vm2, %v537_v25, %v557_v37  ;;  %v657_v42 = vperm.slane %v1349_v27, 2  ;;  %v658_v43 = vperm.slane %v1362_v32, 2  ;;  %v667_v44 = vsel %vm542_vm0, %v652_v35, %v651_v34 }
  0x18   : > { %v559_v45 = vsel %vm548_vm3, %v538_v20, %v558_v41  ;;  %v668_v46 = vsel %vm544_vm1, %v653_v36, %v667_v44  ;;  %v713_v47 = vperm.slane %v1334_v17, 3  ;;  %v714_v48 = vperm.slane %v1352_v28, 3 }
  0x19   : > { %v560_v49 = vsel %vm550_vm4, %v539_v26, %v559_v45  ;;  %v669_v50 = vsel %vm546_vm2, %v654_v38, %v668_v46  ;;  %v715_v51 = vperm.slane %v1342_v22, 3  ;;  %v716_v52 = vperm.slane %v1356_v30, 3 }
  0x1a   : > { %v561_v53 = vsel %vm552_vm5, %v540_v21, %v560_v49  ;;  %v670_v54 = vsel %vm548_vm3, %v655_v39, %v669_v50  ;;  %v717_v55 = vperm.slane %v1344_v23, 3  ;;  %v718_v56 = vperm.slane %v1359_v31, 3 }
  0x1b   : > { %v562_v57 = vsel %vm554_vm6, %v541_v29, %v561_v53  ;;  %v671_v58 = vsel %vm550_vm4, %v656_v40, %v670_v54  ;;  %v719_v59 = vperm.slane %v1349_v27, 3  ;;  %v720_v60 = vperm.slane %v1362_v32, 3 }
  0x1c   : > { %1132 = vmatmul.msk.f32.vlgmr.msra.gmra.mxu1 %vm563_vm7, %v562_v57  ;;  %v672_v61 = vsel %vm552_vm5, %v657_v42, %v671_v58  ;;  %v729_v62 = vsel %vm542_vm0, %v714_v48, %v713_v47  ;;  %v526_v63 = vperm.slane %v1334_v17, 1  ;;  %v527_v0 = vperm.slane %v1352_v28, 1 }
  0x1d   : > { %v673_v1 = vsel %vm554_vm6, %v658_v43, %v672_v61  ;;  %v730_v2 = vsel %vm544_vm1, %v715_v51, %v729_v62  ;;  %v528_v3 = vperm.slane %v1342_v22, 1  ;;  %v529_v4 = vperm.slane %v1356_v30, 1 }
  0x1e   : > { %1137 = vmatmul.msk.f32.vlgmr.msra.gmra.mxu2 %vm563_vm7, %v673_v1  ;;  %v731_v5 = vsel %vm546_vm2, %v716_v52, %v730_v2  ;;  %v530_v6 = vperm.slane %v1344_v23, 1  ;;  %v531_v7 = vperm.slane %v1359_v31, 1  ;;  %v532_v8 = vperm.slane %v1349_v27, 1 }
  0x1f   : > { %v732_v16 = vsel %vm548_vm3, %v717_v55, %v731_v5  ;;  %v533_v19 = vperm.slane %v1362_v32, 1  ;;  %v543_v20 = vsel %vm542_vm0, %v527_v0, %v526_v63  ;;  %v591_v21 = vperm.slane %v1334_v17, 0 }
  0x20   : > { %v733_v24 = vsel %vm550_vm4, %v718_v56, %v732_v16  ;;  %v545_v25 = vsel %vm544_vm1, %v528_v3, %v543_v20  ;;  %v592_v26 = vperm.slane %v1352_v28, 0  ;;  %v593_v29 = vperm.slane %v1342_v22, 0 }
  0x21   : > { %v734_v33 = vsel %vm552_vm5, %v719_v59, %v733_v24  ;;  %v547_v34 = vsel %vm546_vm2, %v529_v4, %v545_v25  ;;  %v594_v35 = vperm.slane %v1356_v30, 0  ;;  %v595_v36 = vperm.slane %v1344_v23, 0 }
  0x22   : > { %v1419_v37 = vsel %vm554_vm6, %v720_v60, %v734_v33  ;;  %v549_v17 = vsel %vm548_vm3, %v530_v6, %v547_v34  ;;  %v596_v38 = vperm.slane %v1359_v31, 0  ;;  %v597_v39 = vperm.slane %v1349_v27, 0 }
  0x23   : > { %1141 = vmatmul.msk.f32.vlgmr.msra.gmra.mxu3 %vm563_vm7, %v1419_v37  ;;  %v551_v22 = vsel %vm550_vm4, %v531_v7, %v549_v17  ;;  %v598_v28 = vperm.slane %v1362_v32, 0  ;;  %v607_v30 = vsel %vm542_vm0, %v592_v26, %v591_v21  ;;  %v659_v23 = vperm.slane %v1316_v9, 2 }
  0x24   : > { %v553_v40 = vsel %vm552_vm5, %v532_v8, %v551_v22  ;;  %v608_v41 = vsel %vm544_vm1, %v593_v29, %v607_v30  ;;  %v660_v42 = vperm.slane %v1325_v13, 2  ;;  %v661_v31 = vperm.slane %v1318_v10, 2  ;;  %v1170_v22 = vld [vmem:[%s1563_s2] ss:$0 sm:$0xff] }
  0x25   : > { %v555_v27 = vsel %vm554_vm6, %v533_v19, %v553_v40  ;;  %v609_v43 = vsel %vm546_vm2, %v594_v35, %v608_v41  ;;  %v662_v44 = vperm.slane %v1328_v14, 2  ;;  %v663_v32 = vperm.slane %v1320_v11, 2 }
  0x26   : > { %1131 = vmatmul.msk.f32.vlgmr.msra.gmra.mxu0 %vm563_vm7, %v555_v27  ;;  %v610_v45 = vsel %vm548_vm3, %v595_v36, %v609_v43  ;;  %v664_v46 = vperm.slane %v1331_v15, 2  ;;  %v665_v47 = vperm.slane %v1322_v12, 2  ;;  %v666_v48 = vperm.slane %v1337_v18, 2 }
  0x27   : > { %v611_v49 = vsel %vm550_vm4, %v596_v38, %v610_v45  ;;  %v674_v50 = vsel %vm542_vm0, %v660_v42, %v659_v23  ;;  %v721_v51 = vperm.slane %v1316_v9, 3  ;;  %v722_v52 = vperm.slane %v1325_v13, 3 }
  0x28   : > { %v612_v53 = vsel %vm552_vm5, %v597_v39, %v611_v49  ;;  %v675_v54 = vsel %vm544_vm1, %v661_v31, %v674_v50  ;;  %v723_v55 = vperm.slane %v1318_v10, 3  ;;  %v724_v56 = vperm.slane %v1328_v14, 3 }
  0x29   : > { %v613_v57 = vsel %vm554_vm6, %v598_v28, %v612_v53  ;;  %v676_v58 = vsel %vm546_vm2, %v662_v44, %v675_v54  ;;  %v725_v59 = vperm.slane %v1320_v11, 3  ;;  %v726_v60 = vperm.slane %v1331_v15, 3 }
  0x2a   : > { %1133 = vmatmul.msk.f32.vlgmr.msrb.gmra.mxu1 %vm563_vm7, %v613_v57  ;;  %v677_v61 = vsel %vm548_vm3, %v663_v32, %v676_v58  ;;  %v727_v62 = vperm.slane %v1322_v12, 3  ;;  %v728_v63 = vperm.slane %v1337_v18, 3  ;;  %v736_v0 = vsel %vm542_vm0, %v722_v52, %v721_v51 }
  0x2b   : > { %v678_v1 = vsel %vm550_vm4, %v664_v46, %v677_v61  ;;  %v737_v2 = vsel %vm544_vm1, %v723_v55, %v736_v0  ;;  %v599_v3 = vperm.slane %v1316_v9, 0  ;;  %v600_v4 = vperm.slane %v1325_v13, 0 }
  0x2c   : > { %v679_v5 = vsel %vm552_vm5, %v665_v47, %v678_v1  ;;  %v738_v6 = vsel %vm546_vm2, %v724_v56, %v737_v2  ;;  %v601_v7 = vperm.slane %v1318_v10, 0  ;;  %v602_v8 = vperm.slane %v1328_v14, 0 }
  0x2d   : > { %v680_v16 = vsel %vm554_vm6, %v666_v48, %v679_v5  ;;  %v739_v19 = vsel %vm548_vm3, %v725_v59, %v738_v6  ;;  %v603_v20 = vperm.slane %v1320_v11, 0  ;;  %v604_v13 = vperm.slane %v1331_v15, 0 }
  0x2e   : > { %1138 = vmatmul.msk.f32.gmra.mxu2 %vm563_vm7, %v680_v16  ;;  %v740_v9 = vsel %vm550_vm4, %v726_v60, %v739_v19  ;;  %v614_v21 = vsel %vm542_vm0, %v600_v4, %v599_v3  ;;  %v605_v10 = vperm.slane %v1322_v12, 0  ;;  %v606_v26 = vperm.slane %v1337_v18, 0 }
  0x2f   : > { %v741_v24 = vsel %vm552_vm5, %v727_v62, %v740_v9  ;;  %v615_v14 = vsel %vm544_vm1, %v601_v7, %v614_v21 }
  0x30   : > { %v1479_v25 = vsel %vm554_vm6, %v728_v63, %v741_v24  ;;  %v616_v11 = vsel %vm546_vm2, %v602_v8, %v615_v14 }
  0x31   : > { %1142 = vmatmul.msk.f32.gmra.mxu3 %vm563_vm7, %v1479_v25  ;;  %v617_v15 = vsel %vm548_vm3, %v603_v20, %v616_v11  ;;  %vm925_vm3 = vcmask 64512  }
  0x32   : > { %v618_v29 = vsel %vm550_vm4, %v604_v13, %v617_v15  ;;  %vm1062_vm4 = vcmask 7168  }
  0x33   : > { %v619_v33 = vsel %vm552_vm5, %v605_v10, %v618_v29 }
  0x34   : > { %v620_v12 = vsel %vm554_vm6, %v606_v26, %v619_v33 }
  0x35   : > { %1134 = vmatmul.msk.f32.gmra.mxu1 %vm563_vm7, %v620_v12 }
  0x99   : > { %v588_v34 = vpop.f32.mrf.mxu1 }
  0xa1   : > { %v702_v17 = vpop.f32.mrf.mxu2 }
  0xa3   : > { %v585_v35 = vpop.f32.mrf.mxu0 }
  0xa6   : > { %v764_v38 = vpop.f32.mrf.mxu3 }
  0xa7   : > { %v642_v36 = vpop.f32.mrf.mxu1 }
  0xa8   : > { %v643_v18 = vadd.f32 %v642_v36, %v585_v35 }
  0xaa   : > { %v708_v39 = vadd.f32 %v702_v17, %v643_v18 }
  0xac   : > { %v770_v28 = vadd.f32 %v764_v38, %v708_v39  ;;  %v884_v38 = vld [vmem:[%s1566_s5 + $0x8] sm:$0xff]  ;;  %v883_v39 = vld [vmem:[%s1566_s5] sm:$0xff] }
  0xad   : > { %909 = vmatpush.msrb.mxu0 %v884_v38 }
  0xae   : > { %v776_v30 = vadd.f32 %v1170_v22, %v770_v28 }
  0xaf   : > { %910 = vmatpush.msrb.mxu0 %v883_v39 }
  0xb0   : > { %v1143_v23 = vmul.f32 -1.442695, %v776_v30  ;;  %v780_v5 = vadd.f32 %v776_v30, %v1419_v37 }
  0xb1   : > { %v705_v41 = vpop.f32.mrf.mxu2 }
  0xb2   : > { %1176 = vpow2.f32 %v1143_v23  ;;  %v645_v40 = vpop.f32.mrf.mxu1 }
  0xb3   : > { %v646_v42 = vadd.f32 %v645_v40, %v588_v34 }
  0xb4   : > { %v767_v31 = vpop.f32.mrf.mxu3 }
  0xb5   : > { %v709_v27 = vadd.f32 %v705_v41, %v646_v42 }
  0xb7   : > { %v771_v43 = vadd.f32 %v767_v31, %v709_v27 }
  0xb8   : > { %v1177_v44 = vpop.eup %1176 }
  0xb9   : > { %v788_v32 = vadd.f32 1.0, %v1177_v44  ;;  %v777_v45 = vadd.f32 %v1170_v22, %v771_v43  ;;  %v920_v43 = vld [vmem:[%s1568_s7] sm:$0xff] }
  0xba   : > { %947 = vmatpush.msra.mxu1 %v920_v43 }
  0xbb   : > { %1178 = vrcp.f32 %v788_v32  ;;  %v1144_v46 = vmul.f32 -1.442695, %v777_v45  ;;  %v801_v52 = vand.u32 2147483648, %v788_v32  ;;  %v799_v54 = vand.u32 2147483647, %v788_v32 }
  0xbc   : > { %vm795_vm9 = vweird.f32 %v788_v32  ;;  %v781_v16 = vadd.f32 %v777_v45, %v1479_v25 }
  0xbd   : > { %1180 = vpow2.f32 %v1144_v46  ;;  %v802_v56 = vor.u32 1.1754944e-38, %v801_v52  ;;  %vm800_vm11 = vcmp.eq.f32.partialorder %v799_v54, 8.507059e+37  ;;  %v879_v52 = vld [vmem:[%s1565_s4] sm:$0xff] }
  0xc1   : > { %v1179_v47 = vpop.eup %1178 }
  0xc2   : > { %v791_v48 = vmul.f32 %v1179_v47, %v788_v32  ;;  %vm796_vm8 = vweird.f32 %v1179_v47 }
  0xc3   : > { %v1181_v49 = vpop.eup %1180  ;;  %vm797_vm10 = vmor %vm795_vm9, %vm796_vm8 }
  0xc4   : > { %v789_v50 = vadd.f32 1.0, %v1181_v49  ;;  %v792_v51 = vsub.f32 1.0, %v791_v48 }
  0xc6   : > { %1182 = vrcp.f32 %v789_v50  ;;  %v793_v53 = vmul.f32 %v1179_v47, %v792_v51  ;;  %v816_v62 = vand.u32 2147483648, %v789_v50  ;;  %v814_v0 = vand.u32 2147483647, %v789_v50 }
  0xc7   : > { %vm810_vm13 = vweird.f32 %v789_v50 }
  0xc8   : > { %v794_v55 = vadd.f32 %v1179_v47, %v793_v53  ;;  %v817_v2 = vor.u32 1.1754944e-38, %v816_v62  ;;  %vm815_vm15 = vcmp.eq.f32.partialorder %v814_v0, 8.507059e+37 }
  0xca   : > { %v798_v57 = vsel %vm797_vm10, %v1179_v47, %v794_v55 }
  0xcb   : > { %v803_v58 = vsel %vm800_vm11, %v802_v56, %v798_v57  ;;  %v876_v56 = vld [vmem:[%s1564_s3 + $0x8] sm:$0xff] }
  0xcc   : > { %v1183_v59 = vpop.eup %1182  ;;  %822 = vrot.lane.b32.xlu0 %v803_v58, %s1194_s29  ;;  %v880_v58 = vld [vmem:[%s1565_s4 + $0x8] sm:$0xff] }
  0xcd   : > { %v806_v60 = vmul.f32 %v1183_v59, %v789_v50  ;;  %vm811_vm12 = vweird.f32 %v1183_v59  ;;  %v875_v50 = vld [vmem:[%s1564_s3] sm:$0xff] }
  0xce   : > { %vm812_vm14 = vmor %vm810_vm13, %vm811_vm12 }
  0xcf   : > { %v807_v61 = vsub.f32 1.0, %v806_v60  ;;  %v955_v60 = vld [vmem:[%s1570_s9] sm:$0xff] }
  0xd0   : > { %981 = vmatpush.msrb.mxu2 %v955_v60 }
  0xd1   : > { %v808_v63 = vmul.f32 %v1183_v59, %v807_v61  ;;  %v1171_v61 = vld [vmem:[%s1567_s6] ss:$0 sm:$0xff] }
  0xd3   : > { %v809_v1 = vadd.f32 %v1183_v59, %v808_v63 }
  0xd5   : > { %v813_v3 = vsel %vm812_vm14, %v1183_v59, %v809_v1 }
  0xd6   : > { %v818_v4 = vsel %vm815_vm15, %v817_v2, %v813_v3 }
  0xd7   : > { %824 = vrot.lane.b32.xlu0 %v818_v4, %s1194_s29  ;;  %v992_v4 = vld [vmem:[%s1572_s11 + $0x8] sm:$0xff] }
  0xd8   : > { %1017 = vmatpush.msrb.mxu3 %v992_v4 }
 0x13e   : > { %v823_v6 = vpop.permute.xlu0 %822 }
 0x13f   : > { %v828_v7 = vmul.f32 %v823_v6, %v780_v5  ;;  %v991_v5 = vld [vmem:[%s1572_s11] sm:$0xff] }
 0x140   : > { %1018 = vmatpush.msrb.mxu3 %v991_v5  ;;  %v1172_v6 = vld [vmem:[%s1569_s8] ss:$0 sm:$0xff] }
 0x141   : > { %v830_v8 = vsel %vm563_vm7, %v828_v7, 0.0 }
 0x142   : > { %831 = vadd.xlane.f32.xlu1 %v830_v8 }
 0x149   : > { %v825_v19 = vpop.permute.xlu0 %824 }
 0x14a   : > { %v829_v20 = vmul.f32 %v825_v19, %v781_v16 }
 0x14c   : > { %v833_v9 = vsel %vm563_vm7, %v829_v20, 0.0 }
 0x14d   : > { %834 = vadd.xlane.f32.xlu1 %v833_v9  ;;  %v1173_v9 = vld [vmem:[%s1571_s10] ss:$0 sm:$0xff] }
 0x1b5   : > { %v832_v13 = vpop.xlane.xlu1 %831 }
 0x1c0   : > { %v835_v21 = vpop.xlane.xlu1 %834 }
 0x1c1   : > { %v836_v24 = vadd.f32 %v835_v21, %v832_v13 }
 0x1c3   : > { %v837_v10 = vrot.slane %v836_v24, 4 }
 0x1c5   : > { %v838_v14 = vadd.f32 %v837_v10, %v836_v24 }
 0x1c7   : > { %v839_v26 = vrot.slane %v838_v14, 2 }
 0x1c9   : > { %v840_v11 = vadd.f32 %v839_v26, %v838_v14 }
 0x1cb   : > { %v841_v37 = vrot.slane %v840_v11, 1 }
 0x1cd   : > { %v842_v15 = vadd.f32 %v841_v37, %v840_v11  ;;  %v1174_v11 = vld [vmem:[%s1573_s12] ss:$0 sm:$0xff] }
 0x1cf   : > { %v843_v29 = vmul.f32 0.00390625, %v842_v15 }
 0x1d1   : > { %v844_v33 = vsub.f32 %v828_v7, %v843_v29  ;;  %v845_v25 = vsub.f32 %v829_v20, %v843_v29  ;;  %v1028_v20 = vld [vmem:[%s1574_s13] sm:$0xff] }
 0x1d2   : > { %1054 = vmatpush.msra.mxu0 %v1028_v20 }
 0x1d3   : > { %v846_v12 = vmul.f32 %v844_v33, %v844_v33  ;;  %v847_v35 = vmul.f32 %v845_v25, %v845_v25 }
 0x1d5   : > { %v848_v34 = vsel %vm563_vm7, %v846_v12, 0.0  ;;  %v851_v36 = vsel %vm563_vm7, %v847_v35, 0.0 }
 0x1d6   : > { %849 = vadd.xlane.f32.xlu2 %v848_v34 }
 0x1de   : > { %852 = vadd.xlane.f32.xlu2 %v851_v36 }
 0x249   : > { %v850_v17 = vpop.xlane.xlu2 %849 }
 0x251   : > { %v853_v18 = vpop.xlane.xlu2 %852 }
 0x252   : > { %v854_v22 = vadd.f32 %v853_v18, %v850_v17 }
 0x254   : > { %v855_v28 = vrot.slane %v854_v22, 4 }
 0x256   : > { %v856_v30 = vadd.f32 %v855_v28, %v854_v22 }
 0x258   : > { %v857_v23 = vrot.slane %v856_v30, 2 }
 0x25a   : > { %v858_v40 = vadd.f32 %v857_v23, %v856_v30 }
 0x25c   : > { %v859_v41 = vrot.slane %v858_v40, 1 }
 0x25e   : > { %v860_v42 = vadd.f32 %v859_v41, %v858_v40 }
 0x260   : > { %v861_v31 = vmul.f32 0.00390625, %v860_v42 }
 0x262   : > { %v862_v27 = vadd.f32 1e-05, %v861_v31 }
 0x264   : > { %1184 = vrsqrt.f32 %v862_v27  ;;  %vm869_vm1 = vweird.f32 %v862_v27 }
 0x26a   : > { %v1185_v44 = vpop.eup %1184 }
 0x26b   : > { %v864_v32 = vmul.f32 %v1185_v44, %v862_v27  ;;  %vm870_vm0 = vweird.f32 %v1185_v44 }
 0x26c   : > { %vm871_vm2 = vmor %vm869_vm1, %vm870_vm0 }
 0x26d   : > { %v865_v45 = vmul.f32 %v1185_v44, %v864_v32 }
 0x26f   : > { %v866_v46 = vmul.f32 0.5, %v865_v45 }
 0x271   : > { %v867_v47 = vsub.f32 1.5, %v866_v46 }
 0x273   : > { %v868_v48 = vmul.f32 %v1185_v44, %v867_v47 }
 0x275   : > { %v872_v49 = vsel %vm871_vm2, %v1185_v44, %v868_v48 }
 0x276   : > { %v873_v51 = vmul.f32 %v872_v49, %v844_v33  ;;  %v874_v55 = vmul.f32 %v872_v49, %v845_v25  ;;  %v1175_v25 = vld [vmem:[#allocation2] ss:$0 sm:$0xff] }
 0x278   : > { %v877_v53 = vmul.f32 %v875_v50, %v873_v51  ;;  %v878_v57 = vmul.f32 %v876_v56, %v874_v55 }
 0x27a   : > { %v881_v54 = vadd.f32 %v879_v52, %v877_v53  ;;  %v882_v59 = vadd.f32 %v880_v58, %v878_v57 }
 0x27c   : > { %1145 = vmatmul.msk.f32.vlgmr.msrb.gmra.mxu0 %vm563_vm7, %v881_v54 }
 0x284   : > { %1146 = vmatmul.msk.f32.gmra.mxu0 %vm563_vm7, %v882_v59 }
 0x2f9   : > { %v912_v62 = vpop.f32.mrf.mxu0 }
 0x2fa   : > { %v913_v63 = vadd.f32 %v1171_v61, %v912_v62 }
 0x2fc   : > { %v918_v0 = vmax.f32 %v913_v63, 0.0 }
 0x2fe   : > { %1147 = vmatmul.msk.f32.vlgmr.msra.gmra.mxu1 %vm925_vm3, %v918_v0 }
 0x301   : > { %v915_v1 = vpop.f32.mrf.mxu0 }
 0x302   : > { %v916_v2 = vadd.f32 %v1171_v61, %v915_v1 }
 0x304   : > { %v919_v3 = vmax.f32 %v916_v2, 0.0 }
 0x306   : > { %1148 = vmatmul.msk.f32.gmra.mxu1 %vm925_vm3, %v919_v3 }
 0x37b   : > { %v949_v7 = vpop.f32.mrf.mxu1 }
 0x37c   : > { %v950_v8 = vadd.f32 %v1172_v6, %v949_v7 }
 0x37e   : > { %1149 = vmatmul.msk.f32.vlgmr.msrb.gmra.mxu2 %vm925_vm3, %v950_v8 }
 0x383   : > { %v952_v16 = vpop.f32.mrf.mxu1 }
 0x384   : > { %v953_v19 = vadd.f32 %v1172_v6, %v952_v16 }
 0x386   : > { %1150 = vmatmul.msk.f32.gmra.mxu2 %vm925_vm3, %v953_v19 }
 0x401   : > { %v983_v13 = vpop.f32.mrf.mxu2 }
 0x402   : > { %v984_v21 = vadd.f32 %v1173_v9, %v983_v13 }
 0x404   : > { %v989_v24 = vmax.f32 %v984_v21, 0.0 }
 0x406   : > { %1151 = vmatmul.msk.f32.vlgmr.msrb.gmra.mxu3 %vm563_vm7, %v989_v24 }
 0x409   : > { %v986_v10 = vpop.f32.mrf.mxu2 }
 0x40a   : > { %v987_v14 = vadd.f32 %v1173_v9, %v986_v10 }
 0x40c   : > { %v990_v26 = vmax.f32 %v987_v14, 0.0 }
 0x40e   : > { %1152 = vmatmul.msk.f32.gmra.mxu3 %vm563_vm7, %v990_v26 }
 0x489   : > { %v1020_v37 = vpop.f32.mrf.mxu3 }
 0x48a   : > { %v1021_v15 = vadd.f32 %v1174_v11, %v1020_v37 }
 0x48c   : > { %v1026_v29 = vmax.f32 %v1021_v15, 0.0 }
 0x48e   : > { %1153 = vmatmul.msk.f32.vlgmr.msra.gmra.mxu0 %vm925_vm3, %v1026_v29 }
 0x491   : > { %v1023_v33 = vpop.f32.mrf.mxu3 }
 0x492   : > { %v1024_v12 = vadd.f32 %v1174_v11, %v1023_v33 }
 0x494   : > { %v1027_v34 = vmax.f32 %v1024_v12, 0.0 }
 0x496   : > { %1154 = vmatmul.msk.f32.gmra.mxu0 %vm925_vm3, %v1027_v34 }
 0x50b   : > { %v1056_v35 = vpop.f32.mrf.mxu0 }
 0x50c   : > { %v1057_v36 = vadd.f32 %v1175_v25, %v1056_v35 }
 0x50e   : > { %1063 = vst.msk [vmem:[%s496_s22] sm:$0xff] %vm1062_vm4, %v1057_v36 }
 0x513   : > { %v1059_v17 = vpop.f32.mrf.mxu0 }
 0x514   : > { %v1060_v18 = vadd.f32 %v1175_v25, %v1059_v17 }
 0x516   : > { %1064 = vst.msk [vmem:[%s496_s22 + $0x8] sm:$0xff] %vm1062_vm4, %v1060_v18 }
 0x517 PF: > { %s27_s20 = sadd.s32 1, %s1192_s20  }
 0x518   : > { %p24_p4 = scmp.ge.s32.totalorder %s27_s20, 4  }
 0x51a   :  { %26 = sbr.rel (!%p24_p4) target bundleno = 3 (0x3), region = 113 }

// kernel: forward.2
= control target key start
LH: loop header
LB: loop body
LE: loop exit
PB: predicated region body
PF: predicated region fallthrough
CT: control target
= control target key end

     0   :  { %s10987_s24 = smov 0   ;;  %s16110_s0 = inlined_call_operand.vmem [shape: f32[2,16,8,4], index: 0, kind: input, shape index: {}]   ;;  %s16111_s1 = inlined_call_operand.vmem [shape: f32[3,4,32], index: 1, kind: input, shape index: {}]   ;;  %s16112_s2 = inlined_call_operand.vmem [shape: f32[1,32], index: 2, kind: input, shape index: {}]   ;;  %s16113_s3 = inlined_call_operand.vmem [shape: f32[16,8], index: 3, kind: input, shape index: {}]   ;;  %s16114_s4 = inlined_call_operand.vmem [shape: f32[1,8], index: 4, kind: input, shape index: {}]   ;;  %s16115_s5 = inlined_call_operand.vmem [shape: f32[96,96], index: 5, kind: input, shape index: {}]   ;;  %s16116_s6 = inlined_call_operand.vmem [shape: f32[24,8], index: 6, kind: input, shape index: {}]   ;;  %s16117_s7 = inlined_call_operand.vmem [shape: f32[1,8], index: 7, kind: input, shape index: {}]   ;;  %s16118_s8 = inlined_call_operand.vmem [shape: f32[8,24], index: 8, kind: input, shape index: {}]   ;;  %s16119_s9 = inlined_call_operand.vmem [shape: f32[1,24], index: 9, kind: input, shape index: {}]   ;;  %s16120_s10 = inlined_call_operand.vmem [shape: f32[8,8], index: 10, kind: input, shape index: {}]   ;;  %s16121_s11 = inlined_call_operand.vmem [shape: f32[1,8], index: 11, kind: input, shape index: {}]   ;;  %s16122_s12 = inlined_call_operand.vmem [shape: f32[3,8,32], index: 12, kind: input, shape index: {}]   ;;  %s16123_s13 = inlined_call_operand.vmem [shape: f32[1,32], index: 13, kind: input, shape index: {}]   ;;  %s16124_s14 = inlined_call_operand.vmem [shape: f32[64,64], index: 14, kind: input, shape index: {}]   ;;  %s16125_s15 = inlined_call_operand.vmem [shape: f32[64,16], index: 15, kind: input, shape index: {}]   ;;  %s16126_s16 = inlined_call_operand.vmem [shape: f32[64,16], index: 16, kind: input, shape index: {}]   ;;  %s16127_s17 = inlined_call_operand.vmem [shape: f32[2,64,16], index: 17, kind: output, shape index: {}]  }
   0x1   :  { %16316 = sst [smem:[#allocation140_spill]] %s16110_s0 }
   0x2   :  { %16317 = sst [smem:[#allocation141_spill]] %s16111_s1 }
   0x3 LB: > { %s9984_s25 = sadd.s32 4294967295, %s10889_s24   ;;  %p9988_p0 = scmp.ge.s32.totalorder %s10889_s24, 1  ;;  %s10889_s24 = sphi %s10987_s24, %s27_s24  }
   0x4   : > { %p487_p1 = scmp.lt.s32.totalorder %s10889_s24, 3 }
   0x6   : > { %p488_p2 = pnand %p9988_p0, %p487_p1 }
   0x8   : > { %491 = sbr.rel (%p488_p2) target bundleno = 5866 (0x16ea), region = 88 }
   0xd   : > { %s16318_s28 = sld [smem:[#allocation141_spill]]  ;;  %vm891_vm0 = vcmask 1043456   ;;  %p539_p3 = scmp.lt.s32.totalorder %s9984_s25, 1  ;;  %vm630_vm1 = vcmask 1040384   ;;  %vm631_vm2 = vcmask 1042434   ;;  %vm633_vm4 = vcmask 1044484  }
   0xe   : > { %vm632_vm3 = vmor %vm630_vm1, %vm631_vm2  ;;  %s16319_s18 = sld [smem:[#allocation140_spill]]  ;;  %vm635_vm6 = vcmask 1046534   ;;  %v16320_v8 = vmov 0  ;;  %vm866_vm8 = vcmask 31744   ;;  %s10891_s27 = smov 112  }
   0xf   : > { %s16885_s25 = smov (!%p539_p3, %s9984_s25), 1  ;;  %vm634_vm5 = vmor %vm632_vm3, %vm633_vm4  ;;  %s10892_s22 = smov 8  }
  0x10   : > { %s10478_s29 = sshll.u32 %s16885_s25, 7  ;;  %vm11020_vm7 = vmor %vm634_vm5, %vm635_vm6  ;;  %s10893_s23 = smov 16  }
  0x11   : > { %v16321_v8 = vsel %vm11020_vm7, 4294967295, %v16320_v8  ;;  %s10895_s0 = smov 120   ;;  %s10479_s21 = sshll.u32 %s16885_s25, 6 }
  0x12   : > { %16322 = vst [vmem:[#allocation2_spill] sm:$0xff] %v16321_v8 }
  0x13   : > { %v10025_v0 = vld [vmem:[%s16318_s28 + $0x4] sm:$0xf] }
  0x14   : > { %10026 = vmatpush.msk.msra.mxu0 %vm891_vm0, %v10025_v0  ;;  %s11005_s19 = scalar_lea.vmem %s16319_s18, %s10478_s29 }
  0x15   : > { %v11008_v1 = vld [vmem:[%s11005_s19] sm:$0xff]  ;;  %v11011_v2 = vld [vmem:[%s11005_s19 + $0x8] sm:$0xff]  ;;  %v11014_v3 = vld [vmem:[%s11005_s19 + $0x10] sm:$0xff] }
  0x16   : > { %v581_v4 = vrot.slane %v11008_v1, 2  ;;  %v582_v5 = vrot.slane %v11008_v1, 4  ;;  %v583_v6 = vrot.slane %v11011_v2, 2  ;;  %v9993_v7 = vrot.slane %v11008_v1, 9  ;;  %v11046_v28 = vld [vmem:[%s11005_s19 + $0x18] sm:$0xff]  ;;  %v11065_v38 = vld [vmem:[%s11005_s19 + $0x28] sm:$0xff] }
  0x17   : > { %v9994_v9 = vrot.slane %v11008_v1, 13  ;;  %v9995_v10 = vrot.slane %v11011_v2, 9  ;;  %v584_v11 = vrot.slane %v11011_v2, 4  ;;  %v585_v12 = vrot.slane %v11014_v3, 2  ;;  %v11074_v44 = vld [vmem:[%s11005_s19 + $0x30] sm:$0xff]  ;;  %v11097_v61 = vld [vmem:[%s11005_s19 + $0x40] sm:$0xff] }
  0x18   : > { %v639_v13 = vrot.slane %v581_v4, 7  ;;  %v642_v14 = vrot.slane %v582_v5, 7  ;;  %v649_v15 = vrot.slane %v583_v6, 7  ;;  %v586_v16 = vrot.slane %v11014_v3, 4 }
  0x19   : > { %v652_v17 = vrot.slane %v584_v11, 7  ;;  %v9996_v18 = vrot.slane %v11011_v2, 13  ;;  %v9997_v19 = vrot.slane %v11014_v3, 9  ;;  %v659_v20 = vrot.slane %v585_v12, 7 }
  0x1a   : > { %v640_v21 = vsel %vm11020_vm7, %v9993_v7, %v639_v13  ;;  %v641_v22 = vrot.slane %v639_v13, 2  ;;  %v644_v23 = vrot.slane %v642_v14, 2  ;;  %v650_v24 = vsel %vm11020_vm7, %v9995_v10, %v649_v15 }
  0x1b   : > { %799 = vst [vmem:[#allocation1] ss:$4 sm:$0xff] %v640_v21  ;;  %v651_v25 = vrot.slane %v649_v15, 2  ;;  %v654_v26 = vrot.slane %v652_v17, 2  ;;  %v661_v27 = vrot.slane %v659_v20, 2  ;;  %v662_v31 = vrot.slane %v586_v16, 7 }
  0x1c   : > { %v643_v29 = vsel %vm11020_vm7, %v641_v22, %v642_v14  ;;  %v646_v30 = vsel %vm11020_vm7, %v644_v23, %v9994_v9  ;;  %805 = vst [vmem:[#allocation1 + $0x3] ss:$4 sm:$0xff] %v650_v24  ;;  %v660_v34 = vsel %vm11020_vm7, %v9997_v19, %v659_v20  ;;  %v587_v35 = vrot.slane %v11046_v28, 2  ;;  %v11102_v9 = vld [vmem:[%s11005_s19 + $0x20] sm:$0xff]  ;;  %v11118_v21 = vld [vmem:[%s11005_s19 + $0x48] sm:$0xff] }
  0x1d   : > { %801 = vst [vmem:[#allocation1 + $0x1] ss:$4 sm:$0xff] %v643_v29  ;;  %v653_v32 = vsel %vm11020_vm7, %v651_v25, %v652_v17  ;;  %v656_v33 = vsel %vm11020_vm7, %v654_v26, %v9996_v18  ;;  %v588_v36 = vrot.slane %v11046_v28, 4  ;;  %v663_v37 = vsel %vm11020_vm7, %v661_v27, %v662_v31  ;;  %v11126_v25 = vld [vmem:[%s11005_s19 + $0x38] sm:$0xff] }
  0x1e   : > { %803 = vst [vmem:[#allocation1 + $0x2] ss:$4 sm:$0xff] %v646_v30  ;;  %v664_v39 = vrot.slane %v662_v31, 2  ;;  %v9998_v40 = vrot.slane %v11014_v3, 13  ;;  %v9999_v41 = vrot.slane %v11046_v28, 9  ;;  %v669_v42 = vrot.slane %v587_v35, 7 }
  0x1f   : > { %807 = vst [vmem:[#allocation1 + $0x20] ss:$4 sm:$0xff] %v653_v32  ;;  %v672_v43 = vrot.slane %v588_v36, 7  ;;  %v591_v45 = vrot.slane %v11065_v38, 2  ;;  %v10000_v47 = vrot.slane %v11046_v28, 13  ;;  %v592_v48 = vrot.slane %v11065_v38, 4 }
  0x20   : > { %809 = vst [vmem:[#allocation1 + $0x21] ss:$4 sm:$0xff] %v656_v33  ;;  %v666_v46 = vsel %vm11020_vm7, %v664_v39, %v9998_v40  ;;  %v670_v49 = vsel %vm11020_vm7, %v9999_v41, %v669_v42  ;;  %v671_v50 = vrot.slane %v669_v42, 2  ;;  %v593_v53 = vrot.slane %v11074_v44, 2 }
  0x21   : > { %811 = vst [vmem:[#allocation1 + $0x22] ss:$4 sm:$0xff] %v660_v34  ;;  %v674_v51 = vrot.slane %v672_v43, 2  ;;  %v689_v56 = vrot.slane %v591_v45, 7  ;;  %v692_v57 = vrot.slane %v592_v48, 7  ;;  %v594_v58 = vrot.slane %v11074_v44, 4 }
  0x22   : > { %813 = vst [vmem:[#allocation1 + $0x23] ss:$4 sm:$0xff] %v663_v37  ;;  %v673_v54 = vsel %vm11020_vm7, %v671_v50, %v672_v43  ;;  %v699_v59 = vrot.slane %v593_v53, 7  ;;  %v10004_v63 = vrot.slane %v11065_v38, 13  ;;  %v10005_v7 = vrot.slane %v11074_v44, 9 }
  0x23   : > { %v676_v55 = vsel %vm11020_vm7, %v674_v51, %v10000_v47  ;;  %v691_v60 = vrot.slane %v689_v56, 2  ;;  %v694_v62 = vrot.slane %v692_v57, 2  ;;  %v11107_v13 = vrot.slane %v594_v58, 7  ;;  %v11153_v51 = vld [vmem:[%s11005_s19 + $0x50] sm:$0xff] }
  0x24   : > { %v701_v10 = vrot.slane %v699_v59, 2  ;;  %v597_v14 = vrot.slane %v11097_v61, 2  ;;  %v598_v17 = vrot.slane %v11097_v61, 4  ;;  %v589_v19 = vrot.slane %v11102_v9, 2 }
  0x25   : > { %v814_v52 = vld.sshfl [vmem:[#allocation1] sm:$0xff pattern:$0x73625140]  ;;  %v693_v15 = vsel %vm11020_vm7, %v691_v60, %v692_v57  ;;  %v696_v18 = vsel %vm11020_vm7, %v694_v62, %v10004_v63  ;;  %v590_v20 = vrot.slane %v11102_v9, 4  ;;  %v700_v22 = vsel %vm11020_vm7, %v10005_v7, %v699_v59 }
  0x26   : > { %10027 = vmatmul.msk.f32.vlgmr.msra.gmra.mxu0 %vm866_vm8, %v814_v52  ;;  %816 = vst [vmem:[#allocation1] ss:$4 sm:$0xff] %v666_v46  ;;  %v703_v24 = vsel %vm11020_vm7, %v701_v10, %v11107_v13  ;;  %v10001_v26 = vrot.slane %v11102_v9, 9  ;;  %v679_v27 = vrot.slane %v589_v19, 7  ;;  %v719_v30 = vrot.slane %v597_v14, 7  ;;  %v11156_v52 = vld [vmem:[%s11005_s19 + $0x58] sm:$0xff] }
  0x27   : > { %817 = vst [vmem:[#allocation1 + $0x1] ss:$4 sm:$0xff] %v670_v49  ;;  %v682_v29 = vrot.slane %v590_v20, 7  ;;  %v10002_v31 = vrot.slane %v11102_v9, 13  ;;  %v10003_v32 = vrot.slane %v11065_v38, 9  ;;  %v722_v33 = vrot.slane %v598_v17, 7 }
  0x28   : > { %818 = vst [vmem:[#allocation1 + $0x2] ss:$4 sm:$0xff] %v673_v54  ;;  %v680_v34 = vsel %vm11020_vm7, %v10001_v26, %v679_v27  ;;  %v681_v37 = vrot.slane %v679_v27, 2  ;;  %v599_v40 = vrot.slane %v11118_v21, 2  ;;  %v10009_v41 = vrot.slane %v11097_v61, 9 }
  0x29   : > { %819 = vst [vmem:[#allocation1 + $0x3] ss:$4 sm:$0xff] %v676_v55  ;;  %v815_v0 = vld.sshfl [vmem:[#allocation1 + $0x20] sm:$0xff pattern:$0x73625140]  ;;  %v684_v39 = vrot.slane %v682_v29, 2  ;;  %v690_v49 = vsel %vm11020_vm7, %v10003_v32, %v689_v56 }
  0x2a   : > { %v595_v42 = vrot.slane %v11126_v25, 2  ;;  %v596_v43 = vrot.slane %v11126_v25, 4  ;;  %v683_v46 = vsel %vm11020_vm7, %v681_v37, %v682_v29  ;;  %820 = vst [vmem:[#allocation1 + $0x20] ss:$4 sm:$0xff] %v680_v34  ;;  %v721_v50 = vrot.slane %v719_v30, 2  ;;  %v11194_v34 = vld [vmem:[%s11005_s19 + $0x68] sm:$0xff] }
  0x2b   : > { %v686_v47 = vsel %vm11020_vm7, %v684_v39, %v10002_v31  ;;  %821 = vst [vmem:[#allocation1 + $0x21] ss:$4 sm:$0xff] %v683_v46  ;;  %v724_v54 = vrot.slane %v722_v33, 2  ;;  %v10010_v55 = vrot.slane %v11097_v61, 13  ;;  %v602_v57 = vrot.slane %v11153_v51, 4 }
  0x2c   : > { %822 = vst [vmem:[#allocation1 + $0x22] ss:$4 sm:$0xff] %v686_v47  ;;  %v10011_v59 = vrot.slane %v11118_v21, 9  ;;  %v11163_v60 = vrot.slane %v599_v40, 7  ;;  %v709_v56 = vrot.slane %v595_v42, 7  ;;  %v720_v62 = vsel %vm11020_vm7, %v10009_v41, %v719_v30 }
  0x2d   : > { %823 = vst [vmem:[#allocation1 + $0x23] ss:$4 sm:$0xff] %v690_v49  ;;  %v712_v63 = vrot.slane %v596_v43, 7  ;;  %v723_v7 = vsel %vm11020_vm7, %v721_v50, %v722_v33  ;;  %v704_v10 = vrot.slane %v11107_v13, 2  ;;  %v11185_v27 = vrot.slane %v602_v57, 7 }
  0x2e   : > { %10028 = vmatmul.msk.f32.gmra.mxu0 %vm866_vm8, %v815_v0  ;;  %v603_v0 = vrot.slane %v11156_v52, 2  ;;  %v730_v26 = vsel %vm11020_vm7, %v10011_v59, %v11163_v60  ;;  %v711_v13 = vrot.slane %v709_v56, 2  ;;  %v10008_v30 = vrot.slane %v11126_v25, 13  ;;  %v11210_v59 = vld [vmem:[%s11005_s19 + $0x70] sm:$0xff] }
  0x2f   : > { %v714_v29 = vrot.slane %v712_v63, 2  ;;  %v600_v32 = vrot.slane %v11118_v21, 4  ;;  %v744_v41 = vrot.slane %v11185_v27, 2  ;;  %v10014_v46 = vrot.slane %v11153_v51, 13 }
  0x30   : > { %v824_v23 = vld.sshfl [vmem:[#allocation1] sm:$0xff pattern:$0x73625140]  ;;  %v749_v31 = vrot.slane %v603_v0, 7  ;;  %v601_v47 = vrot.slane %v11153_v51, 2  ;;  %v713_v49 = vsel %vm11020_vm7, %v711_v13, %v712_v63 }
  0x31   : > { %826 = vst [vmem:[#allocation1] ss:$4 sm:$0xff] %v693_v15  ;;  %v10006_v15 = vrot.slane %v11074_v44, 13 }
  0x32   : > { %827 = vst [vmem:[#allocation1 + $0x1] ss:$4 sm:$0xff] %v696_v18  ;;  %v604_v18 = vrot.slane %v11156_v52, 4 }
  0x33   : > { %828 = vst [vmem:[#allocation1 + $0x2] ss:$4 sm:$0xff] %v700_v22  ;;  %v726_v22 = vsel %vm11020_vm7, %v724_v54, %v10010_v55  ;;  %v706_v33 = vsel %vm11020_vm7, %v704_v10, %v10006_v15  ;;  %v10015_v54 = vrot.slane %v11156_v52, 9  ;;  %v716_v55 = vsel %vm11020_vm7, %v714_v29, %v10008_v30 }
  0x34   : > { %829 = vst [vmem:[#allocation1 + $0x3] ss:$4 sm:$0xff] %v703_v24  ;;  %v10007_v24 = vrot.slane %v11126_v25, 9  ;;  %v752_v37 = vrot.slane %v604_v18, 7  ;;  %v10016_v10 = vrot.slane %v11156_v52, 13  ;;  %v16129_v15 = vrot.slane %v11194_v34, 4 }
  0x35   : > { %v825_v50 = vld.sshfl [vmem:[#allocation1 + $0x20] sm:$0xff pattern:$0x73625140]  ;;  %v750_v13 = vsel %vm11020_vm7, %v10015_v54, %v749_v31  ;;  %v731_v29 = vrot.slane %v11163_v60, 2 }
  0x36   : > { %10029 = vmatmul.msk.f32.gmra.mxu0 %vm866_vm8, %v824_v23  ;;  %v710_v39 = vsel %vm11020_vm7, %v10007_v24, %v709_v56  ;;  %830 = vst [vmem:[#allocation1 + $0x20] ss:$4 sm:$0xff] %v706_v33  ;;  %v751_v56 = vrot.slane %v749_v31, 2  ;;  %v754_v63 = vrot.slane %v752_v37, 2  ;;  %v739_v24 = vrot.slane %v601_v47, 7 }
  0x37   : > { %831 = vst [vmem:[#allocation1 + $0x21] ss:$4 sm:$0xff] %v710_v39  ;;  %v11228_v39 = vld [vmem:[%s11005_s19 + $0x60] sm:$0xff]  ;;  %v10013_v31 = vrot.slane %v11153_v51, 9  ;;  %v772_v60 = vrot.slane %v16129_v15, 7 }
  0x38   : > { %832 = vst [vmem:[#allocation1 + $0x22] ss:$4 sm:$0xff] %v713_v49  ;;  %v753_v30 = vsel %vm11020_vm7, %v751_v56, %v752_v37  ;;  %v741_v37 = vrot.slane %v739_v24, 2  ;;  %v16131_v54 = vrot.slane %v11228_v39, 2  ;;  %v16132_v56 = vrot.slane %v11210_v59, 4 }
  0x39   : > { %833 = vst [vmem:[#allocation1 + $0x23] ss:$4 sm:$0xff] %v716_v55 }
  0x3b   : > { %v834_v23 = vld.sshfl [vmem:[#allocation1] sm:$0xff pattern:$0x73625140] }
  0x3c   : > { %836 = vst [vmem:[#allocation1] ss:$4 sm:$0xff] %v720_v62  ;;  %v732_v62 = vrot.slane %v600_v32, 7 }
  0x3d   : > { %837 = vst [vmem:[#allocation1 + $0x1] ss:$4 sm:$0xff] %v723_v7  ;;  %v16130_v7 = vrot.slane %v11194_v34, 2 }
  0x3e   : > { %838 = vst [vmem:[#allocation1 + $0x2] ss:$4 sm:$0xff] %v726_v22  ;;  %10030 = vmatmul.msk.f32.gmra.mxu0 %vm866_vm8, %v825_v50  ;;  %v746_v22 = vsel %vm11020_vm7, %v744_v41, %v10014_v46  ;;  %v734_v49 = vrot.slane %v732_v62, 2  ;;  %v10012_v41 = vrot.slane %v11118_v21, 13  ;;  %v756_v46 = vsel %vm11020_vm7, %v754_v63, %v10016_v10 }
  0x3f   : > { %839 = vst [vmem:[#allocation1 + $0x3] ss:$4 sm:$0xff] %v730_v26  ;;  %v609_v26 = vrot.slane %v11210_v59, 2  ;;  %v769_v50 = vrot.slane %v16130_v7, 7  ;;  %v733_v55 = vsel %vm11020_vm7, %v731_v29, %v732_v62  ;;  %v606_v10 = vrot.slane %v11228_v39, 4 }
  0x40   : > { %v835_v15 = vld.sshfl [vmem:[#allocation1 + $0x20] sm:$0xff pattern:$0x73625140]  ;;  %v774_v7 = vrot.slane %v772_v60, 2  ;;  %v10020_v62 = vrot.slane %v11194_v34, 13  ;;  %v10021_v29 = vrot.slane %v11210_v59, 9 }
  0x41   : > { %v779_v63 = vrot.slane %v609_v26, 7  ;;  %840 = vst [vmem:[#allocation1 + $0x20] ss:$4 sm:$0xff] %v733_v55 }
  0x43   : > { %v780_v55 = vsel %vm11020_vm7, %v10021_v29, %v779_v63 }
  0x46   : > { %v844_v33 = vld.sshfl [vmem:[#allocation1] sm:$0xff pattern:$0x73625140]  ;;  %10031 = vmatmul.msk.f32.gmra.mxu0 %vm866_vm8, %v834_v23  ;;  %v743_v23 = vsel %vm11020_vm7, %v741_v37, %v11185_v27  ;;  %v776_v27 = vsel %vm11020_vm7, %v774_v7, %v10020_v62  ;;  %v10017_v37 = vrot.slane %v11228_v39, 9  ;;  %v10019_v7 = vrot.slane %v11194_v34, 9 }
  0x47   : > { %846 = vst [vmem:[#allocation1] ss:$4 sm:$0xff] %v746_v22  ;;  %v736_v22 = vsel %vm11020_vm7, %v734_v49, %v10012_v41  ;;  %v781_v49 = vrot.slane %v779_v63, 2  ;;  %v762_v41 = vrot.slane %v606_v10, 7 }
  0x48   : > { %847 = vst [vmem:[#allocation1 + $0x1] ss:$4 sm:$0xff] %v750_v13  ;;  %v771_v13 = vrot.slane %v769_v50, 2 }
  0x49   : > { %848 = vst [vmem:[#allocation1 + $0x2] ss:$4 sm:$0xff] %v753_v30  ;;  %v740_v30 = vsel %vm11020_vm7, %v10013_v31, %v739_v24  ;;  %v782_v24 = vrot.slane %v16132_v56, 7 }
  0x4a   : > { %849 = vst [vmem:[#allocation1 + $0x3] ss:$4 sm:$0xff] %v756_v46  ;;  %v759_v46 = vrot.slane %v16131_v54, 7  ;;  %v773_v31 = vsel %vm11020_vm7, %v771_v13, %v772_v60  ;;  %v764_v60 = vrot.slane %v762_v41, 2  ;;  %v10018_v13 = vrot.slane %v11228_v39, 13 }
  0x4b   : > { %841 = vst [vmem:[#allocation1 + $0x21] ss:$4 sm:$0xff] %v736_v22  ;;  %v783_v56 = vsel %vm11020_vm7, %v781_v49, %v782_v24 }
  0x4c   : > { %842 = vst [vmem:[#allocation1 + $0x22] ss:$4 sm:$0xff] %v740_v30  ;;  %v761_v54 = vrot.slane %v759_v46, 2  ;;  %v11272_v30 = vld [vmem:[%s11005_s19 + $0x78] sm:$0xff]  ;;  %v760_v63 = vsel %vm11020_vm7, %v10017_v37, %v759_v46  ;;  %v766_v29 = vsel %vm11020_vm7, %v764_v60, %v10018_v13 }
  0x4d   : > { %843 = vst [vmem:[#allocation1 + $0x23] ss:$4 sm:$0xff] %v743_v23  ;;  %v611_v62 = vrot.slane %v11272_v30, 2  ;;  %v612_v23 = vrot.slane %v11272_v30, 4  ;;  %v10023_v37 = vrot.slane %v11272_v30, 9  ;;  %v10024_v60 = vrot.slane %v11272_v30, 13 }
  0x4e   : > { %10032 = vmatmul.msk.f32.gmra.mxu0 %vm866_vm8, %v835_v15  ;;  %v763_v15 = vsel %vm11020_vm7, %v761_v54, %v762_v41  ;;  %v10022_v41 = vrot.slane %v11210_v59, 13 }
  0x4f   : > { %v789_v46 = vrot.slane %v611_v62, 7  ;;  %v792_v54 = vrot.slane %v612_v23, 7 }
  0x51   : > { %v854_v22 = vld.sshfl [vmem:[#allocation1] sm:$0xff pattern:$0x73625140] }
  0x52   : > { %856 = vst [vmem:[#allocation1] ss:$4 sm:$0xff] %v773_v31  ;;  %v770_v31 = vsel %vm11020_vm7, %v10019_v7, %v769_v50  ;;  %v791_v50 = vrot.slane %v789_v46, 2 }
  0x53   : > { %857 = vst [vmem:[#allocation1 + $0x1] ss:$4 sm:$0xff] %v776_v27 }
  0x54   : > { %858 = vst [vmem:[#allocation1 + $0x2] ss:$4 sm:$0xff] %v780_v55  ;;  %v845_v49 = vld.sshfl [vmem:[#allocation1 + $0x20] sm:$0xff pattern:$0x73625140]  ;;  %v794_v55 = vrot.slane %v792_v54, 2  ;;  %v793_v13 = vsel %vm11020_vm7, %v791_v50, %v792_v54 }
  0x55   : > { %859 = vst [vmem:[#allocation1 + $0x3] ss:$4 sm:$0xff] %v783_v56  ;;  %v784_v56 = vrot.slane %v782_v24, 2  ;;  %v790_v24 = vsel %vm11020_vm7, %v10023_v37, %v789_v46 }
  0x56   : > { %850 = vst [vmem:[#allocation1 + $0x20] ss:$4 sm:$0xff] %v760_v63  ;;  %10033 = vmatmul.msk.f32.gmra.mxu0 %vm866_vm8, %v844_v33 }
  0x57   : > { %851 = vst [vmem:[#allocation1 + $0x21] ss:$4 sm:$0xff] %v763_v15  ;;  %v786_v33 = vsel %vm11020_vm7, %v784_v56, %v10022_v41 }
  0x58   : > { %852 = vst [vmem:[#allocation1 + $0x22] ss:$4 sm:$0xff] %v766_v29 }
  0x59   : > { %853 = vst [vmem:[#allocation1 + $0x23] ss:$4 sm:$0xff] %v770_v31 }
  0x5c   : > { %v864_v27 = vld.sshfl [vmem:[#allocation1] sm:$0xff pattern:$0x73625140] }
  0x5d   : > { %948 = vst [vmem:[#allocation1] ss:$4 sm:$0xff] %v11008_v1 }
  0x5e   : > { %950 = vst [vmem:[#allocation1 + $0x1] ss:$4 sm:$0xff] %v581_v4  ;;  %10034 = vmatmul.msk.f32.gmra.mxu0 %vm866_vm8, %v845_v49  ;;  %v796_v4 = vsel %vm11020_vm7, %v794_v55, %v10024_v60 }
  0x5f   : > { %952 = vst [vmem:[#allocation1 + $0x2] ss:$4 sm:$0xff] %v582_v5 }
  0x60   : > { %954 = vst [vmem:[#allocation1 + $0x3] ss:$4 sm:$0xff] %v11011_v2  ;;  %v855_v7 = vld.sshfl [vmem:[#allocation1 + $0x20] sm:$0xff pattern:$0x73625140] }
  0x61   : > { %860 = vst [vmem:[#allocation1 + $0x20] ss:$4 sm:$0xff] %v786_v33 }
  0x62   : > { %861 = vst [vmem:[#allocation1 + $0x21] ss:$4 sm:$0xff] %v790_v24 }
  0x63   : > { %862 = vst [vmem:[#allocation1 + $0x22] ss:$4 sm:$0xff] %v793_v13 }
  0x64   : > { %863 = vst [vmem:[#allocation1 + $0x23] ss:$4 sm:$0xff] %v796_v4  ;;  %v613_v4 = vld [vmem:[%s16318_s28] sm:$0xf] }
  0x65   : > { %10039 = vmatpush.msk.msra.mxu1 %vm891_vm0, %v613_v4  ;;  %10480 = vmatpush.msk.msra.mxu3 %vm891_vm0, %v613_v4 }
  0x66   : > { %10035 = vmatmul.msk.f32.gmra.mxu0 %vm866_vm8, %v854_v22 }
  0x67   : > { %v11309_v5 = vld.sshfl [vmem:[#allocation1] sm:$0xff pattern:$0x73625140] }
  0x68   : > { %965 = vst [vmem:[#allocation1] ss:$4 sm:$0xff] %v586_v16  ;;  %10040 = vmatmul.msk.f32.vlgmr.msra.gmra.mxu1 %vm866_vm8, %v11309_v5 }
  0x69   : > { %966 = vst [vmem:[#allocation1 + $0x1] ss:$4 sm:$0xff] %v11046_v28 }
  0x6a   : > { %967 = vst [vmem:[#allocation1 + $0x2] ss:$4 sm:$0xff] %v587_v35 }
  0x6b   : > { %968 = vst [vmem:[#allocation1 + $0x3] ss:$4 sm:$0xff] %v588_v36  ;;  %v865_v63 = vld.sshfl [vmem:[#allocation1 + $0x20] sm:$0xff pattern:$0x73625140] }
  0x6c   : > { %956 = vst [vmem:[#allocation1 + $0x20] ss:$4 sm:$0xff] %v583_v6 }
  0x6d   : > { %958 = vst [vmem:[#allocation1 + $0x21] ss:$4 sm:$0xff] %v584_v11 }
  0x6e   : > { %960 = vst [vmem:[#allocation1 + $0x22] ss:$4 sm:$0xff] %v11014_v3  ;;  %10036 = vmatmul.msk.f32.gmra.mxu0 %vm866_vm8, %v855_v7 }
  0x6f   : > { %962 = vst [vmem:[#allocation1 + $0x23] ss:$4 sm:$0xff] %v585_v12 }
  0x72   : > { %v11327_v16 = vld.sshfl [vmem:[#allocation1] sm:$0xff pattern:$0x73625140] }
  0x73   : > { %975 = vst [vmem:[#allocation1] ss:$4 sm:$0xff] %v591_v45 }
  0x74   : > { %976 = vst [vmem:[#allocation1 + $0x1] ss:$4 sm:$0xff] %v592_v48  ;;  %v16323_v48 = vrot.slane %v11194_v34, 2 }
  0x75   : > { %977 = vst [vmem:[#allocation1 + $0x2] ss:$4 sm:$0xff] %v11074_v44 }
  0x76   : > { %978 = vst [vmem:[#allocation1 + $0x3] ss:$4 sm:$0xff] %v593_v53  ;;  %v11336_v6 = vld.sshfl [vmem:[#allocation1 + $0x20] sm:$0xff pattern:$0x73625140]  ;;  %10037 = vmatmul.msk.f32.gmra.mxu0 %vm866_vm8, %v864_v27  ;;  %v16324_v53 = vrot.slane %v11194_v34, 4 }
  0x77   : > { %969 = vst [vmem:[#allocation1 + $0x20] ss:$4 sm:$0xff] %v11102_v9  ;;  %10041 = vmatmul.msk.f32.gmra.mxu1 %vm866_vm8, %v11336_v6 }
  0x78   : > { %970 = vst [vmem:[#allocation1 + $0x21] ss:$4 sm:$0xff] %v589_v19 }
  0x79   : > { %971 = vst [vmem:[#allocation1 + $0x22] ss:$4 sm:$0xff] %v590_v20  ;;  %v16326_v20 = vrot.slane %v11210_v59, 4 }
  0x7a   : > { %972 = vst [vmem:[#allocation1 + $0x23] ss:$4 sm:$0xff] %v11065_v38 }
  0x7d   : > { %v11345_v11 = vld.sshfl [vmem:[#allocation1] sm:$0xff pattern:$0x73625140] }
  0x7e   : > { %985 = vst [vmem:[#allocation1] ss:$4 sm:$0xff] %v11097_v61  ;;  %10038 = vmatmul.msk.f32.gmra.mxu0 %vm866_vm8, %v865_v63 }
  0x7f   : > { %986 = vst [vmem:[#allocation1 + $0x1] ss:$4 sm:$0xff] %v597_v14  ;;  %v16325_v14 = vrot.slane %v11228_v39, 2  ;;  %10042 = vmatmul.msk.f32.gmra.mxu1 %vm866_vm8, %v11327_v16 }
  0x80   : > { %987 = vst [vmem:[#allocation1 + $0x2] ss:$4 sm:$0xff] %v598_v17 }
  0x81   : > { %988 = vst [vmem:[#allocation1 + $0x3] ss:$4 sm:$0xff] %v11118_v21  ;;  %v11354_v12 = vld.sshfl [vmem:[#allocation1 + $0x20] sm:$0xff pattern:$0x73625140] }
  0x82   : > { %979 = vst [vmem:[#allocation1 + $0x20] ss:$4 sm:$0xff] %v594_v58 }
  0x83   : > { %980 = vst [vmem:[#allocation1 + $0x21] ss:$4 sm:$0xff] %v11126_v25 }
  0x84   : > { %981 = vst [vmem:[#allocation1 + $0x22] ss:$4 sm:$0xff] %v595_v42 }
  0x85   : > { %982 = vst [vmem:[#allocation1 + $0x23] ss:$4 sm:$0xff] %v596_v43 }
  0x87   : > { %10043 = vmatmul.msk.f32.gmra.mxu1 %vm866_vm8, %v11354_v12 }
  0x88   : > { %v11363_v35 = vld.sshfl [vmem:[#allocation1] sm:$0xff pattern:$0x73625140] }
  0x89   : > { %995 = vst [vmem:[#allocation1] ss:$4 sm:$0xff] %v602_v57 }
  0x8a   : > { %996 = vst [vmem:[#allocation1 + $0x1] ss:$4 sm:$0xff] %v11156_v52 }
  0x8b   : > { %997 = vst [vmem:[#allocation1 + $0x2] ss:$4 sm:$0xff] %v603_v0 }
  0x8c   : > { %998 = vst [vmem:[#allocation1 + $0x3] ss:$4 sm:$0xff] %v604_v18  ;;  %v11372_v36 = vld.sshfl [vmem:[#allocation1 + $0x20] sm:$0xff pattern:$0x73625140] }
  0x8d   : > { %989 = vst [vmem:[#allocation1 + $0x20] ss:$4 sm:$0xff] %v599_v40 }
  0x8e   : > { %990 = vst [vmem:[#allocation1 + $0x21] ss:$4 sm:$0xff] %v600_v32 }
  0x8f   : > { %991 = vst [vmem:[#allocation1 + $0x22] ss:$4 sm:$0xff] %v11153_v51  ;;  %10044 = vmatmul.msk.f32.gmra.mxu1 %vm866_vm8, %v11345_v11 }
  0x90   : > { %992 = vst [vmem:[#allocation1 + $0x23] ss:$4 sm:$0xff] %v601_v47 }
  0x93   : > { %v11381_v45 = vld.sshfl [vmem:[#allocation1] sm:$0xff pattern:$0x73625140] }
  0x94   : > { %1005 = vst [vmem:[#allocation1] ss:$4 sm:$0xff] %v16323_v48 }
  0x95   : > { %1006 = vst [vmem:[#allocation1 + $0x1] ss:$4 sm:$0xff] %v16324_v53 }
  0x96   : > { %1007 = vst [vmem:[#allocation1 + $0x2] ss:$4 sm:$0xff] %v11210_v59 }
  0x97   : > { %1008 = vst [vmem:[#allocation1 + $0x3] ss:$4 sm:$0xff] %v609_v26  ;;  %v11390_v58 = vld.sshfl [vmem:[#allocation1 + $0x20] sm:$0xff pattern:$0x73625140]  ;;  %10045 = vmatmul.msk.f32.gmra.mxu1 %vm866_vm8, %v11372_v36 }
  0x98   : > { %999 = vst [vmem:[#allocation1 + $0x20] ss:$4 sm:$0xff] %v11228_v39 }
  0x99   : > { %1000 = vst [vmem:[#allocation1 + $0x21] ss:$4 sm:$0xff] %v16325_v14 }
  0x9a   : > { %1001 = vst [vmem:[#allocation1 + $0x22] ss:$4 sm:$0xff] %v606_v10 }
  0x9b   : > { %1002 = vst [vmem:[#allocation1 + $0x23] ss:$4 sm:$0xff] %v11194_v34 }
  0x9e   : > { %v11398_v17 = vld.sshfl [vmem:[#allocation1] sm:$0xff pattern:$0x73625140] }
  0x9f   : > { %1095 = vst.sshfl [vmem:[#allocation1] sm:$0xff pattern:$0x73625140] %v11008_v1  ;;  %10046 = vmatmul.msk.f32.gmra.mxu1 %vm866_vm8, %v11363_v35 }
  0xa2   : > { %v11401_v19 = vld.sshfl [vmem:[#allocation1 + $0x20] sm:$0xff pattern:$0x73625140] }
  0xa3   : > { %1009 = vst [vmem:[#allocation1 + $0x20] ss:$4 sm:$0xff] %v16326_v20  ;;  %10049 = vmatmul.msk.f32.vlgmr.msra.gmra.mxu3 %vm866_vm8, %v11401_v19 }
  0xa4   : > { %1010 = vst [vmem:[#allocation1 + $0x21] ss:$4 sm:$0xff] %v11272_v30 }
  0xa5   : > { %1011 = vst [vmem:[#allocation1 + $0x22] ss:$4 sm:$0xff] %v611_v62 }
  0xa6   : > { %v11406_v40 = vld [vmem:[#allocation1 + $0x1] ss:$4 sm:$0xff]  ;;  %v11408_v42 = vld [vmem:[#allocation1 + $0x2] ss:$4 sm:$0xff]  ;;  %v11410_v43 = vld [vmem:[#allocation1 + $0x3] ss:$4 sm:$0xff] }
  0xa7   : > { %1109 = vst.sshfl [vmem:[#allocation1] sm:$0xff pattern:$0x73625140] %v11014_v3  ;;  %10047 = vmatmul.msk.f32.gmra.mxu1 %vm866_vm8, %v11390_v58 }
  0xa8   : > { %1012 = vst [vmem:[#allocation1 + $0x23] ss:$4 sm:$0xff] %v612_v23 }
  0xab   : > { %10050 = vmatmul.msk.f32.gmra.mxu3 %vm866_vm8, %v11398_v17 }
  0xae   : > { %v11417_v1 = vld [vmem:[#allocation1 + $0x1] ss:$4 sm:$0xff]  ;;  %v11419_v57 = vld [vmem:[#allocation1 + $0x2] ss:$4 sm:$0xff]  ;;  %v11421_v0 = vld [vmem:[#allocation1 + $0x3] ss:$4 sm:$0xff] }
  0xaf   : > { %1117 = vst.sshfl [vmem:[#allocation1] sm:$0xff pattern:$0x73625140] %v11102_v9  ;;  %v11424_v18 = vld.sshfl [vmem:[#allocation1 + $0x20] sm:$0xff pattern:$0x73625140]  ;;  %10048 = vmatmul.msk.f32.gmra.mxu1 %vm866_vm8, %v11381_v45 }
  0xb0   : > { %1102 = vst.sshfl [vmem:[#allocation1 + $0x20] sm:$0xff pattern:$0x73625140] %v11011_v2 }
  0xb3   : > { %10051 = vmatmul.msk.f32.gmra.mxu3 %vm866_vm8, %v11424_v18 }
  0xb6   : > { %v11427_v32 = vld [vmem:[#allocation1 + $0x1] ss:$4 sm:$0xff]  ;;  %v11429_v3 = vld [vmem:[#allocation1 + $0x2] ss:$4 sm:$0xff]  ;;  %v11431_v47 = vld [vmem:[#allocation1 + $0x3] ss:$4 sm:$0xff] }
  0xb7   : > { %1125 = vst.sshfl [vmem:[#allocation1] sm:$0xff pattern:$0x73625140] %v11074_v44  ;;  %v11434_v26 = vld [vmem:[#allocation1 + $0x21] ss:$4 sm:$0xff] }
  0xb8   : > { %v11436_v10 = vld [vmem:[#allocation1 + $0x22] ss:$4 sm:$0xff]  ;;  %v11438_v22 = vld [vmem:[#allocation1 + $0x23] ss:$4 sm:$0xff] }
  0xb9   : > { %1113 = vst.sshfl [vmem:[#allocation1 + $0x20] sm:$0xff pattern:$0x73625140] %v11046_v28 }
  0xbe   : > { %v11441_v9 = vld [vmem:[#allocation1 + $0x1] ss:$4 sm:$0xff]  ;;  %v11443_v62 = vld [vmem:[#allocation1 + $0x2] ss:$4 sm:$0xff]  ;;  %v11445_v2 = vld [vmem:[#allocation1 + $0x3] ss:$4 sm:$0xff] }
  0xbf   : > { %1133 = vst.sshfl [vmem:[#allocation1] sm:$0xff pattern:$0x73625140] %v11097_v61 }
  0xc0   : > { %v11448_v15 = vld [vmem:[#allocation1 + $0x21] ss:$4 sm:$0xff]  ;;  %v11450_v23 = vld [vmem:[#allocation1 + $0x22] ss:$4 sm:$0xff]  ;;  %v11452_v44 = vld [vmem:[#allocation1 + $0x23] ss:$4 sm:$0xff] }
  0xc1   : > { %1121 = vst.sshfl [vmem:[#allocation1 + $0x20] sm:$0xff pattern:$0x73625140] %v11065_v38 }
  0xc6   : > { %v11455_v29 = vld [vmem:[#allocation1 + $0x1] ss:$4 sm:$0xff]  ;;  %v11457_v49 = vld [vmem:[#allocation1 + $0x2] ss:$4 sm:$0xff]  ;;  %v11459_v28 = vld [vmem:[#allocation1 + $0x3] ss:$4 sm:$0xff] }
  0xc7   : > { %1141 = vst.sshfl [vmem:[#allocation1] sm:$0xff pattern:$0x73625140] %v11153_v51 }
  0xc8   : > { %v11462_v31 = vld [vmem:[#allocation1 + $0x21] ss:$4 sm:$0xff]  ;;  %v11464_v46 = vld [vmem:[#allocation1 + $0x22] ss:$4 sm:$0xff]  ;;  %v11466_v61 = vld [vmem:[#allocation1 + $0x23] ss:$4 sm:$0xff] }
  0xc9   : > { %1129 = vst.sshfl [vmem:[#allocation1 + $0x20] sm:$0xff pattern:$0x73625140] %v11126_v25 }
  0xce   : > { %v11469_v54 = vld [vmem:[#allocation1 + $0x1] ss:$4 sm:$0xff]  ;;  %v11471_v56 = vld [vmem:[#allocation1 + $0x2] ss:$4 sm:$0xff]  ;;  %v11473_v38 = vld [vmem:[#allocation1 + $0x3] ss:$4 sm:$0xff] }
  0xcf   : > { %1149 = vst.sshfl [vmem:[#allocation1] sm:$0xff pattern:$0x73625140] %v11228_v39 }
  0xd0   : > { %v11476_v41 = vld [vmem:[#allocation1 + $0x21] ss:$4 sm:$0xff]  ;;  %v11478_v27 = vld [vmem:[#allocation1 + $0x22] ss:$4 sm:$0xff]  ;;  %v11480_v51 = vld [vmem:[#allocation1 + $0x23] ss:$4 sm:$0xff] }
  0xd1   : > { %1137 = vst.sshfl [vmem:[#allocation1 + $0x20] sm:$0xff pattern:$0x73625140] %v11118_v21 }
  0xd6   : > { %v11483_v37 = vld [vmem:[#allocation1 + $0x1] ss:$4 sm:$0xff]  ;;  %v11485_v50 = vld [vmem:[#allocation1 + $0x2] ss:$4 sm:$0xff]  ;;  %v11487_v25 = vld [vmem:[#allocation1 + $0x3] ss:$4 sm:$0xff] }
  0xd7   : > { %1157 = vst.sshfl [vmem:[#allocation1] sm:$0xff pattern:$0x73625140] %v11210_v59 }
  0xd8   : > { %v11490_v55 = vld [vmem:[#allocation1 + $0x21] ss:$4 sm:$0xff]  ;;  %v11492_v60 = vld [vmem:[#allocation1 + $0x22] ss:$4 sm:$0xff]  ;;  %v11494_v39 = vld [vmem:[#allocation1 + $0x23] ss:$4 sm:$0xff] }
  0xd9   : > { %1145 = vst.sshfl [vmem:[#allocation1 + $0x20] sm:$0xff pattern:$0x73625140] %v11156_v52  ;;  %v10052_v52 = vld [vmem:[%s16318_s28 + $0x8] sm:$0xf] }
  0xda   : > { %1167 = vst [vmem:[#allocation1] ss:$4 sm:$0xff] %v11406_v40  ;;  %10053 = vmatpush.msk.msra.mxu2 %vm891_vm0, %v10052_v52  ;;  %10481 = vmatpush.msk.msrb.mxu3 %vm891_vm0, %v10052_v52 }
  0xde   : > { %v11498_v33 = vld [vmem:[#allocation1 + $0x1] ss:$4 sm:$0xff]  ;;  %v11500_v21 = vld [vmem:[#allocation1 + $0x2] ss:$4 sm:$0xff]  ;;  %v11502_v24 = vld [vmem:[#allocation1 + $0x3] ss:$4 sm:$0xff] }
  0xdf   : > { %1169 = vst [vmem:[#allocation1 + $0x1] ss:$4 sm:$0xff] %v11408_v42 }
  0xe0   : > { %v11505_v13 = vld [vmem:[#allocation1 + $0x21] ss:$4 sm:$0xff]  ;;  %v11507_v59 = vld [vmem:[#allocation1 + $0x22] ss:$4 sm:$0xff]  ;;  %v11509_v7 = vld [vmem:[#allocation1 + $0x23] ss:$4 sm:$0xff] }
  0xe1   : > { %1153 = vst.sshfl [vmem:[#allocation1 + $0x20] sm:$0xff pattern:$0x73625140] %v11194_v34 }
  0xe2   : > { %1171 = vst [vmem:[#allocation1 + $0x2] ss:$4 sm:$0xff] %v11410_v43 }
  0xe3   : > { %1173 = vst [vmem:[#allocation1 + $0x3] ss:$4 sm:$0xff] %v11434_v26 }
  0xe8   : > { %v11528_v34 = vld [vmem:[#allocation1 + $0x21] ss:$4 sm:$0xff]  ;;  %v11530_v63 = vld [vmem:[#allocation1 + $0x22] ss:$4 sm:$0xff]  ;;  %v11532_v48 = vld [vmem:[#allocation1 + $0x23] ss:$4 sm:$0xff] }
  0xe9   : > { %1161 = vst.sshfl [vmem:[#allocation1 + $0x20] sm:$0xff pattern:$0x73625140] %v11272_v30 }
  0xea   : > { %1175 = vst [vmem:[#allocation1 + $0x20] ss:$4 sm:$0xff] %v11436_v10  ;;  %v1182_v53 = vld.sshfl [vmem:[#allocation1] sm:$0xff pattern:$0x73625140] }
  0xeb   : > { %1184 = vst [vmem:[#allocation1] ss:$4 sm:$0xff] %v11421_v0  ;;  %10054 = vmatmul.msk.f32.vlgmr.msra.gmra.mxu2 %vm866_vm8, %v1182_v53 }
  0xec   : > { %1185 = vst [vmem:[#allocation1 + $0x1] ss:$4 sm:$0xff] %v11448_v15 }
  0xed   : > { %1186 = vst [vmem:[#allocation1 + $0x2] ss:$4 sm:$0xff] %v11450_v23 }
  0xee   : > { %1187 = vst [vmem:[#allocation1 + $0x3] ss:$4 sm:$0xff] %v11452_v44 }
  0xf0   : > { %v11545_v30 = vld [vmem:[#allocation1 + $0x21] ss:$4 sm:$0xff]  ;;  %v11547_v5 = vld [vmem:[#allocation1 + $0x22] ss:$4 sm:$0xff]  ;;  %v11549_v14 = vld [vmem:[#allocation1 + $0x23] ss:$4 sm:$0xff] }
  0xf1   : > { %1177 = vst [vmem:[#allocation1 + $0x21] ss:$4 sm:$0xff] %v11438_v22 }
  0xf2   : > { %1179 = vst [vmem:[#allocation1 + $0x22] ss:$4 sm:$0xff] %v11417_v1 }
  0xf3   : > { %1181 = vst [vmem:[#allocation1 + $0x23] ss:$4 sm:$0xff] %v11419_v57 }
  0xf5   : > { %v1192_v19 = vld.sshfl [vmem:[#allocation1] sm:$0xff pattern:$0x73625140] }
  0xf6   : > { %1194 = vst [vmem:[#allocation1] ss:$4 sm:$0xff] %v11464_v46 }
  0xf7   : > { %1195 = vst [vmem:[#allocation1 + $0x1] ss:$4 sm:$0xff] %v11466_v61 }
  0xf8   : > { %1196 = vst [vmem:[#allocation1 + $0x2] ss:$4 sm:$0xff] %v11441_v9 }
  0xf9   : > { %1197 = vst [vmem:[#allocation1 + $0x3] ss:$4 sm:$0xff] %v11443_v62 }
  0xfa   : > { %v1183_v6 = vld.sshfl [vmem:[#allocation1 + $0x20] sm:$0xff pattern:$0x73625140] }
  0xfb   : > { %1188 = vst [vmem:[#allocation1 + $0x20] ss:$4 sm:$0xff] %v11427_v32  ;;  %10055 = vmatmul.msk.f32.gmra.mxu2 %vm866_vm8, %v1183_v6 }
  0xfc   : > { %1189 = vst [vmem:[#allocation1 + $0x21] ss:$4 sm:$0xff] %v11429_v3 }
  0xfd   : > { %1190 = vst [vmem:[#allocation1 + $0x22] ss:$4 sm:$0xff] %v11431_v47 }
  0xfe   : > { %1191 = vst [vmem:[#allocation1 + $0x23] ss:$4 sm:$0xff] %v11462_v31 }
 0x100   : > { %v1202_v16 = vld.sshfl [vmem:[#allocation1] sm:$0xff pattern:$0x73625140] }
 0x101   : > { %1204 = vst [vmem:[#allocation1] ss:$4 sm:$0xff] %v11455_v29 }
 0x102   : > { %1205 = vst [vmem:[#allocation1 + $0x1] ss:$4 sm:$0xff] %v11457_v49 }
 0x103   : > { %1206 = vst [vmem:[#allocation1 + $0x2] ss:$4 sm:$0xff] %v11459_v28  ;;  %10056 = vmatmul.msk.f32.gmra.mxu2 %vm866_vm8, %v1192_v19 }
 0x104   : > { %1207 = vst [vmem:[#allocation1 + $0x3] ss:$4 sm:$0xff] %v11490_v55 }
 0x105   : > { %v1193_v17 = vld.sshfl [vmem:[#allocation1 + $0x20] sm:$0xff pattern:$0x73625140] }
 0x106   : > { %1198 = vst [vmem:[#allocation1 + $0x20] ss:$4 sm:$0xff] %v11445_v2 }
 0x107   : > { %1199 = vst [vmem:[#allocation1 + $0x21] ss:$4 sm:$0xff] %v11476_v41 }
 0x108   : > { %1200 = vst [vmem:[#allocation1 + $0x22] ss:$4 sm:$0xff] %v11478_v27 }
 0x109   : > { %1201 = vst [vmem:[#allocation1 + $0x23] ss:$4 sm:$0xff] %v11480_v51 }
 0x10b   : > { %v1212_v12 = vld.sshfl [vmem:[#allocation1] sm:$0xff pattern:$0x73625140]  ;;  %10057 = vmatmul.msk.f32.gmra.mxu2 %vm866_vm8, %v1193_v17 }
 0x10c   : > { %1214 = vst [vmem:[#allocation1] ss:$4 sm:$0xff] %v11473_v38 }
 0x10d   : > { %1215 = vst [vmem:[#allocation1 + $0x1] ss:$4 sm:$0xff] %v11505_v13 }
 0x10e   : > { %1216 = vst [vmem:[#allocation1 + $0x2] ss:$4 sm:$0xff] %v11507_v59 }
 0x10f   : > { %1217 = vst [vmem:[#allocation1 + $0x3] ss:$4 sm:$0xff] %v11509_v7 }
 0x110   : > { %v1203_v11 = vld.sshfl [vmem:[#allocation1 + $0x20] sm:$0xff pattern:$0x73625140] }
 0x111   : > { %1208 = vst [vmem:[#allocation1 + $0x20] ss:$4 sm:$0xff] %v11492_v60 }
 0x112   : > { %1209 = vst [vmem:[#allocation1 + $0x21] ss:$4 sm:$0xff] %v11494_v39 }
 0x113   : > { %1210 = vst [vmem:[#allocation1 + $0x22] ss:$4 sm:$0xff] %v11469_v54  ;;  %10058 = vmatmul.msk.f32.gmra.mxu2 %vm866_vm8, %v1202_v16 }
 0x114   : > { %1211 = vst [vmem:[#allocation1 + $0x23] ss:$4 sm:$0xff] %v11471_v56 }
 0x116   : > { %v1222_v20 = vld.sshfl [vmem:[#allocation1] sm:$0xff pattern:$0x73625140] }
 0x117   : > { %1224 = vst [vmem:[#allocation1] ss:$4 sm:$0xff] %v11530_v63 }
 0x118   : > { %1225 = vst [vmem:[#allocation1 + $0x1] ss:$4 sm:$0xff] %v11532_v48 }
 0x119   : > { %1226 = vst [vmem:[#allocation1 + $0x2] ss:$4 sm:$0xff] %v11498_v33 }
 0x11a   : > { %1227 = vst [vmem:[#allocation1 + $0x3] ss:$4 sm:$0xff] %v11500_v21 }
 0x11b   : > { %v1213_v36 = vld.sshfl [vmem:[#allocation1 + $0x20] sm:$0xff pattern:$0x73625140]  ;;  %10059 = vmatmul.msk.f32.gmra.mxu2 %vm866_vm8, %v1203_v11 }
 0x11c   : > { %1218 = vst [vmem:[#allocation1 + $0x20] ss:$4 sm:$0xff] %v11483_v37 }
 0x11d   : > { %1219 = vst [vmem:[#allocation1 + $0x21] ss:$4 sm:$0xff] %v11485_v50 }
 0x11e   : > { %1220 = vst [vmem:[#allocation1 + $0x22] ss:$4 sm:$0xff] %v11487_v25 }
 0x11f   : > { %1221 = vst [vmem:[#allocation1 + $0x23] ss:$4 sm:$0xff] %v11528_v34 }
 0x121   : > { %v1232_v35 = vld.sshfl [vmem:[#allocation1] sm:$0xff pattern:$0x73625140] }
 0x122   : > { %1342 = vst [vmem:[#allocation1] ss:$4 sm:$0xff] %v11406_v40 }
 0x123   : > { %1344 = vst [vmem:[#allocation1 + $0x1] ss:$4 sm:$0xff] %v11408_v42  ;;  %10060 = vmatmul.msk.f32.gmra.mxu2 %vm866_vm8, %v1212_v12 }
 0x124   : > { %1346 = vst [vmem:[#allocation1 + $0x2] ss:$4 sm:$0xff] %v11410_v43 }
 0x125   : > { %1348 = vst [vmem:[#allocation1 + $0x3] ss:$4 sm:$0xff] %v11434_v26 }
 0x126   : > { %v1223_v18 = vld.sshfl [vmem:[#allocation1 + $0x20] sm:$0xff pattern:$0x73625140] }
 0x127   : > { %1228 = vst [vmem:[#allocation1 + $0x20] ss:$4 sm:$0xff] %v11502_v24  ;;  %10063 = vmatmul.msk.f32.vlgmr.msrb.gmra.mxu3 %vm866_vm8, %v1223_v18 }
 0x128   : > { %1229 = vst [vmem:[#allocation1 + $0x21] ss:$4 sm:$0xff] %v11545_v30 }
 0x129   : > { %1230 = vst [vmem:[#allocation1 + $0x22] ss:$4 sm:$0xff] %v11547_v5 }
 0x12a   : > { %1231 = vst [vmem:[#allocation1 + $0x23] ss:$4 sm:$0xff] %v11549_v14 }
 0x12b   : > { %10061 = vmatmul.msk.f32.gmra.mxu2 %vm866_vm8, %v1213_v36 }
 0x12c   : > { %v11618_v58 = vld.sshfl [vmem:[#allocation1] sm:$0xff pattern:$0x73625140] }
 0x12d   : > { %1359 = vst [vmem:[#allocation1] ss:$4 sm:$0xff] %v11421_v0 }
 0x12e   : > { %1360 = vst [vmem:[#allocation1 + $0x1] ss:$4 sm:$0xff] %v11448_v15 }
 0x12f   : > { %1361 = vst [vmem:[#allocation1 + $0x2] ss:$4 sm:$0xff] %v11450_v23  ;;  %10064 = vmatmul.msk.f32.gmra.mxu3 %vm866_vm8, %v1232_v35  ;;  %v11688_v23 = vld [vmem:[%s16112_s2] ss:$0 sm:$0xff] }
 0x130   : > { %1362 = vst [vmem:[#allocation1 + $0x3] ss:$4 sm:$0xff] %v11452_v44 }
 0x131   : > { %v1233_v45 = vld.sshfl [vmem:[#allocation1 + $0x20] sm:$0xff pattern:$0x73625140] }
 0x132   : > { %1350 = vst [vmem:[#allocation1 + $0x20] ss:$4 sm:$0xff] %v11436_v10 }
 0x133   : > { %1352 = vst [vmem:[#allocation1 + $0x21] ss:$4 sm:$0xff] %v11438_v22  ;;  %10062 = vmatmul.msk.f32.gmra.mxu2 %vm866_vm8, %v1222_v20  ;;  %v1059_v22 = vpop.f32.mrf.mxu1 }
 0x134   : > { %1354 = vst [vmem:[#allocation1 + $0x22] ss:$4 sm:$0xff] %v11417_v1  ;;  %v912_v1 = vpop.f32.mrf.mxu0 }
 0x135   : > { %1356 = vst [vmem:[#allocation1 + $0x23] ss:$4 sm:$0xff] %v11419_v57 }
 0x137   : > { %v11630_v40 = vld.sshfl [vmem:[#allocation1] sm:$0xff pattern:$0x73625140]  ;;  %10065 = vmatmul.msk.f32.gmra.mxu3 %vm866_vm8, %v1233_v45 }
 0x138   : > { %1369 = vst [vmem:[#allocation1] ss:$4 sm:$0xff] %v11464_v46 }
 0x139   : > { %1370 = vst [vmem:[#allocation1 + $0x1] ss:$4 sm:$0xff] %v11466_v61 }
 0x13a   : > { %1371 = vst [vmem:[#allocation1 + $0x2] ss:$4 sm:$0xff] %v11441_v9 }
 0x13b   : > { %1372 = vst [vmem:[#allocation1 + $0x3] ss:$4 sm:$0xff] %v11443_v62  ;;  %v1062_v15 = vpop.f32.mrf.mxu1 }
 0x13c   : > { %v11637_v42 = vld.sshfl [vmem:[#allocation1 + $0x20] sm:$0xff pattern:$0x73625140] }
 0x13d   : > { %1363 = vst [vmem:[#allocation1 + $0x20] ss:$4 sm:$0xff] %v11427_v32  ;;  %v915_v32 = vpop.f32.mrf.mxu0 }
 0x13e   : > { %1364 = vst [vmem:[#allocation1 + $0x21] ss:$4 sm:$0xff] %v11429_v3 }
 0x13f   : > { %1365 = vst [vmem:[#allocation1 + $0x22] ss:$4 sm:$0xff] %v11431_v47 }
 0x140   : > { %1366 = vst [vmem:[#allocation1 + $0x23] ss:$4 sm:$0xff] %v11462_v31 }
 0x142   : > { %v11643_v43 = vld.sshfl [vmem:[#allocation1] sm:$0xff pattern:$0x73625140] }
 0x143   : > { %1379 = vst [vmem:[#allocation1] ss:$4 sm:$0xff] %v11455_v29  ;;  %v1065_v46 = vpop.f32.mrf.mxu1 }
 0x144   : > { %1380 = vst [vmem:[#allocation1 + $0x1] ss:$4 sm:$0xff] %v11457_v49 }
 0x145   : > { %1381 = vst [vmem:[#allocation1 + $0x2] ss:$4 sm:$0xff] %v11459_v28  ;;  %v918_v26 = vpop.f32.mrf.mxu0 }
 0x146   : > { %1382 = vst [vmem:[#allocation1 + $0x3] ss:$4 sm:$0xff] %v11490_v55  ;;  %v1066_v55 = vadd.f32 %v1065_v46, %v918_v26 }
 0x147   : > { %v11649_v57 = vld.sshfl [vmem:[#allocation1 + $0x20] sm:$0xff pattern:$0x73625140] }
 0x148   : > { %1373 = vst [vmem:[#allocation1 + $0x20] ss:$4 sm:$0xff] %v11445_v2  ;;  %v1060_v2 = vadd.f32 %v1059_v22, %v912_v1 }
 0x149   : > { %1374 = vst [vmem:[#allocation1 + $0x21] ss:$4 sm:$0xff] %v11476_v41 }
 0x14a   : > { %1375 = vst [vmem:[#allocation1 + $0x22] ss:$4 sm:$0xff] %v11478_v27 }
 0x14b   : > { %1376 = vst [vmem:[#allocation1 + $0x23] ss:$4 sm:$0xff] %v11480_v51  ;;  %v1068_v41 = vpop.f32.mrf.mxu1 }
 0x14d   : > { %v11655_v0 = vld.sshfl [vmem:[#allocation1] sm:$0xff pattern:$0x73625140]  ;;  %v921_v9 = vpop.f32.mrf.mxu0 }
 0x14e   : > { %1389 = vst [vmem:[#allocation1] ss:$4 sm:$0xff] %v11473_v38  ;;  %v1069_v53 = vadd.f32 %v1068_v41, %v921_v9 }
 0x14f   : > { %1390 = vst [vmem:[#allocation1 + $0x1] ss:$4 sm:$0xff] %v11505_v13 }
 0x150   : > { %1391 = vst [vmem:[#allocation1 + $0x2] ss:$4 sm:$0xff] %v11507_v59 }
 0x151   : > { %1392 = vst [vmem:[#allocation1 + $0x3] ss:$4 sm:$0xff] %v11509_v7 }
 0x152   : > { %v11661_v3 = vld.sshfl [vmem:[#allocation1 + $0x20] sm:$0xff pattern:$0x73625140] }
 0x153   : > { %1383 = vst [vmem:[#allocation1 + $0x20] ss:$4 sm:$0xff] %v11492_v60 }
 0x154   : > { %1384 = vst [vmem:[#allocation1 + $0x21] ss:$4 sm:$0xff] %v11494_v39 }
 0x155   : > { %1385 = vst [vmem:[#allocation1 + $0x22] ss:$4 sm:$0xff] %v11469_v54  ;;  %v924_v44 = vpop.f32.mrf.mxu0 }
 0x156   : > { %1386 = vst [vmem:[#allocation1 + $0x23] ss:$4 sm:$0xff] %v11471_v56  ;;  %v1063_v56 = vadd.f32 %v1062_v15, %v915_v32 }
 0x158   : > { %v11667_v47 = vld.sshfl [vmem:[#allocation1] sm:$0xff pattern:$0x73625140] }
 0x159   : > { %1399 = vst [vmem:[#allocation1] ss:$4 sm:$0xff] %v11530_v63  ;;  %v11705_v63 = vpop.f32.mrf.mxu3 }
 0x15a   : > { %1400 = vst [vmem:[#allocation1 + $0x1] ss:$4 sm:$0xff] %v11532_v48 }
 0x15b   : > { %1401 = vst [vmem:[#allocation1 + $0x2] ss:$4 sm:$0xff] %v11498_v33 }
 0x15c   : > { %1402 = vst [vmem:[#allocation1 + $0x3] ss:$4 sm:$0xff] %v11500_v21 }
 0x15d   : > { %v11673_v10 = vld.sshfl [vmem:[#allocation1 + $0x20] sm:$0xff pattern:$0x73625140]  ;;  %v11694_v61 = vpop.f32.mrf.mxu0 }
 0x15e   : > { %1393 = vst [vmem:[#allocation1 + $0x20] ss:$4 sm:$0xff] %v11483_v37 }
 0x15f   : > { %1394 = vst [vmem:[#allocation1 + $0x21] ss:$4 sm:$0xff] %v11485_v50 }
 0x160   : > { %1395 = vst [vmem:[#allocation1 + $0x22] ss:$4 sm:$0xff] %v11487_v25 }
 0x161   : > { %1396 = vst [vmem:[#allocation1 + $0x23] ss:$4 sm:$0xff] %v11528_v34  ;;  %v11715_v32 = vpop.f32.mrf.mxu3 }
 0x165   : > { %v11699_v50 = vpop.f32.mrf.mxu0 }
 0x168   : > { %v11679_v62 = vld.sshfl [vmem:[#allocation1 + $0x20] sm:$0xff pattern:$0x73625140] }
 0x169   : > { %1403 = vst [vmem:[#allocation1 + $0x20] ss:$4 sm:$0xff] %v11502_v24  ;;  %v1071_v24 = vpop.f32.mrf.mxu1 }
 0x16a   : > { %1404 = vst [vmem:[#allocation1 + $0x21] ss:$4 sm:$0xff] %v11545_v30  ;;  %v1072_v18 = vadd.f32 %v1071_v24, %v924_v44 }
 0x16b   : > { %1405 = vst [vmem:[#allocation1 + $0x22] ss:$4 sm:$0xff] %v11547_v5 }
 0x16c   : > { %1406 = vst [vmem:[#allocation1 + $0x23] ss:$4 sm:$0xff] %v11549_v14 }
 0x16d   : > { %v11708_v14 = vpop.f32.mrf.mxu0 }
 0x16e   : > { %v1278_v29 = vpop.f32.mrf.mxu2 }
 0x16f   : > { %v1314_v49 = vadd.f32 %v1278_v29, %v1060_v2 }
 0x171   : > { %v11691_v28 = vadd.f32 %v11688_v23, %v1314_v49  ;;  %v1074_v20 = vpop.f32.mrf.mxu1 }
 0x173   : > { %v10066_v31 = vmul.f32 -1.442695, %v11691_v28 }
 0x175   : > { %10531 = vpow2.f32 %v10066_v31  ;;  %v11717_v22 = vpop.f32.mrf.mxu0 }
 0x179   : > { %v1077_v41 = vpop.f32.mrf.mxu1 }
 0x17b   : > { %v10532_v54 = vpop.eup %10531 }
 0x17c   : > { %v1481_v38 = vadd.f32 1.0, %v10532_v54 }
 0x17e   : > { %10533 = vrcp.f32 %v1481_v38  ;;  %v1281_v27 = vpop.f32.mrf.mxu2  ;;  %v1504_v59 = vand.u32 2147483648, %v1481_v38  ;;  %v1502_v4 = vand.u32 2147483647, %v1481_v38  ;;  %vm1498_vm10 = vweird.f32 %v1481_v38 }
 0x17f   : > { %v1315_v51 = vadd.f32 %v1281_v27, %v1063_v56  ;;  %v1075_v56 = vadd.f32 %v1074_v20, %v11694_v61  ;;  %v939_v61 = vpop.f32.mrf.mxu0 }
 0x180   : > { %v1505_v19 = vor.u32 1.1754944e-38, %v1504_v59  ;;  %vm1503_vm12 = vcmp.eq.f32.partialorder %v1502_v4, 8.507059e+37 }
 0x181   : > { %v11697_v37 = vadd.f32 %v11688_v23, %v1315_v51 }
 0x183   : > { %v10067_v25 = vmul.f32 -1.442695, %v11697_v37 }
 0x184   : > { %v10534_v60 = vpop.eup %10533 }
 0x185   : > { %10535 = vpow2.f32 %v10067_v25  ;;  %v1494_v39 = vmul.f32 %v10534_v60, %v1481_v38  ;;  %vm1499_vm9 = vweird.f32 %v10534_v60 }
 0x186   : > { %v1284_v33 = vpop.f32.mrf.mxu2  ;;  %vm1500_vm11 = vmor %vm1498_vm10, %vm1499_vm9 }
 0x187   : > { %v1316_v21 = vadd.f32 %v1284_v33, %v1066_v55  ;;  %v1495_v13 = vsub.f32 1.0, %v1494_v39 }
 0x189   : > { %v11703_v7 = vadd.f32 %v11688_v23, %v1316_v21  ;;  %v1496_v52 = vmul.f32 %v10534_v60, %v1495_v13  ;;  %v11725_v13 = vpop.f32.mrf.mxu3 }
 0x18b   : > { %v10536_v34 = vpop.eup %10535  ;;  %v10068_v48 = vmul.f32 -1.442695, %v11703_v7  ;;  %v1497_v30 = vadd.f32 %v10534_v60, %v1496_v52 }
 0x18c   : > { %v1482_v5 = vadd.f32 1.0, %v10536_v34 }
 0x18d   : > { %10537 = vpow2.f32 %v10068_v48  ;;  %v1501_v6 = vsel %vm1500_vm11, %v10534_v60, %v1497_v30  ;;  %v1078_v30 = vadd.f32 %v1077_v41, %v11699_v50 }
 0x18e   : > { %10539 = vrcp.f32 %v1482_v5  ;;  %v1287_v16 = vpop.f32.mrf.mxu2  ;;  %v1506_v17 = vsel %vm1503_vm12, %v1505_v19, %v1501_v6  ;;  %v1519_v29 = vand.u32 2147483648, %v1482_v5  ;;  %v1517_v46 = vand.u32 2147483647, %v1482_v5 }
 0x18f   : > { %v1317_v12 = vadd.f32 %v1287_v16, %v1069_v53  ;;  %1685 = vrot.lane.b32.xlu0 %v1506_v17, %s10891_s27  ;;  %vm1513_vm14 = vweird.f32 %v1482_v5 }
 0x190   : > { %v1520_v25 = vor.u32 1.1754944e-38, %v1519_v29  ;;  %vm1518_vm0 = vcmp.eq.f32.partialorder %v1517_v46, 8.507059e+37  ;;  %v942_v29 = vpop.f32.mrf.mxu0 }
 0x191   : > { %v11712_v11 = vadd.f32 %v11688_v23, %v1317_v12  ;;  %v1080_v12 = vpop.f32.mrf.mxu1 }
 0x193   : > { %v10538_v36 = vpop.eup %10537  ;;  %v10069_v35 = vmul.f32 -1.442695, %v11712_v11 }
 0x194   : > { %v10540_v45 = vpop.eup %10539  ;;  %v1483_v1 = vadd.f32 1.0, %v10538_v36 }
 0x195   : > { %10541 = vpow2.f32 %v10069_v35  ;;  %v1509_v26 = vmul.f32 %v10540_v45, %v1482_v5  ;;  %vm1514_vm13 = vweird.f32 %v10540_v45 }
 0x196   : > { %10543 = vrcp.f32 %v1483_v1  ;;  %v1290_v9 = vpop.f32.mrf.mxu2  ;;  %vm1515_vm15 = vmor %vm1513_vm14, %vm1514_vm13  ;;  %v1534_v59 = vand.u32 2147483648, %v1483_v1  ;;  %v1532_v34 = vand.u32 2147483647, %v1483_v1  ;;  %vm1528_vm2 = vweird.f32 %v1483_v1 }
 0x197   : > { %v1318_v2 = vadd.f32 %v1290_v9, %v1072_v18  ;;  %v1510_v15 = vsub.f32 1.0, %v1509_v26  ;;  %v1087_v18 = vadd.f32 %v11705_v63, %v939_v61 }
 0x198   : > { %v1535_v16 = vor.u32 1.1754944e-38, %v1534_v59  ;;  %vm1533_vm4 = vcmp.eq.f32.partialorder %v1532_v34, 8.507059e+37 }
 0x199   : > { %v11720_v49 = vadd.f32 %v11688_v23, %v1318_v2  ;;  %v1511_v31 = vmul.f32 %v10540_v45, %v1510_v15 }
 0x19b   : > { %v10542_v44 = vpop.eup %10541  ;;  %v10070_v54 = vmul.f32 -1.442695, %v11720_v49  ;;  %v1512_v38 = vadd.f32 %v10540_v45, %v1511_v31  ;;  %v1081_v31 = vadd.f32 %v1080_v12, %v11708_v14  ;;  %v945_v12 = vpop.f32.mrf.mxu0 }
 0x19c   : > { %v10544_v27 = vpop.eup %10543  ;;  %v1484_v51 = vadd.f32 1.0, %v10542_v44 }
 0x19d   : > { %10545 = vpow2.f32 %v10070_v54  ;;  %v1516_v55 = vsel %vm1515_vm15, %v10540_v45, %v1512_v38  ;;  %v1524_v60 = vmul.f32 %v10544_v27, %v1483_v1  ;;  %vm1529_vm1 = vweird.f32 %v10544_v27 }
 0x19e   : > { %10547 = vrcp.f32 %v1484_v51  ;;  %v1293_v39 = vpop.f32.mrf.mxu2  ;;  %v1521_v33 = vsel %vm1518_vm0, %v1520_v25, %v1516_v55  ;;  %vm1530_vm3 = vmor %vm1528_vm2, %vm1529_vm1  ;;  %v1547_v1 = vand.u32 2147483647, %v1484_v51  ;;  %v1549_v26 = vand.u32 2147483648, %v1484_v51 }
 0x19f   : > { %v1319_v21 = vadd.f32 %v1293_v39, %v1075_v56  ;;  %1687 = vrot.lane.b32.xlu0 %v1521_v33, %s10891_s27  ;;  %v1525_v24 = vsub.f32 1.0, %v1524_v60  ;;  %vm1543_vm6 = vweird.f32 %v1484_v51 }
 0x1a0   : > { %vm1548_vm10 = vcmp.eq.f32.partialorder %v1547_v1, 8.507059e+37  ;;  %v1550_v41 = vor.u32 1.1754944e-38, %v1549_v26  ;;  %v1093_v1 = vadd.f32 %v11725_v13, %v945_v12 }
 0x1a1   : > { %v11728_v52 = vadd.f32 %v11688_v23, %v1319_v21  ;;  %v1526_v4 = vmul.f32 %v10544_v27, %v1525_v24  ;;  %v1083_v21 = vpop.f32.mrf.mxu1 }
 0x1a3   : > { %v10546_v48 = vpop.eup %10545  ;;  %v10071_v53 = vmul.f32 -1.442695, %v11728_v52  ;;  %v1527_v5 = vadd.f32 %v10544_v27, %v1526_v4 }
 0x1a4   : > { %v10548_v19 = vpop.eup %10547  ;;  %v11732_v6 = vadd.f32 1.0, %v10546_v48 }
 0x1a5   : > { %10549 = vpow2.f32 %v10071_v53  ;;  %v1531_v17 = vsel %vm1530_vm3, %v10544_v27, %v1527_v5  ;;  %v1539_v20 = vmul.f32 %v10548_v19, %v1484_v51  ;;  %vm1544_vm5 = vweird.f32 %v10548_v19 }
 0x1a6   : > { %10551 = vrcp.f32 %v11732_v6  ;;  %v1296_v36 = vpop.f32.mrf.mxu2  ;;  %v1536_v35 = vsel %vm1533_vm4, %v1535_v16, %v1531_v17  ;;  %vm1545_vm9 = vmor %vm1543_vm6, %vm1544_vm5  ;;  %v1090_v51 = vadd.f32 %v11715_v32, %v942_v29  ;;  %v1562_v61 = vand.u32 2147483647, %v11732_v6 }
 0x1a7   : > { %v1320_v45 = vadd.f32 %v1296_v36, %v1078_v30  ;;  %1689 = vrot.lane.b32.xlu1 %v1536_v35, %s10891_s27  ;;  %v1540_v50 = vsub.f32 1.0, %v1539_v20  ;;  %v1564_v59 = vand.u32 2147483648, %v11732_v6  ;;  %v1084_v53 = vadd.f32 %v1083_v21, %v11717_v22 }
 0x1a8   : > { %vm1558_vm12 = vweird.f32 %v11732_v6  ;;  %vm1563_vm14 = vcmp.eq.f32.partialorder %v1562_v61, 8.507059e+37 }
 0x1a9   : > { %v11738_v9 = vadd.f32 %v11688_v23, %v1320_v45  ;;  %v1541_v2 = vmul.f32 %v10548_v19, %v1540_v50  ;;  %v1565_v20 = vor.u32 1.1754944e-38, %v1564_v59 }
 0x1aa   : > { %v1305_v15 = vpop.f32.mrf.mxu3 }
 0x1ab   : > { %v10550_v46 = vpop.eup %10549  ;;  %v1323_v44 = vadd.f32 %v1305_v15, %v1087_v18  ;;  %v10072_v54 = vmul.f32 -1.442695, %v11738_v9  ;;  %v1542_v63 = vadd.f32 %v10548_v19, %v1541_v2 }
 0x1ac   : > { %v10552_v56 = vpop.eup %10551  ;;  %v11742_v38 = vadd.f32 1.0, %v10550_v46 }
 0x1ad   : > { %v11745_v27 = vadd.f32 %v11688_v23, %v1323_v44  ;;  %10553 = vpow2.f32 %v10072_v54  ;;  %v1546_v25 = vsel %vm1545_vm9, %v10548_v19, %v1542_v63  ;;  %v1554_v55 = vmul.f32 %v10552_v56, %v11732_v6 }
 0x1ae   : > { %10555 = vrcp.f32 %v11742_v38  ;;  %v1299_v14 = vpop.f32.mrf.mxu2  ;;  %v1551_v60 = vsel %vm1548_vm10, %v1550_v41, %v1546_v25  ;;  %vm1559_vm11 = vweird.f32 %v10552_v56  ;;  %v1577_v29 = vand.u32 2147483647, %v11742_v38 }
 0x1af   : > { %v10075_v39 = vmul.f32 -1.442695, %v11745_v27  ;;  %v1321_v33 = vadd.f32 %v1299_v14, %v1081_v31  ;;  %1691 = vrot.lane.b32.xlu1 %v1551_v60, %s10891_s27  ;;  %v1555_v24 = vsub.f32 1.0, %v1554_v55  ;;  %vm1560_vm13 = vmor %vm1558_vm12, %vm1559_vm11  ;;  %v1579_v31 = vand.u32 2147483648, %v11742_v38 }
 0x1b0   : > { %vm1573_vm0 = vweird.f32 %v11742_v38  ;;  %vm1578_vm2 = vcmp.eq.f32.partialorder %v1577_v29, 8.507059e+37 }
 0x1b1   : > { %10557 = vpow2.f32 %v10075_v39  ;;  %v11755_v4 = vadd.f32 %v11688_v23, %v1321_v33  ;;  %v1556_v34 = vmul.f32 %v10552_v56, %v1555_v24  ;;  %v1580_v14 = vor.u32 1.1754944e-38, %v1579_v31 }
 0x1b2   : > { %v1308_v48 = vpop.f32.mrf.mxu3 }
 0x1b3   : > { %v10554_v30 = vpop.eup %10553  ;;  %v1324_v32 = vadd.f32 %v1308_v48, %v1090_v51  ;;  %v10073_v5 = vmul.f32 -1.442695, %v11755_v4  ;;  %v1557_v19 = vadd.f32 %v10552_v56, %v1556_v34  ;;  %v1734_v48 = vld [vmem:[%s16113_s3 + $0x8] sm:$0xff] }
 0x1b4   : > { %v10556_v16 = vpop.eup %10555  ;;  %v11760_v17 = vadd.f32 1.0, %v10554_v30  ;;  %1790 = vmatpush.msra.mxu3 %v1734_v48 }
 0x1b5   : > { %v11763_v36 = vadd.f32 %v11688_v23, %v1324_v32  ;;  %10559 = vpow2.f32 %v10073_v5  ;;  %v1561_v35 = vsel %vm1560_vm13, %v10552_v56, %v1557_v19  ;;  %v1569_v22 = vmul.f32 %v10556_v16, %v11742_v38 }
 0x1b6   : > { %10561 = vrcp.f32 %v11760_v17  ;;  %v1302_v18 = vpop.f32.mrf.mxu2  ;;  %v1566_v45 = vsel %vm1563_vm14, %v1565_v20, %v1561_v35  ;;  %vm1574_vm15 = vweird.f32 %v10556_v16  ;;  %v1592_v61 = vand.u32 2147483647, %v11760_v17 }
 0x1b7   : > { %v10558_v50 = vpop.eup %10557  ;;  %v10076_v6 = vmul.f32 -1.442695, %v11763_v36  ;;  %v1322_v26 = vadd.f32 %v1302_v18, %v1084_v53  ;;  %1693 = vrot.lane.b32.xlu2 %v1566_v45, %s10891_s27  ;;  %v1570_v2 = vsub.f32 1.0, %v1569_v22  ;;  %vm1575_vm1 = vmor %vm1573_vm0, %vm1574_vm15  ;;  %vm1588_vm4 = vweird.f32 %v11760_v17 }
 0x1b8   : > { %v11770_v15 = vadd.f32 1.0, %v10558_v50  ;;  %vm1593_vm5 = vcmp.eq.f32.partialorder %v1592_v61, 8.507059e+37 }
 0x1b9   : > { %10563 = vpow2.f32 %v10076_v6  ;;  %v11775_v46 = vadd.f32 %v11688_v23, %v1322_v26  ;;  %v1571_v44 = vmul.f32 %v10556_v16, %v1570_v2 }
 0x1ba   : > { %10565 = vrcp.f32 %v11770_v15  ;;  %v1311_v54 = vpop.f32.mrf.mxu3  ;;  %vm1633_vm9 = vweird.f32 %v11770_v15  ;;  %v1637_v18 = vand.u32 2147483647, %v11770_v15 }
 0x1bb   : > { %v10560_v13 = vpop.eup %10559  ;;  %v1325_v63 = vadd.f32 %v1311_v54, %v1093_v1  ;;  %v10074_v56 = vmul.f32 -1.442695, %v11775_v46  ;;  %v1572_v41 = vadd.f32 %v10556_v16, %v1571_v44  ;;  %v1733_v54 = vld [vmem:[%s16113_s3] sm:$0xff] }
 0x1bc   : > { %v10562_v25 = vpop.eup %10561  ;;  %v11780_v55 = vadd.f32 1.0, %v10560_v13  ;;  %vm11819_vm13 = vcmp.eq.f32.partialorder %v1637_v18, 8.507059e+37  ;;  %1791 = vmatpush.msra.mxu3 %v1733_v54  ;;  %v10526_v54 = vld [vmem:[%s16114_s4] ss:$0 sm:$0xff] }
 0x1bd   : > { %v11783_v60 = vadd.f32 %v11688_v23, %v1325_v63  ;;  %10567 = vpow2.f32 %v10074_v56  ;;  %v1576_v39 = vsel %vm1575_vm1, %v10556_v16, %v1572_v41  ;;  %v1584_v51 = vmul.f32 %v10562_v25, %v11760_v17 }
 0x1be   : > { %10569 = vrcp.f32 %v11780_v55  ;;  %v1581_v33 = vsel %vm1578_vm2, %v1580_v14, %v1576_v39  ;;  %v1594_v23 = vand.u32 2147483648, %v11760_v17  ;;  %vm1589_vm3 = vweird.f32 %v10562_v25 }
 0x1bf   : > { %v10564_v21 = vpop.eup %10563  ;;  %v10077_v24 = vmul.f32 -1.442695, %v11783_v60  ;;  %1695 = vrot.lane.b32.xlu2 %v1581_v33, %s10891_s27  ;;  %v1585_v38 = vsub.f32 1.0, %v1584_v51  ;;  %vm1590_vm6 = vmor %vm1588_vm4, %vm1589_vm3  ;;  %v1639_v17 = vand.u32 2147483648, %v11770_v15  ;;  %v1607_v29 = vand.u32 2147483647, %v11780_v55 }
 0x1c0   : > { %v10566_v59 = vpop.eup %10565  ;;  %v11790_v34 = vadd.f32 1.0, %v10564_v21  ;;  %v1595_v12 = vor.u32 1.1754944e-38, %v1594_v23  ;;  %v1609_v31 = vand.u32 2147483648, %v11780_v55  ;;  %vm1603_vm14 = vweird.f32 %v11780_v55 }
 0x1c1   : > { %10571 = vpow2.f32 %v10077_v24  ;;  %v1586_v53 = vmul.f32 %v10562_v25, %v1585_v38  ;;  %v1629_v30 = vmul.f32 %v10566_v59, %v11770_v15  ;;  %vm1634_vm10 = vweird.f32 %v10566_v59 }
 0x1c2   : > { %10573 = vrcp.f32 %v11790_v34  ;;  %vm11813_vm11 = vmor %vm1633_vm9, %vm1634_vm10  ;;  %v1640_v41 = vor.u32 1.1754944e-38, %v1639_v17  ;;  %vm1608_vm0 = vcmp.eq.f32.partialorder %v1607_v29, 8.507059e+37  ;;  %v1610_v51 = vor.u32 1.1754944e-38, %v1609_v31 }
 0x1c3   : > { %v10568_v32 = vpop.eup %10567  ;;  %v1587_v5 = vadd.f32 %v10562_v25, %v1586_v53  ;;  %v1630_v20 = vsub.f32 1.0, %v1629_v30  ;;  %vm1648_vm1 = vweird.f32 %v11790_v34 }
 0x1c4   : > { %v10570_v19 = vpop.eup %10569  ;;  %v11799_v16 = vadd.f32 1.0, %v10568_v32 }
 0x1c5   : > { %v1591_v35 = vsel %vm1590_vm6, %v10562_v25, %v1587_v5  ;;  %v1599_v22 = vmul.f32 %v10570_v19, %v11780_v55  ;;  %v1631_v50 = vmul.f32 %v10566_v59, %v1630_v20  ;;  %vm1604_vm12 = vweird.f32 %v10570_v19 }
 0x1c6   : > { %10575 = vrcp.f32 %v11799_v16  ;;  %v1596_v45 = vsel %vm1593_vm5, %v1595_v12, %v1591_v35  ;;  %vm1605_vm15 = vmor %vm1603_vm14, %vm1604_vm12  ;;  %v1652_v55 = vand.u32 2147483647, %v11790_v34  ;;  %v1622_v30 = vand.u32 2147483647, %v11799_v16 }
 0x1c7   : > { %v10572_v6 = vpop.eup %10571  ;;  %1697 = vrot.lane.b32.xlu0 %v1596_v45, %s10891_s27  ;;  %v1600_v1 = vsub.f32 1.0, %v1599_v22  ;;  %v1632_v44 = vadd.f32 %v10566_v59, %v1631_v50  ;;  %v1624_v32 = vand.u32 2147483648, %v11799_v16  ;;  %vm1618_vm6 = vweird.f32 %v11799_v16 }
 0x1c8   : > { %v10574_v26 = vpop.eup %10573  ;;  %v11807_v2 = vadd.f32 1.0, %v10572_v6  ;;  %vm1653_vm5 = vcmp.eq.f32.partialorder %v1652_v55, 8.507059e+37  ;;  %vm1623_vm10 = vcmp.eq.f32.partialorder %v1622_v30, 8.507059e+37 }
 0x1c9   : > { %v1601_v13 = vmul.f32 %v10570_v19, %v1600_v1  ;;  %v1644_v63 = vmul.f32 %v10574_v26, %v11790_v34  ;;  %v1636_v15 = vsel %vm11813_vm11, %v10566_v59, %v1632_v44  ;;  %vm1649_vm2 = vweird.f32 %v10574_v26 }
 0x1ca   : > { %10577 = vrcp.f32 %v11807_v2  ;;  %v1641_v61 = vsel %vm11819_vm13, %v1640_v41, %v1636_v15  ;;  %v1654_v59 = vand.u32 2147483648, %v11790_v34  ;;  %vm11838_vm3 = vmor %vm1648_vm1, %vm1649_vm2  ;;  %v1625_v34 = vor.u32 1.1754944e-38, %v1624_v32 }
 0x1cb   : > { %v1602_v25 = vadd.f32 %v10570_v19, %v1601_v13  ;;  %v1645_v14 = vsub.f32 1.0, %v1644_v63  ;;  %vm1663_vm11 = vweird.f32 %v11807_v2  ;;  %v1669_v1 = vand.u32 2147483648, %v11807_v2 }
 0x1cc   : > { %v10576_v39 = vpop.eup %10575  ;;  %v1655_v20 = vor.u32 1.1754944e-38, %v1654_v59  ;;  %v1421_v13 = vadd.f32 %v11618_v58, %v11691_v28  ;;  %v1422_v41 = vadd.f32 %v11637_v42, %v11697_v37  ;;  %v1423_v58 = vadd.f32 %v11630_v40, %v11703_v7 }
 0x1cd   : > { %v1606_v33 = vsel %vm1605_vm15, %v10570_v19, %v1602_v25  ;;  %v1614_v21 = vmul.f32 %v10576_v39, %v11799_v16  ;;  %v1646_v24 = vmul.f32 %v10574_v26, %v1645_v14  ;;  %vm1619_vm4 = vweird.f32 %v10576_v39 }
 0x1ce   : > { %v1611_v38 = vsel %vm1608_vm0, %v1610_v51, %v1606_v33  ;;  %vm1620_vm9 = vmor %vm1618_vm6, %vm1619_vm4  ;;  %v1670_v29 = vor.u32 1.1754944e-38, %v1669_v1  ;;  %v1433_v56 = vsel %vm866_vm8, %v1421_v13, %v11691_v28  ;;  %vm1739_vm15 = vcmask 130048  }
 0x1cf   : > { %1699 = vrot.lane.b32.xlu1 %v1611_v38, %s10891_s27  ;;  %1703 = vrot.lane.b32.xlu0 %v1641_v61, %s10891_s27  ;;  %v1615_v23 = vsub.f32 1.0, %v1614_v21  ;;  %v1647_v48 = vadd.f32 %v10574_v26, %v1646_v24  ;;  %v1434_v15 = vsel %vm866_vm8, %v1422_v41, %v11697_v37  ;;  %v1435_v28 = vsel %vm866_vm8, %v1423_v58, %v11703_v7 }
 0x1d0   : > { %v10578_v53 = vpop.eup %10577  ;;  %v1424_v42 = vadd.f32 %v11649_v57, %v11712_v11  ;;  %v1425_v40 = vadd.f32 %v11643_v43, %v11720_v49  ;;  %v1426_v57 = vadd.f32 %v11661_v3, %v11728_v52  ;;  %v1427_v59 = vadd.f32 %v11655_v0, %v11738_v9 }
 0x1d1   : > { %v1616_v19 = vmul.f32 %v10576_v39, %v1615_v23  ;;  %v1659_v12 = vmul.f32 %v10578_v53, %v11807_v2  ;;  %v1651_v22 = vsel %vm11838_vm3, %v10574_v26, %v1647_v48  ;;  %vm1664_vm12 = vweird.f32 %v10578_v53 }
 0x1d2   : > { %v1656_v6 = vsel %vm1653_vm5, %v1655_v20, %v1651_v22  ;;  %v1667_v26 = vand.u32 2147483647, %v11807_v2  ;;  %vm1665_vm13 = vmor %vm1663_vm11, %vm1664_vm12  ;;  %v1436_v37 = vsel %vm866_vm8, %v1424_v42, %v11712_v11  ;;  %v1437_v7 = vsel %vm866_vm8, %v1425_v40, %v11720_v49  ;;  %v1829_v42 = vld [vmem:[%s16115_s5] sm:$0xff]  ;;  %v1834_v40 = vld [vmem:[%s16115_s5 + $0x28] sm:$0xff] }
 0x1d3   : > { %v1617_v35 = vadd.f32 %v10576_v39, %v1616_v19  ;;  %v1660_v18 = vsub.f32 1.0, %v1659_v12  ;;  %v1438_v11 = vsel %vm866_vm8, %v1426_v57, %v11728_v52  ;;  %v1439_v49 = vsel %vm866_vm8, %v1427_v59, %v11738_v9  ;;  %v1407_v19 = vld.sshfl [vmem:[#allocation1] sm:$0xff pattern:$0x73625140] }
 0x1d4   : > { %vm1668_vm14 = vcmp.eq.f32.partialorder %v1667_v26, 8.507059e+37  ;;  %v1428_v3 = vadd.f32 %v11673_v10, %v11755_v4  ;;  %v1429_v0 = vadd.f32 %v11667_v47, %v11775_v46  ;;  %v1430_v10 = vadd.f32 %v11679_v62, %v11745_v27  ;;  %v1837_v57 = vld [vmem:[%s16115_s5 + $0x40] sm:$0xff] }
 0x1d5   : > { %v1621_v45 = vsel %vm1620_vm9, %v10576_v39, %v1617_v35  ;;  %v1661_v50 = vmul.f32 %v10578_v53, %v1660_v18  ;;  %v1431_v47 = vadd.f32 %v1407_v19, %v11763_v36  ;;  %v1408_v35 = vld.sshfl [vmem:[#allocation1 + $0x20] sm:$0xff pattern:$0x73625140]  ;;  %vm2104_vm0 = vcmask 64512  }
 0x1d6   : > { %v1626_v17 = vsel %vm1623_vm10, %v1625_v34, %v1621_v45  ;;  %v1440_v52 = vsel %vm866_vm8, %v1428_v3, %v11755_v4  ;;  %v1441_v9 = vsel %vm866_vm8, %v1429_v0, %v11775_v46  ;;  %v1442_v4 = vsel %vm866_vm8, %v1430_v10, %v11745_v27 }
 0x1d7   : > { %1701 = vrot.lane.b32.xlu2 %v1626_v17, %s10891_s27  ;;  %1705 = vrot.lane.b32.xlu1 %v1656_v6, %s10891_s27  ;;  %v1662_v16 = vadd.f32 %v10578_v53, %v1661_v50  ;;  %v1443_v46 = vsel %vm866_vm8, %v1431_v47, %v11763_v36  ;;  %v1432_v62 = vadd.f32 %v1408_v35, %v11783_v60  ;;  %vm2136_vm1 = vcmask 195584  }
 0x1d9   : > { %v1666_v31 = vsel %vm1665_vm13, %v10578_v53, %v1662_v16  ;;  %v1444_v27 = vsel %vm866_vm8, %v1432_v62, %v11783_v60  ;;  %vm1841_vm8 = vcmask 785408  }
 0x1da   : > { %v1671_v44 = vsel %vm1668_vm14, %v1670_v29, %v1666_v31  ;;  %vm3145_vm14 = vcmask 46080  }
 0x1df   : > { %1707 = vrot.lane.b32.xlu2 %v1671_v44, %s10891_s27 }
 0x201   : > { %v1686_v63 = vpop.permute.xlu0 %1685 }
 0x202   : > { %v1721_v2 = vmul.f32 %v1686_v63, %v1433_v56 }
 0x204   : > { %10078 = vmatmul.msk.f32.vlgmr.msra.gmra.mxu3 %vm1739_vm15, %v1721_v2 }
 0x211   : > { %v1688_v25 = vpop.permute.xlu0 %1687  ;;  %v1694_v24 = vpop.permute.xlu2 %1693 }
 0x212   : > { %v1722_v14 = vmul.f32 %v1688_v25, %v1434_v15  ;;  %v1725_v38 = vmul.f32 %v1694_v24, %v1437_v7  ;;  %v1833_v24 = vld [vmem:[%s16115_s5 + $0x20] sm:$0xff]  ;;  %v1835_v7 = vld [vmem:[%s16115_s5 + $0x30] sm:$0xff] }
 0x214   : > { %10079 = vmatmul.msk.f32.gmra.mxu3 %vm1739_vm15, %v1722_v14 }
 0x219   : > { %v1690_v39 = vpop.permute.xlu1 %1689  ;;  %v1696_v61 = vpop.permute.xlu2 %1695 }
 0x21a   : > { %v1723_v51 = vmul.f32 %v1690_v39, %v1435_v28  ;;  %v1726_v55 = vmul.f32 %v1696_v61, %v1438_v11  ;;  %v1838_v61 = vld [vmem:[%s16115_s5 + $0x48] sm:$0xff]  ;;  %v1839_v11 = vld [vmem:[%s16115_s5 + $0x50] sm:$0xff] }
 0x21c   : > { %10080 = vmatmul.msk.f32.gmra.mxu3 %vm1739_vm15, %v1723_v51 }
 0x221   : > { %v1692_v33 = vpop.permute.xlu1 %1691 }
 0x222   : > { %v1724_v21 = vmul.f32 %v1692_v33, %v1436_v37  ;;  %v1830_v33 = vld [vmem:[%s16115_s5 + $0x8] sm:$0xff]  ;;  %v1831_v37 = vld [vmem:[%s16115_s5 + $0x10] sm:$0xff] }
 0x224   : > { %10081 = vmatmul.msk.f32.gmra.mxu3 %vm1739_vm15, %v1724_v21  ;;  %v1832_v21 = vld [vmem:[%s16115_s5 + $0x18] sm:$0xff] }
 0x22c   : > { %10082 = vmatmul.msk.f32.gmra.mxu3 %vm1739_vm15, %v1725_v38  ;;  %v1836_v38 = vld [vmem:[%s16115_s5 + $0x38] sm:$0xff] }
 0x231   : > { %v1702_v30 = vpop.permute.xlu2 %1701 }
 0x232   : > { %v1729_v32 = vmul.f32 %v1702_v30, %v1441_v9 }
 0x234   : > { %10083 = vmatmul.msk.f32.gmra.mxu3 %vm1739_vm15, %v1726_v55  ;;  %v1840_v55 = vld [vmem:[%s16115_s5 + $0x58] sm:$0xff] }
 0x239   : > { %v1698_v43 = vpop.permute.xlu0 %1697  ;;  %v1708_v18 = vpop.permute.xlu2 %1707 }
 0x23a   : > { %v1727_v23 = vmul.f32 %v1698_v43, %v1439_v49  ;;  %v1732_v34 = vmul.f32 %v1708_v18, %v1444_v27 }
 0x23c   : > { %10084 = vmatmul.msk.f32.gmra.mxu3 %vm1739_vm15, %v1727_v23 }
 0x241   : > { %v1700_v48 = vpop.permute.xlu1 %1699  ;;  %v1704_v5 = vpop.permute.xlu0 %1703 }
 0x242   : > { %v1728_v53 = vmul.f32 %v1700_v48, %v1440_v52  ;;  %v1730_v12 = vmul.f32 %v1704_v5, %v1442_v4 }
 0x244   : > { %10085 = vmatmul.msk.f32.gmra.mxu3 %vm1739_vm15, %v1728_v53 }
 0x249   : > { %v1706_v20 = vpop.permute.xlu1 %1705 }
 0x24a   : > { %v1731_v22 = vmul.f32 %v1706_v20, %v1443_v46 }
 0x24c   : > { %10086 = vmatmul.msk.f32.gmra.mxu3 %vm1739_vm15, %v1729_v32 }
 0x254   : > { %10087 = vmatmul.msk.f32.gmra.mxu3 %vm1739_vm15, %v1730_v12 }
 0x25c   : > { %10088 = vmatmul.msk.f32.gmra.mxu3 %vm1739_vm15, %v1731_v22 }
 0x264   : > { %10089 = vmatmul.msk.f32.gmra.mxu3 %vm1739_vm15, %v1732_v34 }
 0x287   : > { %v1793_v45 = vpop.f32.mrf.mxu3 }
 0x288   : > { %v11948_v51 = vadd.f32 %v10526_v54, %v1793_v45 }
 0x297   : > { %v1796_v50 = vpop.f32.mrf.mxu3 }
 0x298   : > { %v11945_v28 = vadd.f32 %v10526_v54, %v1796_v50 }
 0x29f   : > { %v1799_v17 = vpop.f32.mrf.mxu3 }
 0x2a0   : > { %v11942_v39 = vadd.f32 %v10526_v54, %v1799_v17 }
 0x2a7   : > { %v1802_v6 = vpop.f32.mrf.mxu3 }
 0x2a8   : > { %v11939_v58 = vadd.f32 %v10526_v54, %v1802_v6 }
 0x2af   : > { %v1805_v1 = vpop.f32.mrf.mxu3 }
 0x2b0   : > { %v11936_v14 = vadd.f32 %v10526_v54, %v1805_v1 }
 0x2b7   : > { %v1808_v16 = vpop.f32.mrf.mxu3 }
 0x2b8   : > { %v11933_v15 = vadd.f32 %v10526_v54, %v1808_v16 }
 0x2bf   : > { %v1811_v36 = vpop.f32.mrf.mxu3 }
 0x2c0   : > { %v11930_v25 = vadd.f32 %v10526_v54, %v1811_v36 }
 0x2c7   : > { %v1814_v26 = vpop.f32.mrf.mxu3 }
 0x2c8   : > { %v11927_v41 = vadd.f32 %v10526_v54, %v1814_v26 }
 0x2cf   : > { %v1817_v29 = vpop.f32.mrf.mxu3 }
 0x2d0   : > { %v11924_v2 = vadd.f32 %v10526_v54, %v1817_v29 }
 0x2d7   : > { %v1820_v31 = vpop.f32.mrf.mxu3 }
 0x2d8   : > { %v11921_v56 = vadd.f32 %v10526_v54, %v1820_v31 }
 0x2df   : > { %v1823_v44 = vpop.f32.mrf.mxu3 }
 0x2e0   : > { %v11918_v63 = vadd.f32 %v10526_v54, %v1823_v44 }
 0x2e7   : > { %v1826_v13 = vpop.f32.mrf.mxu3 }
 0x2e8   : > { %v11916_v60 = vadd.f32 %v10526_v54, %v1826_v13 }
 0x2ea   : > { %1882 = vmatpush.msrb.mxu0 %v11916_v60 }
 0x2ec   : > { %1883 = vmatpush.msrb.mxu0 %v11918_v63 }
 0x2ee   : > { %1884 = vmatpush.msrb.mxu0 %v11921_v56 }
 0x2f0   : > { %1885 = vmatpush.msrb.mxu0 %v11924_v2 }
 0x2f2   : > { %1886 = vmatpush.msrb.mxu0 %v11927_v41 }
 0x2f4   : > { %1887 = vmatpush.msrb.mxu0 %v11930_v25 }
 0x2f6   : > { %1888 = vmatpush.msrb.mxu0 %v11933_v15 }
 0x2f8   : > { %1889 = vmatpush.msrb.mxu0 %v11936_v14 }
 0x2fa   : > { %1890 = vmatpush.msrb.mxu0 %v11939_v58 }
 0x2fc   : > { %1891 = vmatpush.msrb.mxu0 %v11942_v39 }
 0x2fe   : > { %1892 = vmatpush.msrb.mxu0 %v11945_v28 }
 0x300   : > { %1893 = vmatpush.msrb.mxu0 %v11948_v51 }
 0x301   : > { %10090 = vmatmul.msk.f32.vlgmr.msrb.gmra.mxu0 %vm1841_vm8, %v1829_v42 }
 0x309   : > { %10091 = vmatmul.msk.f32.gmra.mxu0 %vm1841_vm8, %v1830_v33 }
 0x311   : > { %10092 = vmatmul.msk.f32.gmra.mxu0 %vm1841_vm8, %v1831_v37 }
 0x319   : > { %10093 = vmatmul.msk.f32.gmra.mxu0 %vm1841_vm8, %v1832_v21 }
 0x321   : > { %10094 = vmatmul.msk.f32.gmra.mxu0 %vm1841_vm8, %v1833_v24 }
 0x329   : > { %10095 = vmatmul.msk.f32.gmra.mxu0 %vm1841_vm8, %v1834_v40 }
 0x331   : > { %10096 = vmatmul.msk.f32.gmra.mxu0 %vm1841_vm8, %v1835_v7 }
 0x339   : > { %10097 = vmatmul.msk.f32.gmra.mxu0 %vm1841_vm8, %v1836_v38 }
 0x341   : > { %10098 = vmatmul.msk.f32.gmra.mxu0 %vm1841_vm8, %v1837_v57 }
 0x349   : > { %10099 = vmatmul.msk.f32.gmra.mxu0 %vm1841_vm8, %v1838_v61 }
 0x351   : > { %10100 = vmatmul.msk.f32.gmra.mxu0 %vm1841_vm8, %v1839_v11 }
 0x359   : > { %10101 = vmatmul.msk.f32.gmra.mxu0 %vm1841_vm8, %v1840_v55 }
 0x37e   : > { %v1895_v59 = vpop.f32.mrf.mxu0 }
 0x37f   : > { %2020 = vrot.lane.b32.xlu0 %v1895_v59, %s10892_s22 }
 0x386   : > { %v1898_v43 = vpop.f32.mrf.mxu0 }
 0x387   : > { %2022 = vrot.lane.b32.xlu2 %v1898_v43, %s10892_s22 }
 0x38e   : > { %v1901_v49 = vpop.f32.mrf.mxu0 }
 0x396   : > { %v1904_v23 = vpop.f32.mrf.mxu0 }
 0x39e   : > { %v1907_v3 = vpop.f32.mrf.mxu0 }
 0x3a6   : > { %v1910_v48 = vpop.f32.mrf.mxu0 }
 0x3ae   : > { %v1913_v52 = vpop.f32.mrf.mxu0 }
 0x3b6   : > { %v1916_v53 = vpop.f32.mrf.mxu0 }
 0x3be   : > { %v12002_v0 = vpop.f32.mrf.mxu0 }
 0x3c6   : > { %v12004_v30 = vpop.f32.mrf.mxu0 }
 0x3ce   : > { %v12006_v9 = vpop.f32.mrf.mxu0 }
 0x3d6   : > { %v12008_v32 = vpop.f32.mrf.mxu0 }
 0x3d7   : > { %1935 = vmatpush.msrb.mxu1 %v12008_v32 }
 0x3d9   : > { %1936 = vmatpush.msrb.mxu1 %v12006_v9 }
 0x3db   : > { %1937 = vmatpush.msrb.mxu1 %v12004_v30 }
 0x3dd   : > { %1938 = vmatpush.msrb.mxu1 %v12002_v0 }
 0x3df   : > { %1939 = vmatpush.msrb.mxu1 %v1916_v53 }
 0x3e1   : > { %1940 = vmatpush.msrb.mxu1 %v1913_v52 }
 0x3e3   : > { %1941 = vmatpush.msrb.mxu1 %v1910_v48 }
 0x3e5   : > { %1942 = vmatpush.msrb.mxu1 %v1907_v3 }
 0x3e7   : > { %1943 = vmatpush.msrb.mxu1 %v1904_v23 }
 0x3e9   : > { %1944 = vmatpush.msrb.mxu1 %v1901_v49 }
 0x3eb   : > { %1945 = vmatpush.msrb.mxu1 %v1898_v43 }
 0x3ed   : > { %1946 = vmatpush.msrb.mxu1 %v1895_v59 }
 0x3ee   : > { %10102 = vmatmul.msk.f32.vlgmr.msrb.gmra.mxu1 %vm1841_vm8, %v1829_v42 }
 0x3f1   : > { %v2021_v59 = vpop.permute.xlu0 %2020 }
 0x3f2   : > { %v2105_v43 = vsel %vm2104_vm0, %v11948_v51, %v2021_v59  ;;  %v10894_v59 = vmov 0.0  }
 0x3f6   : > { %10103 = vmatmul.msk.f32.gmra.mxu1 %vm1841_vm8, %v1830_v33 }
 0x3fe   : > { %10104 = vmatmul.msk.f32.gmra.mxu1 %vm1841_vm8, %v1831_v37 }
 0x406   : > { %10105 = vmatmul.msk.f32.gmra.mxu1 %vm1841_vm8, %v1832_v21  ;;  %v2131_v21 = vld [vmem:[%s16116_s6 + $0x10] sm:$0xff] }
 0x407   : > { %2186 = vmatpush.msrb.mxu2 %v2131_v21 }
 0x40e   : > { %10106 = vmatmul.msk.f32.gmra.mxu1 %vm1841_vm8, %v1833_v24  ;;  %v2130_v24 = vld [vmem:[%s16116_s6 + $0x8] sm:$0xff] }
 0x40f   : > { %2187 = vmatpush.msrb.mxu2 %v2130_v24 }
 0x416   : > { %10107 = vmatmul.msk.f32.gmra.mxu1 %vm1841_vm8, %v1834_v40 }
 0x41e   : > { %10108 = vmatmul.msk.f32.gmra.mxu1 %vm1841_vm8, %v1835_v7 }
 0x426   : > { %10109 = vmatmul.msk.f32.gmra.mxu1 %vm1841_vm8, %v1836_v38 }
 0x42e   : > { %10110 = vmatmul.msk.f32.gmra.mxu1 %vm1841_vm8, %v1837_v57 }
 0x436   : > { %10111 = vmatmul.msk.f32.gmra.mxu1 %vm1841_vm8, %v1838_v61  ;;  %v2129_v61 = vld [vmem:[%s16116_s6] sm:$0xff] }
 0x437   : > { %2188 = vmatpush.msrb.mxu2 %v2129_v61 }
 0x43e   : > { %10112 = vmatmul.msk.f32.gmra.mxu1 %vm1841_vm8, %v1839_v11 }
 0x446   : > { %10113 = vmatmul.msk.f32.gmra.mxu1 %vm1841_vm8, %v1840_v55  ;;  %vm4348_vm8 = vcmask 1045504  }
 0x46b   : > { %v1948_v10 = vpop.f32.mrf.mxu1 }
 0x46c   : > { %v1984_v5 = vmul.f32 2.0, %v1948_v10 }
 0x46e   : > { %v1996_v4 = vsub.f32 %v1984_v5, %v11948_v51 }
 0x470   : > { %2068 = vrot.lane.b32.xlu1 %v1996_v4, %s10893_s23 }
 0x473   : > { %v1951_v19 = vpop.f32.mrf.mxu1 }
 0x474   : > { %v1985_v12 = vmul.f32 2.0, %v1951_v19 }
 0x476   : > { %v1997_v47 = vsub.f32 %v1985_v12, %v11945_v28 }
 0x478   : > { %2024 = vrot.lane.b32.xlu1 %v1901_v49, %s10892_s22  ;;  %2070 = vrot.lane.b32.xlu0 %v1997_v47, %s10893_s23 }
 0x47b   : > { %v1954_v20 = vpop.f32.mrf.mxu1 }
 0x47c   : > { %v1986_v46 = vmul.f32 2.0, %v1954_v20 }
 0x47e   : > { %v1998_v35 = vsub.f32 %v1986_v46, %v11942_v39 }
 0x480   : > { %2026 = vrot.lane.b32.xlu0 %v1904_v23, %s10892_s22  ;;  %2072 = vrot.lane.b32.xlu2 %v1998_v35, %s10893_s23 }
 0x483   : > { %v1957_v22 = vpop.f32.mrf.mxu1 }
 0x484   : > { %v1987_v62 = vmul.f32 2.0, %v1957_v22 }
 0x486   : > { %v1999_v18 = vsub.f32 %v1987_v62, %v11939_v58 }
 0x488   : > { %2028 = vrot.lane.b32.xlu2 %v1907_v3, %s10892_s22  ;;  %2074 = vrot.lane.b32.xlu1 %v1999_v18, %s10893_s23  ;;  %v2023_v3 = vpop.permute.xlu2 %2022 }
 0x48b   : > { %v1960_v27 = vpop.f32.mrf.mxu1 }
 0x48c   : > { %v1988_v34 = vmul.f32 2.0, %v1960_v27 }
 0x48e   : > { %v2000_v45 = vsub.f32 %v1988_v34, %v11936_v14 }
 0x490   : > { %2030 = vrot.lane.b32.xlu1 %v1910_v48, %s10892_s22  ;;  %2076 = vrot.lane.b32.xlu0 %v2000_v45, %s10893_s23  ;;  %v2106_v48 = vsel %vm2104_vm0, %v11945_v28, %v2023_v3 }
 0x493   : > { %v1963_v50 = vpop.f32.mrf.mxu1 }
 0x494   : > { %v1989_v17 = vmul.f32 2.0, %v1963_v50 }
 0x496   : > { %v2001_v6 = vsub.f32 %v1989_v17, %v11933_v15 }
 0x498   : > { %2032 = vrot.lane.b32.xlu0 %v1913_v52, %s10892_s22  ;;  %2078 = vrot.lane.b32.xlu2 %v2001_v6, %s10893_s23 }
 0x49b   : > { %v1966_v1 = vpop.f32.mrf.mxu1 }
 0x49c   : > { %v1990_v16 = vmul.f32 2.0, %v1966_v1 }
 0x49e   : > { %v2002_v36 = vsub.f32 %v1990_v16, %v11930_v25 }
 0x4a0   : > { %2034 = vrot.lane.b32.xlu2 %v1916_v53, %s10892_s22  ;;  %2080 = vrot.lane.b32.xlu1 %v2002_v36, %s10893_s23  ;;  %v2250_v36 = vld [vmem:[%s16118_s8] sm:$0xff] }
 0x4a1   : > { %2306 = vmatpush.msra.mxu0 %v2250_v36  ;;  %10482 = vmatpush.msrb.mxu3 %v2250_v36 }
 0x4a3   : > { %v1969_v26 = vpop.f32.mrf.mxu1 }
 0x4a4   : > { %v1991_v29 = vmul.f32 2.0, %v1969_v26 }
 0x4a6   : > { %v2003_v31 = vsub.f32 %v1991_v29, %v11927_v41 }
 0x4a8   : > { %2036 = vrot.lane.b32.xlu1 %v12002_v0, %s10892_s22  ;;  %2082 = vrot.lane.b32.xlu0 %v2003_v31, %s10893_s23 }
 0x4ab   : > { %v1972_v44 = vpop.f32.mrf.mxu1 }
 0x4ac   : > { %v1992_v54 = vmul.f32 2.0, %v1972_v44 }
 0x4ae   : > { %v2004_v13 = vsub.f32 %v1992_v54, %v11924_v2 }
 0x4b0   : > { %2038 = vrot.lane.b32.xlu0 %v12004_v30, %s10892_s22  ;;  %2084 = vrot.lane.b32.xlu2 %v2004_v13, %s10893_s23 }
 0x4b3   : > { %v1975_v42 = vpop.f32.mrf.mxu1 }
 0x4b4   : > { %v1993_v33 = vmul.f32 2.0, %v1975_v42 }
 0x4b6   : > { %v2005_v37 = vsub.f32 %v1993_v33, %v11921_v56 }
 0x4b8   : > { %2040 = vrot.lane.b32.xlu2 %v12006_v9, %s10892_s22  ;;  %2086 = vrot.lane.b32.xlu1 %v2005_v37, %s10893_s23 }
 0x4bb   : > { %v1978_v40 = vpop.f32.mrf.mxu1 }
 0x4bc   : > { %v1994_v7 = vmul.f32 2.0, %v1978_v40 }
 0x4be   : > { %v2006_v38 = vsub.f32 %v1994_v7, %v11918_v63 }
 0x4c0   : > { %2042 = vrot.lane.b32.xlu1 %v12008_v32, %s10892_s22  ;;  %2088 = vrot.lane.b32.xlu0 %v2006_v38, %s10893_s23 }
 0x4c3   : > { %v1981_v57 = vpop.f32.mrf.mxu1 }
 0x4c4   : > { %v1995_v11 = vmul.f32 2.0, %v1981_v57 }
 0x4c6   : > { %v2007_v55 = vsub.f32 %v1995_v11, %v11916_v60  ;;  %v2428_v11 = vlaneseq }
 0x4c8   : > { %2090 = vrot.lane.b32.xlu2 %v2007_v55, %s10893_s23  ;;  %v2429_v55 = vand.u32 127, %v2428_v11 }
 0x4ca   : > { %vm2431_vm2 = vcmp.lt.s32.totalorder %v2429_v55, 2  ;;  %vm3382_vm3 = vcmp.ge.s32.totalorder %v2429_v55, 2  ;;  %vm3383_vm4 = vcmp.lt.s32.totalorder %v2429_v55, 4  ;;  %vm7030_vm5 = vcmp.ge.s32.totalorder %v2429_v55, 6 }
 0x4cb   : > { %vm3384_vm6 = vmand %vm3382_vm3, %vm3383_vm4  ;;  %vm7031_vm9 = vcmp.lt.s32.totalorder %v2429_v55, 8  ;;  %vm5487_vm11 = vcmp.ge.s32.totalorder %v2429_v55, 4  ;;  %vm5488_vm12 = vcmp.lt.s32.totalorder %v2429_v55, 6 }
 0x4cc   : > { %vm7032_vm10 = vmand %vm7030_vm5, %vm7031_vm9 }
 0x4cd   : > { %v12129_v3 = vsel %vm7032_vm10, 1.0, %v10894_v59  ;;  %vm5489_vm13 = vmand %vm5487_vm11, %vm5488_vm12 }
 0x4ce   : > { %16333 = vst [vmem:[#allocation3_spill] sm:$0xff] %v12129_v3 }
 0x4da   : > { %v2073_v9 = vpop.permute.xlu2 %2072 }
 0x4e2   : > { %v2069_v49 = vpop.permute.xlu1 %2068  ;;  %v2029_v12 = vpop.permute.xlu2 %2028 }
 0x4e3   : > { %v2117_v23 = vsel %vm1739_vm15, %v2105_v43, %v2069_v49  ;;  %v2109_v47 = vsel %vm2104_vm0, %v11936_v14, %v2029_v12  ;;  %v12124_v43 = vsel %vm2431_vm2, 1.0, %v10894_v59  ;;  %v12126_v49 = vsel %vm3384_vm6, 1.0, %v10894_v59 }
 0x4e4   : > { %10114 = vmatmul.msk.f32.vlgmr.msrb.gmra.mxu2 %vm2136_vm1, %v2117_v23  ;;  %v4275_v23 = vrot.slane %v12126_v49, 4  ;;  %v3324_v12 = vrot.slane %v12124_v43, 4 }
 0x4ea   : > { %v2071_v52 = vpop.permute.xlu0 %2070  ;;  %v2025_v0 = vpop.permute.xlu1 %2024 }
 0x4eb   : > { %v2118_v53 = vsel %vm1739_vm15, %v2106_v48, %v2071_v52  ;;  %v2107_v30 = vsel %vm2104_vm0, %v11942_v39, %v2025_v0  ;;  %v4274_v48 = vrot.slane %v12126_v49, 2  ;;  %v12132_v52 = vsel %vm5489_vm13, 1.0, %v10894_v59 }
 0x4ec   : > { %10115 = vmatmul.msk.f32.gmra.mxu2 %vm2136_vm1, %v2118_v53  ;;  %v2119_v32 = vsel %vm1739_vm15, %v2107_v30, %v2073_v9  ;;  %16334 = vst [vmem:[#allocation4_spill] sm:$0xff] %v12132_v52  ;;  %v10502_v53 = vpack.i.bf16 %v12124_v43, %v4275_v23  ;;  %v6379_v30 = vrot.slane %v12132_v52, 2 }
 0x4ed   : > { %v10497_v0 = vpack.i.bf16 %v4274_v48, %v12126_v49 }
 0x4ee   : > { %10503 = vrot.lane.b32.xlu1 %v10502_v53, %s10893_s23  ;;  %v10512_v9 = vpack.i.bf16 %v6379_v30, %v12132_v52  ;;  %v12253_v53 = vld [vmem:[%s16119_s9] ss:$0 sm:$0xff] }
 0x4ef   : > { %10498 = vrot.lane.b32.xlu0 %v10497_v0, %s10893_s23 }
 0x4f2   : > { %v2027_v10 = vpop.permute.xlu0 %2026  ;;  %v2079_v62 = vpop.permute.xlu2 %2078 }
 0x4f3   : > { %v2108_v5 = vsel %vm2104_vm0, %v11939_v58, %v2027_v10 }
 0x4f4   : > { %10116 = vmatmul.msk.f32.gmra.mxu2 %vm2136_vm1, %v2119_v32  ;;  %v12143_v32 = vld [vmem:[%s16117_s7] ss:$0 sm:$0xff] }
 0x4f6   : > { %10513 = vrot.lane.b32.xlu1 %v10512_v9, %s10893_s23 }
 0x4fa   : > { %v2075_v4 = vpop.permute.xlu1 %2074  ;;  %v2035_v17 = vpop.permute.xlu2 %2034 }
 0x4fb   : > { %v2120_v19 = vsel %vm1739_vm15, %v2108_v5, %v2075_v4  ;;  %v2112_v6 = vsel %vm2104_vm0, %v11927_v41, %v2035_v17 }
 0x4fc   : > { %10117 = vmatmul.msk.f32.gmra.mxu2 %vm2136_vm1, %v2120_v19  ;;  %v3323_v19 = vrot.slane %v12124_v43, 2 }
 0x502   : > { %v2077_v20 = vpop.permute.xlu0 %2076  ;;  %v2031_v35 = vpop.permute.xlu1 %2030 }
 0x503   : > { %v2121_v46 = vsel %vm1739_vm15, %v2109_v47, %v2077_v20  ;;  %v2110_v22 = vsel %vm2104_vm0, %v11933_v15, %v2031_v35  ;;  %v10507_v20 = vpack.i.bf16 %v3324_v12, %v3323_v19 }
 0x504   : > { %10118 = vmatmul.msk.f32.gmra.mxu2 %vm2136_vm1, %v2121_v46  ;;  %v2122_v18 = vsel %vm1739_vm15, %v2110_v22, %v2079_v62 }
 0x505   : > { %10508 = vrot.lane.b32.xlu2 %v10507_v20, %s10893_s23 }
 0x50a   : > { %v2033_v27 = vpop.permute.xlu0 %2032  ;;  %v2085_v31 = vpop.permute.xlu2 %2084 }
 0x50b   : > { %v2111_v34 = vsel %vm2104_vm0, %v11930_v25, %v2033_v27 }
 0x50c   : > { %10119 = vmatmul.msk.f32.gmra.mxu2 %vm2136_vm1, %v2122_v18 }
 0x512   : > { %v2081_v45 = vpop.permute.xlu1 %2080  ;;  %v2041_v37 = vpop.permute.xlu2 %2040 }
 0x513   : > { %v2123_v50 = vsel %vm1739_vm15, %v2111_v34, %v2081_v45  ;;  %v2115_v21 = vsel %vm2104_vm0, %v11918_v63, %v2041_v37 }
 0x514   : > { %10120 = vmatmul.msk.f32.gmra.mxu2 %vm2136_vm1, %v2123_v50 }
 0x51a   : > { %v2083_v1 = vpop.permute.xlu0 %2082  ;;  %v2037_v26 = vpop.permute.xlu1 %2036 }
 0x51b   : > { %v2124_v16 = vsel %vm1739_vm15, %v2112_v6, %v2083_v1  ;;  %v2113_v29 = vsel %vm2104_vm0, %v11924_v2, %v2037_v26 }
 0x51c   : > { %10121 = vmatmul.msk.f32.gmra.mxu2 %vm2136_vm1, %v2124_v16  ;;  %v2125_v44 = vsel %vm1739_vm15, %v2113_v29, %v2085_v31 }
 0x522   : > { %v2039_v54 = vpop.permute.xlu0 %2038  ;;  %v2091_v57 = vpop.permute.xlu2 %2090 }
 0x523   : > { %v2114_v13 = vsel %vm2104_vm0, %v11921_v56, %v2039_v54 }
 0x524   : > { %10122 = vmatmul.msk.f32.gmra.mxu2 %vm2136_vm1, %v2125_v44 }
 0x52a   : > { %v2087_v42 = vpop.permute.xlu1 %2086 }
 0x52b   : > { %v2126_v33 = vsel %vm1739_vm15, %v2114_v13, %v2087_v42 }
 0x52c   : > { %10123 = vmatmul.msk.f32.gmra.mxu2 %vm2136_vm1, %v2126_v33 }
 0x532   : > { %v2089_v24 = vpop.permute.xlu0 %2088  ;;  %v2043_v7 = vpop.permute.xlu1 %2042 }
 0x533   : > { %v2127_v40 = vsel %vm1739_vm15, %v2115_v21, %v2089_v24  ;;  %v2116_v38 = vsel %vm2104_vm0, %v11916_v60, %v2043_v7 }
 0x534   : > { %10124 = vmatmul.msk.f32.gmra.mxu2 %vm2136_vm1, %v2127_v40  ;;  %v2128_v61 = vsel %vm1739_vm15, %v2116_v38, %v2091_v57 }
 0x53c   : > { %10125 = vmatmul.msk.f32.gmra.mxu2 %vm2136_vm1, %v2128_v61  ;;  %vm4344_vm1 = vcmask 48128  }
 0x567   : > { %v2190_v10 = vpop.f32.mrf.mxu2 }
 0x568   : > { %v2191_v5 = vadd.f32 %v12143_v32, %v2190_v10 }
 0x56a   : > { %v12148_v4 = vadd.f32 %v2191_v5, %v11948_v51  ;;  %v6380_v51 = vrot.slane %v12132_v52, 4 }
 0x56c   : > { %16335 = vst [vmem:[#allocation5_spill] sm:$0xff] %v12148_v4  ;;  %v16144_v47 = vmax.f32 %v12148_v4, 0.0  ;;  %6385 = vrot.lane.b32.xlu2 %v6380_v51, %s10893_s23 }
 0x56e   : > { %10126 = vmatmul.msk.f32.vlgmr.msra.gmra.mxu0 %vm2104_vm0, %v16144_v47 }
 0x56f   : > { %v2193_v46 = vpop.f32.mrf.mxu2 }
 0x570   : > { %v2194_v35 = vadd.f32 %v12143_v32, %v2193_v46 }
 0x572   : > { %v12159_v22 = vadd.f32 %v2194_v35, %v11945_v28 }
 0x574   : > { %16336 = vst [vmem:[#allocation6_spill] sm:$0xff] %v12159_v22  ;;  %v16143_v62 = vmax.f32 %v12159_v22, 0.0 }
 0x576   : > { %10127 = vmatmul.msk.f32.vlgmr.msrb.gmra.mxu3 %vm2104_vm0, %v16143_v62 }
 0x577   : > { %v2196_v18 = vpop.f32.mrf.mxu2 }
 0x578   : > { %v2197_v27 = vadd.f32 %v12143_v32, %v2196_v18 }
 0x57a   : > { %v12169_v34 = vadd.f32 %v2197_v27, %v11942_v39 }
 0x57c   : > { %16337 = vst [vmem:[#allocation7_spill] sm:$0xff] %v12169_v34  ;;  %v16142_v45 = vmax.f32 %v12169_v34, 0.0 }
 0x57e   : > { %10128 = vmatmul.msk.f32.gmra.mxu3 %vm2104_vm0, %v16142_v45 }
 0x57f   : > { %v2199_v28 = vpop.f32.mrf.mxu2 }
 0x580   : > { %v2200_v50 = vadd.f32 %v12143_v32, %v2199_v28 }
 0x582   : > { %v12177_v17 = vadd.f32 %v2200_v50, %v11939_v58 }
 0x584   : > { %16338 = vst [vmem:[#allocation8_spill] sm:$0xff] %v12177_v17  ;;  %v16141_v6 = vmax.f32 %v12177_v17, 0.0 }
 0x586   : > { %10129 = vmatmul.msk.f32.gmra.mxu3 %vm2104_vm0, %v16141_v6 }
 0x587   : > { %v2202_v39 = vpop.f32.mrf.mxu2 }
 0x588   : > { %v2203_v1 = vadd.f32 %v12143_v32, %v2202_v39 }
 0x58a   : > { %v12185_v16 = vadd.f32 %v2203_v1, %v11936_v14 }
 0x58c   : > { %16339 = vst [vmem:[#allocation9_spill] sm:$0xff] %v12185_v16  ;;  %v16140_v36 = vmax.f32 %v12185_v16, 0.0 }
 0x58e   : > { %10130 = vmatmul.msk.f32.gmra.mxu3 %vm2104_vm0, %v16140_v36 }
 0x58f   : > { %v2205_v58 = vpop.f32.mrf.mxu2 }
 0x590   : > { %v2206_v26 = vadd.f32 %v12143_v32, %v2205_v58 }
 0x592   : > { %v12193_v29 = vadd.f32 %v2206_v26, %v11933_v15 }
 0x594   : > { %16340 = vst [vmem:[#allocation10_spill] sm:$0xff] %v12193_v29  ;;  %v16139_v31 = vmax.f32 %v12193_v29, 0.0 }
 0x596   : > { %10131 = vmatmul.msk.f32.gmra.mxu3 %vm2104_vm0, %v16139_v31 }
 0x597   : > { %v2208_v14 = vpop.f32.mrf.mxu2 }
 0x598   : > { %v2209_v44 = vadd.f32 %v12143_v32, %v2208_v14 }
 0x59a   : > { %v12201_v54 = vadd.f32 %v2209_v44, %v11930_v25 }
 0x59c   : > { %16341 = vst [vmem:[#allocation11_spill] sm:$0xff] %v12201_v54  ;;  %v16138_v13 = vmax.f32 %v12201_v54, 0.0 }
 0x59e   : > { %10132 = vmatmul.msk.f32.gmra.mxu3 %vm2104_vm0, %v16138_v13 }
 0x59f   : > { %v2211_v15 = vpop.f32.mrf.mxu2 }
 0x5a0   : > { %v2212_v42 = vadd.f32 %v12143_v32, %v2211_v15 }
 0x5a2   : > { %v12209_v33 = vadd.f32 %v2212_v42, %v11927_v41 }
 0x5a4   : > { %16342 = vst [vmem:[#allocation12_spill] sm:$0xff] %v12209_v33  ;;  %v16137_v37 = vmax.f32 %v12209_v33, 0.0 }
 0x5a6   : > { %10133 = vmatmul.msk.f32.gmra.mxu3 %vm2104_vm0, %v16137_v37 }
 0x5a7   : > { %v2214_v25 = vpop.f32.mrf.mxu2 }
 0x5a8   : > { %v2215_v21 = vadd.f32 %v12143_v32, %v2214_v25 }
 0x5aa   : > { %v12217_v24 = vadd.f32 %v2215_v21, %v11924_v2 }
 0x5ac   : > { %16343 = vst [vmem:[#allocation13_spill] sm:$0xff] %v12217_v24  ;;  %v16136_v40 = vmax.f32 %v12217_v24, 0.0 }
 0x5ae   : > { %10134 = vmatmul.msk.f32.gmra.mxu3 %vm2104_vm0, %v16136_v40 }
 0x5af   : > { %v2217_v41 = vpop.f32.mrf.mxu2 }
 0x5b0   : > { %v2218_v7 = vadd.f32 %v12143_v32, %v2217_v41 }
 0x5b2   : > { %v12225_v38 = vadd.f32 %v2218_v7, %v11921_v56 }
 0x5b4   : > { %16344 = vst [vmem:[#allocation14_spill] sm:$0xff] %v12225_v38  ;;  %v16135_v57 = vmax.f32 %v12225_v38, 0.0 }
 0x5b6   : > { %10135 = vmatmul.msk.f32.gmra.mxu3 %vm2104_vm0, %v16135_v57 }
 0x5b7   : > { %v2220_v2 = vpop.f32.mrf.mxu2 }
 0x5b8   : > { %v2221_v61 = vadd.f32 %v12143_v32, %v2220_v2 }
 0x5ba   : > { %v12233_v11 = vadd.f32 %v2221_v61, %v11918_v63  ;;  %v12248_v63 = vmul.f32 0.70710677, %v12124_v43 }
 0x5bc   : > { %16345 = vst [vmem:[#allocation15_spill] sm:$0xff] %v12233_v11  ;;  %v16134_v55 = vmax.f32 %v12233_v11, 0.0  ;;  %v12256_v30 = vrot.slane %v12248_v63, 2 }
 0x5be   : > { %10136 = vmatmul.msk.f32.gmra.mxu3 %vm2104_vm0, %v16134_v55 }
 0x5bf   : > { %v2223_v56 = vpop.f32.mrf.mxu2 }
 0x5c0   : > { %v2224_v59 = vadd.f32 %v12143_v32, %v2223_v56 }
 0x5c2   : > { %v12241_v23 = vadd.f32 %v2224_v59, %v11916_v60  ;;  %v12259_v60 = vrot.slane %v12248_v63, 4 }
 0x5c4   : > { %16346 = vst [vmem:[#allocation16_spill] sm:$0xff] %v12241_v23  ;;  %v16133_v48 = vmax.f32 %v12241_v23, 0.0 }
 0x5c6   : > { %10137 = vmatmul.msk.f32.gmra.mxu3 %vm2104_vm0, %v16133_v48 }
 0x5eb   : > { %v2308_v0 = vpop.f32.mrf.mxu0 }
 0x5ec   : > { %v12262_v9 = vadd.f32 %v12253_v53, %v2308_v0 }
 0x5ee   : > { %16347 = vst [vmem:[#allocation17_spill] sm:$0xff] %v12262_v9  ;;  %v12265_v32 = vrot.slane %v12262_v9, 2  ;;  %v12268_v43 = vrot.slane %v12262_v9, 4  ;;  %v2441_v10 = vmul.f32 %v12248_v63, %v12262_v9  ;;  %v12285_v35 = vrot.slane %v12262_v9, 6 }
 0x5f0   : > { %16348 = vst [vmem:[#allocation18_spill] sm:$0xff] %v12265_v32  ;;  %v2442_v5 = vmul.f32 %v12256_v30, %v12265_v32  ;;  %v2443_v19 = vmul.f32 %v12259_v60, %v12268_v43  ;;  %v2444_v18 = vmul.f32 %v12248_v63, %v12285_v35 }
 0x5f1   : > { %16349 = vst [vmem:[#allocation19_spill] sm:$0xff] %v12268_v43 }
 0x5f2   : > { %2492 = vst [vmem:[#allocation1] ss:$4 sm:$0xff] %v2441_v10 }
 0x5f3   : > { %2494 = vst [vmem:[#allocation1 + $0x1] ss:$4 sm:$0xff] %v2442_v5 }
 0x5f4   : > { %2496 = vst [vmem:[#allocation1 + $0x2] ss:$4 sm:$0xff] %v2443_v19 }
 0x5f5   : > { %16351 = vst [vmem:[#allocation21_spill] sm:$0xff] %v12285_v35 }
 0x5f9   : > { %v2311_v20 = vpop.f32.mrf.mxu3 }
 0x5fa   : > { %v12282_v46 = vadd.f32 %v12253_v53, %v2311_v20 }
 0x5fb   : > { %v12276_v12 = vld.sshfl [vmem:[#allocation1] sm:$0xff pattern:$0x73625140] }
 0x5fc   : > { %2498 = vst [vmem:[#allocation1] ss:$4 sm:$0xff] %v12262_v9  ;;  %v12288_v51 = vrot.slane %v12282_v46, 2  ;;  %v2445_v28 = vmul.f32 %v12256_v30, %v12282_v46  ;;  %v12303_v58 = vrot.slane %v12282_v46, 4  ;;  %v12306_v26 = vrot.slane %v12282_v46, 6 }
 0x5fd   : > { %2500 = vst [vmem:[#allocation1 + $0x1] ss:$4 sm:$0xff] %v12265_v32 }
 0x5fe   : > { %2502 = vst [vmem:[#allocation1 + $0x2] ss:$4 sm:$0xff] %v12268_v43  ;;  %v2446_v50 = vmul.f32 %v12259_v60, %v12288_v51  ;;  %v2447_v44 = vmul.f32 %v12248_v63, %v12303_v58  ;;  %v2448_v15 = vmul.f32 %v12256_v30, %v12306_v26 }
 0x5ff   : > { %16350 = vst [vmem:[#allocation20_spill] sm:$0xff] %v12282_v46 }
 0x600   : > { %16352 = vst [vmem:[#allocation22_spill] sm:$0xff] %v12288_v51 }
 0x601   : > { %v2314_v1 = vpop.f32.mrf.mxu3  ;;  %16353 = vst [vmem:[#allocation23_spill] sm:$0xff] %v12303_v58 }
 0x602   : > { %16354 = vst [vmem:[#allocation24_spill] sm:$0xff] %v12306_v26  ;;  %v12309_v14 = vadd.f32 %v12253_v53, %v2314_v1 }
 0x604   : > { %16355 = vst [vmem:[#allocation25_spill] sm:$0xff] %v12309_v14  ;;  %v2449_v25 = vmul.f32 %v12259_v60, %v12309_v14  ;;  %v12324_v41 = vrot.slane %v12309_v14, 2  ;;  %v12327_v7 = vrot.slane %v12309_v14, 4  ;;  %v12330_v2 = vrot.slane %v12309_v14, 6 }
 0x605   : > { %v2503_v27 = vld.sshfl [vmem:[#allocation1] sm:$0xff pattern:$0x73625140] }
 0x606   : > { %2533 = vst [vmem:[#allocation1] ss:$4 sm:$0xff] %v2444_v18  ;;  %2504 = vrot.lane.b32.xlu0 %v2503_v27, %s10895_s0  ;;  %v2450_v61 = vmul.f32 %v12248_v63, %v12324_v41  ;;  %v2451_v56 = vmul.f32 %v12256_v30, %v12327_v7  ;;  %v2452_v0 = vmul.f32 %v12259_v60, %v12330_v2 }
 0x607   : > { %2535 = vst [vmem:[#allocation1 + $0x1] ss:$4 sm:$0xff] %v2445_v28 }
 0x608   : > { %2537 = vst [vmem:[#allocation1 + $0x2] ss:$4 sm:$0xff] %v2446_v50 }
 0x609   : > { %16356 = vst [vmem:[#allocation26_spill] sm:$0xff] %v12324_v41  ;;  %v2317_v10 = vpop.f32.mrf.mxu3 }
 0x60a   : > { %16357 = vst [vmem:[#allocation27_spill] sm:$0xff] %v12327_v7  ;;  %v12344_v19 = vadd.f32 %v12253_v53, %v2317_v10 }
 0x60b   : > { %16358 = vst [vmem:[#allocation28_spill] sm:$0xff] %v12330_v2 }
 0x60c   : > { %16359 = vst [vmem:[#allocation29_spill] sm:$0xff] %v12344_v19  ;;  %v12348_v20 = vrot.slane %v12344_v19, 2  ;;  %v12351_v18 = vrot.slane %v12344_v19, 4  ;;  %v2453_v27 = vmul.f32 %v12248_v63, %v12344_v19 }
 0x60e   : > { %16360 = vst [vmem:[#allocation30_spill] sm:$0xff] %v12348_v20  ;;  %v2454_v50 = vmul.f32 %v12256_v30, %v12348_v20  ;;  %v2455_v1 = vmul.f32 %v12259_v60, %v12351_v18 }
 0x60f   : > { %v12297_v39 = vld.sshfl [vmem:[#allocation1] sm:$0xff pattern:$0x73625140]  ;;  %16361 = vst [vmem:[#allocation31_spill] sm:$0xff] %v12351_v18 }
 0x610   : > { %2539 = vst [vmem:[#allocation1] ss:$4 sm:$0xff] %v12285_v35 }
 0x611   : > { %2541 = vst [vmem:[#allocation1 + $0x1] ss:$4 sm:$0xff] %v12282_v46 }
 0x612   : > { %2543 = vst [vmem:[#allocation1 + $0x2] ss:$4 sm:$0xff] %v12288_v51 }
 0x619   : > { %v2544_v42 = vld.sshfl [vmem:[#allocation1] sm:$0xff pattern:$0x73625140] }
 0x61a   : > { %2574 = vst [vmem:[#allocation1] ss:$4 sm:$0xff] %v2447_v44  ;;  %2545 = vrot.lane.b32.xlu0 %v2544_v42, %s10895_s0 }
 0x61b   : > { %2576 = vst [vmem:[#allocation1 + $0x1] ss:$4 sm:$0xff] %v2448_v15  ;;  %v2320_v15 = vpop.f32.mrf.mxu3 }
 0x61c   : > { %2578 = vst [vmem:[#allocation1 + $0x2] ss:$4 sm:$0xff] %v2449_v25  ;;  %v12366_v42 = vadd.f32 %v12253_v53, %v2320_v15  ;;  %v12369_v25 = vrot.slane %v12344_v19, 6 }
 0x61e   : > { %16362 = vst [vmem:[#allocation32_spill] sm:$0xff] %v12366_v42 }
 0x61f   : > { %16363 = vst [vmem:[#allocation33_spill] sm:$0xff] %v12369_v25 }
 0x623   : > { %v12318_v21 = vld.sshfl [vmem:[#allocation1] sm:$0xff pattern:$0x73625140] }
 0x624   : > { %2580 = vst [vmem:[#allocation1] ss:$4 sm:$0xff] %v12303_v58 }
 0x625   : > { %2582 = vst [vmem:[#allocation1 + $0x1] ss:$4 sm:$0xff] %v12306_v26 }
 0x626   : > { %2584 = vst [vmem:[#allocation1 + $0x2] ss:$4 sm:$0xff] %v12309_v14 }
 0x62d   : > { %v2585_v59 = vld.sshfl [vmem:[#allocation1] sm:$0xff pattern:$0x73625140] }
 0x62e   : > { %2615 = vst [vmem:[#allocation1] ss:$4 sm:$0xff] %v2450_v61  ;;  %2586 = vrot.lane.b32.xlu0 %v2585_v59, %s10895_s0  ;;  %v12372_v61 = vrot.slane %v12366_v42, 2 }
 0x62f   : > { %2617 = vst [vmem:[#allocation1 + $0x1] ss:$4 sm:$0xff] %v2451_v56  ;;  %v2456_v56 = vmul.f32 %v12248_v63, %v12369_v25 }
 0x630   : > { %2619 = vst [vmem:[#allocation1 + $0x2] ss:$4 sm:$0xff] %v2452_v0  ;;  %v2457_v0 = vmul.f32 %v12256_v30, %v12366_v42  ;;  %v2458_v10 = vmul.f32 %v12259_v60, %v12372_v61 }
 0x631   : > { %16364 = vst [vmem:[#allocation34_spill] sm:$0xff] %v12372_v61 }
 0x637   : > { %v12339_v5 = vld.sshfl [vmem:[#allocation1] sm:$0xff pattern:$0x73625140] }
 0x638   : > { %2621 = vst [vmem:[#allocation1] ss:$4 sm:$0xff] %v12324_v41 }
 0x639   : > { %2623 = vst [vmem:[#allocation1 + $0x1] ss:$4 sm:$0xff] %v12327_v7 }
 0x63a   : > { %2625 = vst [vmem:[#allocation1 + $0x2] ss:$4 sm:$0xff] %v12330_v2 }
 0x641   : > { %v2626_v28 = vld.sshfl [vmem:[#allocation1] sm:$0xff pattern:$0x73625140] }
 0x642   : > { %2656 = vst [vmem:[#allocation1] ss:$4 sm:$0xff] %v2453_v27  ;;  %2627 = vrot.lane.b32.xlu1 %v2626_v28, %s10895_s0  ;;  %v2323_v28 = vpop.f32.mrf.mxu3 }
 0x643   : > { %2658 = vst [vmem:[#allocation1 + $0x1] ss:$4 sm:$0xff] %v2454_v50  ;;  %v12387_v50 = vrot.slane %v12366_v42, 4  ;;  %v12393_v15 = vadd.f32 %v12253_v53, %v2323_v28 }
 0x644   : > { %2660 = vst [vmem:[#allocation1 + $0x2] ss:$4 sm:$0xff] %v2455_v1  ;;  %v12390_v1 = vrot.slane %v12366_v42, 6 }
 0x645   : > { %16365 = vst [vmem:[#allocation35_spill] sm:$0xff] %v12387_v50  ;;  %v12408_v28 = vrot.slane %v12393_v15, 2  ;;  %v12414_v55 = vrot.slane %v12393_v15, 6 }
 0x646   : > { %16366 = vst [vmem:[#allocation36_spill] sm:$0xff] %v12390_v1 }
 0x647   : > { %16367 = vst [vmem:[#allocation37_spill] sm:$0xff] %v12393_v15  ;;  %v2464_v57 = vmul.f32 %v12259_v60, %v12414_v55 }
 0x648   : > { %16368 = vst [vmem:[#allocation38_spill] sm:$0xff] %v12408_v28 }
 0x649   : > { %16370 = vst [vmem:[#allocation40_spill] sm:$0xff] %v12414_v55 }
 0x64a   : > { %v2326_v40 = vpop.f32.mrf.mxu3 }
 0x64b   : > { %v12360_v44 = vld.sshfl [vmem:[#allocation1] sm:$0xff pattern:$0x73625140]  ;;  %v12428_v13 = vadd.f32 %v12253_v53, %v2326_v40 }
 0x64c   : > { %2662 = vst [vmem:[#allocation1] ss:$4 sm:$0xff] %v12344_v19 }
 0x64d   : > { %2664 = vst [vmem:[#allocation1 + $0x1] ss:$4 sm:$0xff] %v12348_v20  ;;  %v12432_v31 = vrot.slane %v12428_v13, 2  ;;  %v12453_v62 = vrot.slane %v12428_v13, 6 }
 0x64e   : > { %2666 = vst [vmem:[#allocation1 + $0x2] ss:$4 sm:$0xff] %v12351_v18 }
 0x64f   : > { %16371 = vst [vmem:[#allocation41_spill] sm:$0xff] %v12428_v13 }
 0x650   : > { %16372 = vst [vmem:[#allocation42_spill] sm:$0xff] %v12432_v31 }
 0x651   : > { %16375 = vst [vmem:[#allocation45_spill] sm:$0xff] %v12453_v62 }
 0x652   : > { %v2329_v6 = vpop.f32.mrf.mxu3 }
 0x653   : > { %v12450_v45 = vadd.f32 %v12253_v53, %v2329_v6 }
 0x655   : > { %v2667_v59 = vld.sshfl [vmem:[#allocation1] sm:$0xff pattern:$0x73625140]  ;;  %16374 = vst [vmem:[#allocation44_spill] sm:$0xff] %v12450_v45  ;;  %v12471_v11 = vrot.slane %v12450_v45, 4 }
 0x656   : > { %2697 = vst [vmem:[#allocation1] ss:$4 sm:$0xff] %v2456_v56  ;;  %2668 = vrot.lane.b32.xlu1 %v2667_v59, %s10895_s0  ;;  %v2459_v56 = vmul.f32 %v12248_v63, %v12387_v50  ;;  %v2460_v59 = vmul.f32 %v12256_v30, %v12390_v1 }
 0x657   : > { %2699 = vst [vmem:[#allocation1 + $0x1] ss:$4 sm:$0xff] %v2457_v0 }
 0x658   : > { %2701 = vst [vmem:[#allocation1 + $0x2] ss:$4 sm:$0xff] %v2458_v10  ;;  %v2461_v10 = vmul.f32 %v12259_v60, %v12393_v15 }
 0x659   : > { %16377 = vst [vmem:[#allocation47_spill] sm:$0xff] %v12471_v11 }
 0x65a   : > { %v2332_v23 = vpop.f32.mrf.mxu3 }
 0x65b   : > { %v12477_v38 = vadd.f32 %v12253_v53, %v2332_v23 }
 0x65d   : > { %16379 = vst [vmem:[#allocation49_spill] sm:$0xff] %v12477_v38  ;;  %v2473_v24 = vmul.f32 %v12259_v60, %v12477_v38  ;;  %v12492_v23 = vrot.slane %v12477_v38, 2  ;;  %v12498_v54 = vrot.slane %v12477_v38, 6 }
 0x65f   : > { %v12381_v27 = vld.sshfl [vmem:[#allocation1] sm:$0xff pattern:$0x73625140]  ;;  %16380 = vst [vmem:[#allocation50_spill] sm:$0xff] %v12492_v23  ;;  %v2476_v29 = vmul.f32 %v12259_v60, %v12498_v54 }
 0x660   : > { %2703 = vst [vmem:[#allocation1] ss:$4 sm:$0xff] %v12369_v25 }
 0x661   : > { %2705 = vst [vmem:[#allocation1 + $0x1] ss:$4 sm:$0xff] %v12366_v42 }
 0x662   : > { %2707 = vst [vmem:[#allocation1 + $0x2] ss:$4 sm:$0xff] %v12372_v61  ;;  %v2335_v16 = vpop.f32.mrf.mxu3 }
 0x663   : > { %16382 = vst [vmem:[#allocation52_spill] sm:$0xff] %v12498_v54  ;;  %v12512_v34 = vadd.f32 %v12253_v53, %v2335_v16 }
 0x665   : > { %16383 = vst [vmem:[#allocation53_spill] sm:$0xff] %v12512_v34  ;;  %v12516_v22 = vrot.slane %v12512_v34, 2  ;;  %v12537_v52 = vrot.slane %v12512_v34, 6 }
 0x667   : > { %16384 = vst [vmem:[#allocation54_spill] sm:$0xff] %v12516_v22 }
 0x668   : > { %16388 = vst [vmem:[#allocation58_spill] sm:$0xff] %v12537_v52 }
 0x669   : > { %v2708_v0 = vld.sshfl [vmem:[#allocation1] sm:$0xff pattern:$0x73625140] }
 0x66a   : > { %2738 = vst [vmem:[#allocation1] ss:$4 sm:$0xff] %v2459_v56  ;;  %2709 = vrot.lane.b32.xlu1 %v2708_v0, %s10895_s0  ;;  %v12411_v56 = vrot.slane %v12393_v15, 4  ;;  %v2338_v4 = vpop.f32.mrf.mxu3 }
 0x66b   : > { %2740 = vst [vmem:[#allocation1 + $0x1] ss:$4 sm:$0xff] %v2460_v59  ;;  %v2462_v59 = vmul.f32 %v12248_v63, %v12408_v28  ;;  %v12534_v3 = vadd.f32 %v12253_v53, %v2338_v4 }
 0x66c   : > { %2742 = vst [vmem:[#allocation1 + $0x2] ss:$4 sm:$0xff] %v2461_v10  ;;  %v2463_v0 = vmul.f32 %v12256_v30, %v12411_v56 }
 0x66d   : > { %16369 = vst [vmem:[#allocation39_spill] sm:$0xff] %v12411_v56 }
 0x66e   : > { %16387 = vst [vmem:[#allocation57_spill] sm:$0xff] %v12534_v3 }
 0x673   : > { %v12402_v48 = vld.sshfl [vmem:[#allocation1] sm:$0xff pattern:$0x73625140] }
 0x674   : > { %2744 = vst [vmem:[#allocation1] ss:$4 sm:$0xff] %v12387_v50 }
 0x675   : > { %2746 = vst [vmem:[#allocation1 + $0x1] ss:$4 sm:$0xff] %v12390_v1 }
 0x676   : > { %2748 = vst [vmem:[#allocation1 + $0x2] ss:$4 sm:$0xff] %v12393_v15 }
 0x67d   : > { %v2749_v10 = vld.sshfl [vmem:[#allocation1] sm:$0xff pattern:$0x73625140] }
 0x67e   : > { %2779 = vst [vmem:[#allocation1] ss:$4 sm:$0xff] %v2462_v59  ;;  %2750 = vrot.lane.b32.xlu2 %v2749_v10, %s10895_s0  ;;  %v12435_v59 = vrot.slane %v12428_v13, 4  ;;  %v2466_v10 = vmul.f32 %v12256_v30, %v12432_v31 }
 0x67f   : > { %2781 = vst [vmem:[#allocation1 + $0x1] ss:$4 sm:$0xff] %v2463_v0 }
 0x680   : > { %2783 = vst [vmem:[#allocation1 + $0x2] ss:$4 sm:$0xff] %v2464_v57  ;;  %v2465_v57 = vmul.f32 %v12248_v63, %v12428_v13  ;;  %v2467_v36 = vmul.f32 %v12259_v60, %v12435_v59 }
 0x681   : > { %16373 = vst [vmem:[#allocation43_spill] sm:$0xff] %v12435_v59 }
 0x687   : > { %v12423_v37 = vld.sshfl [vmem:[#allocation1] sm:$0xff pattern:$0x73625140] }
 0x688   : > { %2785 = vst [vmem:[#allocation1] ss:$4 sm:$0xff] %v12408_v28 }
 0x689   : > { %2787 = vst [vmem:[#allocation1 + $0x1] ss:$4 sm:$0xff] %v12411_v56 }
 0x68a   : > { %2789 = vst [vmem:[#allocation1 + $0x2] ss:$4 sm:$0xff] %v12414_v55 }
 0x691   : > { %v2790_v0 = vld.sshfl [vmem:[#allocation1] sm:$0xff pattern:$0x73625140] }
 0x692   : > { %2820 = vst [vmem:[#allocation1] ss:$4 sm:$0xff] %v2465_v57  ;;  %2791 = vrot.lane.b32.xlu1 %v2790_v0, %s10895_s0  ;;  %v12456_v57 = vrot.slane %v12450_v45, 2 }
 0x693   : > { %2822 = vst [vmem:[#allocation1 + $0x1] ss:$4 sm:$0xff] %v2466_v10  ;;  %v2469_v10 = vmul.f32 %v12256_v30, %v12450_v45 }
 0x694   : > { %2824 = vst [vmem:[#allocation1 + $0x2] ss:$4 sm:$0xff] %v2467_v36  ;;  %v2468_v36 = vmul.f32 %v12248_v63, %v12453_v62  ;;  %v2470_v47 = vmul.f32 %v12259_v60, %v12456_v57 }
 0x695   : > { %16376 = vst [vmem:[#allocation46_spill] sm:$0xff] %v12456_v57 }
 0x69b   : > { %v12444_v40 = vld.sshfl [vmem:[#allocation1] sm:$0xff pattern:$0x73625140] }
 0x69c   : > { %2826 = vst [vmem:[#allocation1] ss:$4 sm:$0xff] %v12428_v13 }
 0x69d   : > { %2828 = vst [vmem:[#allocation1 + $0x1] ss:$4 sm:$0xff] %v12432_v31 }
 0x69e   : > { %2830 = vst [vmem:[#allocation1 + $0x2] ss:$4 sm:$0xff] %v12435_v59 }
 0x6a5   : > { %v2831_v0 = vld.sshfl [vmem:[#allocation1] sm:$0xff pattern:$0x73625140] }
 0x6a6   : > { %2861 = vst [vmem:[#allocation1] ss:$4 sm:$0xff] %v2468_v36  ;;  %2832 = vrot.lane.b32.xlu2 %v2831_v0, %s10895_s0  ;;  %v12474_v36 = vrot.slane %v12450_v45, 6 }
 0x6a7   : > { %2863 = vst [vmem:[#allocation1 + $0x1] ss:$4 sm:$0xff] %v2469_v10 }
 0x6a8   : > { %2865 = vst [vmem:[#allocation1 + $0x2] ss:$4 sm:$0xff] %v2470_v47  ;;  %v2471_v47 = vmul.f32 %v12248_v63, %v12471_v11  ;;  %v2472_v0 = vmul.f32 %v12256_v30, %v12474_v36 }
 0x6a9   : > { %16378 = vst [vmem:[#allocation48_spill] sm:$0xff] %v12474_v36 }
 0x6af   : > { %v12465_v6 = vld.sshfl [vmem:[#allocation1] sm:$0xff pattern:$0x73625140] }
 0x6b0   : > { %2867 = vst [vmem:[#allocation1] ss:$4 sm:$0xff] %v12453_v62 }
 0x6b1   : > { %2869 = vst [vmem:[#allocation1 + $0x1] ss:$4 sm:$0xff] %v12450_v45 }
 0x6b2   : > { %2871 = vst [vmem:[#allocation1 + $0x2] ss:$4 sm:$0xff] %v12456_v57 }
 0x6b9   : > { %v2872_v10 = vld.sshfl [vmem:[#allocation1] sm:$0xff pattern:$0x73625140] }
 0x6ba   : > { %2902 = vst [vmem:[#allocation1] ss:$4 sm:$0xff] %v2471_v47  ;;  %2873 = vrot.lane.b32.xlu2 %v2872_v10, %s10895_s0  ;;  %v12495_v47 = vrot.slane %v12477_v38, 4 }
 0x6bb   : > { %2904 = vst [vmem:[#allocation1 + $0x1] ss:$4 sm:$0xff] %v2472_v0 }
 0x6bc   : > { %2906 = vst [vmem:[#allocation1 + $0x2] ss:$4 sm:$0xff] %v2473_v24  ;;  %v2474_v24 = vmul.f32 %v12248_v63, %v12492_v23  ;;  %v2475_v0 = vmul.f32 %v12256_v30, %v12495_v47 }
 0x6bd   : > { %16381 = vst [vmem:[#allocation51_spill] sm:$0xff] %v12495_v47 }
 0x6c3   : > { %v12486_v33 = vld.sshfl [vmem:[#allocation1] sm:$0xff pattern:$0x73625140] }
 0x6c4   : > { %2908 = vst [vmem:[#allocation1] ss:$4 sm:$0xff] %v12471_v11 }
 0x6c5   : > { %2910 = vst [vmem:[#allocation1 + $0x1] ss:$4 sm:$0xff] %v12474_v36 }
 0x6c6   : > { %2912 = vst [vmem:[#allocation1 + $0x2] ss:$4 sm:$0xff] %v12477_v38 }
 0x6cd   : > { %v2913_v10 = vld.sshfl [vmem:[#allocation1] sm:$0xff pattern:$0x73625140] }
 0x6ce   : > { %2943 = vst [vmem:[#allocation1] ss:$4 sm:$0xff] %v2474_v24  ;;  %2914 = vrot.lane.b32.xlu2 %v2913_v10, %s10895_s0  ;;  %v12519_v24 = vrot.slane %v12512_v34, 4  ;;  %v2478_v10 = vmul.f32 %v12256_v30, %v12516_v22 }
 0x6cf   : > { %2945 = vst [vmem:[#allocation1 + $0x1] ss:$4 sm:$0xff] %v2475_v0 }
 0x6d0   : > { %2947 = vst [vmem:[#allocation1 + $0x2] ss:$4 sm:$0xff] %v2476_v29  ;;  %v2477_v29 = vmul.f32 %v12248_v63, %v12512_v34  ;;  %v2479_v8 = vmul.f32 %v12259_v60, %v12519_v24 }
 0x6d1   : > { %16385 = vst [vmem:[#allocation55_spill] sm:$0xff] %v12519_v24 }
 0x6d7   : > { %v12507_v17 = vld.sshfl [vmem:[#allocation1] sm:$0xff pattern:$0x73625140] }
 0x6d8   : > { %2949 = vst [vmem:[#allocation1] ss:$4 sm:$0xff] %v12492_v23 }
 0x6d9   : > { %2951 = vst [vmem:[#allocation1 + $0x1] ss:$4 sm:$0xff] %v12495_v47 }
 0x6da   : > { %2953 = vst [vmem:[#allocation1 + $0x2] ss:$4 sm:$0xff] %v12498_v54 }
 0x6e1   : > { %v2954_v0 = vld.sshfl [vmem:[#allocation1] sm:$0xff pattern:$0x73625140] }
 0x6e2   : > { %2984 = vst [vmem:[#allocation1] ss:$4 sm:$0xff] %v2477_v29  ;;  %2955 = vrot.lane.b32.xlu2 %v2954_v0, %s10895_s0  ;;  %v12540_v29 = vrot.slane %v12534_v3, 2 }
 0x6e3   : > { %2986 = vst [vmem:[#allocation1 + $0x1] ss:$4 sm:$0xff] %v2478_v10  ;;  %v2481_v10 = vmul.f32 %v12256_v30, %v12534_v3 }
 0x6e4   : > { %2988 = vst [vmem:[#allocation1 + $0x2] ss:$4 sm:$0xff] %v2479_v8  ;;  %v2480_v8 = vmul.f32 %v12248_v63, %v12537_v52 }
 0x6e5   : > { %16389 = vst [vmem:[#allocation59_spill] sm:$0xff] %v12540_v29 }
 0x6eb   : > { %v12528_v16 = vld.sshfl [vmem:[#allocation1] sm:$0xff pattern:$0x73625140] }
 0x6ec   : > { %16386 = vst [vmem:[#allocation56_spill] sm:$0xff] %v12528_v16  ;;  %v2482_v16 = vmul.f32 %v12259_v60, %v12540_v29 }
 0x6ed   : > { %2990 = vst [vmem:[#allocation1] ss:$4 sm:$0xff] %v12512_v34 }
 0x6ee   : > { %2992 = vst [vmem:[#allocation1 + $0x1] ss:$4 sm:$0xff] %v12516_v22  ;;  %v12555_v22 = vrot.slane %v12534_v3, 4 }
 0x6ef   : > { %2994 = vst [vmem:[#allocation1 + $0x2] ss:$4 sm:$0xff] %v12519_v24  ;;  %v2341_v24 = vpop.f32.mrf.mxu3 }
 0x6f0   : > { %16391 = vst [vmem:[#allocation61_spill] sm:$0xff] %v12555_v22  ;;  %v12561_v34 = vadd.f32 %v12253_v53, %v2341_v24 }
 0x6f2   : > { %16393 = vst [vmem:[#allocation63_spill] sm:$0xff] %v12561_v34  ;;  %v12576_v53 = vrot.slane %v12561_v34, 2  ;;  %v12579_v24 = vrot.slane %v12561_v34, 4 }
 0x6f4   : > { %16395 = vst [vmem:[#allocation65_spill] sm:$0xff] %v12576_v53 }
 0x6f5   : > { %16396 = vst [vmem:[#allocation66_spill] sm:$0xff] %v12579_v24 }
 0x6f6   : > { %v2995_v0 = vld.sshfl [vmem:[#allocation1] sm:$0xff pattern:$0x73625140] }
 0x6f7   : > { %3025 = vst [vmem:[#allocation1] ss:$4 sm:$0xff] %v2480_v8  ;;  %2996 = vrot.lane.b32.xlu0 %v2995_v0, %s10895_s0  ;;  %v12558_v8 = vrot.slane %v12534_v3, 6 }
 0x6f8   : > { %3027 = vst [vmem:[#allocation1 + $0x1] ss:$4 sm:$0xff] %v2481_v10 }
 0x6f9   : > { %3029 = vst [vmem:[#allocation1 + $0x2] ss:$4 sm:$0xff] %v2482_v16  ;;  %v2483_v16 = vmul.f32 %v12248_v63, %v12555_v22  ;;  %v2484_v0 = vmul.f32 %v12256_v30, %v12558_v8 }
 0x6fa   : > { %16392 = vst [vmem:[#allocation62_spill] sm:$0xff] %v12558_v8 }
 0x700   : > { %v12549_v4 = vld.sshfl [vmem:[#allocation1] sm:$0xff pattern:$0x73625140] }
 0x701   : > { %16390 = vst [vmem:[#allocation60_spill] sm:$0xff] %v12549_v4  ;;  %v2485_v4 = vmul.f32 %v12259_v60, %v12561_v34 }
 0x702   : > { %3031 = vst [vmem:[#allocation1] ss:$4 sm:$0xff] %v12537_v52 }
 0x703   : > { %3033 = vst [vmem:[#allocation1 + $0x1] ss:$4 sm:$0xff] %v12534_v3 }
 0x704   : > { %3035 = vst [vmem:[#allocation1 + $0x2] ss:$4 sm:$0xff] %v12540_v29 }
 0x70b   : > { %v3036_v10 = vld.sshfl [vmem:[#allocation1] sm:$0xff pattern:$0x73625140] }
 0x70c   : > { %3066 = vst [vmem:[#allocation1] ss:$4 sm:$0xff] %v2483_v16  ;;  %3037 = vrot.lane.b32.xlu0 %v3036_v10, %s10895_s0  ;;  %v12582_v16 = vrot.slane %v12561_v34, 6 }
 0x70d   : > { %3068 = vst [vmem:[#allocation1 + $0x1] ss:$4 sm:$0xff] %v2484_v0  ;;  %v2487_v0 = vmul.f32 %v12256_v30, %v12579_v24 }
 0x70e   : > { %3070 = vst [vmem:[#allocation1 + $0x2] ss:$4 sm:$0xff] %v2485_v4  ;;  %v2486_v4 = vmul.f32 %v12248_v63, %v12576_v53 }
 0x70f   : > { %16397 = vst [vmem:[#allocation67_spill] sm:$0xff] %v12582_v16 }
 0x715   : > { %v12570_v29 = vld.sshfl [vmem:[#allocation1] sm:$0xff pattern:$0x73625140] }
 0x716   : > { %16394 = vst [vmem:[#allocation64_spill] sm:$0xff] %v12570_v29  ;;  %v2488_v29 = vmul.f32 %v12259_v60, %v12582_v16 }
 0x717   : > { %3072 = vst [vmem:[#allocation1] ss:$4 sm:$0xff] %v12555_v22 }
 0x718   : > { %3074 = vst [vmem:[#allocation1 + $0x1] ss:$4 sm:$0xff] %v12558_v8 }
 0x719   : > { %3076 = vst [vmem:[#allocation1 + $0x2] ss:$4 sm:$0xff] %v12561_v34  ;;  %v12595_v34 = vmul.f32 0.70710677, %v12126_v49 }
 0x71b   : > { %v12600_v63 = vrot.slane %v12595_v34, 2  ;;  %v12603_v30 = vrot.slane %v12595_v34, 4  ;;  %v3393_v60 = vmul.f32 %v12595_v34, %v12262_v9 }
 0x71d   : > { %v3395_v49 = vmul.f32 %v12603_v30, %v12268_v43 }
 0x720   : > { %v3077_v10 = vld.sshfl [vmem:[#allocation1] sm:$0xff pattern:$0x73625140] }
 0x721   : > { %3107 = vst [vmem:[#allocation1] ss:$4 sm:$0xff] %v2486_v4  ;;  %3078 = vrot.lane.b32.xlu0 %v3077_v10, %s10895_s0  ;;  %v3396_v10 = vmul.f32 %v12595_v34, %v12285_v35 }
 0x722   : > { %3109 = vst [vmem:[#allocation1 + $0x1] ss:$4 sm:$0xff] %v2487_v0 }
 0x723   : > { %3111 = vst [vmem:[#allocation1 + $0x2] ss:$4 sm:$0xff] %v2488_v29  ;;  %v3394_v29 = vmul.f32 %v12600_v63, %v12265_v32 }
 0x72a   : > { %v12591_v8 = vld.sshfl [vmem:[#allocation1] sm:$0xff pattern:$0x73625140] }
 0x72b   : > { %16398 = vst [vmem:[#allocation68_spill] sm:$0xff] %v12591_v8  ;;  %v3397_v8 = vmul.f32 %v12600_v63, %v12282_v46 }
 0x72c   : > { %3113 = vst [vmem:[#allocation1] ss:$4 sm:$0xff] %v12576_v53 }
 0x72d   : > { %3115 = vst [vmem:[#allocation1 + $0x1] ss:$4 sm:$0xff] %v12579_v24 }
 0x72e   : > { %3117 = vst [vmem:[#allocation1 + $0x2] ss:$4 sm:$0xff] %v12582_v16 }
 0x735   : > { %v3118_v4 = vld.sshfl [vmem:[#allocation1] sm:$0xff pattern:$0x73625140] }
 0x736   : > { %3444 = vst [vmem:[#allocation1] ss:$4 sm:$0xff] %v3393_v60  ;;  %3119 = vrot.lane.b32.xlu0 %v3118_v4, %s10895_s0  ;;  %v3398_v60 = vmul.f32 %v12603_v30, %v12288_v51  ;;  %v3399_v4 = vmul.f32 %v12595_v34, %v12303_v58 }
 0x737   : > { %3446 = vst [vmem:[#allocation1 + $0x1] ss:$4 sm:$0xff] %v3394_v29 }
 0x738   : > { %3448 = vst [vmem:[#allocation1 + $0x2] ss:$4 sm:$0xff] %v3395_v49  ;;  %v3400_v49 = vmul.f32 %v12600_v63, %v12306_v26 }
 0x73f   : > { %v12612_v0 = vld.sshfl [vmem:[#allocation1] sm:$0xff pattern:$0x73625140] }
 0x740   : > { %16399 = vst [vmem:[#allocation69_spill] sm:$0xff] %v12612_v0 }
 0x741   : > { %3450 = vst [vmem:[#allocation1] ss:$4 sm:$0xff] %v12262_v9 }
 0x742   : > { %3452 = vst [vmem:[#allocation1 + $0x1] ss:$4 sm:$0xff] %v12265_v32 }
 0x743   : > { %3454 = vst [vmem:[#allocation1 + $0x2] ss:$4 sm:$0xff] %v12268_v43 }
 0x74a   : > { %v3455_v16 = vld.sshfl [vmem:[#allocation1] sm:$0xff pattern:$0x73625140] }
 0x74b   : > { %3485 = vst [vmem:[#allocation1] ss:$4 sm:$0xff] %v3396_v10  ;;  %3456 = vrot.lane.b32.xlu1 %v3455_v16, %s10895_s0  ;;  %v3401_v16 = vmul.f32 %v12603_v30, %v12309_v14  ;;  %v3402_v10 = vmul.f32 %v12595_v34, %v12324_v41 }
 0x74c   : > { %3487 = vst [vmem:[#allocation1 + $0x1] ss:$4 sm:$0xff] %v3397_v8 }
 0x74d   : > { %3489 = vst [vmem:[#allocation1 + $0x2] ss:$4 sm:$0xff] %v3398_v60  ;;  %v3403_v60 = vmul.f32 %v12600_v63, %v12327_v7 }
 0x754   : > { %v12624_v29 = vld.sshfl [vmem:[#allocation1] sm:$0xff pattern:$0x73625140] }
 0x755   : > { %16400 = vst [vmem:[#allocation70_spill] sm:$0xff] %v12624_v29 }
 0x756   : > { %3491 = vst [vmem:[#allocation1] ss:$4 sm:$0xff] %v12285_v35 }
 0x757   : > { %3493 = vst [vmem:[#allocation1 + $0x1] ss:$4 sm:$0xff] %v12282_v46 }
 0x758   : > { %3495 = vst [vmem:[#allocation1 + $0x2] ss:$4 sm:$0xff] %v12288_v51 }
 0x75f   : > { %v3496_v0 = vld.sshfl [vmem:[#allocation1] sm:$0xff pattern:$0x73625140] }
 0x760   : > { %3526 = vst [vmem:[#allocation1] ss:$4 sm:$0xff] %v3399_v4  ;;  %3497 = vrot.lane.b32.xlu1 %v3496_v0, %s10895_s0  ;;  %v3404_v0 = vmul.f32 %v12603_v30, %v12330_v2  ;;  %v12648_v4 = vpop.permute.xlu0 %10498 }
 0x761   : > { %3528 = vst [vmem:[#allocation1 + $0x1] ss:$4 sm:$0xff] %v3400_v49 }
 0x762   : > { %3530 = vst [vmem:[#allocation1 + $0x2] ss:$4 sm:$0xff] %v3401_v16 }
 0x768   : > { %v2505_v16 = vpop.permute.xlu0 %2504 }
 0x769   : > { %v12636_v8 = vld.sshfl [vmem:[#allocation1] sm:$0xff pattern:$0x73625140]  ;;  %10139 = vmatpush.xpose.msk.msrb.mxu0 %vm2104_vm0, %v2505_v16 }
 0x76a   : > { %3532 = vst [vmem:[#allocation1] ss:$4 sm:$0xff] %v12303_v58 }
 0x76b   : > { %3534 = vst [vmem:[#allocation1 + $0x1] ss:$4 sm:$0xff] %v12306_v26 }
 0x76c   : > { %3536 = vst [vmem:[#allocation1 + $0x2] ss:$4 sm:$0xff] %v12309_v14  ;;  %10140 = vmatmul.msk.f32.vlgmr.msrb.gmra.mxu0 %vm2104_vm0, %v12276_v12  ;;  %v3408_v12 = vmul.f32 %v12595_v34, %v12369_v25 }
 0x770   : > { %v2546_v16 = vpop.permute.xlu0 %2545 }
 0x771   : > { %10141 = vmatpush.xpose.msk.msra.mxu1 %vm2104_vm0, %v2546_v16 }
 0x773   : > { %v3537_v29 = vld.sshfl [vmem:[#allocation1] sm:$0xff pattern:$0x73625140] }
 0x774   : > { %3567 = vst [vmem:[#allocation1] ss:$4 sm:$0xff] %v3402_v10  ;;  %3538 = vrot.lane.b32.xlu1 %v3537_v29, %s10895_s0  ;;  %v3405_v29 = vmul.f32 %v12595_v34, %v12344_v19  ;;  %v3406_v10 = vmul.f32 %v12600_v63, %v12348_v20  ;;  %10142 = vmatmul.msk.f32.vlgmr.msra.gmra.mxu1 %vm2104_vm0, %v12297_v39 }
 0x775   : > { %3569 = vst [vmem:[#allocation1 + $0x1] ss:$4 sm:$0xff] %v3403_v60 }
 0x776   : > { %3571 = vst [vmem:[#allocation1 + $0x2] ss:$4 sm:$0xff] %v3404_v0  ;;  %v3407_v0 = vmul.f32 %v12603_v30, %v12351_v18 }
 0x778   : > { %v2587_v39 = vpop.permute.xlu0 %2586 }
 0x779   : > { %10143 = vmatpush.xpose.msk.msra.mxu2 %vm2104_vm0, %v2587_v39 }
 0x77c   : > { %10144 = vmatmul.msk.f32.vlgmr.msra.gmra.mxu2 %vm2104_vm0, %v12318_v21  ;;  %v3413_v21 = vmul.f32 %v12603_v30, %v12393_v15 }
 0x77d   : > { %v12650_v49 = vld.sshfl [vmem:[#allocation1] sm:$0xff pattern:$0x73625140] }
 0x77e   : > { %16401 = vst [vmem:[#allocation71_spill] sm:$0xff] %v12650_v49 }
 0x77f   : > { %3573 = vst [vmem:[#allocation1] ss:$4 sm:$0xff] %v12324_v41 }
 0x780   : > { %3575 = vst [vmem:[#allocation1 + $0x1] ss:$4 sm:$0xff] %v12327_v7 }
 0x781   : > { %3577 = vst [vmem:[#allocation1 + $0x2] ss:$4 sm:$0xff] %v12330_v2 }
 0x788   : > { %v3578_v60 = vld.sshfl [vmem:[#allocation1] sm:$0xff pattern:$0x73625140] }
 0x789   : > { %3608 = vst [vmem:[#allocation1] ss:$4 sm:$0xff] %v3405_v29  ;;  %3579 = vrot.lane.b32.xlu1 %v3578_v60, %s10895_s0  ;;  %v3409_v29 = vmul.f32 %v12600_v63, %v12366_v42  ;;  %v12679_v60 = vpop.permute.xlu1 %10503 }
 0x78a   : > { %3610 = vst [vmem:[#allocation1 + $0x1] ss:$4 sm:$0xff] %v3406_v10 }
 0x78b   : > { %3612 = vst [vmem:[#allocation1 + $0x2] ss:$4 sm:$0xff] %v3407_v0  ;;  %v3410_v0 = vmul.f32 %v12603_v30, %v12372_v61 }
 0x78c   : > { %16403 = vst [vmem:[#allocation73_spill] sm:$0xff] %v12679_v60 }
 0x792   : > { %v12666_v49 = vld.sshfl [vmem:[#allocation1] sm:$0xff pattern:$0x73625140] }
 0x793   : > { %16402 = vst [vmem:[#allocation72_spill] sm:$0xff] %v12666_v49  ;;  %v12688_v49 = vpop.permute.xlu1 %10513 }
 0x794   : > { %3614 = vst [vmem:[#allocation1] ss:$4 sm:$0xff] %v12344_v19 }
 0x795   : > { %3616 = vst [vmem:[#allocation1 + $0x1] ss:$4 sm:$0xff] %v12348_v20 }
 0x796   : > { %3618 = vst [vmem:[#allocation1 + $0x2] ss:$4 sm:$0xff] %v12351_v18 }
 0x797   : > { %16405 = vst [vmem:[#allocation75_spill] sm:$0xff] %v12688_v49  ;;  %v12704_v49 = vpop.permute.xlu2 %10508 }
 0x798   : > { %16406 = vst [vmem:[#allocation76_spill] sm:$0xff] %v12704_v49 }
 0x79d   : > { %v12677_v10 = vld.sshfl [vmem:[#allocation1] sm:$0xff pattern:$0x73625140] }
 0x79e   : > { %3649 = vst [vmem:[#allocation1] ss:$4 sm:$0xff] %v3408_v12  ;;  %v3411_v12 = vmul.f32 %v12595_v34, %v12387_v50 }
 0x79f   : > { %3651 = vst [vmem:[#allocation1 + $0x1] ss:$4 sm:$0xff] %v3409_v29  ;;  %v2628_v29 = vpop.permute.xlu1 %2627 }
 0x7a0   : > { %3653 = vst [vmem:[#allocation1 + $0x2] ss:$4 sm:$0xff] %v3410_v0  ;;  %v3412_v0 = vmul.f32 %v12600_v63, %v12390_v1  ;;  %10145 = vmatpush.xpose.msk.msra.mxu3 %vm2104_vm0, %v2628_v29  ;;  %v12711_v29 = vpop.permute.xlu2 %6385 }
 0x7a1   : > { %16407 = vst [vmem:[#allocation77_spill] sm:$0xff] %v12711_v29 }
 0x7a3   : > { %10146 = vmatmul.msk.f32.vlgmr.msra.gmra.mxu3 %vm2104_vm0, %v12339_v5  ;;  %v3415_v5 = vmul.f32 %v12600_v63, %v12411_v56 }
 0x7a7   : > { %v12686_v16 = vld.sshfl [vmem:[#allocation1] sm:$0xff pattern:$0x73625140] }
 0x7a8   : > { %16404 = vst [vmem:[#allocation74_spill] sm:$0xff] %v12686_v16  ;;  %v2751_v29 = vpop.permute.xlu2 %2750 }
 0x7a9   : > { %3655 = vst [vmem:[#allocation1] ss:$4 sm:$0xff] %v12369_v25  ;;  %10151 = vmatpush.xpose.msk.msrb.mxu2 %vm2104_vm0, %v2751_v29  ;;  %v3417_v29 = vmul.f32 %v12595_v34, %v12428_v13 }
 0x7aa   : > { %3657 = vst [vmem:[#allocation1 + $0x1] ss:$4 sm:$0xff] %v12366_v42 }
 0x7ab   : > { %3659 = vst [vmem:[#allocation1 + $0x2] ss:$4 sm:$0xff] %v12372_v61  ;;  %v2669_v61 = vpop.permute.xlu1 %2668 }
 0x7ac   : > { %10147 = vmatpush.xpose.msk.msra.mxu0 %vm2104_vm0, %v2669_v61  ;;  %10152 = vmatmul.msk.f32.vlgmr.msrb.gmra.mxu2 %vm2104_vm0, %v12402_v48  ;;  %v3418_v48 = vmul.f32 %v12600_v63, %v12432_v31 }
 0x7af   : > { %10148 = vmatmul.msk.f32.vlgmr.msra.gmra.mxu0 %vm2104_vm0, %v12360_v44 }
 0x7b2   : > { %v12697_v39 = vld.sshfl [vmem:[#allocation1] sm:$0xff pattern:$0x73625140] }
 0x7b3   : > { %3690 = vst [vmem:[#allocation1] ss:$4 sm:$0xff] %v3411_v12  ;;  %v3414_v12 = vmul.f32 %v12595_v34, %v12408_v28  ;;  %v2710_v44 = vpop.permute.xlu1 %2709 }
 0x7b4   : > { %3692 = vst [vmem:[#allocation1 + $0x1] ss:$4 sm:$0xff] %v3412_v0  ;;  %10149 = vmatpush.xpose.msk.msrb.mxu1 %vm2104_vm0, %v2710_v44  ;;  %v3420_v44 = vmul.f32 %v12595_v34, %v12453_v62 }
 0x7b5   : > { %3694 = vst [vmem:[#allocation1 + $0x2] ss:$4 sm:$0xff] %v3413_v21  ;;  %v3416_v21 = vmul.f32 %v12603_v30, %v12414_v55 }
 0x7b7   : > { %10150 = vmatmul.msk.f32.vlgmr.msrb.gmra.mxu1 %vm2104_vm0, %v12381_v27  ;;  %v2833_v27 = vpop.permute.xlu2 %2832 }
 0x7b8   : > { %10155 = vmatpush.xpose.msk.msrb.mxu0 %vm2104_vm0, %v2833_v27 }
 0x7bb   : > { %10156 = vmatmul.msk.f32.vlgmr.msrb.gmra.mxu0 %vm2104_vm0, %v12444_v40  ;;  %v2792_v49 = vpop.permute.xlu1 %2791 }
 0x7bc   : > { %v12706_v16 = vld.sshfl [vmem:[#allocation1] sm:$0xff pattern:$0x73625140]  ;;  %10153 = vmatpush.xpose.msk.msrb.mxu3 %vm2104_vm0, %v2792_v49  ;;  %v3423_v49 = vmul.f32 %v12595_v34, %v12471_v11 }
 0x7bd   : > { %3696 = vst [vmem:[#allocation1] ss:$4 sm:$0xff] %v12387_v50 }
 0x7be   : > { %3698 = vst [vmem:[#allocation1 + $0x1] ss:$4 sm:$0xff] %v12390_v1 }
 0x7bf   : > { %3700 = vst [vmem:[#allocation1 + $0x2] ss:$4 sm:$0xff] %v12393_v15  ;;  %10154 = vmatmul.msk.f32.vlgmr.msrb.gmra.mxu3 %vm2104_vm0, %v12423_v37  ;;  %v2874_v40 = vpop.permute.xlu2 %2873  ;;  %v3424_v37 = vmul.f32 %v12600_v63, %v12474_v36 }
 0x7c0   : > { %10157 = vmatpush.xpose.msk.msra.mxu1 %vm2104_vm0, %v2874_v40 }
 0x7c3   : > { %10158 = vmatmul.msk.f32.vlgmr.msra.gmra.mxu1 %vm2104_vm0, %v12465_v6 }
 0x7c6   : > { %v12720_v0 = vld.sshfl [vmem:[#allocation1] sm:$0xff pattern:$0x73625140] }
 0x7c7   : > { %3731 = vst [vmem:[#allocation1] ss:$4 sm:$0xff] %v3414_v12  ;;  %v2915_v6 = vpop.permute.xlu2 %2914 }
 0x7c8   : > { %3733 = vst [vmem:[#allocation1 + $0x1] ss:$4 sm:$0xff] %v3415_v5  ;;  %v3419_v5 = vmul.f32 %v12603_v30, %v12435_v59  ;;  %10159 = vmatpush.xpose.msk.msra.mxu2 %vm2104_vm0, %v2915_v6 }
 0x7c9   : > { %3735 = vst [vmem:[#allocation1 + $0x2] ss:$4 sm:$0xff] %v3416_v21 }
 0x7cb   : > { %10160 = vmatmul.msk.f32.vlgmr.msra.gmra.mxu2 %vm2104_vm0, %v12486_v33  ;;  %v3428_v33 = vmul.f32 %v12603_v30, %v12498_v54 }
 0x7d0   : > { %v12727_v61 = vld.sshfl [vmem:[#allocation1] sm:$0xff pattern:$0x73625140] }
 0x7d1   : > { %3737 = vst [vmem:[#allocation1] ss:$4 sm:$0xff] %v12408_v28 }
 0x7d2   : > { %3739 = vst [vmem:[#allocation1 + $0x1] ss:$4 sm:$0xff] %v12411_v56 }
 0x7d3   : > { %3741 = vst [vmem:[#allocation1 + $0x2] ss:$4 sm:$0xff] %v12414_v55 }
 0x7da   : > { %v12739_v12 = vld.sshfl [vmem:[#allocation1] sm:$0xff pattern:$0x73625140] }
 0x7db   : > { %3772 = vst [vmem:[#allocation1] ss:$4 sm:$0xff] %v3417_v29  ;;  %v3421_v29 = vmul.f32 %v12600_v63, %v12450_v45 }
 0x7dc   : > { %3774 = vst [vmem:[#allocation1 + $0x1] ss:$4 sm:$0xff] %v3418_v48 }
 0x7dd   : > { %3776 = vst [vmem:[#allocation1 + $0x2] ss:$4 sm:$0xff] %v3419_v5  ;;  %v3422_v5 = vmul.f32 %v12603_v30, %v12456_v57 }
 0x7e4   : > { %v12743_v21 = vld.sshfl [vmem:[#allocation1] sm:$0xff pattern:$0x73625140] }
 0x7e5   : > { %16408 = vst [vmem:[#allocation78_spill] sm:$0xff] %v12743_v21 }
 0x7e6   : > { %3778 = vst [vmem:[#allocation1] ss:$4 sm:$0xff] %v12428_v13 }
 0x7e7   : > { %3780 = vst [vmem:[#allocation1 + $0x1] ss:$4 sm:$0xff] %v12432_v31 }
 0x7e8   : > { %3782 = vst [vmem:[#allocation1 + $0x2] ss:$4 sm:$0xff] %v12435_v59 }
 0x7ef   : > { %v12755_v48 = vld.sshfl [vmem:[#allocation1] sm:$0xff pattern:$0x73625140] }
 0x7f0   : > { %3813 = vst [vmem:[#allocation1] ss:$4 sm:$0xff] %v3420_v44 }
 0x7f1   : > { %3815 = vst [vmem:[#allocation1 + $0x1] ss:$4 sm:$0xff] %v3421_v29  ;;  %v12776_v29 = vpop.f32.mrf.mxu0 }
 0x7f2   : > { %3817 = vst [vmem:[#allocation1 + $0x2] ss:$4 sm:$0xff] %v3422_v5  ;;  %v3425_v5 = vmul.f32 %v12603_v30, %v12477_v38  ;;  %v3146_v40 = vsel %vm3145_vm14, %v12776_v29, -inf }
 0x7f3   : > { %3147 = vmax.xlane.f32.xlu2 %v3146_v40  ;;  %v3427_v40 = vmul.f32 %v12600_v63, %v12495_v47 }
 0x7f9   : > { %v12762_v27 = vld.sshfl [vmem:[#allocation1] sm:$0xff pattern:$0x73625140] }
 0x7fa   : > { %16409 = vst [vmem:[#allocation79_spill] sm:$0xff] %v12762_v27 }
 0x7fb   : > { %3819 = vst [vmem:[#allocation1] ss:$4 sm:$0xff] %v12453_v62 }
 0x7fc   : > { %3821 = vst [vmem:[#allocation1 + $0x1] ss:$4 sm:$0xff] %v12450_v45 }
 0x7fd   : > { %3823 = vst [vmem:[#allocation1 + $0x2] ss:$4 sm:$0xff] %v12456_v57 }
 0x7ff   : > { %v12810_v21 = vpop.f32.mrf.mxu2 }
 0x804   : > { %v12774_v44 = vld.sshfl [vmem:[#allocation1] sm:$0xff pattern:$0x73625140] }
 0x805   : > { %3854 = vst [vmem:[#allocation1] ss:$4 sm:$0xff] %v3423_v49  ;;  %v12790_v49 = vpop.f32.mrf.mxu1 }
 0x806   : > { %3856 = vst [vmem:[#allocation1 + $0x1] ss:$4 sm:$0xff] %v3424_v37  ;;  %v3149_v37 = vsel %vm3145_vm14, %v12790_v49, -inf }
 0x807   : > { %3858 = vst [vmem:[#allocation1 + $0x2] ss:$4 sm:$0xff] %v3425_v5  ;;  %3150 = vmax.xlane.f32.xlu0 %v3149_v37  ;;  %v3426_v5 = vmul.f32 %v12595_v34, %v12492_v23 }
 0x80e   : > { %v12783_v27 = vld.sshfl [vmem:[#allocation1] sm:$0xff pattern:$0x73625140] }
 0x80f   : > { %16410 = vst [vmem:[#allocation80_spill] sm:$0xff] %v12783_v27  ;;  %v2956_v27 = vpop.permute.xlu2 %2955 }
 0x810   : > { %3860 = vst [vmem:[#allocation1] ss:$4 sm:$0xff] %v12471_v11  ;;  %10161 = vmatpush.xpose.msk.msra.mxu3 %vm2104_vm0, %v2956_v27  ;;  %v16414_v27 = vld [vmem:[#allocation54_spill] sm:$0xff] }
 0x811   : > { %3862 = vst [vmem:[#allocation1 + $0x1] ss:$4 sm:$0xff] %v12474_v36 }
 0x812   : > { %3864 = vst [vmem:[#allocation1 + $0x2] ss:$4 sm:$0xff] %v12477_v38 }
 0x813   : > { %10162 = vmatmul.msk.f32.vlgmr.msra.gmra.mxu3 %vm2104_vm0, %v12507_v17 }
 0x819   : > { %v12798_v6 = vld.sshfl [vmem:[#allocation1] sm:$0xff pattern:$0x73625140] }
 0x81a   : > { %16411 = vst [vmem:[#allocation81_spill] sm:$0xff] %v12798_v6  ;;  %v16413_v6 = vld [vmem:[#allocation53_spill] sm:$0xff] }
 0x81b   : > { %3895 = vst [vmem:[#allocation1] ss:$4 sm:$0xff] %v3426_v5  ;;  %v3429_v5 = vmul.f32 %v12595_v34, %v16413_v6 }
 0x81c   : > { %3897 = vst [vmem:[#allocation1 + $0x1] ss:$4 sm:$0xff] %v3427_v40  ;;  %v3152_v40 = vsel %vm3145_vm14, %v12810_v21, -inf }
 0x81d   : > { %3899 = vst [vmem:[#allocation1 + $0x2] ss:$4 sm:$0xff] %v3428_v33  ;;  %v3430_v33 = vmul.f32 %v12600_v63, %v16414_v27  ;;  %3153 = vmax.xlane.f32.xlu2 %v3152_v40  ;;  %v3432_v40 = vmul.f32 %v12595_v34, %v12537_v52 }
 0x824   : > { %v12805_v37 = vld.sshfl [vmem:[#allocation1] sm:$0xff pattern:$0x73625140] }
 0x825   : > { %16412 = vst [vmem:[#allocation82_spill] sm:$0xff] %v12805_v37  ;;  %v16416_v37 = vld [vmem:[#allocation55_spill] sm:$0xff] }
 0x826   : > { %3901 = vst [vmem:[#allocation1] ss:$4 sm:$0xff] %v12492_v23  ;;  %v3431_v23 = vmul.f32 %v12603_v30, %v16416_v37 }
 0x827   : > { %3903 = vst [vmem:[#allocation1 + $0x1] ss:$4 sm:$0xff] %v12495_v47  ;;  %v12827_v47 = vpop.f32.mrf.mxu3 }
 0x828   : > { %3905 = vst [vmem:[#allocation1 + $0x2] ss:$4 sm:$0xff] %v12498_v54 }
 0x82f   : > { %v12818_v17 = vld.sshfl [vmem:[#allocation1] sm:$0xff pattern:$0x73625140] }
 0x830   : > { %16415 = vst [vmem:[#allocation83_spill] sm:$0xff] %v12818_v17  ;;  %v3155_v17 = vsel %vm3145_vm14, %v12827_v47, -inf }
 0x831   : > { %3936 = vst [vmem:[#allocation1] ss:$4 sm:$0xff] %v3429_v5  ;;  %3156 = vmax.xlane.f32.xlu0 %v3155_v17 }
 0x832   : > { %3938 = vst [vmem:[#allocation1 + $0x1] ss:$4 sm:$0xff] %v3430_v33  ;;  %v16419_v33 = vld [vmem:[#allocation59_spill] sm:$0xff] }
 0x833   : > { %3940 = vst [vmem:[#allocation1 + $0x2] ss:$4 sm:$0xff] %v3431_v23  ;;  %v3433_v23 = vmul.f32 %v12600_v63, %v12534_v3 }
 0x835   : > { %3620 = vrot.lane.b32.xlu2 %v12677_v10, %s10895_s0 }
 0x83a   : > { %v12822_v54 = vld.sshfl [vmem:[#allocation1] sm:$0xff pattern:$0x73625140] }
 0x83b   : > { %16417 = vst [vmem:[#allocation84_spill] sm:$0xff] %v12822_v54  ;;  %v3434_v54 = vmul.f32 %v12603_v30, %v16419_v33 }
 0x83c   : > { %3942 = vst [vmem:[#allocation1] ss:$4 sm:$0xff] %v16413_v6  ;;  %v16420_v6 = vld [vmem:[#allocation56_spill] sm:$0xff] }
 0x83d   : > { %3944 = vst [vmem:[#allocation1 + $0x1] ss:$4 sm:$0xff] %v16414_v27  ;;  %v12839_v27 = vpop.f32.mrf.mxu0  ;;  %3661 = vrot.lane.b32.xlu2 %v12697_v39, %s10895_s0 }
 0x83e   : > { %3946 = vst [vmem:[#allocation1 + $0x2] ss:$4 sm:$0xff] %v16416_v37  ;;  %v2997_v37 = vpop.permute.xlu0 %2996  ;;  %v3158_v17 = vsel %vm3145_vm14, %v12839_v27, -inf }
 0x83f   : > { %10163 = vmatpush.xpose.msk.msra.mxu0 %vm2104_vm0, %v2997_v37  ;;  %3159 = vmax.xlane.f32.xlu0 %v3158_v17  ;;  %v16422_v37 = vld [vmem:[#allocation62_spill] sm:$0xff]  ;;  %v16424_v17 = vld [vmem:[#allocation63_spill] sm:$0xff] }
 0x840   : > { %v3437_v39 = vmul.f32 %v12603_v30, %v16424_v17 }
 0x842   : > { %10164 = vmatmul.msk.f32.vlgmr.msra.gmra.mxu0 %vm2104_vm0, %v16420_v6  ;;  %v12861_v6 = vpop.f32.mrf.mxu1 }
 0x845   : > { %v12835_v5 = vld.sshfl [vmem:[#allocation1] sm:$0xff pattern:$0x73625140]  ;;  %3702 = vrot.lane.b32.xlu2 %v12720_v0, %s10895_s0 }
 0x846   : > { %16418 = vst [vmem:[#allocation85_spill] sm:$0xff] %v12835_v5  ;;  %v3038_v10 = vpop.permute.xlu0 %3037 }
 0x847   : > { %3977 = vst [vmem:[#allocation1] ss:$4 sm:$0xff] %v3432_v40  ;;  %v3436_v40 = vmul.f32 %v12600_v63, %v16422_v37  ;;  %10165 = vmatpush.xpose.msk.msrb.mxu1 %vm2104_vm0, %v3038_v10 }
 0x848   : > { %3979 = vst [vmem:[#allocation1 + $0x1] ss:$4 sm:$0xff] %v3433_v23 }
 0x849   : > { %3981 = vst [vmem:[#allocation1 + $0x2] ss:$4 sm:$0xff] %v3434_v54  ;;  %v3435_v54 = vmul.f32 %v12595_v34, %v12555_v22 }
 0x84d   : > { %3743 = vrot.lane.b32.xlu2 %v12739_v12, %s10895_s0  ;;  %v3439_v12 = vmul.f32 %v12600_v63, %v12579_v24  ;;  %v16431_v63 = vld [vmem:[#allocation68_spill] sm:$0xff] }
 0x850   : > { %v12848_v5 = vld.sshfl [vmem:[#allocation1] sm:$0xff pattern:$0x73625140] }
 0x851   : > { %16421 = vst [vmem:[#allocation56_spill] sm:$0xff] %v12848_v5  ;;  %v3161_v5 = vsel %vm3145_vm14, %v12861_v6, -inf }
 0x852   : > { %3983 = vst [vmem:[#allocation1] ss:$4 sm:$0xff] %v12537_v52  ;;  %3162 = vmax.xlane.f32.xlu1 %v3161_v5  ;;  %v3079_v5 = vpop.permute.xlu0 %3078 }
 0x853   : > { %3985 = vst [vmem:[#allocation1 + $0x1] ss:$4 sm:$0xff] %v12534_v3  ;;  %10167 = vmatpush.xpose.msk.msrb.mxu2 %vm2104_vm0, %v3079_v5 }
 0x854   : > { %3987 = vst [vmem:[#allocation1 + $0x2] ss:$4 sm:$0xff] %v16419_v33  ;;  %v16425_v33 = vld [vmem:[#allocation60_spill] sm:$0xff] }
 0x855   : > { %10166 = vmatmul.msk.f32.vlgmr.msrb.gmra.mxu1 %vm2104_vm0, %v16425_v33  ;;  %v3438_v33 = vmul.f32 %v12595_v34, %v12576_v53  ;;  %v12901_v34 = vunpack.i.l.bf16 %v12648_v4 }
 0x85a   : > { %v3120_v5 = vpop.permute.xlu0 %3119 }
 0x85b   : > { %v12859_v23 = vld.sshfl [vmem:[#allocation1] sm:$0xff pattern:$0x73625140]  ;;  %10169 = vmatpush.xpose.msk.msrb.mxu3 %vm2104_vm0, %v3120_v5  ;;  %v4285_v5 = vmul.f32 %v12901_v34, %v12262_v9 }
 0x85c   : > { %16423 = vst [vmem:[#allocation86_spill] sm:$0xff] %v12859_v23  ;;  %v12872_v23 = vpop.f32.mrf.mxu2 }
 0x85d   : > { %4018 = vst [vmem:[#allocation1] ss:$4 sm:$0xff] %v3435_v54  ;;  %v3164_v0 = vsel %vm3145_vm14, %v12872_v23, -inf  ;;  %v16428_v54 = vld [vmem:[#allocation64_spill] sm:$0xff] }
 0x85e   : > { %4020 = vst [vmem:[#allocation1 + $0x1] ss:$4 sm:$0xff] %v3436_v40  ;;  %3165 = vmax.xlane.f32.xlu1 %v3164_v0  ;;  %10168 = vmatmul.msk.f32.vlgmr.msrb.gmra.mxu2 %vm2104_vm0, %v16428_v54 }
 0x85f   : > { %4022 = vst [vmem:[#allocation1 + $0x2] ss:$4 sm:$0xff] %v3437_v39  ;;  %v16429_v39 = vld [vmem:[#allocation67_spill] sm:$0xff]  ;;  %10170 = vmatmul.msk.f32.vlgmr.msrb.gmra.mxu3 %vm2104_vm0, %v16431_v63 }
 0x860   : > { %16426 = vst [vmem:[#allocation60_spill] sm:$0xff] %v12872_v23  ;;  %v3440_v0 = vmul.f32 %v12603_v30, %v16429_v39  ;;  %v12906_v30 = vunpack.i.h.bf16 %v12648_v4 }
 0x862   : > { %v4286_v63 = vmul.f32 %v12906_v30, %v12265_v32 }
 0x866   : > { %v12878_v10 = vld.sshfl [vmem:[#allocation1] sm:$0xff pattern:$0x73625140]  ;;  %v3148_v54 = vpop.xlane.xlu2 %3147 }
 0x867   : > { %16427 = vst [vmem:[#allocation87_spill] sm:$0xff] %v12878_v10 }
 0x868   : > { %4024 = vst [vmem:[#allocation1] ss:$4 sm:$0xff] %v12555_v22 }
 0x869   : > { %4026 = vst [vmem:[#allocation1 + $0x1] ss:$4 sm:$0xff] %v16422_v37 }
 0x86a   : > { %4028 = vst [vmem:[#allocation1 + $0x2] ss:$4 sm:$0xff] %v16424_v17 }
 0x871   : > { %v12890_v40 = vld.sshfl [vmem:[#allocation1] sm:$0xff pattern:$0x73625140] }
 0x872   : > { %4059 = vst [vmem:[#allocation1] ss:$4 sm:$0xff] %v3438_v33  ;;  %v12909_v33 = vunpack.i.l.bf16 %v12679_v60 }
 0x873   : > { %4061 = vst [vmem:[#allocation1 + $0x1] ss:$4 sm:$0xff] %v3439_v12  ;;  %v3194_v12 = vsub.f32 %v12776_v29, %v3148_v54  ;;  %v12924_v29 = vpop.f32.mrf.mxu0  ;;  %v3457_v54 = vpop.permute.xlu1 %3456 }
 0x874   : > { %4063 = vst [vmem:[#allocation1 + $0x2] ss:$4 sm:$0xff] %v3440_v0  ;;  %v12912_v0 = vpop.f32.mrf.mxu3  ;;  %v4287_v60 = vmul.f32 %v12909_v33, %v12268_v43  ;;  %10172 = vmatpush.xpose.msk.msrb.mxu0 %vm2104_vm0, %v3457_v54  ;;  %v4292_v54 = vmul.f32 %v12906_v30, %v12306_v26 }
 0x875   : > { %16432 = vst [vmem:[#allocation68_spill] sm:$0xff] %v12912_v0  ;;  %v3210_v4 = vmul.f32 1.442695, %v3194_v12 }
 0x876   : > { %16433 = vst [vmem:[#allocation88_spill] sm:$0xff] %v12924_v29 }
 0x877   : > { %10579 = vpow2.f32 %v3210_v4  ;;  %v16436_v4 = vld [vmem:[#allocation69_spill] sm:$0xff] }
 0x878   : > { %10173 = vmatmul.msk.f32.vlgmr.msrb.gmra.mxu0 %vm2104_vm0, %v16436_v4  ;;  %v16438_v4 = vld [vmem:[#allocation70_spill] sm:$0xff] }
 0x87b   : > { %v12894_v10 = vld.sshfl [vmem:[#allocation1] sm:$0xff pattern:$0x73625140] }
 0x87c   : > { %16430 = vst [vmem:[#allocation64_spill] sm:$0xff] %v12894_v10  ;;  %v3167_v10 = vsel %vm3145_vm14, %v12912_v0, -inf  ;;  %v3170_v0 = vsel %vm3145_vm14, %v12924_v29, -inf }
 0x87d   : > { %4065 = vst [vmem:[#allocation1] ss:$4 sm:$0xff] %v12576_v53  ;;  %3168 = vmax.xlane.f32.xlu0 %v3167_v10  ;;  %v12928_v9 = vpop.eup %10579  ;;  %v4288_v10 = vmul.f32 %v12901_v34, %v12285_v35 }
 0x87e   : > { %4067 = vst [vmem:[#allocation1 + $0x1] ss:$4 sm:$0xff] %v12579_v24  ;;  %v3242_v12 = vsel %vm3145_vm14, %v12928_v9, 0.0 }
 0x87f   : > { %4069 = vst [vmem:[#allocation1 + $0x2] ss:$4 sm:$0xff] %v16429_v39  ;;  %3243 = vadd.xlane.f32.xlu2 %v3242_v12  ;;  %v4293_v12 = vmul.f32 %v12909_v33, %v12309_v14 }
 0x880   : > { %16434 = vst [vmem:[#allocation89_spill] sm:$0xff] %v12928_v9 }
 0x885   : > { %3171 = vmax.xlane.f32.xlu0 %v3170_v0  ;;  %v4291_v0 = vmul.f32 %v12901_v34, %v12303_v58 }
 0x886   : > { %v12920_v23 = vld.sshfl [vmem:[#allocation1] sm:$0xff pattern:$0x73625140] }
 0x887   : > { %4336 = vst [vmem:[#allocation1] ss:$4 sm:$0xff] %v4285_v5 }
 0x888   : > { %4338 = vst [vmem:[#allocation1 + $0x1] ss:$4 sm:$0xff] %v4286_v63  ;;  %v4290_v63 = vmul.f32 %v12909_v33, %v12288_v51 }
 0x889   : > { %4340 = vst [vmem:[#allocation1 + $0x2] ss:$4 sm:$0xff] %v4287_v60  ;;  %v4289_v60 = vmul.f32 %v12906_v30, %v12282_v46 }
 0x890   : > { %v12937_v5 = vld.sshfl [vmem:[#allocation1] sm:$0xff pattern:$0x73625140] }
 0x891   : > { %16435 = vst [vmem:[#allocation90_spill] sm:$0xff] %v12937_v5 }
 0x892   : > { %4374 = vst [vmem:[#allocation1] ss:$4 sm:$0xff] %v4288_v10  ;;  %v3498_v10 = vpop.permute.xlu1 %3497 }
 0x893   : > { %4376 = vst [vmem:[#allocation1 + $0x1] ss:$4 sm:$0xff] %v4289_v60  ;;  %10174 = vmatpush.xpose.msk.msra.mxu1 %vm2104_vm0, %v3498_v10  ;;  %v4294_v60 = vmul.f32 %v12901_v34, %v12324_v41  ;;  %v4297_v10 = vmul.f32 %v12901_v34, %v12344_v19 }
 0x894   : > { %4378 = vst [vmem:[#allocation1 + $0x2] ss:$4 sm:$0xff] %v4290_v63  ;;  %v4295_v63 = vmul.f32 %v12906_v30, %v12327_v7 }
 0x896   : > { %10175 = vmatmul.msk.f32.vlgmr.msra.gmra.mxu1 %vm2104_vm0, %v16438_v4  ;;  %v3154_v4 = vpop.xlane.xlu2 %3153 }
 0x897   : > { %3825 = vrot.lane.b32.xlu2 %v12774_v44, %s10895_s0 }
 0x899   : > { %3784 = vrot.lane.b32.xlu0 %v12755_v48, %s10895_s0 }
 0x89b   : > { %v12947_v9 = vld.sshfl [vmem:[#allocation1] sm:$0xff pattern:$0x73625140] }
 0x89c   : > { %16437 = vst [vmem:[#allocation69_spill] sm:$0xff] %v12947_v9  ;;  %v3539_v9 = vpop.permute.xlu1 %3538 }
 0x89d   : > { %4410 = vst [vmem:[#allocation1] ss:$4 sm:$0xff] %v4291_v0  ;;  %v4296_v0 = vmul.f32 %v12909_v33, %v12330_v2  ;;  %10176 = vmatpush.xpose.msk.msra.mxu2 %vm2104_vm0, %v3539_v9  ;;  %v4300_v9 = vmul.f32 %v12901_v34, %v12369_v25 }
 0x89e   : > { %4412 = vst [vmem:[#allocation1 + $0x1] ss:$4 sm:$0xff] %v4292_v54  ;;  %v3151_v54 = vpop.xlane.xlu0 %3150 }
 0x89f   : > { %4414 = vst [vmem:[#allocation1 + $0x2] ss:$4 sm:$0xff] %v4293_v12  ;;  %v3195_v48 = vsub.f32 %v12790_v49, %v3151_v54  ;;  %v16442_v54 = vld [vmem:[#allocation34_spill] sm:$0xff] }
 0x8a0   : > { %10177 = vmatmul.msk.f32.vlgmr.msra.gmra.mxu2 %vm2104_vm0, %v12636_v8  ;;  %v4302_v8 = vmul.f32 %v12909_v33, %v16442_v54 }
 0x8a1   : > { %v3212_v12 = vmul.f32 1.442695, %v3195_v48 }
 0x8a3   : > { %10581 = vpow2.f32 %v3212_v12  ;;  %v16443_v12 = vld [vmem:[#allocation72_spill] sm:$0xff] }
 0x8a6   : > { %v12960_v5 = vld.sshfl [vmem:[#allocation1] sm:$0xff pattern:$0x73625140]  ;;  %v3157_v48 = vpop.xlane.xlu0 %3156 }
 0x8a7   : > { %16439 = vst [vmem:[#allocation70_spill] sm:$0xff] %v12960_v5  ;;  %v4298_v5 = vmul.f32 %v12906_v30, %v12348_v20 }
 0x8a8   : > { %4446 = vst [vmem:[#allocation1] ss:$4 sm:$0xff] %v4294_v60  ;;  %v4299_v60 = vmul.f32 %v12909_v33, %v12351_v18 }
 0x8a9   : > { %4448 = vst [vmem:[#allocation1 + $0x1] ss:$4 sm:$0xff] %v4295_v63  ;;  %v12978_v44 = vpop.eup %10581  ;;  %v3621_v63 = vpop.permute.xlu2 %3620 }
 0x8aa   : > { %4450 = vst [vmem:[#allocation1 + $0x2] ss:$4 sm:$0xff] %v4296_v0  ;;  %v3245_v49 = vsel %vm3145_vm14, %v12978_v44, 0.0  ;;  %10180 = vmatpush.xpose.msk.msra.mxu0 %vm2104_vm0, %v3621_v63  ;;  %v4301_v0 = vmul.f32 %v12906_v30, %v12366_v42  ;;  %v4303_v63 = vmul.f32 %v12901_v34, %v12387_v50 }
 0x8ab   : > { %16440 = vst [vmem:[#allocation91_spill] sm:$0xff] %v12978_v44  ;;  %3246 = vadd.xlane.f32.xlu1 %v3245_v49  ;;  %v3580_v49 = vpop.permute.xlu1 %3579  ;;  %v16444_v44 = vld [vmem:[#allocation71_spill] sm:$0xff] }
 0x8ac   : > { %10178 = vmatpush.xpose.msk.msra.mxu3 %vm2104_vm0, %v3580_v49  ;;  %v16446_v49 = vld [vmem:[#allocation74_spill] sm:$0xff] }
 0x8ad   : > { %10181 = vmatmul.msk.f32.vlgmr.msra.gmra.mxu0 %vm2104_vm0, %v16443_v12 }
 0x8af   : > { %10179 = vmatmul.msk.f32.vlgmr.msra.gmra.mxu3 %vm2104_vm0, %v16444_v44 }
 0x8b1   : > { %v12971_v29 = vld.sshfl [vmem:[#allocation1] sm:$0xff pattern:$0x73625140]  ;;  %v3662_v12 = vpop.permute.xlu2 %3661 }
 0x8b2   : > { %4482 = vst [vmem:[#allocation1] ss:$4 sm:$0xff] %v4297_v10  ;;  %v3197_v10 = vsub.f32 %v12827_v47, %v3157_v48  ;;  %v4305_v47 = vmul.f32 %v12909_v33, %v12393_v15  ;;  %10182 = vmatpush.xpose.msk.msrb.mxu1 %vm2104_vm0, %v3662_v12 }
 0x8b3   : > { %4484 = vst [vmem:[#allocation1 + $0x1] ss:$4 sm:$0xff] %v4298_v5 }
 0x8b4   : > { %4486 = vst [vmem:[#allocation1 + $0x2] ss:$4 sm:$0xff] %v4299_v60  ;;  %v3216_v60 = vmul.f32 1.442695, %v3197_v10 }
 0x8b5   : > { %10183 = vmatmul.msk.f32.vlgmr.msrb.gmra.mxu1 %vm2104_vm0, %v16446_v49 }
 0x8b6   : > { %10583 = vpow2.f32 %v3216_v60  ;;  %v13011_v60 = vpop.f32.mrf.mxu1 }
 0x8bb   : > { %v12987_v5 = vld.sshfl [vmem:[#allocation1] sm:$0xff pattern:$0x73625140] }
 0x8bc   : > { %16441 = vst [vmem:[#allocation92_spill] sm:$0xff] %v12987_v5 }
 0x8bd   : > { %4518 = vst [vmem:[#allocation1] ss:$4 sm:$0xff] %v4300_v9  ;;  %v4304_v9 = vmul.f32 %v12906_v30, %v12390_v1 }
 0x8be   : > { %4520 = vst [vmem:[#allocation1 + $0x1] ss:$4 sm:$0xff] %v4301_v0  ;;  %v3160_v0 = vpop.xlane.xlu0 %3159 }
 0x8bf   : > { %4522 = vst [vmem:[#allocation1 + $0x2] ss:$4 sm:$0xff] %v4302_v8  ;;  %v13005_v8 = vpop.eup %10583  ;;  %v3198_v48 = vsub.f32 %v12839_v27, %v3160_v0  ;;  %v4306_v27 = vmul.f32 %v12901_v34, %v12408_v28 }
 0x8c0   : > { %16445 = vst [vmem:[#allocation72_spill] sm:$0xff] %v13005_v8  ;;  %v3251_v44 = vsel %vm3145_vm14, %v13005_v8, 0.0 }
 0x8c1   : > { %v3218_v10 = vmul.f32 1.442695, %v3198_v48  ;;  %3252 = vadd.xlane.f32.xlu1 %v3251_v44  ;;  %v4308_v48 = vmul.f32 %v12909_v33, %v12414_v55 }
 0x8c3   : > { %10585 = vpow2.f32 %v3218_v10  ;;  %v13032_v10 = vpop.f32.mrf.mxu2 }
 0x8c6   : > { %v13001_v5 = vld.sshfl [vmem:[#allocation1] sm:$0xff pattern:$0x73625140] }
 0x8c7   : > { %4554 = vst [vmem:[#allocation1] ss:$4 sm:$0xff] %v4303_v63  ;;  %v3196_v63 = vsub.f32 %v12810_v21, %v3154_v4  ;;  %v13028_v4 = vpop.f32.mrf.mxu0 }
 0x8c8   : > { %4556 = vst [vmem:[#allocation1 + $0x1] ss:$4 sm:$0xff] %v4304_v9  ;;  %v3173_v9 = vsel %vm3145_vm14, %v13011_v60, -inf  ;;  %v3182_v44 = vsel %vm3145_vm14, %v13028_v4, -inf }
 0x8c9   : > { %4558 = vst [vmem:[#allocation1 + $0x2] ss:$4 sm:$0xff] %v4305_v47  ;;  %v4307_v47 = vmul.f32 %v12906_v30, %v12411_v56  ;;  %3174 = vmax.xlane.f32.xlu0 %v3173_v9  ;;  %v13026_v12 = vpop.eup %10585  ;;  %v3214_v21 = vmul.f32 1.442695, %v3196_v63  ;;  %3183 = vmax.xlane.f32.xlu1 %v3182_v44  ;;  %v4309_v63 = vmul.f32 %v12901_v34, %v12428_v13  ;;  %v3703_v9 = vpop.permute.xlu2 %3702 }
 0x8ca   : > { %16448 = vst [vmem:[#allocation74_spill] sm:$0xff] %v13026_v12  ;;  %v3254_v49 = vsel %vm3145_vm14, %v13026_v12, 0.0  ;;  %10184 = vmatpush.xpose.msk.msrb.mxu2 %vm2104_vm0, %v3703_v9  ;;  %v4311_v44 = vmul.f32 %v12909_v33, %v12435_v59  ;;  %v4312_v9 = vmul.f32 %v12901_v34, %v12453_v62 }
 0x8cb   : > { %16449 = vst [vmem:[#allocation93_spill] sm:$0xff] %v13028_v4  ;;  %3255 = vadd.xlane.f32.xlu2 %v3254_v49  ;;  %10587 = vpow2.f32 %v3214_v21 }
 0x8cd   : > { %10185 = vmatmul.msk.f32.vlgmr.msrb.gmra.mxu2 %vm2104_vm0, %v12706_v16  ;;  %v4314_v16 = vmul.f32 %v12909_v33, %v12456_v57 }
 0x8d0   : > { %v13022_v0 = vld.sshfl [vmem:[#allocation1] sm:$0xff pattern:$0x73625140] }
 0x8d1   : > { %16447 = vst [vmem:[#allocation71_spill] sm:$0xff] %v13022_v0  ;;  %v13047_v21 = vpop.eup %10587  ;;  %v16464_v0 = vld [vmem:[#allocation55_spill] sm:$0xff] }
 0x8d2   : > { %4590 = vst [vmem:[#allocation1] ss:$4 sm:$0xff] %v4306_v27  ;;  %v3176_v27 = vsel %vm3145_vm14, %v13032_v10, -inf  ;;  %v3248_v49 = vsel %vm3145_vm14, %v13047_v21, 0.0 }
 0x8d3   : > { %4592 = vst [vmem:[#allocation1 + $0x1] ss:$4 sm:$0xff] %v4307_v47  ;;  %3177 = vmax.xlane.f32.xlu0 %v3176_v27  ;;  %v4310_v47 = vmul.f32 %v12906_v30, %v12432_v31  ;;  %v13053_v27 = vpop.f32.mrf.mxu1 }
 0x8d4   : > { %4594 = vst [vmem:[#allocation1 + $0x2] ss:$4 sm:$0xff] %v4308_v48  ;;  %v3185_v8 = vsel %vm3145_vm14, %v13053_v27, -inf }
 0x8d5   : > { %16451 = vst [vmem:[#allocation95_spill] sm:$0xff] %v13047_v21  ;;  %3186 = vmax.xlane.f32.xlu2 %v3185_v8  ;;  %v4315_v21 = vmul.f32 %v12901_v34, %v12471_v11  ;;  %v4316_v8 = vmul.f32 %v12906_v30, %v12474_v36 }
 0x8d6   : > { %16452 = vst [vmem:[#allocation96_spill] sm:$0xff] %v13053_v27 }
 0x8db   : > { %v13042_v48 = vld.sshfl [vmem:[#allocation1] sm:$0xff pattern:$0x73625140]  ;;  %3249 = vadd.xlane.f32.xlu0 %v3248_v49  ;;  %v3163_v49 = vpop.xlane.xlu1 %3162 }
 0x8dc   : > { %16450 = vst [vmem:[#allocation94_spill] sm:$0xff] %v13042_v48  ;;  %v3199_v12 = vsub.f32 %v12861_v6, %v3163_v49  ;;  %v16458_v49 = vld [vmem:[#allocation51_spill] sm:$0xff] }
 0x8dd   : > { %4626 = vst [vmem:[#allocation1] ss:$4 sm:$0xff] %v4309_v63  ;;  %v4313_v63 = vmul.f32 %v12906_v30, %v12450_v45 }
 0x8de   : > { %4628 = vst [vmem:[#allocation1 + $0x1] ss:$4 sm:$0xff] %v4310_v47 }
 0x8df   : > { %4630 = vst [vmem:[#allocation1 + $0x2] ss:$4 sm:$0xff] %v4311_v44  ;;  %v3744_v44 = vpop.permute.xlu2 %3743 }
 0x8e0   : > { %10186 = vmatpush.xpose.msk.msrb.mxu3 %vm2104_vm0, %v3744_v44  ;;  %v16457_v44 = vld [vmem:[#allocation50_spill] sm:$0xff] }
 0x8e3   : > { %10187 = vmatmul.msk.f32.vlgmr.msrb.gmra.mxu3 %vm2104_vm0, %v12727_v61  ;;  %v4318_v61 = vmul.f32 %v12901_v34, %v16457_v44 }
 0x8e6   : > { %v13061_v47 = vld.sshfl [vmem:[#allocation1] sm:$0xff pattern:$0x73625140] }
 0x8e7   : > { %16453 = vst [vmem:[#allocation97_spill] sm:$0xff] %v13061_v47  ;;  %v4319_v47 = vmul.f32 %v12906_v30, %v16458_v49 }
 0x8e8   : > { %4662 = vst [vmem:[#allocation1] ss:$4 sm:$0xff] %v4312_v9  ;;  %v4317_v9 = vmul.f32 %v12909_v33, %v12477_v38 }
 0x8e9   : > { %4664 = vst [vmem:[#allocation1 + $0x1] ss:$4 sm:$0xff] %v4313_v63  ;;  %v3220_v63 = vmul.f32 1.442695, %v3199_v12  ;;  %v16460_v12 = vld [vmem:[#allocation52_spill] sm:$0xff] }
 0x8ea   : > { %4666 = vst [vmem:[#allocation1 + $0x2] ss:$4 sm:$0xff] %v4314_v16  ;;  %v16455_v16 = vld [vmem:[#allocation81_spill] sm:$0xff] }
 0x8eb   : > { %10589 = vpow2.f32 %v3220_v63 }
 0x8ef   : > { %3866 = vrot.lane.b32.xlu0 %v16455_v16, %s10895_s0  ;;  %v16462_v16 = vld [vmem:[#allocation54_spill] sm:$0xff] }
 0x8f0   : > { %v4322_v4 = vmul.f32 %v12906_v30, %v16462_v16 }
 0x8f1   : > { %v13073_v27 = vld.sshfl [vmem:[#allocation1] sm:$0xff pattern:$0x73625140]  ;;  %v13079_v6 = vpop.eup %10589 }
 0x8f2   : > { %16454 = vst [vmem:[#allocation98_spill] sm:$0xff] %v13073_v27 }
 0x8f3   : > { %4698 = vst [vmem:[#allocation1] ss:$4 sm:$0xff] %v4315_v21  ;;  %v3257_v21 = vsel %vm3145_vm14, %v13079_v6, 0.0 }
 0x8f4   : > { %4700 = vst [vmem:[#allocation1 + $0x1] ss:$4 sm:$0xff] %v4316_v8  ;;  %v4320_v8 = vmul.f32 %v12909_v33, %v16460_v12  ;;  %3258 = vadd.xlane.f32.xlu1 %v3257_v21 }
 0x8f5   : > { %4702 = vst [vmem:[#allocation1 + $0x2] ss:$4 sm:$0xff] %v4317_v9  ;;  %v16461_v9 = vld [vmem:[#allocation53_spill] sm:$0xff] }
 0x8f6   : > { %16456 = vst [vmem:[#allocation81_spill] sm:$0xff] %v13079_v6  ;;  %v4321_v63 = vmul.f32 %v12901_v34, %v16461_v9  ;;  %v13099_v6 = vpop.xlane.xlu0 %3168 }
 0x8fc   : > { %v13085_v27 = vld.sshfl [vmem:[#allocation1] sm:$0xff pattern:$0x73625140] }
 0x8fd   : > { %16459 = vst [vmem:[#allocation99_spill] sm:$0xff] %v13085_v27  ;;  %v4323_v27 = vmul.f32 %v12909_v33, %v16464_v0 }
 0x8fe   : > { %4734 = vst [vmem:[#allocation1] ss:$4 sm:$0xff] %v4318_v61  ;;  %v4325_v61 = vmul.f32 %v12906_v30, %v12534_v3 }
 0x8ff   : > { %4736 = vst [vmem:[#allocation1 + $0x1] ss:$4 sm:$0xff] %v4319_v47  ;;  %v4324_v47 = vmul.f32 %v12901_v34, %v12537_v52 }
 0x900   : > { %4738 = vst [vmem:[#allocation1 + $0x2] ss:$4 sm:$0xff] %v4320_v8  ;;  %v16466_v8 = vld [vmem:[#allocation59_spill] sm:$0xff] }
 0x901   : > { %v4326_v16 = vmul.f32 %v12909_v33, %v16466_v8  ;;  %v4328_v8 = vmul.f32 %v12906_v30, %v16422_v37 }
 0x907   : > { %v13095_v48 = vld.sshfl [vmem:[#allocation1] sm:$0xff pattern:$0x73625140] }
 0x908   : > { %16463 = vst [vmem:[#allocation100_spill] sm:$0xff] %v13095_v48  ;;  %v13109_v48 = vpop.xlane.xlu0 %3171 }
 0x909   : > { %4770 = vst [vmem:[#allocation1] ss:$4 sm:$0xff] %v4321_v63 }
 0x90a   : > { %4772 = vst [vmem:[#allocation1 + $0x1] ss:$4 sm:$0xff] %v4322_v4  ;;  %v13111_v4 = vpop.f32.mrf.mxu0 }
 0x90b   : > { %4774 = vst [vmem:[#allocation1 + $0x2] ss:$4 sm:$0xff] %v4323_v27  ;;  %v16468_v27 = vld [vmem:[#allocation86_spill] sm:$0xff]  ;;  %v4097_v63 = vsel %vm3145_vm14, %v13111_v4, -inf }
 0x90c   : > { %16467 = vst [vmem:[#allocation102_spill] sm:$0xff] %v13111_v4  ;;  %4098 = vmax.xlane.f32.xlu2 %v4097_v63  ;;  %v16471_v63 = vld [vmem:[#allocation78_spill] sm:$0xff] }
 0x90d   : > { %3989 = vrot.lane.b32.xlu1 %v16468_v27, %s10895_s0  ;;  %v13126_v27 = vpop.f32.mrf.mxu3 }
 0x90e   : > { %16470 = vst [vmem:[#allocation103_spill] sm:$0xff] %v13126_v27 }
 0x912   : > { %v13105_v21 = vld.sshfl [vmem:[#allocation1] sm:$0xff pattern:$0x73625140] }
 0x913   : > { %16465 = vst [vmem:[#allocation101_spill] sm:$0xff] %v13105_v21  ;;  %v4327_v21 = vmul.f32 %v12901_v34, %v12555_v22 }
 0x914   : > { %4806 = vst [vmem:[#allocation1] ss:$4 sm:$0xff] %v4324_v47 }
 0x915   : > { %4808 = vst [vmem:[#allocation1 + $0x1] ss:$4 sm:$0xff] %v4325_v61  ;;  %v3785_v61 = vpop.permute.xlu0 %3784  ;;  %4030 = vrot.lane.b32.xlu1 %v12890_v40, %s10895_s0  ;;  %v13142_v40 = vpop.f32.mrf.mxu1 }
 0x916   : > { %4810 = vst [vmem:[#allocation1 + $0x2] ss:$4 sm:$0xff] %v4326_v16  ;;  %v4329_v16 = vmul.f32 %v12909_v33, %v16424_v17  ;;  %10188 = vmatpush.xpose.msk.msrb.mxu0 %vm2104_vm0, %v3785_v61  ;;  %v4332_v61 = vmul.f32 %v12909_v33, %v16429_v39 }
 0x917   : > { %16473 = vst [vmem:[#allocation104_spill] sm:$0xff] %v13142_v40 }
 0x919   : > { %10189 = vmatmul.msk.f32.vlgmr.msrb.gmra.mxu0 %vm2104_vm0, %v16471_v63  ;;  %v4100_v63 = vsel %vm3145_vm14, %v13142_v40, -inf }
 0x91a   : > { %4101 = vmax.xlane.f32.xlu2 %v4100_v63  ;;  %v13163_v63 = vpop.xlane.xlu2 %3243 }
 0x91d   : > { %v13121_v47 = vld.sshfl [vmem:[#allocation1] sm:$0xff pattern:$0x73625140] }
 0x91e   : > { %16469 = vst [vmem:[#allocation86_spill] sm:$0xff] %v13121_v47  ;;  %v3179_v47 = vsel %vm3145_vm14, %v13126_v27, -inf }
 0x91f   : > { %4842 = vst [vmem:[#allocation1] ss:$4 sm:$0xff] %v4327_v21  ;;  %3180 = vmax.xlane.f32.xlu0 %v3179_v47  ;;  %v4330_v21 = vmul.f32 %v12901_v34, %v12576_v53  ;;  %v16474_v47 = vld [vmem:[#allocation73_spill] sm:$0xff]  ;;  %v16475_v34 = vld [vmem:[#allocation76_spill] sm:$0xff] }
 0x920   : > { %4844 = vst [vmem:[#allocation1 + $0x1] ss:$4 sm:$0xff] %v4328_v8  ;;  %v4331_v8 = vmul.f32 %v12906_v30, %v12579_v24  ;;  %v13147_v4 = vunpack.i.h.bf16 %v16474_v47  ;;  %v13150_v27 = vunpack.i.l.bf16 %v16475_v34  ;;  %v13153_v30 = vunpack.i.h.bf16 %v16475_v34  ;;  %v16479_v47 = vld [vmem:[#allocation83_spill] sm:$0xff] }
 0x921   : > { %4846 = vst [vmem:[#allocation1 + $0x2] ss:$4 sm:$0xff] %v4329_v16 }
 0x922   : > { %16478 = vst [vmem:[#allocation76_spill] sm:$0xff] %v13163_v63  ;;  %v3337_v34 = vmul.f32 %v13147_v4, %v12285_v35  ;;  %v3826_v40 = vpop.permute.xlu2 %3825  ;;  %v3341_v63 = vmul.f32 %v13150_v27, %v12306_v26 }
 0x923   : > { %10190 = vmatpush.xpose.msk.msra.mxu1 %vm2104_vm0, %v3826_v40  ;;  %v3342_v40 = vmul.f32 %v13153_v30, %v12309_v14 }
 0x928   : > { %v13138_v16 = vld.sshfl [vmem:[#allocation1] sm:$0xff pattern:$0x73625140] }
 0x929   : > { %16472 = vst [vmem:[#allocation78_spill] sm:$0xff] %v13138_v16  ;;  %v16476_v16 = vld [vmem:[#allocation17_spill] sm:$0xff] }
 0x92a   : > { %4878 = vst [vmem:[#allocation1] ss:$4 sm:$0xff] %v4330_v21  ;;  %v3334_v33 = vmul.f32 %v13147_v4, %v16476_v16  ;;  %v3335_v21 = vmul.f32 %v13150_v27, %v12265_v32  ;;  %v3338_v32 = vmul.f32 %v13150_v27, %v12282_v46 }
 0x92b   : > { %4880 = vst [vmem:[#allocation1 + $0x1] ss:$4 sm:$0xff] %v4331_v8 }
 0x92c   : > { %4882 = vst [vmem:[#allocation1 + $0x2] ss:$4 sm:$0xff] %v4332_v61  ;;  %v3336_v61 = vmul.f32 %v13153_v30, %v12268_v43 }
 0x933   : > { %v13159_v8 = vld.sshfl [vmem:[#allocation1] sm:$0xff pattern:$0x73625140]  ;;  %3907 = vrot.lane.b32.xlu0 %v16479_v47, %s10895_s0  ;;  %v3340_v47 = vmul.f32 %v13147_v4, %v12303_v58 }
 0x934   : > { %16477 = vst [vmem:[#allocation73_spill] sm:$0xff] %v13159_v8  ;;  %v3343_v8 = vmul.f32 %v13147_v4, %v12324_v41 }
 0x935   : > { %4914 = vst [vmem:[#allocation1] ss:$4 sm:$0xff] %v3334_v33  ;;  %v3339_v33 = vmul.f32 %v13153_v30, %v12288_v51 }
 0x936   : > { %4916 = vst [vmem:[#allocation1 + $0x1] ss:$4 sm:$0xff] %v3335_v21  ;;  %v16481_v21 = vld [vmem:[#allocation79_spill] sm:$0xff] }
 0x937   : > { %4918 = vst [vmem:[#allocation1 + $0x2] ss:$4 sm:$0xff] %v3336_v61  ;;  %10191 = vmatmul.msk.f32.vlgmr.msra.gmra.mxu1 %vm2104_vm0, %v16481_v21  ;;  %v16482_v61 = vld [vmem:[#allocation85_spill] sm:$0xff] }
 0x93b   : > { %3948 = vrot.lane.b32.xlu0 %v16482_v61, %s10895_s0 }
 0x93e   : > { %v13171_v16 = vld.sshfl [vmem:[#allocation1] sm:$0xff pattern:$0x73625140] }
 0x93f   : > { %16480 = vst [vmem:[#allocation83_spill] sm:$0xff] %v13171_v16 }
 0x940   : > { %4950 = vst [vmem:[#allocation1] ss:$4 sm:$0xff] %v3337_v34  ;;  %v3175_v34 = vpop.xlane.xlu0 %3174 }
 0x941   : > { %4952 = vst [vmem:[#allocation1 + $0x1] ss:$4 sm:$0xff] %v3338_v32  ;;  %v13188_v32 = vpop.f32.mrf.mxu3  ;;  %v3203_v21 = vsub.f32 %v13011_v60, %v3175_v34  ;;  %v3347_v34 = vmul.f32 %v13150_v27, %v12348_v20 }
 0x942   : > { %4954 = vst [vmem:[#allocation1 + $0x2] ss:$4 sm:$0xff] %v3339_v33  ;;  %v3191_v33 = vsel %vm3145_vm14, %v13188_v32, -inf }
 0x943   : > { %16484 = vst [vmem:[#allocation85_spill] sm:$0xff] %v13188_v32  ;;  %3192 = vmax.xlane.f32.xlu1 %v3191_v33  ;;  %v3228_v61 = vmul.f32 1.442695, %v3203_v21  ;;  %v3348_v21 = vmul.f32 %v13153_v30, %v12351_v18 }
 0x945   : > { %10591 = vpow2.f32 %v3228_v61  ;;  %v16488_v61 = vld [vmem:[#allocation60_spill] sm:$0xff] }
 0x949   : > { %v13184_v16 = vld.sshfl [vmem:[#allocation1] sm:$0xff pattern:$0x73625140] }
 0x94a   : > { %16483 = vst [vmem:[#allocation79_spill] sm:$0xff] %v13184_v16  ;;  %v3344_v16 = vmul.f32 %v13150_v27, %v12327_v7 }
 0x94b   : > { %4986 = vst [vmem:[#allocation1] ss:$4 sm:$0xff] %v3340_v47  ;;  %v13201_v47 = vpop.eup %10591 }
 0x94c   : > { %4988 = vst [vmem:[#allocation1 + $0x1] ss:$4 sm:$0xff] %v3341_v63  ;;  %v3345_v63 = vmul.f32 %v13153_v30, %v12330_v2  ;;  %v3269_v60 = vsel %vm3145_vm14, %v13201_v47, 0.0 }
 0x94d   : > { %4990 = vst [vmem:[#allocation1 + $0x2] ss:$4 sm:$0xff] %v3342_v40  ;;  %3270 = vadd.xlane.f32.xlu2 %v3269_v60  ;;  %v3346_v40 = vmul.f32 %v13147_v4, %v12344_v19  ;;  %v3349_v60 = vmul.f32 %v13147_v4, %v12369_v25 }
 0x94e   : > { %16486 = vst [vmem:[#allocation106_spill] sm:$0xff] %v13201_v47  ;;  %v3350_v47 = vmul.f32 %v13150_v27, %v12366_v42 }
 0x954   : > { %v13197_v14 = vld.sshfl [vmem:[#allocation1] sm:$0xff pattern:$0x73625140] }
 0x955   : > { %16485 = vst [vmem:[#allocation105_spill] sm:$0xff] %v13197_v14 }
 0x956   : > { %5022 = vst [vmem:[#allocation1] ss:$4 sm:$0xff] %v3343_v8  ;;  %v3166_v8 = vpop.xlane.xlu1 %3165 }
 0x957   : > { %5024 = vst [vmem:[#allocation1 + $0x1] ss:$4 sm:$0xff] %v3344_v16  ;;  %v13213_v16 = vpop.xlane.xlu0 %3177 }
 0x958   : > { %5026 = vst [vmem:[#allocation1 + $0x2] ss:$4 sm:$0xff] %v3345_v63  ;;  %v3200_v63 = vsub.f32 %v16488_v61, %v3166_v8  ;;  %v16491_v8 = vld [vmem:[#allocation68_spill] sm:$0xff] }
 0x959   : > { %v3201_v61 = vsub.f32 %v16491_v8, %v13099_v6 }
 0x95c   : > { %4071 = vrot.lane.b32.xlu1 %v12920_v23, %s10895_s0  ;;  %v3352_v23 = vmul.f32 %v13147_v4, %v12387_v50 }
 0x95e   : > { %v13234_v14 = vpop.xlane.xlu1 %3246 }
 0x95f   : > { %v13209_v33 = vld.sshfl [vmem:[#allocation1] sm:$0xff pattern:$0x73625140]  ;;  %16492 = vst [vmem:[#allocation68_spill] sm:$0xff] %v13234_v14  ;;  %v3359_v14 = vmul.f32 %v13150_v27, %v12432_v31 }
 0x960   : > { %16487 = vst [vmem:[#allocation107_spill] sm:$0xff] %v13209_v33  ;;  %v3351_v33 = vmul.f32 %v13153_v30, %v16442_v54 }
 0x961   : > { %5058 = vst [vmem:[#allocation1] ss:$4 sm:$0xff] %v3346_v40  ;;  %v3222_v40 = vmul.f32 1.442695, %v3200_v63 }
 0x962   : > { %5060 = vst [vmem:[#allocation1 + $0x1] ss:$4 sm:$0xff] %v3347_v34  ;;  %v13226_v34 = vpop.xlane.xlu0 %3249 }
 0x963   : > { %5062 = vst [vmem:[#allocation1 + $0x2] ss:$4 sm:$0xff] %v3348_v21  ;;  %v13228_v21 = vpop.f32.mrf.mxu2  ;;  %10593 = vpow2.f32 %v3222_v40  ;;  %v3354_v40 = vmul.f32 %v13153_v30, %v12393_v15 }
 0x964   : > { %16490 = vst [vmem:[#allocation108_spill] sm:$0xff] %v13226_v34 }
 0x965   : > { %4452 = vrot.lane.b32.xlu2 %v12971_v29, %s10891_s27 }
 0x969   : > { %v13245_v6 = vpop.eup %10593 }
 0x96a   : > { %v13220_v32 = vld.sshfl [vmem:[#allocation1] sm:$0xff pattern:$0x73625140]  ;;  %16494 = vst [vmem:[#allocation110_spill] sm:$0xff] %v13245_v6  ;;  %v3260_v8 = vsel %vm3145_vm14, %v13245_v6, 0.0 }
 0x96b   : > { %16489 = vst [vmem:[#allocation60_spill] sm:$0xff] %v13220_v32  ;;  %v3188_v32 = vsel %vm3145_vm14, %v13228_v21, -inf }
 0x96c   : > { %5094 = vst [vmem:[#allocation1] ss:$4 sm:$0xff] %v3349_v60  ;;  %3189 = vmax.xlane.f32.xlu0 %v3188_v32  ;;  %v3867_v60 = vpop.permute.xlu0 %3866  ;;  %v16495_v32 = vld [vmem:[#allocation80_spill] sm:$0xff] }
 0x96d   : > { %5096 = vst [vmem:[#allocation1 + $0x1] ss:$4 sm:$0xff] %v3350_v47  ;;  %v3353_v47 = vmul.f32 %v13150_v27, %v12390_v1  ;;  %10192 = vmatpush.xpose.msk.msra.mxu2 %vm2104_vm0, %v3867_v60 }
 0x96e   : > { %5098 = vst [vmem:[#allocation1 + $0x2] ss:$4 sm:$0xff] %v3351_v33  ;;  %v3224_v33 = vmul.f32 1.442695, %v3201_v61  ;;  %v13253_v61 = vpop.xlane.xlu1 %3252 }
 0x96f   : > { %16496 = vst [vmem:[#allocation80_spill] sm:$0xff] %v13253_v61  ;;  %v3358_v61 = vmul.f32 %v13147_v4, %v12428_v13 }
 0x970   : > { %10595 = vpow2.f32 %v3224_v33  ;;  %10193 = vmatmul.msk.f32.vlgmr.msra.gmra.mxu2 %vm2104_vm0, %v16495_v32  ;;  %v3357_v33 = vmul.f32 %v13153_v30, %v12414_v55 }
 0x974   : > { %3261 = vadd.xlane.f32.xlu0 %v3260_v8  ;;  %v16498_v8 = vld [vmem:[#allocation88_spill] sm:$0xff] }
 0x975   : > { %v13240_v63 = vld.sshfl [vmem:[#allocation1] sm:$0xff pattern:$0x73625140]  ;;  %v3202_v6 = vsub.f32 %v16498_v8, %v13109_v48  ;;  %v3361_v48 = vmul.f32 %v13147_v4, %v12453_v62 }
 0x976   : > { %16493 = vst [vmem:[#allocation109_spill] sm:$0xff] %v13240_v63  ;;  %v13257_v60 = vpop.eup %10595  ;;  %v13267_v32 = vpop.xlane.xlu1 %3183 }
 0x977   : > { %5130 = vst [vmem:[#allocation1] ss:$4 sm:$0xff] %v3352_v23  ;;  %v3355_v23 = vmul.f32 %v13147_v4, %v12408_v28  ;;  %v3226_v34 = vmul.f32 1.442695, %v3202_v6  ;;  %v3362_v6 = vmul.f32 %v13150_v27, %v12450_v45 }
 0x978   : > { %5132 = vst [vmem:[#allocation1 + $0x1] ss:$4 sm:$0xff] %v3353_v47  ;;  %v3356_v47 = vmul.f32 %v13150_v27, %v12411_v56 }
 0x979   : > { %5134 = vst [vmem:[#allocation1 + $0x2] ss:$4 sm:$0xff] %v3354_v40  ;;  %v3263_v40 = vsel %vm3145_vm14, %v13257_v60, 0.0  ;;  %10597 = vpow2.f32 %v3226_v34  ;;  %v3204_v34 = vsub.f32 %v13032_v10, %v13213_v16  ;;  %v3366_v16 = vmul.f32 %v13153_v30, %v12477_v38 }
 0x97a   : > { %16497 = vst [vmem:[#allocation111_spill] sm:$0xff] %v13257_v60  ;;  %v3363_v60 = vmul.f32 %v13153_v30, %v12456_v57 }
 0x97c   : > { %3264 = vadd.xlane.f32.xlu0 %v3263_v40 }
 0x980   : > { %v13261_v29 = vld.sshfl [vmem:[#allocation1] sm:$0xff pattern:$0x73625140] }
 0x981   : > { %5166 = vst [vmem:[#allocation1] ss:$4 sm:$0xff] %v3355_v23  ;;  %v3360_v23 = vmul.f32 %v13153_v30, %v12435_v59 }
 0x982   : > { %5168 = vst [vmem:[#allocation1 + $0x1] ss:$4 sm:$0xff] %v3356_v47  ;;  %v13279_v47 = vpop.xlane.xlu1 %3258 }
 0x983   : > { %5170 = vst [vmem:[#allocation1 + $0x2] ss:$4 sm:$0xff] %v3357_v33  ;;  %v13281_v33 = vpop.eup %10597 }
 0x984   : > { %16500 = vst [vmem:[#allocation112_spill] sm:$0xff] %v13279_v47  ;;  %v3230_v47 = vmul.f32 1.442695, %v3204_v34 }
 0x985   : > { %16501 = vst [vmem:[#allocation113_spill] sm:$0xff] %v13281_v33 }
 0x986   : > { %10599 = vpow2.f32 %v3230_v47  ;;  %v3368_v47 = vmul.f32 %v13150_v27, %v16458_v49 }
 0x98a   : > { %v13275_v63 = vld.sshfl [vmem:[#allocation1] sm:$0xff pattern:$0x73625140]  ;;  %v3990_v8 = vpop.permute.xlu1 %3989 }
 0x98b   : > { %16499 = vst [vmem:[#allocation88_spill] sm:$0xff] %v13275_v63  ;;  %10198 = vmatpush.xpose.msk.msrb.mxu1 %vm2104_vm0, %v3990_v8  ;;  %v16504_v8 = vld [vmem:[#allocation70_spill] sm:$0xff] }
 0x98c   : > { %5202 = vst [vmem:[#allocation1] ss:$4 sm:$0xff] %v3358_v61  ;;  %v16502_v61 = vld [vmem:[#allocation69_spill] sm:$0xff]  ;;  %v13317_v34 = vpop.eup %10599 }
 0x98d   : > { %5204 = vst [vmem:[#allocation1 + $0x1] ss:$4 sm:$0xff] %v3359_v14  ;;  %v3266_v14 = vsel %vm3145_vm14, %v13281_v33, 0.0 }
 0x98e   : > { %5206 = vst [vmem:[#allocation1 + $0x2] ss:$4 sm:$0xff] %v3360_v23  ;;  %3267 = vadd.xlane.f32.xlu1 %v3266_v14  ;;  %v16503_v23 = vld [vmem:[#allocation56_spill] sm:$0xff]  ;;  %v16505_v14 = vld [vmem:[#allocation87_spill] sm:$0xff] }
 0x98f   : > { %10199 = vmatmul.msk.f32.vlgmr.msrb.gmra.mxu1 %vm2104_vm0, %v16503_v23  ;;  %16506 = vst [vmem:[#allocation69_spill] sm:$0xff] %v13317_v34 }
 0x990   : > { %4380 = vrot.lane.b32.xlu0 %v16502_v61, %s10891_s27  ;;  %v3367_v61 = vmul.f32 %v13147_v4, %v16457_v44 }
 0x992   : > { %v4031_v63 = vpop.permute.xlu1 %4030 }
 0x993   : > { %10200 = vmatpush.xpose.msk.msrb.mxu2 %vm2104_vm0, %v4031_v63 }
 0x995   : > { %v13287_v40 = vld.sshfl [vmem:[#allocation1] sm:$0xff pattern:$0x73625140] }
 0x996   : > { %5238 = vst [vmem:[#allocation1] ss:$4 sm:$0xff] %v3361_v48  ;;  %v3364_v48 = vmul.f32 %v13147_v4, %v12471_v11  ;;  %10201 = vmatmul.msk.f32.vlgmr.msrb.gmra.mxu2 %vm2104_vm0, %v16505_v14  ;;  %v16509_v14 = vld [vmem:[#allocation90_spill] sm:$0xff] }
 0x997   : > { %5240 = vst [vmem:[#allocation1 + $0x1] ss:$4 sm:$0xff] %v3362_v6  ;;  %v13302_v6 = vpop.f32.mrf.mxu2 }
 0x998   : > { %5242 = vst [vmem:[#allocation1 + $0x2] ss:$4 sm:$0xff] %v3363_v60  ;;  %v3365_v60 = vmul.f32 %v13150_v27, %v12474_v36  ;;  %4416 = vrot.lane.b32.xlu0 %v16504_v8, %s10891_s27  ;;  %v4103_v63 = vsel %vm3145_vm14, %v13302_v6, -inf  ;;  %v3181_v8 = vpop.xlane.xlu0 %3180 }
 0x999   : > { %4104 = vmax.xlane.f32.xlu2 %v4103_v63  ;;  %v3370_v63 = vmul.f32 %v13147_v4, %v16461_v9 }
 0x99f   : > { %v13307_v10 = vld.sshfl [vmem:[#allocation1] sm:$0xff pattern:$0x73625140] }
 0x9a0   : > { %5274 = vst [vmem:[#allocation1] ss:$4 sm:$0xff] %v3364_v48  ;;  %v16508_v48 = vld [vmem:[#allocation92_spill] sm:$0xff] }
 0x9a1   : > { %5276 = vst [vmem:[#allocation1 + $0x1] ss:$4 sm:$0xff] %v3365_v60  ;;  %4488 = vrot.lane.b32.xlu0 %v16508_v48, %s10891_s27  ;;  %v3272_v60 = vsel %vm3145_vm14, %v13317_v34, 0.0  ;;  %v16510_v48 = vld [vmem:[#allocation54_spill] sm:$0xff] }
 0x9a2   : > { %5278 = vst [vmem:[#allocation1 + $0x2] ss:$4 sm:$0xff] %v3366_v16  ;;  %v3369_v16 = vmul.f32 %v13153_v30, %v16460_v12  ;;  %3273 = vadd.xlane.f32.xlu2 %v3272_v60  ;;  %v3371_v34 = vmul.f32 %v13150_v27, %v16510_v48 }
 0x9a5   : > { %v3908_v60 = vpop.permute.xlu0 %3907 }
 0x9a6   : > { %10194 = vmatpush.xpose.msk.msra.mxu3 %vm2104_vm0, %v3908_v60 }
 0x9a7   : > { %4342 = vrot.lane.b32.xlu1 %v16509_v14, %s10891_s27  ;;  %v3373_v14 = vmul.f32 %v13147_v4, %v12537_v52 }
 0x9a9   : > { %v13323_v23 = vld.sshfl [vmem:[#allocation1] sm:$0xff pattern:$0x73625140]  ;;  %4524 = vrot.lane.b32.xlu0 %v13001_v5, %s10891_s27  ;;  %v16513_v5 = vld [vmem:[#allocation71_spill] sm:$0xff] }
 0x9aa   : > { %16507 = vst [vmem:[#allocation56_spill] sm:$0xff] %v13323_v23  ;;  %v3377_v23 = vmul.f32 %v13150_v27, %v16422_v37  ;;  %v3380_v37 = vmul.f32 %v13150_v27, %v12579_v24 }
 0x9ab   : > { %5310 = vst [vmem:[#allocation1] ss:$4 sm:$0xff] %v3367_v61  ;;  %v3372_v61 = vmul.f32 %v13153_v30, %v16464_v0 }
 0x9ac   : > { %5312 = vst [vmem:[#allocation1 + $0x1] ss:$4 sm:$0xff] %v3368_v47  ;;  %v13343_v47 = vpop.xlane.xlu2 %3255 }
 0x9ad   : > { %5314 = vst [vmem:[#allocation1 + $0x2] ss:$4 sm:$0xff] %v3369_v16  ;;  %v16514_v16 = vld [vmem:[#allocation82_spill] sm:$0xff] }
 0x9ae   : > { %16512 = vst [vmem:[#allocation87_spill] sm:$0xff] %v13343_v47  ;;  %10195 = vmatmul.msk.f32.vlgmr.msra.gmra.mxu3 %vm2104_vm0, %v16514_v16  ;;  %v16516_v47 = vld [vmem:[#allocation59_spill] sm:$0xff]  ;;  %v16518_v16 = vld [vmem:[#allocation94_spill] sm:$0xff] }
 0x9af   : > { %4560 = vrot.lane.b32.xlu1 %v16513_v5, %s10891_s27  ;;  %v16517_v5 = vld [vmem:[#allocation84_spill] sm:$0xff] }
 0x9b4   : > { %v13339_v33 = vld.sshfl [vmem:[#allocation1] sm:$0xff pattern:$0x73625140]  ;;  %v13359_v60 = vpop.xlane.xlu2 %3186 }
 0x9b5   : > { %16511 = vst [vmem:[#allocation70_spill] sm:$0xff] %v13339_v33  ;;  %v3374_v33 = vmul.f32 %v13150_v27, %v12534_v3 }
 0x9b6   : > { %5346 = vst [vmem:[#allocation1] ss:$4 sm:$0xff] %v3370_v63 }
 0x9b7   : > { %5348 = vst [vmem:[#allocation1 + $0x1] ss:$4 sm:$0xff] %v3371_v34  ;;  %v3949_v34 = vpop.permute.xlu0 %3948 }
 0x9b8   : > { %5350 = vst [vmem:[#allocation1 + $0x2] ss:$4 sm:$0xff] %v3372_v61  ;;  %v3375_v61 = vmul.f32 %v13153_v30, %v16516_v47  ;;  %10196 = vmatpush.xpose.msk.msra.mxu0 %vm2104_vm0, %v3949_v34 }
 0x9ba   : > { %4596 = vrot.lane.b32.xlu2 %v16518_v16, %s10891_s27 }
 0x9bb   : > { %10197 = vmatmul.msk.f32.vlgmr.msra.gmra.mxu0 %vm2104_vm0, %v16517_v5  ;;  %v16520_v5 = vld [vmem:[#allocation93_spill] sm:$0xff] }
 0x9bc   : > { %v3206_v16 = vsub.f32 %v16520_v5, %v13267_v32  ;;  %v13394_v5 = vpop.f32.mrf.mxu3 }
 0x9bf   : > { %v13354_v63 = vld.sshfl [vmem:[#allocation1] sm:$0xff pattern:$0x73625140] }
 0x9c0   : > { %16515 = vst [vmem:[#allocation92_spill] sm:$0xff] %v13354_v63  ;;  %v3376_v63 = vmul.f32 %v13147_v4, %v12555_v22 }
 0x9c1   : > { %5382 = vst [vmem:[#allocation1] ss:$4 sm:$0xff] %v3373_v14  ;;  %v13371_v14 = vpop.xlane.xlu2 %4098 }
 0x9c2   : > { %5384 = vst [vmem:[#allocation1 + $0x1] ss:$4 sm:$0xff] %v3374_v33  ;;  %v3378_v33 = vmul.f32 %v13153_v30, %v16424_v17 }
 0x9c3   : > { %5386 = vst [vmem:[#allocation1 + $0x2] ss:$4 sm:$0xff] %v3375_v61  ;;  %v3379_v61 = vmul.f32 %v13147_v4, %v12576_v53  ;;  %v3234_v4 = vmul.f32 1.442695, %v3206_v16 }
 0x9c5   : > { %10601 = vpow2.f32 %v3234_v4 }
 0x9c9   : > { %v13375_v34 = vpop.xlane.xlu2 %4101 }
 0x9ca   : > { %v13369_v47 = vld.sshfl [vmem:[#allocation1] sm:$0xff pattern:$0x73625140] }
 0x9cb   : > { %16519 = vst [vmem:[#allocation90_spill] sm:$0xff] %v13369_v47  ;;  %v16522_v47 = vld [vmem:[#allocation103_spill] sm:$0xff]  ;;  %v13413_v4 = vpop.eup %10601 }
 0x9cc   : > { %5418 = vst [vmem:[#allocation1] ss:$4 sm:$0xff] %v3376_v63  ;;  %v3205_v3 = vsub.f32 %v16522_v47, %v3181_v8  ;;  %v3381_v63 = vmul.f32 %v13153_v30, %v16429_v39  ;;  %v13401_v30 = vpop.xlane.xlu1 %3192  ;;  %v16525_v47 = vld [vmem:[#allocation17_spill] sm:$0xff] }
 0x9cd   : > { %5420 = vst [vmem:[#allocation1 + $0x1] ss:$4 sm:$0xff] %v3377_v23  ;;  %v16523_v23 = vld [vmem:[#allocation4_spill] sm:$0xff] }
 0x9ce   : > { %5422 = vst [vmem:[#allocation1 + $0x2] ss:$4 sm:$0xff] %v3378_v33  ;;  %v13389_v33 = vmul.f32 0.70710677, %v16523_v23  ;;  %v3232_v53 = vmul.f32 1.442695, %v3205_v3 }
 0x9cf   : > { %v4106_v3 = vsel %vm3145_vm14, %v13394_v5, -inf  ;;  %16528 = vst [vmem:[#allocation94_spill] sm:$0xff] %v13413_v4 }
 0x9d0   : > { %v13392_v32 = vrot.slane %v13389_v33, 2  ;;  %v13399_v8 = vrot.slane %v13389_v33, 4  ;;  %10603 = vpow2.f32 %v3232_v53 }
 0x9d1   : > { %v13396_v27 = vpop.xlane.xlu2 %3270 }
 0x9d2   : > { %16524 = vst [vmem:[#allocation82_spill] sm:$0xff] %v13396_v27  ;;  %v5500_v23 = vmul.f32 %v13399_v8, %v12268_v43 }
 0x9d3   : > { %4107 = vmax.xlane.f32.xlu0 %v4106_v3  ;;  %v3278_v3 = vsel %vm3145_vm14, %v13413_v4, 0.0  ;;  %v5503_v4 = vmul.f32 %v13399_v8, %v12288_v51 }
 0x9d4   : > { %v4072_v27 = vpop.permute.xlu1 %4071 }
 0x9d5   : > { %v13383_v22 = vld.sshfl [vmem:[#allocation1] sm:$0xff pattern:$0x73625140]  ;;  %10202 = vmatpush.xpose.msk.msrb.mxu3 %vm2104_vm0, %v4072_v27  ;;  %v13429_v27 = vpop.f32.mrf.mxu0 }
 0x9d6   : > { %16521 = vst [vmem:[#allocation71_spill] sm:$0xff] %v13383_v22  ;;  %v13415_v53 = vpop.eup %10603 }
 0x9d7   : > { %5454 = vst [vmem:[#allocation1] ss:$4 sm:$0xff] %v3379_v61  ;;  %v16526_v61 = vld [vmem:[#allocation18_spill] sm:$0xff] }
 0x9d8   : > { %5456 = vst [vmem:[#allocation1 + $0x1] ss:$4 sm:$0xff] %v3380_v37  ;;  %v5498_v37 = vmul.f32 %v13389_v33, %v16525_v47  ;;  %v5499_v16 = vmul.f32 %v13392_v32, %v16526_v61 }
 0x9d9   : > { %5458 = vst [vmem:[#allocation1 + $0x2] ss:$4 sm:$0xff] %v3381_v63  ;;  %v4453_v22 = vpop.permute.xlu2 %4452  ;;  %3279 = vadd.xlane.f32.xlu1 %v3278_v3  ;;  %v4109_v3 = vsel %vm3145_vm14, %v13429_v27, -inf }
 0x9da   : > { %16529 = vst [vmem:[#allocation93_spill] sm:$0xff] %v13415_v53  ;;  %10210 = vmatpush.msk.msra.mxu3 %vm4348_vm8, %v4453_v22 }
 0x9df   : > { %v3190_v22 = vpop.xlane.xlu0 %3189 }
 0x9e0   : > { %v13409_v63 = vld.sshfl [vmem:[#allocation1] sm:$0xff pattern:$0x73625140] }
 0x9e1   : > { %16527 = vst [vmem:[#allocation84_spill] sm:$0xff] %v13409_v63  ;;  %v3275_v63 = vsel %vm3145_vm14, %v13415_v53, 0.0  ;;  %v5502_v53 = vmul.f32 %v13392_v32, %v12282_v46 }
 0x9e2   : > { %5549 = vst [vmem:[#allocation1] ss:$4 sm:$0xff] %v5498_v37  ;;  %3276 = vadd.xlane.f32.xlu0 %v3275_v63  ;;  %v16530_v37 = vld [vmem:[#allocation64_spill] sm:$0xff] }
 0x9e3   : > { %5551 = vst [vmem:[#allocation1 + $0x1] ss:$4 sm:$0xff] %v5499_v16  ;;  %10203 = vmatmul.msk.f32.vlgmr.msrb.gmra.mxu3 %vm2104_vm0, %v16530_v37  ;;  %4110 = vmax.xlane.f32.xlu2 %v4109_v3  ;;  %v5501_v37 = vmul.f32 %v13389_v33, %v12285_v35 }
 0x9e4   : > { %5553 = vst [vmem:[#allocation1 + $0x2] ss:$4 sm:$0xff] %v5500_v23  ;;  %v3208_v23 = vsub.f32 %v13228_v21, %v3190_v22 }
 0x9e6   : > { %v3238_v63 = vmul.f32 1.442695, %v3208_v23  ;;  %v16534_v23 = vld [vmem:[#allocation98_spill] sm:$0xff] }
 0x9e8   : > { %10605 = vpow2.f32 %v3238_v63  ;;  %v13451_v63 = vpop.xlane.xlu0 %3261 }
 0x9e9   : > { %16536 = vst [vmem:[#allocation114_spill] sm:$0xff] %v13451_v63 }
 0x9eb   : > { %v13425_v16 = vld.sshfl [vmem:[#allocation1] sm:$0xff pattern:$0x73625140] }
 0x9ec   : > { %16531 = vst [vmem:[#allocation103_spill] sm:$0xff] %v13425_v16 }
 0x9ed   : > { %5555 = vst [vmem:[#allocation1] ss:$4 sm:$0xff] %v16525_v47 }
 0x9ee   : > { %5557 = vst [vmem:[#allocation1 + $0x1] ss:$4 sm:$0xff] %v16526_v61  ;;  %v13443_v21 = vpop.eup %10605 }
 0x9ef   : > { %5559 = vst [vmem:[#allocation1 + $0x2] ss:$4 sm:$0xff] %v12268_v43  ;;  %v3284_v22 = vsel %vm3145_vm14, %v13443_v21, 0.0 }
 0x9f0   : > { %16533 = vst [vmem:[#allocation64_spill] sm:$0xff] %v13443_v21  ;;  %3285 = vadd.xlane.f32.xlu2 %v3284_v22  ;;  %v16540_v21 = vld [vmem:[#allocation25_spill] sm:$0xff] }
 0x9f1   : > { %v5506_v63 = vmul.f32 %v13399_v8, %v16540_v21 }
 0x9f6   : > { %v13439_v16 = vld.sshfl [vmem:[#allocation1] sm:$0xff pattern:$0x73625140]  ;;  %4668 = vrot.lane.b32.xlu0 %v16534_v23, %s10891_s27  ;;  %v13464_v23 = vpop.xlane.xlu0 %3264 }
 0x9f7   : > { %16532 = vst [vmem:[#allocation4_spill] sm:$0xff] %v13439_v16  ;;  %v16542_v16 = vld [vmem:[#allocation100_spill] sm:$0xff] }
 0x9f8   : > { %5590 = vst [vmem:[#allocation1] ss:$4 sm:$0xff] %v5501_v37  ;;  %v5505_v37 = vmul.f32 %v13392_v32, %v12306_v26 }
 0x9f9   : > { %5592 = vst [vmem:[#allocation1 + $0x1] ss:$4 sm:$0xff] %v5502_v53  ;;  %v5504_v53 = vmul.f32 %v13389_v33, %v12303_v58 }
 0x9fa   : > { %5594 = vst [vmem:[#allocation1 + $0x2] ss:$4 sm:$0xff] %v5503_v4  ;;  %v16537_v4 = vld [vmem:[#allocation97_spill] sm:$0xff] }
 0x9fb   : > { %4632 = vrot.lane.b32.xlu1 %v16537_v4, %s10891_s27  ;;  %16539 = vst [vmem:[#allocation115_spill] sm:$0xff] %v13464_v23  ;;  %v5509_v23 = vmul.f32 %v13399_v8, %v12330_v2 }
 0xa01   : > { %v13449_v3 = vld.sshfl [vmem:[#allocation1] sm:$0xff pattern:$0x73625140] }
 0xa02   : > { %16535 = vst [vmem:[#allocation98_spill] sm:$0xff] %v13449_v3  ;;  %v16541_v3 = vld [vmem:[#allocation99_spill] sm:$0xff]  ;;  %v4381_v4 = vpop.permute.xlu0 %4380 }
 0xa03   : > { %5596 = vst [vmem:[#allocation1] ss:$4 sm:$0xff] %v12285_v35  ;;  %4704 = vrot.lane.b32.xlu1 %v16541_v3, %s10891_s27  ;;  %10206 = vmatpush.msk.msra.mxu1 %vm4348_vm8, %v4381_v4  ;;  %v16547_v4 = vld [vmem:[#allocation96_spill] sm:$0xff] }
 0xa04   : > { %5598 = vst [vmem:[#allocation1 + $0x1] ss:$4 sm:$0xff] %v12282_v46 }
 0xa05   : > { %5600 = vst [vmem:[#allocation1 + $0x2] ss:$4 sm:$0xff] %v12288_v51 }
 0xa0a   : > { %v4417_v3 = vpop.permute.xlu0 %4416 }
 0xa0b   : > { %4740 = vrot.lane.b32.xlu1 %v16542_v16, %s10891_s27  ;;  %10208 = vmatpush.msk.msra.mxu2 %vm4348_vm8, %v4417_v3 }
 0xa0c   : > { %v13462_v22 = vld.sshfl [vmem:[#allocation1] sm:$0xff pattern:$0x73625140]  ;;  %v13483_v16 = vpop.xlane.xlu2 %4104 }
 0xa0d   : > { %16538 = vst [vmem:[#allocation97_spill] sm:$0xff] %v13462_v22  ;;  %v16544_v22 = vld [vmem:[#allocation78_spill] sm:$0xff] }
 0xa0e   : > { %5631 = vst [vmem:[#allocation1] ss:$4 sm:$0xff] %v5504_v53  ;;  %4848 = vrot.lane.b32.xlu2 %v16544_v22, %s10891_s27  ;;  %v5507_v53 = vmul.f32 %v13389_v33, %v12324_v41 }
 0xa0f   : > { %5633 = vst [vmem:[#allocation1 + $0x1] ss:$4 sm:$0xff] %v5505_v37  ;;  %v5508_v37 = vmul.f32 %v13392_v32, %v12327_v7 }
 0xa10   : > { %5635 = vst [vmem:[#allocation1 + $0x2] ss:$4 sm:$0xff] %v5506_v63  ;;  %v16545_v63 = vld [vmem:[#allocation73_spill] sm:$0xff] }
 0xa16   : > { %4884 = vrot.lane.b32.xlu2 %v16545_v63, %s10891_s27  ;;  %v13495_v63 = vpop.xlane.xlu1 %3267 }
 0xa17   : > { %v13473_v51 = vld.sshfl [vmem:[#allocation1] sm:$0xff pattern:$0x73625140]  ;;  %16548 = vst [vmem:[#allocation78_spill] sm:$0xff] %v13495_v63 }
 0xa18   : > { %16543 = vst [vmem:[#allocation99_spill] sm:$0xff] %v13473_v51  ;;  %v3207_v51 = vsub.f32 %v16547_v4, %v13359_v60  ;;  %v5511_v4 = vmul.f32 %v13392_v32, %v12348_v20 }
 0xa19   : > { %5637 = vst [vmem:[#allocation1] ss:$4 sm:$0xff] %v12303_v58  ;;  %v13499_v58 = vpop.xlane.xlu2 %3273 }
 0xa1a   : > { %5639 = vst [vmem:[#allocation1 + $0x1] ss:$4 sm:$0xff] %v12306_v26  ;;  %v3236_v3 = vmul.f32 1.442695, %v3207_v51  ;;  %v13497_v26 = vpop.f32.mrf.mxu1 }
 0xa1b   : > { %5641 = vst [vmem:[#allocation1 + $0x2] ss:$4 sm:$0xff] %v16540_v21  ;;  %v4489_v21 = vpop.permute.xlu0 %4488 }
 0xa1c   : > { %16549 = vst [vmem:[#allocation73_spill] sm:$0xff] %v13499_v58  ;;  %10607 = vpow2.f32 %v3236_v3  ;;  %v16554_v58 = vld [vmem:[#allocation104_spill] sm:$0xff] }
 0xa1e   : > { %v4343_v60 = vpop.permute.xlu1 %4342 }
 0xa1f   : > { %10204 = vmatpush.msk.msrb.mxu0 %vm4348_vm8, %v4343_v60 }
 0xa21   : > { %10212 = vmatpush.msk.msra.mxu0 %vm4348_vm8, %v4489_v21  ;;  %v16553_v21 = vld [vmem:[#allocation102_spill] sm:$0xff] }
 0xa22   : > { %v13489_v22 = vld.sshfl [vmem:[#allocation1] sm:$0xff pattern:$0x73625140] }
 0xa23   : > { %16546 = vst [vmem:[#allocation100_spill] sm:$0xff] %v13489_v22  ;;  %v4112_v22 = vsel %vm3145_vm14, %v13497_v26, -inf  ;;  %v4525_v51 = vpop.permute.xlu0 %4524 }
 0xa24   : > { %5672 = vst [vmem:[#allocation1] ss:$4 sm:$0xff] %v5507_v53  ;;  %4113 = vmax.xlane.f32.xlu0 %v4112_v22  ;;  %10214 = vmatpush.msk.msrb.mxu1 %vm4348_vm8, %v4525_v51  ;;  %v4597_v53 = vpop.permute.xlu2 %4596  ;;  %v5510_v22 = vmul.f32 %v13389_v33, %v12344_v19  ;;  %v5512_v51 = vmul.f32 %v13399_v8, %v12351_v18 }
 0xa25   : > { %5674 = vst [vmem:[#allocation1 + $0x1] ss:$4 sm:$0xff] %v5508_v37  ;;  %10218 = vmatpush.msk.msrb.mxu3 %vm4348_vm8, %v4597_v53  ;;  %v4145_v53 = vsub.f32 %v16553_v21, %v13371_v14  ;;  %v5515_v21 = vmul.f32 %v13399_v8, %v16442_v54 }
 0xa26   : > { %5676 = vst [vmem:[#allocation1 + $0x2] ss:$4 sm:$0xff] %v5509_v23  ;;  %v13510_v23 = vpop.eup %10607  ;;  %v4561_v60 = vpop.permute.xlu1 %4560 }
 0xa27   : > { %16551 = vst [vmem:[#allocation116_spill] sm:$0xff] %v13510_v23  ;;  %v3281_v37 = vsel %vm3145_vm14, %v13510_v23, 0.0  ;;  %10216 = vmatpush.msk.msrb.mxu2 %vm4348_vm8, %v4561_v60  ;;  %v4146_v23 = vsub.f32 %v16554_v58, %v13375_v34  ;;  %v16556_v58 = vld [vmem:[#allocation101_spill] sm:$0xff] }
 0xa29   : > { %v4163_v14 = vmul.f32 1.442695, %v4146_v23  ;;  %v5514_v23 = vmul.f32 %v13392_v32, %v12366_v42 }
 0xa2c   : > { %3282 = vadd.xlane.f32.xlu0 %v3281_v37  ;;  %v4161_v37 = vmul.f32 1.442695, %v4145_v53 }
 0xa2d   : > { %v13503_v46 = vld.sshfl [vmem:[#allocation1] sm:$0xff pattern:$0x73625140] }
 0xa2e   : > { %16550 = vst [vmem:[#allocation96_spill] sm:$0xff] %v13503_v46  ;;  %v13527_v46 = vpop.f32.mrf.mxu2  ;;  %10609 = vpow2.f32 %v4161_v37  ;;  %v16558_v37 = vld [vmem:[#allocation86_spill] sm:$0xff] }
 0xa2f   : > { %5678 = vst [vmem:[#allocation1] ss:$4 sm:$0xff] %v12324_v41  ;;  %10611 = vpow2.f32 %v4163_v14 }
 0xa30   : > { %5680 = vst [vmem:[#allocation1 + $0x1] ss:$4 sm:$0xff] %v12327_v7 }
 0xa31   : > { %5682 = vst [vmem:[#allocation1 + $0x2] ss:$4 sm:$0xff] %v12330_v2 }
 0xa38   : > { %v13520_v3 = vld.sshfl [vmem:[#allocation1] sm:$0xff pattern:$0x73625140] }
 0xa39   : > { %16552 = vst [vmem:[#allocation117_spill] sm:$0xff] %v13520_v3  ;;  %v4115_v3 = vsel %vm3145_vm14, %v13527_v46, -inf }
 0xa3a   : > { %5713 = vst [vmem:[#allocation1] ss:$4 sm:$0xff] %v5510_v22  ;;  %4116 = vmax.xlane.f32.xlu1 %v4115_v3  ;;  %v13538_v22 = vpop.eup %10609  ;;  %v5513_v3 = vmul.f32 %v13389_v33, %v12369_v25 }
 0xa3b   : > { %5715 = vst [vmem:[#allocation1 + $0x1] ss:$4 sm:$0xff] %v5511_v4  ;;  %v13540_v4 = vpop.f32.mrf.mxu1  ;;  %v4193_v60 = vsel %vm3145_vm14, %v13538_v22, 0.0  ;;  %v13556_v53 = vpop.eup %10611 }
 0xa3c   : > { %5717 = vst [vmem:[#allocation1 + $0x2] ss:$4 sm:$0xff] %v5512_v51  ;;  %v4124_v34 = vsel %vm3145_vm14, %v13540_v4, -inf  ;;  %v4196_v14 = vsel %vm3145_vm14, %v13556_v53, 0.0 }
 0xa3f   : > { %4194 = vadd.xlane.f32.xlu2 %v4193_v60  ;;  %v5517_v60 = vmul.f32 %v13392_v32, %v12390_v1 }
 0xa40   : > { %4776 = vrot.lane.b32.xlu0 %v16556_v58, %s10891_s27 }
 0xa42   : > { %4125 = vmax.xlane.f32.xlu1 %v4124_v34  ;;  %v5516_v34 = vmul.f32 %v13389_v33, %v12387_v50 }
 0xa43   : > { %v13531_v63 = vld.sshfl [vmem:[#allocation1] sm:$0xff pattern:$0x73625140] }
 0xa44   : > { %16555 = vst [vmem:[#allocation102_spill] sm:$0xff] %v13531_v63 }
 0xa45   : > { %5719 = vst [vmem:[#allocation1] ss:$4 sm:$0xff] %v12344_v19 }
 0xa46   : > { %5721 = vst [vmem:[#allocation1 + $0x1] ss:$4 sm:$0xff] %v12348_v20 }
 0xa47   : > { %5723 = vst [vmem:[#allocation1 + $0x2] ss:$4 sm:$0xff] %v12351_v18  ;;  %4197 = vadd.xlane.f32.xlu2 %v4196_v14  ;;  %v16563_v14 = vld [vmem:[#allocation107_spill] sm:$0xff] }
 0xa48   : > { %4812 = vrot.lane.b32.xlu0 %v16558_v37, %s10891_s27 }
 0xa4e   : > { %v13552_v51 = vld.sshfl [vmem:[#allocation1] sm:$0xff pattern:$0x73625140] }
 0xa4f   : > { %16557 = vst [vmem:[#allocation104_spill] sm:$0xff] %v13552_v51  ;;  %v5524_v51 = vmul.f32 %v13399_v8, %v12435_v59 }
 0xa50   : > { %5754 = vst [vmem:[#allocation1] ss:$4 sm:$0xff] %v5513_v3 }
 0xa51   : > { %5756 = vst [vmem:[#allocation1 + $0x1] ss:$4 sm:$0xff] %v5514_v23  ;;  %v5518_v23 = vmul.f32 %v13399_v8, %v12393_v15 }
 0xa52   : > { %5758 = vst [vmem:[#allocation1 + $0x2] ss:$4 sm:$0xff] %v5515_v21  ;;  %v16561_v21 = vld [vmem:[#allocation105_spill] sm:$0xff] }
 0xa59   : > { %v13562_v58 = vld.sshfl [vmem:[#allocation1] sm:$0xff pattern:$0x73625140] }
 0xa5a   : > { %16559 = vst [vmem:[#allocation101_spill] sm:$0xff] %v13562_v58  ;;  %v16564_v58 = vld [vmem:[#allocation85_spill] sm:$0xff] }
 0xa5b   : > { %5760 = vst [vmem:[#allocation1] ss:$4 sm:$0xff] %v12369_v25  ;;  %4992 = vrot.lane.b32.xlu1 %v16561_v21, %s10891_s27  ;;  %v3209_v63 = vsub.f32 %v16564_v58, %v13401_v30  ;;  %v5521_v21 = vmul.f32 %v13399_v8, %v12414_v55 }
 0xa5c   : > { %5762 = vst [vmem:[#allocation1 + $0x1] ss:$4 sm:$0xff] %v12366_v42 }
 0xa5d   : > { %5764 = vst [vmem:[#allocation1 + $0x2] ss:$4 sm:$0xff] %v16442_v54 }
 0xa5f   : > { %5028 = vrot.lane.b32.xlu2 %v16563_v14, %s10891_s27  ;;  %v3240_v14 = vmul.f32 1.442695, %v3209_v63  ;;  %v4147_v63 = vsub.f32 %v13302_v6, %v13483_v16  ;;  %v13619_v6 = vpop.f32.mrf.mxu2 }
 0xa61   : > { %10613 = vpow2.f32 %v3240_v14  ;;  %v4111_v14 = vpop.xlane.xlu2 %4110 }
 0xa62   : > { %v4149_v16 = vsub.f32 %v13429_v27, %v4111_v14 }
 0xa64   : > { %v13571_v3 = vld.sshfl [vmem:[#allocation1] sm:$0xff pattern:$0x73625140] }
 0xa65   : > { %16560 = vst [vmem:[#allocation86_spill] sm:$0xff] %v13571_v3 }
 0xa66   : > { %5795 = vst [vmem:[#allocation1] ss:$4 sm:$0xff] %v5516_v34  ;;  %v5519_v34 = vmul.f32 %v13389_v33, %v12408_v28 }
 0xa67   : > { %5797 = vst [vmem:[#allocation1 + $0x1] ss:$4 sm:$0xff] %v5517_v60  ;;  %v5520_v60 = vmul.f32 %v13392_v32, %v12411_v56  ;;  %v13601_v3 = vpop.eup %10613 }
 0xa68   : > { %5799 = vst [vmem:[#allocation1 + $0x2] ss:$4 sm:$0xff] %v5518_v23 }
 0xa69   : > { %16567 = vst [vmem:[#allocation118_spill] sm:$0xff] %v13601_v3 }
 0xa6f   : > { %v13577_v37 = vld.sshfl [vmem:[#allocation1] sm:$0xff pattern:$0x73625140] }
 0xa70   : > { %16562 = vst [vmem:[#allocation105_spill] sm:$0xff] %v13577_v37  ;;  %v13594_v37 = vpop.f32.mrf.mxu3 }
 0xa71   : > { %5801 = vst [vmem:[#allocation1] ss:$4 sm:$0xff] %v12387_v50  ;;  %v4118_v30 = vsel %vm3145_vm14, %v13594_v37, -inf }
 0xa72   : > { %5803 = vst [vmem:[#allocation1 + $0x1] ss:$4 sm:$0xff] %v12390_v1  ;;  %4119 = vmax.xlane.f32.xlu0 %v4118_v30  ;;  %v5523_v30 = vmul.f32 %v13392_v32, %v12432_v31 }
 0xa73   : > { %5805 = vst [vmem:[#allocation1 + $0x2] ss:$4 sm:$0xff] %v12393_v15 }
 0xa7a   : > { %v13590_v23 = vld.sshfl [vmem:[#allocation1] sm:$0xff pattern:$0x73625140] }
 0xa7b   : > { %16565 = vst [vmem:[#allocation107_spill] sm:$0xff] %v13590_v23  ;;  %v13615_v23 = vpop.f32.mrf.mxu0 }
 0xa7c   : > { %5836 = vst [vmem:[#allocation1] ss:$4 sm:$0xff] %v5519_v34  ;;  %v3287_v34 = vsel %vm3145_vm14, %v13601_v3, 0.0  ;;  %v4169_v3 = vmul.f32 1.442695, %v4149_v16  ;;  %v16570_v16 = vld [vmem:[#allocation83_spill] sm:$0xff] }
 0xa7d   : > { %5838 = vst [vmem:[#allocation1 + $0x1] ss:$4 sm:$0xff] %v5520_v60  ;;  %3288 = vadd.xlane.f32.xlu0 %v3287_v34  ;;  %v4165_v60 = vmul.f32 1.442695, %v4147_v63  ;;  %v4121_v63 = vsel %vm3145_vm14, %v13615_v23, -inf  ;;  %v4127_v34 = vsel %vm3145_vm14, %v13619_v6, -inf }
 0xa7e   : > { %5840 = vst [vmem:[#allocation1 + $0x2] ss:$4 sm:$0xff] %v5521_v21  ;;  %v5522_v21 = vmul.f32 %v13389_v33, %v12428_v13 }
 0xa7f   : > { %10615 = vpow2.f32 %v4165_v60  ;;  %v5525_v60 = vmul.f32 %v13389_v33, %v12453_v62 }
 0xa80   : > { %10617 = vpow2.f32 %v4169_v3  ;;  %v5526_v3 = vmul.f32 %v13392_v32, %v12450_v45 }
 0xa85   : > { %v13598_v58 = vld.sshfl [vmem:[#allocation1] sm:$0xff pattern:$0x73625140]  ;;  %4122 = vmax.xlane.f32.xlu0 %v4121_v63  ;;  %4128 = vmax.xlane.f32.xlu1 %v4127_v34  ;;  %v13649_v63 = vpop.xlane.xlu2 %3285 }
 0xa86   : > { %16566 = vst [vmem:[#allocation85_spill] sm:$0xff] %v13598_v58 }
 0xa87   : > { %5842 = vst [vmem:[#allocation1] ss:$4 sm:$0xff] %v12408_v28 }
 0xa88   : > { %5844 = vst [vmem:[#allocation1 + $0x1] ss:$4 sm:$0xff] %v12411_v56 }
 0xa89   : > { %5846 = vst [vmem:[#allocation1 + $0x2] ss:$4 sm:$0xff] %v12414_v55 }
 0xa8a   : > { %16571 = vst [vmem:[#allocation83_spill] sm:$0xff] %v13649_v63  ;;  %v16578_v63 = vld [vmem:[#allocation109_spill] sm:$0xff] }
 0xa90   : > { %v13613_v58 = vld.sshfl [vmem:[#allocation1] sm:$0xff pattern:$0x73625140] }
 0xa91   : > { %16568 = vst [vmem:[#allocation119_spill] sm:$0xff] %v13613_v58  ;;  %v13626_v58 = vpop.eup %10615 }
 0xa92   : > { %5877 = vst [vmem:[#allocation1] ss:$4 sm:$0xff] %v5522_v21  ;;  %v4199_v27 = vsel %vm3145_vm14, %v13626_v58, 0.0 }
 0xa93   : > { %5879 = vst [vmem:[#allocation1 + $0x1] ss:$4 sm:$0xff] %v5523_v30  ;;  %4200 = vadd.xlane.f32.xlu2 %v4199_v27  ;;  %v5527_v30 = vmul.f32 %v13399_v8, %v12456_v57  ;;  %v16573_v27 = vld [vmem:[#allocation79_spill] sm:$0xff] }
 0xa94   : > { %5881 = vst [vmem:[#allocation1 + $0x2] ss:$4 sm:$0xff] %v5524_v51  ;;  %v13635_v51 = vpop.eup %10617 }
 0xa95   : > { %v4205_v21 = vsel %vm3145_vm14, %v13635_v51, 0.0 }
 0xa99   : > { %4920 = vrot.lane.b32.xlu0 %v16570_v16, %s10891_s27  ;;  %v16576_v16 = vld [vmem:[#allocation60_spill] sm:$0xff] }
 0xa9b   : > { %v13628_v55 = vld.sshfl [vmem:[#allocation1] sm:$0xff pattern:$0x73625140]  ;;  %4206 = vadd.xlane.f32.xlu2 %v4205_v21  ;;  %v5528_v21 = vmul.f32 %v13389_v33, %v12471_v11 }
 0xa9c   : > { %16569 = vst [vmem:[#allocation120_spill] sm:$0xff] %v13628_v55  ;;  %v5533_v55 = vmul.f32 %v13399_v8, %v16460_v12 }
 0xa9d   : > { %5883 = vst [vmem:[#allocation1] ss:$4 sm:$0xff] %v12428_v13 }
 0xa9e   : > { %5885 = vst [vmem:[#allocation1 + $0x1] ss:$4 sm:$0xff] %v12432_v31  ;;  %5136 = vrot.lane.b32.xlu1 %v13261_v29, %s10891_s27  ;;  %v5530_v29 = vmul.f32 %v13399_v8, %v12477_v38 }
 0xa9f   : > { %5887 = vst [vmem:[#allocation1 + $0x2] ss:$4 sm:$0xff] %v12435_v59 }
 0xaa1   : > { %4956 = vrot.lane.b32.xlu0 %v16573_v27, %s10891_s27 }
 0xaa6   : > { %v13643_v14 = vld.sshfl [vmem:[#allocation1] sm:$0xff pattern:$0x73625140] }
 0xaa7   : > { %5918 = vst [vmem:[#allocation1] ss:$4 sm:$0xff] %v5525_v60  ;;  %v13660_v60 = vpop.permute.xlu2 %4848 }
 0xaa8   : > { %5920 = vst [vmem:[#allocation1 + $0x1] ss:$4 sm:$0xff] %v5526_v3  ;;  %v5529_v3 = vmul.f32 %v13392_v32, %v12474_v36 }
 0xaa9   : > { %5922 = vst [vmem:[#allocation1 + $0x2] ss:$4 sm:$0xff] %v5527_v30  ;;  %5064 = vrot.lane.b32.xlu0 %v16576_v16, %s10891_s27  ;;  %v5531_v16 = vmul.f32 %v13389_v33, %v16457_v44 }
 0xaaa   : > { %16574 = vst [vmem:[#allocation79_spill] sm:$0xff] %v13660_v60  ;;  %v13700_v60 = vpop.f32.mrf.mxu3 }
 0xaaf   : > { %v13674_v27 = vpop.permute.xlu2 %4884 }
 0xab0   : > { %v13651_v34 = vld.sshfl [vmem:[#allocation1] sm:$0xff pattern:$0x73625140]  ;;  %16577 = vst [vmem:[#allocation60_spill] sm:$0xff] %v13674_v27 }
 0xab1   : > { %16572 = vst [vmem:[#allocation121_spill] sm:$0xff] %v13651_v34  ;;  %5100 = vrot.lane.b32.xlu0 %v16578_v63, %s10891_s27  ;;  %v5532_v63 = vmul.f32 %v13392_v32, %v16458_v49 }
 0xab2   : > { %5924 = vst [vmem:[#allocation1] ss:$4 sm:$0xff] %v12453_v62 }
 0xab3   : > { %5926 = vst [vmem:[#allocation1 + $0x1] ss:$4 sm:$0xff] %v12450_v45  ;;  %5208 = vrot.lane.b32.xlu2 %v13287_v40, %s10891_s27  ;;  %v13685_v40 = vpop.xlane.xlu1 %3279 }
 0xab4   : > { %5928 = vst [vmem:[#allocation1 + $0x2] ss:$4 sm:$0xff] %v12456_v57 }
 0xab5   : > { %16580 = vst [vmem:[#allocation123_spill] sm:$0xff] %v13685_v40 }
 0xabb   : > { %v13666_v30 = vld.sshfl [vmem:[#allocation1] sm:$0xff pattern:$0x73625140]  ;;  %5244 = vrot.lane.b32.xlu2 %v13307_v10, %s10891_s27  ;;  %v4633_v40 = vpop.permute.xlu1 %4632 }
 0xabc   : > { %16575 = vst [vmem:[#allocation122_spill] sm:$0xff] %v13666_v30 }
 0xabd   : > { %5959 = vst [vmem:[#allocation1] ss:$4 sm:$0xff] %v5528_v21  ;;  %v4108_v21 = vpop.xlane.xlu0 %4107 }
 0xabe   : > { %5961 = vst [vmem:[#allocation1 + $0x1] ss:$4 sm:$0xff] %v5529_v3  ;;  %v4195_v3 = vpop.xlane.xlu2 %4194 }
 0xabf   : > { %5963 = vst [vmem:[#allocation1 + $0x2] ss:$4 sm:$0xff] %v5530_v29  ;;  %10619 = vrcp.f32 %v4195_v3 }
 0xac5   : > { %v13696_v3 = vpop.xlane.xlu0 %3276 }
 0xac6   : > { %v13678_v34 = vld.sshfl [vmem:[#allocation1] sm:$0xff pattern:$0x73625140]  ;;  %v4198_v27 = vpop.xlane.xlu2 %4197  ;;  %16582 = vst [vmem:[#allocation125_spill] sm:$0xff] %v13696_v3 }
 0xac7   : > { %16579 = vst [vmem:[#allocation109_spill] sm:$0xff] %v13678_v34  ;;  %v10620_v34 = vpop.eup %10619  ;;  %10621 = vrcp.f32 %v4198_v27 }
 0xac8   : > { %5965 = vst [vmem:[#allocation1] ss:$4 sm:$0xff] %v12471_v11  ;;  %v4257_v10 = vmul.f32 %v10620_v34, %v13538_v22  ;;  %v4130_v34 = vsel %vm3145_vm14, %v13700_v60, -inf }
 0xac9   : > { %5967 = vst [vmem:[#allocation1 + $0x1] ss:$4 sm:$0xff] %v12474_v36  ;;  %4131 = vmax.xlane.f32.xlu1 %v4130_v34  ;;  %v16587_v34 = vld [vmem:[#allocation88_spill] sm:$0xff] }
 0xaca   : > { %5969 = vst [vmem:[#allocation1 + $0x2] ss:$4 sm:$0xff] %v12477_v38  ;;  %10205 = vmatmul.msk.f32.vlgmr.msrb.gmra.mxu0 %vm4344_vm1, %v4257_v10 }
 0xacb   : > { %10220 = vmatpush.msk.msrb.mxu0 %vm4348_vm8, %v4633_v40  ;;  %v5535_v40 = vmul.f32 %v13392_v32, %v16510_v48 }
 0xacd   : > { %v4669_v22 = vpop.permute.xlu0 %4668 }
 0xad1   : > { %v13691_v29 = vld.sshfl [vmem:[#allocation1] sm:$0xff pattern:$0x73625140] }
 0xad2   : > { %16581 = vst [vmem:[#allocation124_spill] sm:$0xff] %v13691_v29  ;;  %v10622_v29 = vpop.eup %10621 }
 0xad3   : > { %6000 = vst [vmem:[#allocation1] ss:$4 sm:$0xff] %v5531_v16  ;;  %v4258_v16 = vmul.f32 %v10622_v29, %v13556_v53  ;;  %v5534_v53 = vmul.f32 %v13389_v33, %v16461_v9  ;;  %v13723_v29 = vpop.f32.mrf.mxu1 }
 0xad4   : > { %6002 = vst [vmem:[#allocation1 + $0x1] ss:$4 sm:$0xff] %v5532_v63 }
 0xad5   : > { %6004 = vst [vmem:[#allocation1 + $0x2] ss:$4 sm:$0xff] %v5533_v55  ;;  %v4148_v55 = vsub.f32 %v13394_v5, %v4108_v21  ;;  %10207 = vmatmul.msk.f32.vlgmr.msra.gmra.mxu1 %vm4344_vm1, %v4258_v16  ;;  %v5536_v5 = vmul.f32 %v13399_v8, %v16464_v0  ;;  %v4114_v3 = vpop.xlane.xlu0 %4113 }
 0xad6   : > { %10222 = vmatpush.msk.msra.mxu1 %vm4348_vm8, %v4669_v22  ;;  %16585 = vst [vmem:[#allocation128_spill] sm:$0xff] %v13723_v29  ;;  %v4705_v22 = vpop.permute.xlu1 %4704 }
 0xad7   : > { %v4167_v27 = vmul.f32 1.442695, %v4148_v55  ;;  %v4136_v55 = vsel %vm3145_vm14, %v13723_v29, -inf }
 0xad9   : > { %10623 = vpow2.f32 %v4167_v27  ;;  %v5537_v27 = vmul.f32 %v13389_v33, %v12537_v52 }
 0xadc   : > { %v13702_v30 = vld.sshfl [vmem:[#allocation1] sm:$0xff pattern:$0x73625140] }
 0xadd   : > { %16583 = vst [vmem:[#allocation126_spill] sm:$0xff] %v13702_v30 }
 0xade   : > { %6006 = vst [vmem:[#allocation1] ss:$4 sm:$0xff] %v16457_v44 }
 0xadf   : > { %6008 = vst [vmem:[#allocation1 + $0x1] ss:$4 sm:$0xff] %v16458_v49  ;;  %v13721_v21 = vpop.eup %10623 }
 0xae0   : > { %6010 = vst [vmem:[#allocation1 + $0x2] ss:$4 sm:$0xff] %v16460_v12  ;;  %v4202_v10 = vsel %vm3145_vm14, %v13721_v21, 0.0 }
 0xae1   : > { %4203 = vadd.xlane.f32.xlu0 %v4202_v10  ;;  %v16590_v10 = vld [vmem:[#allocation59_spill] sm:$0xff] }
 0xae2   : > { %5172 = vrot.lane.b32.xlu1 %v16587_v34, %s10891_s27  ;;  %v5539_v30 = vmul.f32 %v13399_v8, %v16590_v10  ;;  %v16592_v34 = vld [vmem:[#allocation90_spill] sm:$0xff] }
 0xae4   : > { %4137 = vmax.xlane.f32.xlu2 %v4136_v55  ;;  %v13744_v55 = vpop.permute.xlu1 %4740 }
 0xae7   : > { %v13717_v63 = vld.sshfl [vmem:[#allocation1] sm:$0xff pattern:$0x73625140] }
 0xae8   : > { %16584 = vst [vmem:[#allocation127_spill] sm:$0xff] %v13717_v63  ;;  %v13753_v63 = vpop.xlane.xlu0 %3282 }
 0xae9   : > { %6041 = vst [vmem:[#allocation1] ss:$4 sm:$0xff] %v5534_v53  ;;  %v16588_v53 = vld [vmem:[#allocation57_spill] sm:$0xff] }
 0xaea   : > { %6043 = vst [vmem:[#allocation1 + $0x1] ss:$4 sm:$0xff] %v5535_v40  ;;  %v5538_v40 = vmul.f32 %v13392_v32, %v16588_v53 }
 0xaeb   : > { %6045 = vst [vmem:[#allocation1 + $0x2] ss:$4 sm:$0xff] %v5536_v5 }
 0xaec   : > { %16593 = vst [vmem:[#allocation90_spill] sm:$0xff] %v13753_v63  ;;  %v13755_v29 = vpop.xlane.xlu1 %4116 }
 0xaf0   : > { %v4777_v63 = vpop.permute.xlu0 %4776 }
 0xaf2   : > { %v13727_v16 = vld.sshfl [vmem:[#allocation1] sm:$0xff pattern:$0x73625140] }
 0xaf3   : > { %16586 = vst [vmem:[#allocation129_spill] sm:$0xff] %v13727_v16 }
 0xaf4   : > { %6047 = vst [vmem:[#allocation1] ss:$4 sm:$0xff] %v16461_v9  ;;  %v4150_v9 = vsub.f32 %v13497_v26, %v4114_v3  ;;  %v16602_v26 = vld [vmem:[#allocation65_spill] sm:$0xff] }
 0xaf5   : > { %6049 = vst [vmem:[#allocation1 + $0x1] ss:$4 sm:$0xff] %v16510_v48  ;;  %5388 = vrot.lane.b32.xlu0 %v16592_v34, %s10891_s27  ;;  %v5543_v3 = vmul.f32 %v13389_v33, %v16602_v26 }
 0xaf6   : > { %6051 = vst [vmem:[#allocation1 + $0x2] ss:$4 sm:$0xff] %v16464_v0  ;;  %v16597_v0 = vld [vmem:[#allocation62_spill] sm:$0xff] }
 0xaf7   : > { %v5541_v34 = vmul.f32 %v13392_v32, %v16597_v0 }
 0xafd   : > { %v13740_v5 = vld.sshfl [vmem:[#allocation1] sm:$0xff pattern:$0x73625140] }
 0xafe   : > { %16589 = vst [vmem:[#allocation88_spill] sm:$0xff] %v13740_v5 }
 0xaff   : > { %6082 = vst [vmem:[#allocation1] ss:$4 sm:$0xff] %v5537_v27  ;;  %v16595_v27 = vld [vmem:[#allocation61_spill] sm:$0xff] }
 0xb00   : > { %6084 = vst [vmem:[#allocation1 + $0x1] ss:$4 sm:$0xff] %v5538_v40  ;;  %v5540_v40 = vmul.f32 %v13389_v33, %v16595_v27 }
 0xb01   : > { %6086 = vst [vmem:[#allocation1 + $0x2] ss:$4 sm:$0xff] %v5539_v30  ;;  %v16594_v30 = vld [vmem:[#allocation56_spill] sm:$0xff] }
 0xb02   : > { %5280 = vrot.lane.b32.xlu2 %v16594_v30, %s10891_s27  ;;  %v16599_v30 = vld [vmem:[#allocation92_spill] sm:$0xff] }
 0xb08   : > { %v13746_v16 = vld.sshfl [vmem:[#allocation1] sm:$0xff pattern:$0x73625140] }
 0xb09   : > { %16591 = vst [vmem:[#allocation130_spill] sm:$0xff] %v13746_v16  ;;  %v13761_v16 = vpop.permute.xlu2 %5028 }
 0xb0a   : > { %6088 = vst [vmem:[#allocation1] ss:$4 sm:$0xff] %v12537_v52  ;;  %5352 = vrot.lane.b32.xlu2 %v16599_v30, %s10891_s27 }
 0xb0b   : > { %6090 = vst [vmem:[#allocation1 + $0x1] ss:$4 sm:$0xff] %v16588_v53  ;;  %v13769_v53 = vpop.xlane.xlu1 %4125 }
 0xb0c   : > { %6092 = vst [vmem:[#allocation1 + $0x2] ss:$4 sm:$0xff] %v16590_v10  ;;  %v5542_v10 = vmul.f32 %v13399_v8, %v16424_v17 }
 0xb0d   : > { %16596 = vst [vmem:[#allocation56_spill] sm:$0xff] %v13761_v16 }
 0xb11   : > { %v4201_v48 = vpop.xlane.xlu2 %4200 }
 0xb12   : > { %10625 = vrcp.f32 %v4201_v48  ;;  %v13784_v48 = vpop.f32.mrf.mxu0 }
 0xb13   : > { %v13765_v52 = vld.sshfl [vmem:[#allocation1] sm:$0xff pattern:$0x73625140]  ;;  %v13779_v5 = vpop.permute.xlu1 %4992 }
 0xb14   : > { %16598 = vst [vmem:[#allocation131_spill] sm:$0xff] %v13765_v52  ;;  %v13777_v52 = vpop.permute.xlu0 %4812 }
 0xb15   : > { %6123 = vst [vmem:[#allocation1] ss:$4 sm:$0xff] %v5540_v40  ;;  %v4171_v40 = vmul.f32 1.442695, %v4150_v9  ;;  %v4133_v9 = vsel %vm3145_vm14, %v13784_v48, -inf }
 0xb16   : > { %6125 = vst [vmem:[#allocation1 + $0x1] ss:$4 sm:$0xff] %v5541_v34  ;;  %4134 = vmax.xlane.f32.xlu1 %v4133_v9  ;;  %v13808_v9 = vpop.f32.mrf.mxu3 }
 0xb17   : > { %6127 = vst [vmem:[#allocation1 + $0x2] ss:$4 sm:$0xff] %v5542_v10 }
 0xb18   : > { %16601 = vst [vmem:[#allocation132_spill] sm:$0xff] %v13779_v5  ;;  %v10626_v10 = vpop.eup %10625 }
 0xb19   : > { %v4259_v34 = vmul.f32 %v10626_v10, %v13626_v58  ;;  %v4207_v30 = vpop.xlane.xlu2 %4206  ;;  %v5544_v58 = vmul.f32 %v13392_v32, %v12579_v24  ;;  %16604 = vst [vmem:[#allocation134_spill] sm:$0xff] %v13808_v9 }
 0xb1a   : > { %10627 = vrcp.f32 %v4207_v30 }
 0xb1b   : > { %10209 = vmatmul.msk.f32.vlgmr.msra.gmra.mxu2 %vm4344_vm1, %v4259_v34  ;;  %10629 = vpow2.f32 %v4171_v40  ;;  %v4129_v5 = vpop.xlane.xlu1 %4128  ;;  %v5545_v40 = vmul.f32 %v13399_v8, %v16429_v39 }
 0xb1c   : > { %10224 = vmatpush.msk.msra.mxu2 %vm4348_vm8, %v4705_v22  ;;  %v4155_v33 = vsub.f32 %v13619_v6, %v4129_v5  ;;  %v4142_v6 = vsel %vm3145_vm14, %v13808_v9, -inf  ;;  %v16613_v9 = vld [vmem:[#allocation20_spill] sm:$0xff] }
 0xb1e   : > { %v13773_v16 = vld.sshfl [vmem:[#allocation1] sm:$0xff pattern:$0x73625140] }
 0xb1f   : > { %16600 = vst [vmem:[#allocation92_spill] sm:$0xff] %v13773_v16  ;;  %v13790_v16 = vpop.xlane.xlu0 %4119  ;;  %4143 = vmax.xlane.f32.xlu0 %v4142_v6 }
 0xb20   : > { %6129 = vst [vmem:[#allocation1] ss:$4 sm:$0xff] %v16595_v27  ;;  %v10628_v22 = vpop.eup %10627 }
 0xb21   : > { %6131 = vst [vmem:[#allocation1 + $0x1] ss:$4 sm:$0xff] %v16597_v0  ;;  %v4261_v34 = vmul.f32 %v10628_v22, %v13635_v51  ;;  %v13802_v30 = vpop.eup %10629  ;;  %v16607_v51 = vld [vmem:[#allocation75_spill] sm:$0xff] }
 0xb22   : > { %6133 = vst [vmem:[#allocation1 + $0x2] ss:$4 sm:$0xff] %v16424_v17  ;;  %v4181_v17 = vmul.f32 1.442695, %v4155_v33  ;;  %v4208_v32 = vsel %vm3145_vm14, %v13802_v30, 0.0 }
 0xb23   : > { %10213 = vmatmul.msk.f32.vlgmr.msra.gmra.mxu0 %vm4344_vm1, %v4261_v34  ;;  %4209 = vadd.xlane.f32.xlu1 %v4208_v32  ;;  %v16610_v32 = vld [vmem:[#allocation77_spill] sm:$0xff] }
 0xb24   : > { %10228 = vmatpush.msk.msra.mxu0 %vm4348_vm8, %v4777_v63  ;;  %10631 = vpow2.f32 %v4181_v17  ;;  %v13820_v63 = vunpack.i.l.bf16 %v16607_v51  ;;  %v6392_v6 = vmul.f32 %v16610_v32, %v12268_v43 }
 0xb26   : > { %v6390_v17 = vmul.f32 %v13820_v63, %v16525_v47 }
 0xb27   : > { %v13810_v8 = vpop.xlane.xlu0 %3288 }
 0xb28   : > { %16605 = vst [vmem:[#allocation135_spill] sm:$0xff] %v13810_v8 }
 0xb29   : > { %v13796_v10 = vld.sshfl [vmem:[#allocation1] sm:$0xff pattern:$0x73625140] }
 0xb2a   : > { %16603 = vst [vmem:[#allocation133_spill] sm:$0xff] %v13796_v10  ;;  %v13822_v5 = vpop.eup %10631  ;;  %v6393_v10 = vmul.f32 %v13820_v63, %v12285_v35 }
 0xb2b   : > { %6164 = vst [vmem:[#allocation1] ss:$4 sm:$0xff] %v5543_v3  ;;  %v4223_v22 = vsel %vm3145_vm14, %v13822_v5, 0.0 }
 0xb2c   : > { %6166 = vst [vmem:[#allocation1 + $0x1] ss:$4 sm:$0xff] %v5544_v58  ;;  %v13825_v58 = vunpack.i.h.bf16 %v16607_v51  ;;  %4224 = vadd.xlane.f32.xlu0 %v4223_v22  ;;  %v13839_v51 = vpop.f32.mrf.mxu2 }
 0xb2d   : > { %6168 = vst [vmem:[#allocation1 + $0x2] ss:$4 sm:$0xff] %v5545_v40 }
 0xb2e   : > { %16608 = vst [vmem:[#allocation75_spill] sm:$0xff] %v13822_v5  ;;  %v6391_v33 = vmul.f32 %v13825_v58, %v16526_v61  ;;  %v6394_v22 = vmul.f32 %v13825_v58, %v16613_v9  ;;  %v16615_v5 = vld [vmem:[#allocation22_spill] sm:$0xff] }
 0xb2f   : > { %v13829_v40 = vpop.xlane.xlu0 %4122  ;;  %16611 = vst [vmem:[#allocation77_spill] sm:$0xff] %v13839_v51 }
 0xb34   : > { %v13812_v3 = vld.sshfl [vmem:[#allocation1] sm:$0xff pattern:$0x73625140] }
 0xb35   : > { %16606 = vst [vmem:[#allocation136_spill] sm:$0xff] %v13812_v3  ;;  %v4139_v3 = vsel %vm3145_vm14, %v13839_v51, -inf  ;;  %v16618_v51 = vld [vmem:[#allocation24_spill] sm:$0xff] }
 0xb36   : > { %6170 = vst [vmem:[#allocation1] ss:$4 sm:$0xff] %v16602_v26  ;;  %4140 = vmax.xlane.f32.xlu2 %v4139_v3  ;;  %v6397_v35 = vmul.f32 %v13825_v58, %v16618_v51 }
 0xb37   : > { %6172 = vst [vmem:[#allocation1 + $0x1] ss:$4 sm:$0xff] %v12579_v24  ;;  %v13843_v8 = vpop.permute.xlu0 %4920 }
 0xb38   : > { %6174 = vst [vmem:[#allocation1 + $0x2] ss:$4 sm:$0xff] %v16429_v39 }
 0xb39   : > { %16612 = vst [vmem:[#allocation138_spill] sm:$0xff] %v13843_v8 }
 0xb3f   : > { %v13835_v34 = vld.sshfl [vmem:[#allocation1] sm:$0xff pattern:$0x73625140]  ;;  %v13855_v3 = vpop.permute.xlu0 %4956 }
 0xb40   : > { %16609 = vst [vmem:[#allocation137_spill] sm:$0xff] %v13835_v34 }
 0xb41   : > { %6441 = vst [vmem:[#allocation1] ss:$4 sm:$0xff] %v6390_v17  ;;  %v6395_v17 = vmul.f32 %v16610_v32, %v16615_v5  ;;  %v16620_v5 = vld [vmem:[#allocation25_spill] sm:$0xff] }
 0xb42   : > { %6443 = vst [vmem:[#allocation1 + $0x1] ss:$4 sm:$0xff] %v6391_v33  ;;  %v16616_v33 = vld [vmem:[#allocation70_spill] sm:$0xff] }
 0xb43   : > { %6445 = vst [vmem:[#allocation1 + $0x2] ss:$4 sm:$0xff] %v6392_v6  ;;  %5316 = vrot.lane.b32.xlu1 %v16616_v33, %s10891_s27  ;;  %v16617_v6 = vld [vmem:[#allocation23_spill] sm:$0xff]  ;;  %v6400_v33 = vmul.f32 %v13825_v58, %v12327_v7  ;;  %v6402_v7 = vmul.f32 %v13820_v63, %v12344_v19 }
 0xb44   : > { %v6396_v8 = vmul.f32 %v13820_v63, %v16617_v6  ;;  %v16622_v6 = vld [vmem:[#allocation71_spill] sm:$0xff] }
 0xb4a   : > { %v13849_v34 = vld.sshfl [vmem:[#allocation1] sm:$0xff pattern:$0x73625140] }
 0xb4b   : > { %16614 = vst [vmem:[#allocation139_spill] sm:$0xff] %v13849_v34  ;;  %v16619_v34 = vld [vmem:[#allocation100_spill] sm:$0xff] }
 0xb4c   : > { %6477 = vst [vmem:[#allocation1] ss:$4 sm:$0xff] %v6393_v10  ;;  %5643 = vrot.lane.b32.xlu0 %v16619_v34, %s10895_s0  ;;  %v6398_v10 = vmul.f32 %v16610_v32, %v16620_v5  ;;  %v6401_v34 = vmul.f32 %v16610_v32, %v12330_v2 }
 0xb4d   : > { %6479 = vst [vmem:[#allocation1 + $0x1] ss:$4 sm:$0xff] %v6394_v22  ;;  %v13867_v22 = vpop.permute.xlu0 %5064 }
 0xb4e   : > { %6481 = vst [vmem:[#allocation1 + $0x2] ss:$4 sm:$0xff] %v6395_v17  ;;  %v6399_v17 = vmul.f32 %v13820_v63, %v12324_v41  ;;  %5424 = vrot.lane.b32.xlu2 %v16622_v6, %s10891_s27  ;;  %v6403_v6 = vmul.f32 %v13825_v58, %v12348_v20 }
 0xb4f   : > { %16621 = vst [vmem:[#allocation70_spill] sm:$0xff] %v13867_v22  ;;  %v16625_v22 = vld [vmem:[#allocation84_spill] sm:$0xff] }
 0xb55   : > { %v13861_v9 = vld.sshfl [vmem:[#allocation1] sm:$0xff pattern:$0x73625140] }
 0xb56   : > { %6513 = vst [vmem:[#allocation1] ss:$4 sm:$0xff] %v6396_v8  ;;  %v4151_v8 = vsub.f32 %v13527_v46, %v13755_v29  ;;  %5460 = vrot.lane.b32.xlu2 %v16625_v22, %s10891_s27  ;;  %v4152_v29 = vsub.f32 %v13594_v37, %v13790_v16  ;;  %v4154_v37 = vsub.f32 %v13540_v4, %v13769_v53 }
 0xb57   : > { %6515 = vst [vmem:[#allocation1 + $0x1] ss:$4 sm:$0xff] %v6397_v35  ;;  %v13879_v35 = vpop.permute.xlu1 %5136  ;;  %v6408_v4 = vmul.f32 %v13820_v63, %v12387_v50  ;;  %v6410_v53 = vmul.f32 %v16610_v32, %v12393_v15 }
 0xb58   : > { %6517 = vst [vmem:[#allocation1 + $0x2] ss:$4 sm:$0xff] %v6398_v10  ;;  %v13883_v10 = vpop.permute.xlu0 %5100  ;;  %v4175_v20 = vmul.f32 1.442695, %v4152_v29 }
 0xb59   : > { %16623 = vst [vmem:[#allocation100_spill] sm:$0xff] %v13879_v35 }
 0xb5a   : > { %16624 = vst [vmem:[#allocation71_spill] sm:$0xff] %v13883_v10  ;;  %v6405_v10 = vmul.f32 %v13820_v63, %v12369_v25 }
 0xb5f   : > { %v13873_v51 = vld.sshfl [vmem:[#allocation1] sm:$0xff pattern:$0x73625140] }
 0xb60   : > { %6549 = vst [vmem:[#allocation1] ss:$4 sm:$0xff] %v6399_v17  ;;  %v6404_v17 = vmul.f32 %v16610_v32, %v12351_v18  ;;  %v4204_v22 = vpop.xlane.xlu0 %4203 }
 0xb61   : > { %6551 = vst [vmem:[#allocation1 + $0x1] ss:$4 sm:$0xff] %v6400_v33  ;;  %v4173_v33 = vmul.f32 1.442695, %v4151_v8 }
 0xb62   : > { %6553 = vst [vmem:[#allocation1 + $0x2] ss:$4 sm:$0xff] %v6401_v34  ;;  %v4132_v34 = vpop.xlane.xlu1 %4131 }
 0xb63   : > { %v4156_v46 = vsub.f32 %v13700_v60, %v4132_v34  ;;  %10633 = vpow2.f32 %v4173_v33  ;;  %v6407_v60 = vmul.f32 %v16610_v32, %v16442_v54 }
 0xb64   : > { %10635 = vrcp.f32 %v4204_v22 }
 0xb65   : > { %v4183_v35 = vmul.f32 1.442695, %v4156_v46 }
 0xb67   : > { %10637 = vpow2.f32 %v4183_v35 }
 0xb68   : > { %10639 = vpow2.f32 %v4175_v20  ;;  %v6409_v20 = vmul.f32 %v13825_v58, %v12390_v1 }
 0xb69   : > { %v13891_v2 = vld.sshfl [vmem:[#allocation1] sm:$0xff pattern:$0x73625140] }
 0xb6a   : > { %6585 = vst [vmem:[#allocation1] ss:$4 sm:$0xff] %v6402_v7  ;;  %v6406_v7 = vmul.f32 %v13825_v58, %v12366_v42 }
 0xb6b   : > { %6587 = vst [vmem:[#allocation1 + $0x1] ss:$4 sm:$0xff] %v6403_v6  ;;  %v13904_v6 = vpop.eup %10633 }
 0xb6c   : > { %6589 = vst [vmem:[#allocation1 + $0x2] ss:$4 sm:$0xff] %v6404_v17  ;;  %v10636_v17 = vpop.eup %10635  ;;  %v4211_v33 = vsel %vm3145_vm14, %v13904_v6, 0.0 }
 0xb6d   : > { %v4260_v16 = vmul.f32 %v10636_v17, %v13721_v21  ;;  %4212 = vadd.xlane.f32.xlu1 %v4211_v33  ;;  %v13916_v34 = vpop.eup %10637 }
 0xb6e   : > { %v13918_v35 = vpop.eup %10639  ;;  %v4226_v46 = vsel %vm3145_vm14, %v13916_v34, 0.0 }
 0xb6f   : > { %10211 = vmatmul.msk.f32.vlgmr.msra.gmra.mxu3 %vm4344_vm1, %v4260_v16  ;;  %v4214_v29 = vsel %vm3145_vm14, %v13918_v35, 0.0 }
 0xb70   : > { %10226 = vmatpush.msk.msra.mxu3 %vm4348_vm8, %v13744_v55  ;;  %v4153_v55 = vsub.f32 %v13615_v23, %v13829_v40  ;;  %v6412_v23 = vmul.f32 %v13825_v58, %v12411_v56 }
 0xb72   : > { %v4177_v22 = vmul.f32 1.442695, %v4153_v55  ;;  %v6416_v55 = vmul.f32 %v16610_v32, %v12435_v59 }
 0xb73   : > { %v13902_v8 = vld.sshfl [vmem:[#allocation1] sm:$0xff pattern:$0x73625140] }
 0xb74   : > { %6621 = vst [vmem:[#allocation1] ss:$4 sm:$0xff] %v6405_v10  ;;  %v4179_v10 = vmul.f32 1.442695, %v4154_v37  ;;  %v16626_v37 = vld [vmem:[#allocation40_spill] sm:$0xff] }
 0xb75   : > { %6623 = vst [vmem:[#allocation1 + $0x1] ss:$4 sm:$0xff] %v6406_v7  ;;  %4215 = vadd.xlane.f32.xlu1 %v4214_v29  ;;  %v6413_v16 = vmul.f32 %v16610_v32, %v16626_v37  ;;  %v6417_v29 = vmul.f32 %v13820_v63, %v12453_v62 }
 0xb76   : > { %6625 = vst [vmem:[#allocation1 + $0x2] ss:$4 sm:$0xff] %v6407_v60  ;;  %10641 = vpow2.f32 %v4179_v10  ;;  %4227 = vadd.xlane.f32.xlu0 %v4226_v46  ;;  %v6411_v60 = vmul.f32 %v13820_v63, %v12408_v28  ;;  %v13958_v46 = vpop.permute.xlu1 %5172 }
 0xb77   : > { %10643 = vpow2.f32 %v4177_v22  ;;  %16627 = vst [vmem:[#allocation84_spill] sm:$0xff] %v13958_v46  ;;  %v6418_v22 = vmul.f32 %v13825_v58, %v12450_v45 }
 0xb7c   : > { %v13934_v7 = vpop.eup %10641 }
 0xb7d   : > { %v13924_v21 = vld.sshfl [vmem:[#allocation1] sm:$0xff pattern:$0x73625140]  ;;  %v4220_v17 = vsel %vm3145_vm14, %v13934_v7, 0.0  ;;  %v13946_v33 = vpop.eup %10643 }
 0xb7e   : > { %6657 = vst [vmem:[#allocation1] ss:$4 sm:$0xff] %v6408_v4  ;;  %4221 = vadd.xlane.f32.xlu1 %v4220_v17  ;;  %v4217_v10 = vsel %vm3145_vm14, %v13946_v33, 0.0  ;;  %v6414_v4 = vmul.f32 %v13820_v63, %v12428_v13 }
 0xb7f   : > { %6659 = vst [vmem:[#allocation1 + $0x1] ss:$4 sm:$0xff] %v6409_v20  ;;  %4218 = vadd.xlane.f32.xlu2 %v4217_v10  ;;  %v6415_v20 = vmul.f32 %v13825_v58, %v12432_v31  ;;  %v16628_v10 = vld [vmem:[#allocation97_spill] sm:$0xff] }
 0xb80   : > { %6661 = vst [vmem:[#allocation1 + $0x2] ss:$4 sm:$0xff] %v6410_v53 }
 0xb87   : > { %v13940_v40 = vld.sshfl [vmem:[#allocation1] sm:$0xff pattern:$0x73625140] }
 0xb88   : > { %6693 = vst [vmem:[#allocation1] ss:$4 sm:$0xff] %v6411_v60 }
 0xb89   : > { %6695 = vst [vmem:[#allocation1 + $0x1] ss:$4 sm:$0xff] %v6412_v23  ;;  %v6419_v23 = vmul.f32 %v16610_v32, %v12456_v57  ;;  %v4135_v17 = vpop.xlane.xlu1 %4134 }
 0xb8a   : > { %6697 = vst [vmem:[#allocation1 + $0x2] ss:$4 sm:$0xff] %v6413_v16  ;;  %v4157_v16 = vsub.f32 %v13784_v48, %v4135_v17 }
 0xb91   : > { %v13954_v53 = vld.sshfl [vmem:[#allocation1] sm:$0xff pattern:$0x73625140] }
 0xb92   : > { %6729 = vst [vmem:[#allocation1] ss:$4 sm:$0xff] %v6414_v4  ;;  %v4185_v4 = vmul.f32 1.442695, %v4157_v16  ;;  %v6423_v16 = vmul.f32 %v13820_v63, %v16457_v44 }
 0xb93   : > { %6731 = vst [vmem:[#allocation1 + $0x1] ss:$4 sm:$0xff] %v6415_v20  ;;  %v6420_v20 = vmul.f32 %v13820_v63, %v12471_v11 }
 0xb94   : > { %6733 = vst [vmem:[#allocation1 + $0x2] ss:$4 sm:$0xff] %v6416_v55  ;;  %v6421_v55 = vmul.f32 %v13825_v58, %v12474_v36  ;;  %10645 = vpow2.f32 %v4185_v4  ;;  %v6424_v4 = vmul.f32 %v13825_v58, %v16458_v49  ;;  %v16640_v49 = vld [vmem:[#allocation107_spill] sm:$0xff] }
 0xb96   : > { %v4210_v48 = vpop.xlane.xlu1 %4209 }
 0xb97   : > { %5602 = vrot.lane.b32.xlu1 %v16628_v10, %s10895_s0  ;;  %10647 = vrcp.f32 %v4210_v48  ;;  %v16631_v48 = vld [vmem:[#allocation88_spill] sm:$0xff] }
 0xb9b   : > { %v13964_v60 = vld.sshfl [vmem:[#allocation1] sm:$0xff pattern:$0x73625140] }
 0xb9c   : > { %6765 = vst [vmem:[#allocation1] ss:$4 sm:$0xff] %v6417_v29  ;;  %v6422_v29 = vmul.f32 %v16610_v32, %v12477_v38 }
 0xb9d   : > { %6767 = vst [vmem:[#allocation1 + $0x1] ss:$4 sm:$0xff] %v6418_v22  ;;  %v16629_v22 = vld [vmem:[#allocation4_spill] sm:$0xff] }
 0xb9e   : > { %6769 = vst [vmem:[#allocation1 + $0x2] ss:$4 sm:$0xff] %v6419_v23  ;;  %5561 = vrot.lane.b32.xlu2 %v16629_v22, %s10895_s0  ;;  %v13983_v23 = vpop.eup %10645  ;;  %v13998_v22 = vpop.permute.xlu2 %5208 }
 0xb9f   : > { %5889 = vrot.lane.b32.xlu1 %v13643_v14, %s10895_s0  ;;  %v4229_v17 = vsel %vm3145_vm14, %v13983_v23, 0.0  ;;  %v10648_v10 = vpop.eup %10647 }
 0xba0   : > { %4230 = vadd.xlane.f32.xlu0 %v4229_v17  ;;  %v4262_v14 = vmul.f32 %v10648_v10, %v13802_v30  ;;  %v16632_v17 = vld [vmem:[#allocation53_spill] sm:$0xff] }
 0xba2   : > { %10215 = vmatmul.msk.f32.vlgmr.msrb.gmra.mxu1 %vm4344_vm1, %v4262_v14 }
 0xba3   : > { %10230 = vmatpush.msk.msrb.mxu1 %vm4348_vm8, %v13777_v52  ;;  %v16635_v52 = vld [vmem:[#allocation104_spill] sm:$0xff] }
 0xba5   : > { %v13975_v46 = vld.sshfl [vmem:[#allocation1] sm:$0xff pattern:$0x73625140] }
 0xba6   : > { %6801 = vst [vmem:[#allocation1] ss:$4 sm:$0xff] %v6420_v20  ;;  %v14013_v14 = vpop.permute.xlu2 %5244 }
 0xba7   : > { %6803 = vst [vmem:[#allocation1 + $0x1] ss:$4 sm:$0xff] %v6421_v55  ;;  %v6425_v55 = vmul.f32 %v16610_v32, %v16460_v12  ;;  %6053 = vrot.lane.b32.xlu1 %v16631_v48, %s10895_s0  ;;  %v16633_v12 = vld [vmem:[#allocation54_spill] sm:$0xff] }
 0xba8   : > { %6805 = vst [vmem:[#allocation1 + $0x2] ss:$4 sm:$0xff] %v6422_v29  ;;  %v16630_v29 = vld [vmem:[#allocation117_spill] sm:$0xff]  ;;  %v6427_v30 = vmul.f32 %v13825_v58, %v16633_v12 }
 0xba9   : > { %5684 = vrot.lane.b32.xlu2 %v16630_v29, %s10895_s0  ;;  %v16636_v29 = vld [vmem:[#allocation58_spill] sm:$0xff]  ;;  %v16637_v12 = vld [vmem:[#allocation57_spill] sm:$0xff] }
 0xbaa   : > { %v6429_v48 = vmul.f32 %v13820_v63, %v16636_v29  ;;  %v6433_v29 = vmul.f32 %v13825_v58, %v16597_v0 }
 0xbaf   : > { %v6806_v20 = vld.sshfl [vmem:[#allocation1] sm:$0xff pattern:$0x73625140]  ;;  %6483 = vrot.lane.b32.xlu1 %v13861_v9, %s10891_s27  ;;  %v6430_v9 = vmul.f32 %v13825_v58, %v16637_v12  ;;  %v6432_v12 = vmul.f32 %v13820_v63, %v16595_v27 }
 0xbb0   : > { %6837 = vst [vmem:[#allocation1] ss:$4 sm:$0xff] %v6423_v16  ;;  %v6426_v16 = vmul.f32 %v13820_v63, %v16632_v17 }
 0xbb1   : > { %6839 = vst [vmem:[#allocation1 + $0x1] ss:$4 sm:$0xff] %v6424_v4  ;;  %v16634_v4 = vld [vmem:[#allocation55_spill] sm:$0xff] }
 0xbb2   : > { %6841 = vst [vmem:[#allocation1 + $0x2] ss:$4 sm:$0xff] %v6425_v55  ;;  %v6428_v55 = vmul.f32 %v16610_v32, %v16634_v4  ;;  %v16638_v4 = vld [vmem:[#allocation59_spill] sm:$0xff] }
 0xbb4   : > { %5725 = vrot.lane.b32.xlu0 %v16635_v52, %s10895_s0 }
 0xbb7   : > { %6555 = vrot.lane.b32.xlu1 %v13891_v2, %s10891_s27 }
 0xbb9   : > { %v14007_v10 = vld.sshfl [vmem:[#allocation1] sm:$0xff pattern:$0x73625140] }
 0xbba   : > { %6873 = vst [vmem:[#allocation1] ss:$4 sm:$0xff] %v6426_v16  ;;  %v6431_v16 = vmul.f32 %v16610_v32, %v16638_v4 }
 0xbbb   : > { %6875 = vst [vmem:[#allocation1 + $0x1] ss:$4 sm:$0xff] %v6427_v30  ;;  %v4138_v30 = vpop.xlane.xlu2 %4137 }
 0xbbc   : > { %6877 = vst [vmem:[#allocation1 + $0x2] ss:$4 sm:$0xff] %v6428_v55  ;;  %v16639_v55 = vld [vmem:[#allocation128_spill] sm:$0xff]  ;;  %5807 = vrot.lane.b32.xlu0 %v16640_v49, %s10895_s0  ;;  %v16642_v49 = vld [vmem:[#allocation119_spill] sm:$0xff] }
 0xbbd   : > { %v4158_v52 = vsub.f32 %v16639_v55, %v4138_v30  ;;  %v14047_v30 = vpop.permute.xlu0 %5388  ;;  %v6435_v55 = vmul.f32 %v13820_v63, %v16602_v26 }
 0xbbf   : > { %6663 = vrot.lane.b32.xlu1 %v13940_v40, %s10891_s27  ;;  %v4187_v2 = vmul.f32 1.442695, %v4158_v52  ;;  %v6437_v52 = vmul.f32 %v16610_v32, %v16429_v39  ;;  %v14084_v39 = vpop.permute.xlu1 %5316 }
 0xbc1   : > { %10649 = vpow2.f32 %v4187_v2  ;;  %v16644_v2 = vld [vmem:[#allocation3_spill] sm:$0xff] }
 0xbc3   : > { %v14023_v17 = vld.sshfl [vmem:[#allocation1] sm:$0xff pattern:$0x73625140] }
 0xbc4   : > { %6909 = vst [vmem:[#allocation1] ss:$4 sm:$0xff] %v6429_v48  ;;  %v16641_v48 = vld [vmem:[#allocation63_spill] sm:$0xff]  ;;  %5848 = vrot.lane.b32.xlu0 %v16642_v49, %s10895_s0 }
 0xbc5   : > { %6911 = vst [vmem:[#allocation1 + $0x1] ss:$4 sm:$0xff] %v6430_v9  ;;  %v6434_v9 = vmul.f32 %v16610_v32, %v16641_v48  ;;  %v16645_v49 = vld [vmem:[#allocation127_spill] sm:$0xff] }
 0xbc6   : > { %6913 = vst [vmem:[#allocation1 + $0x2] ss:$4 sm:$0xff] %v6431_v16  ;;  %v14045_v16 = vpop.permute.xlu2 %5280  ;;  %v16648_v48 = vld [vmem:[#allocation131_spill] sm:$0xff] }
 0xbc7   : > { %6807 = vrot.lane.b32.xlu1 %v6806_v20, %s10891_s27  ;;  %v14043_v40 = vpop.eup %10649 }
 0xbc8   : > { %v4232_v20 = vsel %vm3145_vm14, %v14043_v40, 0.0 }
 0xbcc   : > { %6012 = vrot.lane.b32.xlu0 %v16645_v49, %s10895_s0 }
 0xbcd   : > { %v14036_v4 = vld.sshfl [vmem:[#allocation1] sm:$0xff pattern:$0x73625140] }
 0xbce   : > { %6945 = vst [vmem:[#allocation1] ss:$4 sm:$0xff] %v6432_v12  ;;  %v6436_v12 = vmul.f32 %v13825_v58, %v12579_v24  ;;  %v14067_v58 = vpop.xlane.xlu0 %4143 }
 0xbcf   : > { %6947 = vst [vmem:[#allocation1 + $0x1] ss:$4 sm:$0xff] %v6433_v29 }
 0xbd0   : > { %6949 = vst [vmem:[#allocation1 + $0x2] ss:$4 sm:$0xff] %v6434_v9  ;;  %v14060_v9 = vmul.f32 0.70710677, %v16644_v2 }
 0xbd2   : > { %4233 = vadd.xlane.f32.xlu2 %v4232_v20  ;;  %v14065_v63 = vrot.slane %v14060_v9, 2  ;;  %v14070_v32 = vrot.slane %v14060_v9, 4  ;;  %v7041_v2 = vmul.f32 %v14060_v9, %v16525_v47 }
 0xbd4   : > { %v7043_v49 = vmul.f32 %v14070_v32, %v12268_v43 }
 0xbd6   : > { %v4225_v24 = vpop.xlane.xlu0 %4224 }
 0xbd7   : > { %v14053_v29 = vld.sshfl [vmem:[#allocation1] sm:$0xff pattern:$0x73625140] }
 0xbd8   : > { %16643 = vst [vmem:[#allocation97_spill] sm:$0xff] %v14053_v29 }
 0xbd9   : > { %6981 = vst [vmem:[#allocation1] ss:$4 sm:$0xff] %v6435_v55  ;;  %v14072_v55 = vpop.permute.xlu2 %5352 }
 0xbda   : > { %6983 = vst [vmem:[#allocation1 + $0x1] ss:$4 sm:$0xff] %v6436_v12  ;;  %v7042_v12 = vmul.f32 %v14065_v63, %v16526_v61 }
 0xbdb   : > { %6985 = vst [vmem:[#allocation1 + $0x2] ss:$4 sm:$0xff] %v6437_v52  ;;  %v16647_v52 = vld [vmem:[#allocation122_spill] sm:$0xff] }
 0xbdc   : > { %5930 = vrot.lane.b32.xlu0 %v16647_v52, %s10895_s0  ;;  %v16651_v52 = vld [vmem:[#allocation86_spill] sm:$0xff] }
 0xbe1   : > { %v14086_v26 = vpop.xlane.xlu2 %4140 }
 0xbe2   : > { %v14078_v20 = vld.sshfl [vmem:[#allocation1] sm:$0xff pattern:$0x73625140] }
 0xbe3   : > { %16646 = vst [vmem:[#allocation4_spill] sm:$0xff] %v14078_v20  ;;  %v4213_v20 = vpop.xlane.xlu1 %4212 }
 0xbe4   : > { %7092 = vst [vmem:[#allocation1] ss:$4 sm:$0xff] %v7041_v2  ;;  %6094 = vrot.lane.b32.xlu0 %v16648_v48, %s10895_s0  ;;  %10651 = vrcp.f32 %v4213_v20  ;;  %v14095_v2 = vpop.permute.xlu0 %5643  ;;  %v16652_v20 = vld [vmem:[#allocation21_spill] sm:$0xff] }
 0xbe5   : > { %7094 = vst [vmem:[#allocation1 + $0x1] ss:$4 sm:$0xff] %v7042_v12  ;;  %10653 = vrcp.f32 %v4225_v24 }
 0xbe6   : > { %7096 = vst [vmem:[#allocation1 + $0x2] ss:$4 sm:$0xff] %v7043_v49 }
 0xbe7   : > { %16650 = vst [vmem:[#allocation88_spill] sm:$0xff] %v14095_v2 }
 0xbe9   : > { %v14097_v12 = vpop.permute.xlu2 %5424 }
 0xbea   : > { %5766 = vrot.lane.b32.xlu2 %v16651_v52, %s10895_s0  ;;  %v10652_v48 = vpop.eup %10651  ;;  %v16655_v52 = vld [vmem:[#allocation22_spill] sm:$0xff] }
 0xbeb   : > { %v4263_v49 = vmul.f32 %v10652_v48, %v13904_v6  ;;  %v7046_v29 = vmul.f32 %v14070_v32, %v16655_v52  ;;  %v10654_v6 = vpop.eup %10653  ;;  %v16657_v48 = vld [vmem:[#allocation75_spill] sm:$0xff] }
 0xbec   : > { %6519 = vrot.lane.b32.xlu0 %v13873_v51, %s10891_s27  ;;  %v16656_v51 = vld [vmem:[#allocation79_spill] sm:$0xff]  ;;  %v4228_v24 = vpop.xlane.xlu0 %4227 }
 0xbed   : > { %v14090_v0 = vld.sshfl [vmem:[#allocation1] sm:$0xff pattern:$0x73625140]  ;;  %10217 = vmatmul.msk.f32.vlgmr.msrb.gmra.mxu2 %vm4344_vm1, %v4263_v49  ;;  %v4267_v49 = vmul.f32 %v10654_v6, %v16657_v48  ;;  %v16663_v48 = vld [vmem:[#allocation24_spill] sm:$0xff] }
 0xbee   : > { %16649 = vst [vmem:[#allocation117_spill] sm:$0xff] %v14090_v0  ;;  %10232 = vmatpush.msk.msrb.mxu2 %vm4348_vm8, %v16656_v51 }
 0xbef   : > { %7098 = vst [vmem:[#allocation1] ss:$4 sm:$0xff] %v16525_v47  ;;  %v4216_v47 = vpop.xlane.xlu1 %4215 }
 0xbf0   : > { %7100 = vst [vmem:[#allocation1 + $0x1] ss:$4 sm:$0xff] %v16526_v61  ;;  %v7044_v61 = vmul.f32 %v14060_v9, %v16652_v20  ;;  %10655 = vrcp.f32 %v4216_v47 }
 0xbf1   : > { %7102 = vst [vmem:[#allocation1 + $0x2] ss:$4 sm:$0xff] %v12268_v43  ;;  %v16653_v43 = vld [vmem:[#allocation20_spill] sm:$0xff]  ;;  %10657 = vrcp.f32 %v4228_v24  ;;  %v14118_v44 = vpop.permute.xlu2 %5460 }
 0xbf2   : > { %v7045_v0 = vmul.f32 %v14065_v63, %v16653_v43  ;;  %v16660_v24 = vld [vmem:[#allocation56_spill] sm:$0xff] }
 0xbf4   : > { %6591 = vrot.lane.b32.xlu0 %v13902_v8, %s10891_s27 }
 0xbf5   : > { %10225 = vmatmul.msk.f32.vlgmr.msra.gmra.mxu2 %vm4344_vm1, %v4267_v49 }
 0xbf6   : > { %v10656_v47 = vpop.eup %10655 }
 0xbf7   : > { %v4222_v2 = vpop.xlane.xlu1 %4221 }
 0xbf8   : > { %v14109_v27 = vld.sshfl [vmem:[#allocation1] sm:$0xff pattern:$0x73625140]  ;;  %10659 = vrcp.f32 %v4222_v2 }
 0xbf9   : > { %16654 = vst [vmem:[#allocation104_spill] sm:$0xff] %v14109_v27  ;;  %v4264_v27 = vmul.f32 %v10656_v47, %v13918_v35  ;;  %v4219_v51 = vpop.xlane.xlu2 %4218  ;;  %v16662_v47 = vld [vmem:[#allocation77_spill] sm:$0xff] }
 0xbfa   : > { %7133 = vst [vmem:[#allocation1] ss:$4 sm:$0xff] %v7044_v61  ;;  %v16659_v61 = vld [vmem:[#allocation132_spill] sm:$0xff]  ;;  %10661 = vrcp.f32 %v4219_v51 }
 0xbfb   : > { %7135 = vst [vmem:[#allocation1 + $0x1] ss:$4 sm:$0xff] %v7045_v0  ;;  %10219 = vmatmul.msk.f32.vlgmr.msrb.gmra.mxu3 %vm4344_vm1, %v4264_v27  ;;  %v16658_v0 = vld [vmem:[#allocation60_spill] sm:$0xff]  ;;  %10240 = vmatpush.msk.msra.mxu2 %vm4348_vm8, %v16659_v61 }
 0xbfc   : > { %7137 = vst [vmem:[#allocation1 + $0x2] ss:$4 sm:$0xff] %v7046_v29  ;;  %10234 = vmatpush.msk.msrb.mxu3 %vm4348_vm8, %v16658_v0  ;;  %v10658_v29 = vpop.eup %10657  ;;  %6735 = vrot.lane.b32.xlu0 %v13964_v60, %s10891_s27  ;;  %v16661_v60 = vld [vmem:[#allocation23_spill] sm:$0xff] }
 0xbfd   : > { %v4268_v27 = vmul.f32 %v10658_v29, %v13916_v34  ;;  %v7047_v6 = vmul.f32 %v14060_v9, %v16661_v60  ;;  %v4159_v34 = vsub.f32 %v16662_v47, %v14086_v26  ;;  %v16664_v26 = vld [vmem:[#allocation138_spill] sm:$0xff] }
 0xbfe   : > { %v10660_v35 = vpop.eup %10659 }
 0xbff   : > { %v4266_v2 = vmul.f32 %v10660_v35, %v13934_v7  ;;  %v7048_v7 = vmul.f32 %v14065_v63, %v16663_v48  ;;  %v4189_v29 = vmul.f32 1.442695, %v4159_v34  ;;  %v16665_v35 = vld [vmem:[#allocation134_spill] sm:$0xff] }
 0xc00   : > { %v10662_v0 = vpop.eup %10661 }
 0xc01   : > { %10223 = vmatmul.msk.f32.vlgmr.msra.gmra.mxu1 %vm4344_vm1, %v4266_v2  ;;  %v4265_v61 = vmul.f32 %v10662_v0, %v13946_v33  ;;  %10663 = vpow2.f32 %v4189_v29 }
 0xc02   : > { %10238 = vmatpush.msk.msra.mxu1 %vm4348_vm8, %v13855_v3  ;;  %v7049_v3 = vmul.f32 %v14070_v32, %v16620_v5 }
 0xc03   : > { %v14127_v8 = vld.sshfl [vmem:[#allocation1] sm:$0xff pattern:$0x73625140]  ;;  %10227 = vmatmul.msk.f32.vlgmr.msra.gmra.mxu3 %vm4344_vm1, %v4268_v27  ;;  %10221 = vmatmul.msk.f32.vlgmr.msrb.gmra.mxu0 %vm4344_vm1, %v4265_v61 }
 0xc04   : > { %7139 = vst [vmem:[#allocation1] ss:$4 sm:$0xff] %v16652_v20  ;;  %10242 = vmatpush.msk.msra.mxu3 %vm4348_vm8, %v16660_v24  ;;  %6771 = vrot.lane.b32.xlu0 %v13975_v46, %s10891_s27  ;;  %v4160_v46 = vsub.f32 %v16665_v35, %v14067_v58  ;;  %v7050_v58 = vmul.f32 %v14060_v9, %v12324_v41  ;;  %v16666_v24 = vld [vmem:[#allocation27_spill] sm:$0xff] }
 0xc05   : > { %7141 = vst [vmem:[#allocation1 + $0x1] ss:$4 sm:$0xff] %v16653_v43  ;;  %10236 = vmatpush.msk.msrb.mxu0 %vm4348_vm8, %v16664_v26  ;;  %v16668_v26 = vld [vmem:[#allocation76_spill] sm:$0xff] }
 0xc06   : > { %7143 = vst [vmem:[#allocation1 + $0x2] ss:$4 sm:$0xff] %v16655_v52  ;;  %v4191_v2 = vmul.f32 1.442695, %v4160_v46 }
 0xc07   : > { %v14164_v33 = vpop.eup %10663 }
 0xc08   : > { %10665 = vpow2.f32 %v4191_v2  ;;  %v4235_v51 = vsel %vm3145_vm14, %v14164_v33, 0.0  ;;  %v16669_v2 = vld [vmem:[#allocation70_spill] sm:$0xff] }
 0xc0d   : > { %v14150_v49 = vld.sshfl [vmem:[#allocation1] sm:$0xff pattern:$0x73625140] }
 0xc0e   : > { %7174 = vst [vmem:[#allocation1] ss:$4 sm:$0xff] %v7047_v6  ;;  %v7051_v6 = vmul.f32 %v14065_v63, %v16666_v24  ;;  %v14175_v34 = vpop.eup %10665 }
 0xc0f   : > { %7176 = vst [vmem:[#allocation1 + $0x1] ss:$4 sm:$0xff] %v7048_v7  ;;  %v16667_v7 = vld [vmem:[#allocation28_spill] sm:$0xff]  ;;  %v4238_v61 = vsel %vm3145_vm14, %v14175_v34, 0.0 }
 0xc10   : > { %7178 = vst [vmem:[#allocation1 + $0x2] ss:$4 sm:$0xff] %v7049_v3  ;;  %v7052_v0 = vmul.f32 %v14070_v32, %v16667_v7 }
 0xc13   : > { %4236 = vadd.xlane.f32.xlu2 %v4235_v51  ;;  %v4231_v3 = vpop.xlane.xlu0 %4230 }
 0xc14   : > { %10667 = vrcp.f32 %v4231_v3 }
 0xc15   : > { %10669 = vrcp.f32 %v16668_v26  ;;  %v7055_v26 = vmul.f32 %v14070_v32, %v12351_v18 }
 0xc17   : > { %v14160_v27 = vld.sshfl [vmem:[#allocation1] sm:$0xff pattern:$0x73625140] }
 0xc18   : > { %7180 = vst [vmem:[#allocation1] ss:$4 sm:$0xff] %v16661_v60 }
 0xc19   : > { %7182 = vst [vmem:[#allocation1 + $0x1] ss:$4 sm:$0xff] %v16663_v48 }
 0xc1a   : > { %7184 = vst [vmem:[#allocation1 + $0x2] ss:$4 sm:$0xff] %v16620_v5  ;;  %v10668_v29 = vpop.eup %10667 }
 0xc1b   : > { %4239 = vadd.xlane.f32.xlu2 %v4238_v61  ;;  %v4269_v46 = vmul.f32 %v10668_v29, %v13983_v23  ;;  %v10670_v51 = vpop.eup %10669  ;;  %v16672_v23 = vld [vmem:[#allocation30_spill] sm:$0xff] }
 0xc1c   : > { %v7054_v61 = vmul.f32 %v14065_v63, %v16672_v23 }
 0xc1d   : > { %10229 = vmatmul.msk.f32.vlgmr.msra.gmra.mxu0 %vm4344_vm1, %v4269_v46 }
 0xc1e   : > { %10244 = vmatpush.msk.msra.mxu0 %vm4348_vm8, %v16669_v2  ;;  %v16673_v2 = vld [vmem:[#allocation78_spill] sm:$0xff] }
 0xc21   : > { %v14173_v47 = vld.sshfl [vmem:[#allocation1] sm:$0xff pattern:$0x73625140] }
 0xc22   : > { %7215 = vst [vmem:[#allocation1] ss:$4 sm:$0xff] %v7050_v58  ;;  %v16670_v58 = vld [vmem:[#allocation87_spill] sm:$0xff] }
 0xc23   : > { %7217 = vst [vmem:[#allocation1 + $0x1] ss:$4 sm:$0xff] %v7051_v6  ;;  %10671 = vrcp.f32 %v16670_v58  ;;  %v7053_v6 = vmul.f32 %v14060_v9, %v12344_v19 }
 0xc24   : > { %7219 = vst [vmem:[#allocation1 + $0x2] ss:$4 sm:$0xff] %v7052_v0  ;;  %v16671_v0 = vld [vmem:[#allocation89_spill] sm:$0xff]  ;;  %10673 = vrcp.f32 %v16673_v2 }
 0xc25   : > { %v3306_v3 = vmul.f32 %v10670_v51, %v16671_v0  ;;  %v16674_v51 = vld [vmem:[#allocation74_spill] sm:$0xff]  ;;  %v5562_v0 = vpop.permute.xlu2 %5561 }
 0xc27   : > { %10237 = vmatmul.msk.f32.vlgmr.msrb.gmra.mxu0 %vm4344_vm1, %v3306_v3  ;;  %v16676_v3 = vld [vmem:[#allocation123_spill] sm:$0xff] }
 0xc28   : > { %10252 = vmatpush.msk.msrb.mxu0 %vm4348_vm8, %v13998_v22  ;;  %10675 = vrcp.f32 %v16676_v3  ;;  %v14232_v3 = vpop.permute.xlu1 %5602 }
 0xc29   : > { %v10672_v46 = vpop.eup %10671 }
 0xc2a   : > { %v3310_v58 = vmul.f32 %v10672_v46, %v16674_v51  ;;  %v10674_v22 = vpop.eup %10673  ;;  %v7057_v51 = vmul.f32 %v14065_v63, %v12366_v42 }
 0xc2b   : > { %v14182_v35 = vld.sshfl [vmem:[#allocation1] sm:$0xff pattern:$0x73625140] }
 0xc2c   : > { %7221 = vst [vmem:[#allocation1] ss:$4 sm:$0xff] %v12324_v41  ;;  %v16774_v41 = vld [vmem:[#allocation4_spill] sm:$0xff] }
 0xc2d   : > { %7223 = vst [vmem:[#allocation1 + $0x1] ss:$4 sm:$0xff] %v16666_v24  ;;  %v14224_v46 = vpop.permute.xlu2 %5684 }
 0xc2e   : > { %7225 = vst [vmem:[#allocation1 + $0x2] ss:$4 sm:$0xff] %v16667_v7  ;;  %v16675_v7 = vld [vmem:[#allocation124_spill] sm:$0xff]  ;;  %v10676_v2 = vpop.eup %10675 }
 0xc2f   : > { %10245 = vmatmul.msk.f32.vlgmr.msra.gmra.mxu0 %vm4344_vm1, %v3310_v58 }
 0xc30   : > { %10260 = vmatpush.msk.msra.mxu0 %vm4348_vm8, %v14072_v55  ;;  %v7056_v55 = vmul.f32 %v14060_v9, %v12369_v25 }
 0xc33   : > { %5971 = vrot.lane.b32.xlu2 %v16675_v7, %s10895_s0  ;;  %v16678_v7 = vld [vmem:[#allocation133_spill] sm:$0xff] }
 0xc35   : > { %v14197_v29 = vld.sshfl [vmem:[#allocation1] sm:$0xff pattern:$0x73625140] }
 0xc36   : > { %7256 = vst [vmem:[#allocation1] ss:$4 sm:$0xff] %v7053_v6 }
 0xc37   : > { %7258 = vst [vmem:[#allocation1 + $0x1] ss:$4 sm:$0xff] %v7054_v61  ;;  %v16677_v61 = vld [vmem:[#allocation113_spill] sm:$0xff] }
 0xc38   : > { %7260 = vst [vmem:[#allocation1 + $0x2] ss:$4 sm:$0xff] %v7055_v26  ;;  %v3314_v26 = vmul.f32 %v10674_v22, %v16677_v61  ;;  %v7058_v22 = vmul.f32 %v14070_v32, %v16442_v54  ;;  %v16679_v61 = vld [vmem:[#allocation94_spill] sm:$0xff] }
 0xc3a   : > { %10253 = vmatmul.msk.f32.vlgmr.msrb.gmra.mxu0 %vm4344_vm1, %v3314_v26  ;;  %v5726_v26 = vpop.permute.xlu0 %5725 }
 0xc3b   : > { %6135 = vrot.lane.b32.xlu2 %v16678_v7, %s10895_s0  ;;  %10269 = vmatpush.xpose.msk.msrb.mxu0 %vm2104_vm0, %v5562_v0  ;;  %v3318_v0 = vmul.f32 %v10676_v2, %v16679_v61  ;;  %v16680_v7 = vld [vmem:[#allocation137_spill] sm:$0xff]  ;;  %v16682_v2 = vld [vmem:[#allocation139_spill] sm:$0xff] }
 0xc3c   : > { %v16684_v61 = vld [vmem:[#allocation71_spill] sm:$0xff] }
 0xc3f   : > { %v14211_v6 = vld.sshfl [vmem:[#allocation1] sm:$0xff pattern:$0x73625140] }
 0xc40   : > { %7262 = vst [vmem:[#allocation1] ss:$4 sm:$0xff] %v12344_v19  ;;  %v5890_v19 = vpop.permute.xlu1 %5889 }
 0xc41   : > { %7264 = vst [vmem:[#allocation1 + $0x1] ss:$4 sm:$0xff] %v16672_v23 }
 0xc42   : > { %7266 = vst [vmem:[#allocation1 + $0x2] ss:$4 sm:$0xff] %v12351_v18  ;;  %10261 = vmatmul.msk.f32.vlgmr.msra.gmra.mxu0 %vm4344_vm1, %v3318_v0  ;;  %v7059_v0 = vmul.f32 %v14060_v9, %v12387_v50 }
 0xc43   : > { %6176 = vrot.lane.b32.xlu2 %v16680_v7, %s10895_s0  ;;  %10277 = vmatpush.xpose.msk.msra.mxu0 %vm2104_vm0, %v5726_v26  ;;  %v7060_v7 = vmul.f32 %v14065_v63, %v12390_v1 }
 0xc45   : > { %v4234_v18 = vpop.xlane.xlu2 %4233 }
 0xc46   : > { %10677 = vrcp.f32 %v4234_v18 }
 0xc49   : > { %v14228_v58 = vld.sshfl [vmem:[#allocation1] sm:$0xff pattern:$0x73625140] }
 0xc4a   : > { %7297 = vst [vmem:[#allocation1] ss:$4 sm:$0xff] %v7056_v55  ;;  %v16681_v55 = vld [vmem:[#allocation103_spill] sm:$0xff] }
 0xc4b   : > { %7299 = vst [vmem:[#allocation1 + $0x1] ss:$4 sm:$0xff] %v7057_v51  ;;  %10270 = vmatmul.msk.f32.vlgmr.msrb.gmra.mxu0 %vm2104_vm0, %v16681_v55  ;;  %6447 = vrot.lane.b32.xlu2 %v16682_v2, %s10891_s27  ;;  %v7061_v2 = vmul.f32 %v14070_v32, %v12393_v15 }
 0xc4c   : > { %7301 = vst [vmem:[#allocation1 + $0x2] ss:$4 sm:$0xff] %v7058_v22  ;;  %v10678_v51 = vpop.eup %10677  ;;  %v16683_v22 = vld [vmem:[#allocation68_spill] sm:$0xff]  ;;  %10285 = vmatpush.xpose.msk.msrb.mxu0 %vm2104_vm0, %v5890_v19  ;;  %v6054_v19 = vpop.permute.xlu1 %6053 }
 0xc4d   : > { %10679 = vrcp.f32 %v16683_v22  ;;  %v4270_v18 = vmul.f32 %v10678_v51, %v14043_v40  ;;  %v16685_v22 = vld [vmem:[#allocation102_spill] sm:$0xff]  ;;  %v16686_v40 = vld [vmem:[#allocation112_spill] sm:$0xff]  ;;  %v16687_v51 = vld [vmem:[#allocation91_spill] sm:$0xff] }
 0xc4e   : > { %10681 = vrcp.f32 %v16686_v40  ;;  %v16693_v40 = vld [vmem:[#allocation106_spill] sm:$0xff] }
 0xc4f   : > { %10231 = vmatmul.msk.f32.vlgmr.msrb.gmra.mxu1 %vm4344_vm1, %v4270_v18 }
 0xc50   : > { %10246 = vmatpush.msk.msrb.mxu1 %vm4348_vm8, %v16684_v61  ;;  %v14269_v61 = vpop.permute.xlu0 %5807 }
 0xc53   : > { %v14239_v23 = vld.sshfl [vmem:[#allocation1] sm:$0xff pattern:$0x73625140]  ;;  %v10680_v26 = vpop.eup %10679  ;;  %10278 = vmatmul.msk.f32.vlgmr.msra.gmra.mxu0 %vm2104_vm0, %v16685_v22  ;;  %6627 = vrot.lane.b32.xlu2 %v13924_v21, %s10891_s27  ;;  %v16689_v21 = vld [vmem:[#allocation82_spill] sm:$0xff] }
 0xc54   : > { %7303 = vst [vmem:[#allocation1] ss:$4 sm:$0xff] %v12369_v25  ;;  %10293 = vmatpush.xpose.msk.msra.mxu0 %vm2104_vm0, %v6054_v19  ;;  %v3307_v18 = vmul.f32 %v10680_v26, %v16687_v51  ;;  %v10682_v22 = vpop.eup %10681  ;;  %10683 = vrcp.f32 %v16689_v21  ;;  %v16690_v26 = vld [vmem:[#allocation81_spill] sm:$0xff]  ;;  %v7062_v19 = vmul.f32 %v14060_v9, %v12408_v28 }
 0xc55   : > { %7305 = vst [vmem:[#allocation1 + $0x1] ss:$4 sm:$0xff] %v12366_v42 }
 0xc56   : > { %7307 = vst [vmem:[#allocation1 + $0x2] ss:$4 sm:$0xff] %v16442_v54  ;;  %v16688_v54 = vld [vmem:[#allocation120_spill] sm:$0xff] }
 0xc57   : > { %10239 = vmatmul.msk.f32.vlgmr.msra.gmra.mxu1 %vm4344_vm1, %v3307_v18  ;;  %v7063_v18 = vmul.f32 %v14065_v63, %v12411_v56 }
 0xc58   : > { %10254 = vmatpush.msk.msra.mxu1 %vm4348_vm8, %v14013_v14  ;;  %v16691_v14 = vld [vmem:[#allocation129_spill] sm:$0xff] }
 0xc5b   : > { %10286 = vmatmul.msk.f32.vlgmr.msrb.gmra.mxu0 %vm2104_vm0, %v16688_v54  ;;  %6699 = vrot.lane.b32.xlu2 %v13954_v53, %s10891_s27  ;;  %v14288_v54 = vpop.permute.xlu0 %5848  ;;  %v10684_v53 = vpop.eup %10683 }
 0xc5c   : > { %v3315_v51 = vmul.f32 %v10684_v53, %v16693_v40  ;;  %v5767_v53 = vpop.permute.xlu2 %5766 }
 0xc5d   : > { %v14258_v55 = vld.sshfl [vmem:[#allocation1] sm:$0xff pattern:$0x73625140] }
 0xc5e   : > { %7338 = vst [vmem:[#allocation1] ss:$4 sm:$0xff] %v7059_v0 }
 0xc5f   : > { %7340 = vst [vmem:[#allocation1 + $0x1] ss:$4 sm:$0xff] %v7060_v7  ;;  %v3311_v7 = vmul.f32 %v10682_v22, %v16690_v26  ;;  %v7064_v22 = vmul.f32 %v14070_v32, %v16626_v37  ;;  %v16694_v26 = vld [vmem:[#allocation116_spill] sm:$0xff] }
 0xc60   : > { %7342 = vst [vmem:[#allocation1 + $0x2] ss:$4 sm:$0xff] %v7061_v2  ;;  %v16692_v2 = vld [vmem:[#allocation90_spill] sm:$0xff] }
 0xc61   : > { %10247 = vmatmul.msk.f32.vlgmr.msrb.gmra.mxu1 %vm4344_vm1, %v3311_v7  ;;  %10685 = vrcp.f32 %v16692_v2  ;;  %v7065_v2 = vmul.f32 %v14060_v9, %v12428_v13 }
 0xc62   : > { %10262 = vmatpush.msk.msrb.mxu1 %vm4348_vm8, %v14047_v30 }
 0xc63   : > { %10294 = vmatmul.msk.f32.vlgmr.msra.gmra.mxu0 %vm2104_vm0, %v16691_v14  ;;  %6843 = vrot.lane.b32.xlu2 %v14007_v10, %s10891_s27  ;;  %v14307_v21 = vpop.permute.xlu0 %6012 }
 0xc67   : > { %v14279_v0 = vld.sshfl [vmem:[#allocation1] sm:$0xff pattern:$0x73625140]  ;;  %v10686_v10 = vpop.eup %10685 }
 0xc68   : > { %7344 = vst [vmem:[#allocation1] ss:$4 sm:$0xff] %v12387_v50  ;;  %v3319_v7 = vmul.f32 %v10686_v10, %v16694_v26  ;;  %v6484_v26 = vpop.permute.xlu1 %6483 }
 0xc69   : > { %7346 = vst [vmem:[#allocation1 + $0x1] ss:$4 sm:$0xff] %v12390_v1  ;;  %10255 = vmatmul.msk.f32.vlgmr.msra.gmra.mxu1 %vm4344_vm1, %v3315_v51  ;;  %v7067_v51 = vmul.f32 %v14070_v32, %v12435_v59 }
 0xc6a   : > { %7348 = vst [vmem:[#allocation1 + $0x2] ss:$4 sm:$0xff] %v12393_v15  ;;  %10271 = vmatpush.xpose.msk.msra.mxu1 %vm2104_vm0, %v14232_v3 }
 0xc6b   : > { %6879 = vrot.lane.b32.xlu2 %v14023_v17, %s10891_s27  ;;  %v5931_v3 = vpop.permute.xlu0 %5930  ;;  %v16695_v17 = vld [vmem:[#allocation98_spill] sm:$0xff] }
 0xc71   : > { %v14300_v30 = vld.sshfl [vmem:[#allocation1] sm:$0xff pattern:$0x73625140]  ;;  %10263 = vmatmul.msk.f32.vlgmr.msrb.gmra.mxu1 %vm4344_vm1, %v3319_v7 }
 0xc72   : > { %7379 = vst [vmem:[#allocation1] ss:$4 sm:$0xff] %v7062_v19  ;;  %10279 = vmatpush.xpose.msk.msrb.mxu1 %vm2104_vm0, %v5767_v53  ;;  %v7066_v19 = vmul.f32 %v14065_v63, %v12432_v31  ;;  %v16697_v7 = vld [vmem:[#allocation121_spill] sm:$0xff]  ;;  %v14342_v53 = vpop.f32.mrf.mxu0 }
 0xc73   : > { %7381 = vst [vmem:[#allocation1 + $0x1] ss:$4 sm:$0xff] %v7063_v18  ;;  %6915 = vrot.lane.b32.xlu2 %v14036_v4, %s10891_s27  ;;  %v6095_v4 = vpop.permute.xlu0 %6094  ;;  %v16696_v18 = vld [vmem:[#allocation101_spill] sm:$0xff] }
 0xc74   : > { %7383 = vst [vmem:[#allocation1 + $0x2] ss:$4 sm:$0xff] %v7064_v22 }
 0xc75   : > { %16698 = vst [vmem:[#allocation128_spill] sm:$0xff] %v14342_v53 }
 0xc79   : > { %10272 = vmatmul.msk.f32.vlgmr.msra.gmra.mxu1 %vm2104_vm0, %v16695_v17  ;;  %v7068_v17 = vmul.f32 %v14060_v9, %v12453_v62 }
 0xc7a   : > { %10287 = vmatpush.xpose.msk.msra.mxu1 %vm2104_vm0, %v5931_v3 }
 0xc7b   : > { %v14314_v14 = vld.sshfl [vmem:[#allocation1] sm:$0xff pattern:$0x73625140] }
 0xc7c   : > { %7385 = vst [vmem:[#allocation1] ss:$4 sm:$0xff] %v12408_v28 }
 0xc7d   : > { %7387 = vst [vmem:[#allocation1 + $0x1] ss:$4 sm:$0xff] %v12411_v56 }
 0xc7e   : > { %7389 = vst [vmem:[#allocation1 + $0x2] ss:$4 sm:$0xff] %v16626_v37 }
 0xc81   : > { %10280 = vmatmul.msk.f32.vlgmr.msrb.gmra.mxu1 %vm2104_vm0, %v16696_v18 }
 0xc82   : > { %10295 = vmatpush.xpose.msk.msrb.mxu1 %vm2104_vm0, %v6095_v4 }
 0xc85   : > { %v14328_v40 = vld.sshfl [vmem:[#allocation1] sm:$0xff pattern:$0x73625140] }
 0xc86   : > { %7420 = vst [vmem:[#allocation1] ss:$4 sm:$0xff] %v7065_v2  ;;  %v4237_v10 = vpop.xlane.xlu2 %4236  ;;  %v16699_v2 = vld [vmem:[#allocation108_spill] sm:$0xff] }
 0xc87   : > { %7422 = vst [vmem:[#allocation1 + $0x1] ss:$4 sm:$0xff] %v7066_v19  ;;  %10687 = vrcp.f32 %v4237_v10  ;;  %v7069_v19 = vmul.f32 %v14065_v63, %v12450_v45  ;;  %v7070_v10 = vmul.f32 %v14070_v32, %v12456_v57 }
 0xc88   : > { %7424 = vst [vmem:[#allocation1 + $0x2] ss:$4 sm:$0xff] %v7067_v51  ;;  %10689 = vrcp.f32 %v16699_v2  ;;  %v16702_v2 = vld [vmem:[#allocation100_spill] sm:$0xff] }
 0xc89   : > { %10288 = vmatmul.msk.f32.vlgmr.msra.gmra.mxu1 %vm2104_vm0, %v16697_v7  ;;  %v16700_v7 = vld [vmem:[#allocation130_spill] sm:$0xff] }
 0xc8a   : > { %10303 = vmatpush.msk.msra.mxu1 %vm4348_vm8, %v6484_v26  ;;  %v14357_v26 = vpop.f32.mrf.mxu0 }
 0xc8b   : > { %16701 = vst [vmem:[#allocation107_spill] sm:$0xff] %v14357_v26 }
 0xc8d   : > { %v10688_v3 = vpop.eup %10687 }
 0xc8e   : > { %v4271_v51 = vmul.f32 %v10688_v3, %v14164_v33  ;;  %v4240_v4 = vpop.xlane.xlu2 %4239  ;;  %v10690_v33 = vpop.eup %10689  ;;  %v16703_v3 = vld [vmem:[#allocation80_spill] sm:$0xff] }
 0xc8f   : > { %v14335_v22 = vld.sshfl [vmem:[#allocation1] sm:$0xff pattern:$0x73625140]  ;;  %10691 = vrcp.f32 %v4240_v4  ;;  %v16705_v4 = vld [vmem:[#allocation95_spill] sm:$0xff] }
 0xc90   : > { %7426 = vst [vmem:[#allocation1] ss:$4 sm:$0xff] %v12428_v13  ;;  %10233 = vmatmul.msk.f32.vlgmr.msrb.gmra.mxu2 %vm4344_vm1, %v4271_v51  ;;  %10693 = vrcp.f32 %v16703_v3  ;;  %v16707_v51 = vld [vmem:[#allocation84_spill] sm:$0xff] }
 0xc91   : > { %7428 = vst [vmem:[#allocation1 + $0x1] ss:$4 sm:$0xff] %v12432_v31  ;;  %10296 = vmatmul.msk.f32.vlgmr.msrb.gmra.mxu1 %vm2104_vm0, %v16700_v7  ;;  %10248 = vmatpush.msk.msrb.mxu2 %vm4348_vm8, %v16702_v2  ;;  %v3308_v31 = vmul.f32 %v10690_v33, %v16705_v4  ;;  %v16711_v33 = vld [vmem:[#allocation110_spill] sm:$0xff] }
 0xc92   : > { %7430 = vst [vmem:[#allocation1 + $0x2] ss:$4 sm:$0xff] %v12435_v59  ;;  %v16704_v59 = vld [vmem:[#allocation114_spill] sm:$0xff]  ;;  %v14368_v26 = vpop.f32.mrf.mxu0 }
 0xc93   : > { %10695 = vrcp.f32 %v16704_v59  ;;  %16706 = vst [vmem:[#allocation119_spill] sm:$0xff] %v14368_v26  ;;  %v6520_v26 = vpop.permute.xlu0 %6519 }
 0xc95   : > { %v10692_v53 = vpop.eup %10691 }
 0xc96   : > { %v4272_v7 = vmul.f32 %v10692_v53, %v14175_v34  ;;  %v10694_v59 = vpop.eup %10693  ;;  %v16708_v53 = vld [vmem:[#allocation115_spill] sm:$0xff] }
 0xc97   : > { %10697 = vrcp.f32 %v16708_v53 }
 0xc98   : > { %10235 = vmatmul.msk.f32.vlgmr.msrb.gmra.mxu3 %vm4344_vm1, %v4272_v7  ;;  %10241 = vmatmul.msk.f32.vlgmr.msra.gmra.mxu2 %vm4344_vm1, %v3308_v31  ;;  %v16710_v31 = vld [vmem:[#allocation72_spill] sm:$0xff] }
 0xc99   : > { %v14351_v18 = vld.sshfl [vmem:[#allocation1] sm:$0xff pattern:$0x73625140]  ;;  %10250 = vmatpush.msk.msrb.mxu3 %vm4348_vm8, %v16707_v51  ;;  %10256 = vmatpush.msk.msra.mxu2 %vm4348_vm8, %v14045_v16  ;;  %v10696_v34 = vpop.eup %10695  ;;  %v3309_v2 = vmul.f32 %v10694_v59, %v16710_v31  ;;  %v7071_v16 = vmul.f32 %v14060_v9, %v12471_v11  ;;  %v7072_v59 = vmul.f32 %v14065_v63, %v12474_v36 }
 0xc9a   : > { %7461 = vst [vmem:[#allocation1] ss:$4 sm:$0xff] %v7068_v17  ;;  %v14366_v17 = vpop.permute.xlu2 %5971  ;;  %v3312_v3 = vmul.f32 %v10696_v34, %v16711_v33  ;;  %v14387_v7 = vpop.f32.mrf.mxu0  ;;  %v16713_v31 = vld [vmem:[#allocation125_spill] sm:$0xff] }
 0xc9b   : > { %7463 = vst [vmem:[#allocation1 + $0x1] ss:$4 sm:$0xff] %v7069_v19 }
 0xc9c   : > { %7465 = vst [vmem:[#allocation1 + $0x2] ss:$4 sm:$0xff] %v7070_v10  ;;  %v16709_v10 = vld [vmem:[#allocation73_spill] sm:$0xff] }
 0xc9d   : > { %10699 = vrcp.f32 %v16709_v10  ;;  %16712 = vst [vmem:[#allocation127_spill] sm:$0xff] %v14387_v7  ;;  %v10698_v51 = vpop.eup %10697  ;;  %v7073_v10 = vmul.f32 %v14070_v32, %v12477_v38 }
 0xc9e   : > { %10701 = vrcp.f32 %v16713_v31 }
 0xca0   : > { %10243 = vmatmul.msk.f32.vlgmr.msra.gmra.mxu3 %vm4344_vm1, %v3309_v2  ;;  %10249 = vmatmul.msk.f32.vlgmr.msrb.gmra.mxu2 %vm4344_vm1, %v3312_v3  ;;  %v16714_v2 = vld [vmem:[#allocation83_spill] sm:$0xff] }
 0xca1   : > { %10258 = vmatpush.msk.msra.mxu3 %vm4348_vm8, %v14084_v39  ;;  %10264 = vmatpush.msk.msrb.mxu2 %vm4348_vm8, %v14097_v12  ;;  %10703 = vrcp.f32 %v16714_v2  ;;  %v16715_v39 = vld [vmem:[#allocation111_spill] sm:$0xff]  ;;  %v16716_v12 = vld [vmem:[#allocation69_spill] sm:$0xff] }
 0xca2   : > { %v14385_v4 = vpop.permute.xlu2 %6135  ;;  %v3313_v33 = vmul.f32 %v10698_v51, %v16715_v39  ;;  %v16719_v51 = vld [vmem:[#allocation135_spill] sm:$0xff]  ;;  %v16721_v39 = vld [vmem:[#allocation64_spill] sm:$0xff] }
 0xca3   : > { %v14372_v19 = vld.sshfl [vmem:[#allocation1] sm:$0xff pattern:$0x73625140]  ;;  %v10700_v53 = vpop.eup %10699  ;;  %10705 = vrcp.f32 %v16719_v51 }
 0xca4   : > { %7467 = vst [vmem:[#allocation1] ss:$4 sm:$0xff] %v12453_v62  ;;  %v3316_v3 = vmul.f32 %v10700_v53, %v16716_v12  ;;  %v16720_v53 = vld [vmem:[#allocation93_spill] sm:$0xff] }
 0xca5   : > { %7469 = vst [vmem:[#allocation1 + $0x1] ss:$4 sm:$0xff] %v12450_v45 }
 0xca6   : > { %7471 = vst [vmem:[#allocation1 + $0x2] ss:$4 sm:$0xff] %v12456_v57  ;;  %v14407_v57 = vpop.f32.mrf.mxu0 }
 0xca7   : > { %16717 = vst [vmem:[#allocation122_spill] sm:$0xff] %v14407_v57 }
 0xca8   : > { %10251 = vmatmul.msk.f32.vlgmr.msrb.gmra.mxu3 %vm4344_vm1, %v3313_v33  ;;  %10257 = vmatmul.msk.f32.vlgmr.msra.gmra.mxu2 %vm4344_vm1, %v3316_v3  ;;  %v6592_v3 = vpop.permute.xlu0 %6591 }
 0xca9   : > { %10266 = vmatpush.msk.msrb.mxu3 %vm4348_vm8, %v14118_v44 }
 0xcaa   : > { %v6177_v7 = vpop.permute.xlu2 %6176 }
 0xcad   : > { %v14399_v34 = vld.sshfl [vmem:[#allocation1] sm:$0xff pattern:$0x73625140] }
 0xcae   : > { %7502 = vst [vmem:[#allocation1] ss:$4 sm:$0xff] %v7071_v16  ;;  %v16718_v16 = vld [vmem:[#allocation88_spill] sm:$0xff]  ;;  %v14424_v44 = vpop.f32.mrf.mxu0 }
 0xcaf   : > { %7504 = vst [vmem:[#allocation1 + $0x1] ss:$4 sm:$0xff] %v7072_v59  ;;  %10273 = vmatpush.xpose.msk.msra.mxu2 %vm2104_vm0, %v16718_v16  ;;  %v10702_v59 = vpop.eup %10701 }
 0xcb0   : > { %7506 = vst [vmem:[#allocation1 + $0x2] ss:$4 sm:$0xff] %v7073_v10  ;;  %v10704_v10 = vpop.eup %10703  ;;  %v3317_v2 = vmul.f32 %v10702_v59, %v16720_v53  ;;  %v14433_v59 = vpop.f32.mrf.mxu1  ;;  %v16725_v53 = vld [vmem:[#allocation51_spill] sm:$0xff] }
 0xcb1   : > { %v3320_v33 = vmul.f32 %v10704_v10, %v16721_v39  ;;  %16722 = vst [vmem:[#allocation131_spill] sm:$0xff] %v14424_v44  ;;  %v10706_v16 = vpop.eup %10705  ;;  %v16724_v10 = vld [vmem:[#allocation50_spill] sm:$0xff] }
 0xcb2   : > { %v6448_v12 = vpop.permute.xlu2 %6447  ;;  %10259 = vmatmul.msk.f32.vlgmr.msra.gmra.mxu3 %vm4344_vm1, %v3317_v2  ;;  %16723 = vst [vmem:[#allocation86_spill] sm:$0xff] %v14433_v59  ;;  %v7074_v51 = vmul.f32 %v14060_v9, %v16724_v10  ;;  %v7075_v2 = vmul.f32 %v14065_v63, %v16725_v53  ;;  %v16726_v39 = vld [vmem:[#allocation118_spill] sm:$0xff]  ;;  %v16742_v59 = vld [vmem:[#allocation92_spill] sm:$0xff] }
 0xcb3   : > { %10301 = vmatpush.msk.msrb.mxu0 %vm4348_vm8, %v6448_v12  ;;  %10265 = vmatmul.msk.f32.vlgmr.msrb.gmra.mxu2 %vm4344_vm1, %v3320_v33  ;;  %v3321_v33 = vmul.f32 %v10706_v16, %v16726_v39 }
 0xcb4   : > { %10275 = vmatpush.xpose.msk.msra.mxu3 %vm2104_vm0, %v14224_v46  ;;  %10281 = vmatpush.xpose.msk.msrb.mxu2 %vm2104_vm0, %v14269_v61  ;;  %v16727_v46 = vld [vmem:[#allocation52_spill] sm:$0xff] }
 0xcb5   : > { %10309 = vmatpush.msk.msra.mxu0 %vm4348_vm8, %v6592_v3  ;;  %v7076_v57 = vmul.f32 %v14070_v32, %v16727_v46  ;;  %v16729_v3 = vld [vmem:[#allocation99_spill] sm:$0xff] }
 0xcb7   : > { %v14415_v31 = vld.sshfl [vmem:[#allocation1] sm:$0xff pattern:$0x73625140]  ;;  %v14445_v61 = vpop.f32.mrf.mxu0 }
 0xcb8   : > { %7508 = vst [vmem:[#allocation1] ss:$4 sm:$0xff] %v12471_v11  ;;  %v14454_v16 = vpop.f32.mrf.mxu1  ;;  %v16759_v11 = vld [vmem:[#allocation66_spill] sm:$0xff] }
 0xcb9   : > { %7510 = vst [vmem:[#allocation1 + $0x1] ss:$4 sm:$0xff] %v12474_v36 }
 0xcba   : > { %7512 = vst [vmem:[#allocation1 + $0x2] ss:$4 sm:$0xff] %v12477_v38  ;;  %v6628_v12 = vpop.permute.xlu2 %6627  ;;  %10267 = vmatmul.msk.f32.vlgmr.msrb.gmra.mxu3 %vm4344_vm1, %v3321_v33 }
 0xcbb   : > { %10311 = vmatpush.msk.msrb.mxu1 %vm4348_vm8, %v6628_v12  ;;  %16728 = vst [vmem:[#allocation21_spill] sm:$0xff] %v14445_v61  ;;  %10274 = vmatmul.msk.f32.vlgmr.msra.gmra.mxu2 %vm2104_vm0, %v16729_v3  ;;  %v16733_v12 = vld [vmem:[#allocation105_spill] sm:$0xff] }
 0xcbc   : > { %10283 = vmatpush.xpose.msk.msrb.mxu3 %vm2104_vm0, %v14288_v54  ;;  %10289 = vmatpush.xpose.msk.msra.mxu2 %vm2104_vm0, %v14366_v17  ;;  %16730 = vst [vmem:[#allocation79_spill] sm:$0xff] %v14454_v16  ;;  %v6556_v54 = vpop.permute.xlu1 %6555  ;;  %v16736_v3 = vld [vmem:[#allocation109_spill] sm:$0xff] }
 0xcbf   : > { %v14456_v39 = vpop.f32.mrf.mxu0 }
 0xcc0   : > { %16731 = vst [vmem:[#allocation75_spill] sm:$0xff] %v14456_v39 }
 0xcc1   : > { %v14440_v44 = vld.sshfl [vmem:[#allocation1] sm:$0xff pattern:$0x73625140] }
 0xcc2   : > { %7543 = vst [vmem:[#allocation1] ss:$4 sm:$0xff] %v7074_v51  ;;  %v16732_v51 = vld [vmem:[#allocation96_spill] sm:$0xff] }
 0xcc3   : > { %7545 = vst [vmem:[#allocation1 + $0x1] ss:$4 sm:$0xff] %v7075_v2  ;;  %10276 = vmatmul.msk.f32.vlgmr.msra.gmra.mxu3 %vm2104_vm0, %v16732_v51  ;;  %10282 = vmatmul.msk.f32.vlgmr.msrb.gmra.mxu2 %vm2104_vm0, %v16733_v12  ;;  %v16735_v2 = vld [vmem:[#allocation85_spill] sm:$0xff]  ;;  %v16738_v12 = vld [vmem:[#allocation54_spill] sm:$0xff] }
 0xcc4   : > { %7547 = vst [vmem:[#allocation1 + $0x2] ss:$4 sm:$0xff] %v7076_v57  ;;  %10291 = vmatpush.xpose.msk.msra.mxu3 %vm2104_vm0, %v14307_v21  ;;  %10297 = vmatpush.xpose.msk.msrb.mxu2 %vm2104_vm0, %v14385_v4  ;;  %v14471_v57 = vpop.f32.mrf.mxu1  ;;  %v16737_v21 = vld [vmem:[#allocation53_spill] sm:$0xff]  ;;  %v7078_v39 = vmul.f32 %v14065_v63, %v16738_v12 }
 0xcc5   : > { %16734 = vst [vmem:[#allocation60_spill] sm:$0xff] %v14471_v57  ;;  %v7077_v4 = vmul.f32 %v14060_v9, %v16737_v21 }
 0xcc8   : > { %v14473_v17 = vpop.f32.mrf.mxu0 }
 0xcc9   : > { %v6202_v51 = vsel %vm3145_vm14, %v14473_v17, -inf }
 0xcca   : > { %6203 = vmax.xlane.f32.xlu1 %v6202_v51 }
 0xccb   : > { %v14462_v33 = vld.sshfl [vmem:[#allocation1] sm:$0xff pattern:$0x73625140]  ;;  %10284 = vmatmul.msk.f32.vlgmr.msrb.gmra.mxu3 %vm2104_vm0, %v16735_v2  ;;  %10290 = vmatmul.msk.f32.vlgmr.msra.gmra.mxu2 %vm2104_vm0, %v16736_v3  ;;  %v16739_v2 = vld [vmem:[#allocation55_spill] sm:$0xff] }
 0xccc   : > { %7549 = vst [vmem:[#allocation1] ss:$4 sm:$0xff] %v16724_v10  ;;  %10299 = vmatpush.xpose.msk.msrb.mxu3 %vm2104_vm0, %v6177_v7  ;;  %10305 = vmatpush.msk.msra.mxu2 %vm4348_vm8, %v6520_v26  ;;  %v7079_v57 = vmul.f32 %v14070_v32, %v16739_v2  ;;  %v14491_v3 = vpop.f32.mrf.mxu1  ;;  %v6664_v7 = vpop.permute.xlu1 %6663  ;;  %v16741_v26 = vld [vmem:[#allocation126_spill] sm:$0xff] }
 0xccd   : > { %7551 = vst [vmem:[#allocation1 + $0x1] ss:$4 sm:$0xff] %v16725_v53 }
 0xcce   : > { %7553 = vst [vmem:[#allocation1 + $0x2] ss:$4 sm:$0xff] %v16727_v46  ;;  %v16752_v46 = vld [vmem:[#allocation61_spill] sm:$0xff] }
 0xccf   : > { %16740 = vst [vmem:[#allocation132_spill] sm:$0xff] %v14491_v3 }
 0xcd0   : > { %v14493_v16 = vpop.f32.mrf.mxu0 }
 0xcd3   : > { %10292 = vmatmul.msk.f32.vlgmr.msra.gmra.mxu3 %vm2104_vm0, %v16741_v26  ;;  %10298 = vmatmul.msk.f32.vlgmr.msrb.gmra.mxu2 %vm2104_vm0, %v16742_v59  ;;  %v16744_v59 = vld [vmem:[#allocation136_spill] sm:$0xff] }
 0xcd4   : > { %10307 = vmatpush.msk.msra.mxu3 %vm4348_vm8, %v6556_v54  ;;  %10313 = vmatpush.msk.msrb.mxu2 %vm4348_vm8, %v6664_v7  ;;  %v14503_v51 = vpop.f32.mrf.mxu1  ;;  %v16746_v7 = vld [vmem:[#allocation58_spill] sm:$0xff] }
 0xcd5   : > { %v14487_v61 = vld.sshfl [vmem:[#allocation1] sm:$0xff pattern:$0x73625140]  ;;  %16743 = vst [vmem:[#allocation56_spill] sm:$0xff] %v14503_v51  ;;  %v7080_v26 = vmul.f32 %v14060_v9, %v16746_v7 }
 0xcd6   : > { %7584 = vst [vmem:[#allocation1] ss:$4 sm:$0xff] %v7077_v4  ;;  %v6214_v4 = vsel %vm3145_vm14, %v14493_v16, -inf }
 0xcd7   : > { %7586 = vst [vmem:[#allocation1 + $0x1] ss:$4 sm:$0xff] %v7078_v39  ;;  %6215 = vmax.xlane.f32.xlu2 %v6214_v4  ;;  %v16747_v4 = vld [vmem:[#allocation57_spill] sm:$0xff] }
 0xcd8   : > { %7588 = vst [vmem:[#allocation1 + $0x2] ss:$4 sm:$0xff] %v7079_v57  ;;  %v6700_v57 = vpop.permute.xlu2 %6699  ;;  %v7081_v3 = vmul.f32 %v14065_v63, %v16747_v4 }
 0xcdb   : > { %10300 = vmatmul.msk.f32.vlgmr.msrb.gmra.mxu3 %vm2104_vm0, %v16744_v59  ;;  %v16749_v59 = vld [vmem:[#allocation97_spill] sm:$0xff] }
 0xcdc   : > { %10315 = vmatpush.msk.msrb.mxu3 %vm4348_vm8, %v6700_v57 }
 0xcde   : > { %v14513_v54 = vpop.f32.mrf.mxu1 }
 0xcdf   : > { %v14505_v39 = vld.sshfl [vmem:[#allocation1] sm:$0xff pattern:$0x73625140]  ;;  %16745 = vst [vmem:[#allocation77_spill] sm:$0xff] %v14513_v54 }
 0xce0   : > { %7590 = vst [vmem:[#allocation1] ss:$4 sm:$0xff] %v16737_v21  ;;  %v16748_v21 = vld [vmem:[#allocation59_spill] sm:$0xff] }
 0xce1   : > { %7592 = vst [vmem:[#allocation1 + $0x1] ss:$4 sm:$0xff] %v16738_v12  ;;  %v7082_v12 = vmul.f32 %v14070_v32, %v16748_v21 }
 0xce2   : > { %7594 = vst [vmem:[#allocation1 + $0x2] ss:$4 sm:$0xff] %v16739_v2 }
 0xce3   : > { %6951 = vrot.lane.b32.xlu1 %v16749_v59, %s10891_s27  ;;  %v16754_v59 = vld [vmem:[#allocation63_spill] sm:$0xff] }
 0xce6   : > { %v14525_v57 = vpop.f32.mrf.mxu1 }
 0xce7   : > { %16750 = vst [vmem:[#allocation138_spill] sm:$0xff] %v14525_v57  ;;  %v7085_v57 = vmul.f32 %v14070_v32, %v16754_v59 }
 0xce9   : > { %v14519_v51 = vld.sshfl [vmem:[#allocation1] sm:$0xff pattern:$0x73625140] }
 0xcea   : > { %7625 = vst [vmem:[#allocation1] ss:$4 sm:$0xff] %v7080_v26  ;;  %v7083_v26 = vmul.f32 %v14060_v9, %v16752_v46 }
 0xceb   : > { %7627 = vst [vmem:[#allocation1 + $0x1] ss:$4 sm:$0xff] %v7081_v3  ;;  %v16753_v3 = vld [vmem:[#allocation62_spill] sm:$0xff] }
 0xcec   : > { %7629 = vst [vmem:[#allocation1 + $0x2] ss:$4 sm:$0xff] %v7082_v12  ;;  %v7084_v12 = vmul.f32 %v14065_v63, %v16753_v3 }
 0xcee   : > { %v14532_v2 = vpop.f32.mrf.mxu1 }
 0xcef   : > { %16751 = vst [vmem:[#allocation134_spill] sm:$0xff] %v14532_v2  ;;  %v14546_v2 = vpop.f32.mrf.mxu2 }
 0xcf0   : > { %16755 = vst [vmem:[#allocation76_spill] sm:$0xff] %v14546_v2 }
 0xcf3   : > { %v14527_v54 = vld.sshfl [vmem:[#allocation1] sm:$0xff pattern:$0x73625140] }
 0xcf4   : > { %7631 = vst [vmem:[#allocation1] ss:$4 sm:$0xff] %v16746_v7 }
 0xcf5   : > { %7633 = vst [vmem:[#allocation1 + $0x1] ss:$4 sm:$0xff] %v16747_v4 }
 0xcf6   : > { %7635 = vst [vmem:[#allocation1 + $0x2] ss:$4 sm:$0xff] %v16748_v21  ;;  %v14542_v10 = vpop.f32.mrf.mxu1 }
 0xcf7   : > { %v6205_v21 = vsel %vm3145_vm14, %v14542_v10, -inf }
 0xcf8   : > { %6206 = vmax.xlane.f32.xlu0 %v6205_v21  ;;  %v14561_v21 = vpop.f32.mrf.mxu0 }
 0xcf9   : > { %v6226_v36 = vsel %vm3145_vm14, %v14561_v21, -inf }
 0xcfd   : > { %v14538_v53 = vld.sshfl [vmem:[#allocation1] sm:$0xff pattern:$0x73625140] }
 0xcfe   : > { %7666 = vst [vmem:[#allocation1] ss:$4 sm:$0xff] %v7083_v26  ;;  %v14548_v4 = vpop.f32.mrf.mxu1  ;;  %v14557_v26 = vpop.f32.mrf.mxu3 }
 0xcff   : > { %7668 = vst [vmem:[#allocation1 + $0x1] ss:$4 sm:$0xff] %v7084_v12  ;;  %v6217_v38 = vsel %vm3145_vm14, %v14548_v4, -inf  ;;  %v16758_v12 = vld [vmem:[#allocation65_spill] sm:$0xff] }
 0xd00   : > { %7670 = vst [vmem:[#allocation1 + $0x2] ss:$4 sm:$0xff] %v7085_v57  ;;  %6218 = vmax.xlane.f32.xlu0 %v6217_v38  ;;  %v14559_v57 = vpop.f32.mrf.mxu2  ;;  %v7086_v2 = vmul.f32 %v14060_v9, %v16758_v12  ;;  %v14635_v28 = vpop.f32.mrf.mxu0 }
 0xd01   : > { %16756 = vst [vmem:[#allocation70_spill] sm:$0xff] %v14557_v26 }
 0xd02   : > { %16757 = vst [vmem:[#allocation87_spill] sm:$0xff] %v14559_v57 }
 0xd06   : > { %v14573_v57 = vpop.f32.mrf.mxu3  ;;  %v14575_v26 = vpop.f32.mrf.mxu1 }
 0xd07   : > { %v14550_v7 = vld.sshfl [vmem:[#allocation1] sm:$0xff pattern:$0x73625140]  ;;  %16761 = vst [vmem:[#allocation89_spill] sm:$0xff] %v14573_v57  ;;  %v6229_v45 = vsel %vm3145_vm14, %v14575_v26, -inf }
 0xd08   : > { %7672 = vst [vmem:[#allocation1] ss:$4 sm:$0xff] %v16752_v46  ;;  %v7087_v46 = vmul.f32 %v14065_v63, %v16759_v11  ;;  %6227 = vmax.xlane.f32.xlu0 %v6226_v36  ;;  %v14577_v9 = vpop.f32.mrf.mxu2 }
 0xd09   : > { %7674 = vst [vmem:[#allocation1 + $0x1] ss:$4 sm:$0xff] %v16753_v3  ;;  %v16760_v3 = vld [vmem:[#allocation67_spill] sm:$0xff] }
 0xd0a   : > { %7676 = vst [vmem:[#allocation1 + $0x2] ss:$4 sm:$0xff] %v16754_v59  ;;  %v7088_v59 = vmul.f32 %v14070_v32, %v16760_v3 }
 0xd0b   : > { %16762 = vst [vmem:[#allocation78_spill] sm:$0xff] %v14577_v9 }
 0xd0d   : > { %6230 = vmax.xlane.f32.xlu1 %v6229_v45 }
 0xd0e   : > { %v14585_v36 = vpop.f32.mrf.mxu3 }
 0xd0f   : > { %16763 = vst [vmem:[#allocation74_spill] sm:$0xff] %v14585_v36 }
 0xd11   : > { %v14569_v38 = vld.sshfl [vmem:[#allocation1] sm:$0xff pattern:$0x73625140] }
 0xd12   : > { %7707 = vst [vmem:[#allocation1] ss:$4 sm:$0xff] %v7086_v2 }
 0xd13   : > { %7709 = vst [vmem:[#allocation1 + $0x1] ss:$4 sm:$0xff] %v7087_v46  ;;  %v14587_v32 = vpop.f32.mrf.mxu2 }
 0xd14   : > { %7711 = vst [vmem:[#allocation1 + $0x2] ss:$4 sm:$0xff] %v7088_v59 }
 0xd15   : > { %16764 = vst [vmem:[#allocation124_spill] sm:$0xff] %v14587_v32 }
 0xd1b   : > { %v14581_v63 = vld.sshfl [vmem:[#allocation1] sm:$0xff pattern:$0x73625140]  ;;  %v14590_v46 = vpop.f32.mrf.mxu3  ;;  %v14592_v2 = vpop.f32.mrf.mxu2 }
 0xd1c   : > { %7713 = vst [vmem:[#allocation1] ss:$4 sm:$0xff] %v16758_v12  ;;  %v14602_v12 = vpop.permute.xlu2 %6843 }
 0xd1d   : > { %7715 = vst [vmem:[#allocation1 + $0x1] ss:$4 sm:$0xff] %v16759_v11 }
 0xd1e   : > { %7717 = vst [vmem:[#allocation1 + $0x2] ss:$4 sm:$0xff] %v16760_v3 }
 0xd1f   : > { %16765 = vst [vmem:[#allocation123_spill] sm:$0xff] %v14590_v46 }
 0xd20   : > { %16766 = vst [vmem:[#allocation113_spill] sm:$0xff] %v14592_v2 }
 0xd23   : > { %v14594_v59 = vpop.f32.mrf.mxu3  ;;  %v14596_v9 = vpop.f32.mrf.mxu2 }
 0xd24   : > { %16767 = vst [vmem:[#allocation133_spill] sm:$0xff] %v14594_v59  ;;  %v14608_v32 = vpop.permute.xlu2 %6879 }
 0xd25   : > { %16768 = vst [vmem:[#allocation94_spill] sm:$0xff] %v14596_v9 }
 0xd2b   : > { %v14598_v45 = vpop.f32.mrf.mxu3  ;;  %v14600_v57 = vpop.f32.mrf.mxu2 }
 0xd2c   : > { %16769 = vst [vmem:[#allocation137_spill] sm:$0xff] %v14598_v45  ;;  %v14616_v9 = vpop.permute.xlu2 %6915 }
 0xd2d   : > { %16770 = vst [vmem:[#allocation103_spill] sm:$0xff] %v14600_v57 }
 0xd35   : > { %v14604_v11 = vpop.f32.mrf.mxu3 }
 0xd36   : > { %16771 = vst [vmem:[#allocation139_spill] sm:$0xff] %v14604_v11  ;;  %v14606_v36 = vpop.f32.mrf.mxu2 }
 0xd37   : > { %16772 = vst [vmem:[#allocation68_spill] sm:$0xff] %v14606_v36 }
 0xd3d   : > { %v14610_v3 = vpop.f32.mrf.mxu3 }
 0xd3e   : > { %16773 = vst [vmem:[#allocation71_spill] sm:$0xff] %v14610_v3  ;;  %v14612_v46 = vpop.f32.mrf.mxu2 }
 0xd3f   : > { %v6208_v59 = vsel %vm3145_vm14, %v14612_v46, -inf }
 0xd40   : > { %6209 = vmax.xlane.f32.xlu2 %v6208_v59 }
 0xd46   : > { %v14618_v45 = vpop.f32.mrf.mxu3  ;;  %v14620_v57 = vpop.f32.mrf.mxu2 }
 0xd47   : > { %v6211_v11 = vsel %vm3145_vm14, %v14618_v45, -inf  ;;  %v6220_v36 = vsel %vm3145_vm14, %v14620_v57, -inf }
 0xd48   : > { %6212 = vmax.xlane.f32.xlu2 %v6211_v11  ;;  %6221 = vmax.xlane.f32.xlu1 %v6220_v36  ;;  %v14643_v36 = vpop.permute.xlu0 %6735 }
 0xd4a   : > { %v6216_v3 = vpop.xlane.xlu2 %6215 }
 0xd4b   : > { %v6254_v2 = vsub.f32 %v14493_v16, %v6216_v3  ;;  %v6238_v3 = vsel %vm3145_vm14, %v14635_v28, -inf }
 0xd4d   : > { %v6274_v56 = vmul.f32 1.442695, %v6254_v2 }
 0xd4e   : > { %v14627_v62 = vpop.f32.mrf.mxu3  ;;  %v14629_v59 = vpop.f32.mrf.mxu2 }
 0xd4f   : > { %v6232_v13 = vsel %vm3145_vm14, %v14629_v59, -inf  ;;  %v6223_v37 = vsel %vm3145_vm14, %v14627_v62, -inf  ;;  %10707 = vpow2.f32 %v6274_v56 }
 0xd50   : > { %6233 = vmax.xlane.f32.xlu2 %v6232_v13  ;;  %6224 = vmax.xlane.f32.xlu1 %v6223_v37  ;;  %v14649_v37 = vpop.permute.xlu0 %6771 }
 0xd55   : > { %v14645_v15 = vpop.eup %10707 }
 0xd56   : > { %v14637_v11 = vpop.f32.mrf.mxu2  ;;  %v6310_v13 = vsel %vm3145_vm14, %v14645_v15, 0.0 }
 0xd57   : > { %v6244_v16 = vsel %vm3145_vm14, %v14637_v11, -inf }
 0xd58   : > { %6245 = vmax.xlane.f32.xlu0 %v6244_v16  ;;  %6239 = vmax.xlane.f32.xlu1 %v6238_v3  ;;  %v14654_v16 = vpop.f32.mrf.mxu3 }
 0xd59   : > { %v6235_v42 = vsel %vm3145_vm14, %v14654_v16, -inf }
 0xd60   : > { %6311 = vadd.xlane.f32.xlu1 %v6310_v13  ;;  %v14662_v13 = vpop.f32.mrf.mxu3 }
 0xd68   : > { %7186 = vrot.lane.b32.xlu2 %v14173_v47, %s10895_s0  ;;  %v6247_v47 = vsel %vm3145_vm14, %v14662_v13, -inf }
 0xd6b   : > { %v6207_v56 = vpop.xlane.xlu0 %6206 }
 0xd6c   : > { %v6251_v2 = vsub.f32 %v14542_v10, %v6207_v56  ;;  %v14666_v10 = vpop.permute.xlu1 %6807 }
 0xd6e   : > { %v6268_v1 = vmul.f32 1.442695, %v6251_v2 }
 0xd70   : > { %10709 = vpow2.f32 %v6268_v1 }
 0xd73   : > { %v6219_v56 = vpop.xlane.xlu0 %6218 }
 0xd74   : > { %v6204_v1 = vpop.xlane.xlu1 %6203 }
 0xd75   : > { %v6250_v2 = vsub.f32 %v14473_v17, %v6204_v1 }
 0xd76   : > { %v14656_v3 = vpop.eup %10709 }
 0xd77   : > { %v6301_v50 = vsel %vm3145_vm14, %v14656_v3, 0.0  ;;  %v6266_v25 = vmul.f32 1.442695, %v6250_v2 }
 0xd78   : > { %6302 = vadd.xlane.f32.xlu0 %v6301_v50  ;;  %v6255_v50 = vsub.f32 %v14548_v4, %v6219_v56 }
 0xd79   : > { %7145 = vrot.lane.b32.xlu1 %v14150_v49, %s10895_s0  ;;  %v14672_v49 = vpop.f32.mrf.mxu1  ;;  %10711 = vpow2.f32 %v6266_v25 }
 0xd7a   : > { %v6276_v24 = vmul.f32 1.442695, %v6255_v50  ;;  %v6241_v5 = vsel %vm3145_vm14, %v14672_v49, -inf }
 0xd7c   : > { %10713 = vpow2.f32 %v6276_v24 }
 0xd7f   : > { %v14679_v1 = vpop.eup %10711 }
 0xd80   : > { %6248 = vmax.xlane.f32.xlu0 %v6247_v47  ;;  %v6228_v47 = vpop.xlane.xlu0 %6227  ;;  %v6298_v56 = vsel %vm3145_vm14, %v14679_v1, 0.0 }
 0xd81   : > { %v6258_v17 = vsub.f32 %v14561_v21, %v6228_v47 }
 0xd83   : > { %v6282_v4 = vmul.f32 1.442695, %v6258_v17  ;;  %v16775_v17 = vld [vmem:[#allocation104_spill] sm:$0xff] }
 0xd85   : > { %10715 = vpow2.f32 %v6282_v4 }
 0xd91   : > { %6236 = vmax.xlane.f32.xlu2 %v6235_v42  ;;  %v14681_v42 = vpop.eup %10713 }
 0xd92   : > { %v14687_v25 = vpop.eup %10715 }
 0xd93   : > { %v6322_v24 = vsel %vm3145_vm14, %v14687_v25, 0.0 }
 0xd94   : > { %6987 = vrot.lane.b32.xlu0 %v16774_v41, %s10891_s27  ;;  %v6313_v41 = vsel %vm3145_vm14, %v14681_v42, 0.0 }
 0xd99   : > { %6242 = vmax.xlane.f32.xlu2 %v6241_v5  ;;  %v14691_v5 = vpop.permute.xlu1 %6951 }
 0xda1   : > { %6299 = vadd.xlane.f32.xlu2 %v6298_v56  ;;  %v6231_v21 = vpop.xlane.xlu1 %6230 }
 0xda3   : > { %6314 = vadd.xlane.f32.xlu1 %v6313_v41 }
 0xdab   : > { %6323 = vadd.xlane.f32.xlu1 %v6322_v24 }
 0xdb3   : > { %v6210_v2 = vpop.xlane.xlu2 %6209 }
 0xdb4   : > { %v6252_v50 = vsub.f32 %v14612_v46, %v6210_v2 }
 0xdb6   : > { %v6270_v47 = vmul.f32 1.442695, %v6252_v50 }
 0xdb8   : > { %10717 = vpow2.f32 %v6270_v47 }
 0xdb9   : > { %7104 = vrot.lane.b32.xlu2 %v16775_v17, %s10895_s0 }
 0xdbb   : > { %v6213_v4 = vpop.xlane.xlu2 %6212  ;;  %v6222_v56 = vpop.xlane.xlu1 %6221 }
 0xdbc   : > { %v6253_v41 = vsub.f32 %v14618_v45, %v6213_v4 }
 0xdbe   : > { %v14697_v48 = vpop.eup %10717  ;;  %v6272_v60 = vmul.f32 1.442695, %v6253_v41 }
 0xdbf   : > { %v6304_v52 = vsel %vm3145_vm14, %v14697_v48, 0.0 }
 0xdc0   : > { %10719 = vpow2.f32 %v6272_v60  ;;  %6305 = vadd.xlane.f32.xlu1 %v6304_v52  ;;  %v6259_v52 = vsub.f32 %v14575_v26, %v6231_v21 }
 0xdc1   : > { %7227 = vrot.lane.b32.xlu2 %v14197_v29, %s10895_s0 }
 0xdc2   : > { %v6284_v29 = vmul.f32 1.442695, %v6259_v52 }
 0xdc3   : > { %v6225_v46 = vpop.xlane.xlu1 %6224  ;;  %v6234_v41 = vpop.xlane.xlu2 %6233 }
 0xdc4   : > { %v6257_v24 = vsub.f32 %v14627_v62, %v6225_v46  ;;  %v6256_v62 = vsub.f32 %v14620_v57, %v6222_v56 }
 0xdc6   : > { %v14704_v2 = vpop.eup %10719  ;;  %v6280_v50 = vmul.f32 1.442695, %v6257_v24  ;;  %v6278_v17 = vmul.f32 1.442695, %v6256_v62  ;;  %v6260_v24 = vsub.f32 %v14629_v59, %v6234_v41 }
 0xdc7   : > { %v6307_v45 = vsel %vm3145_vm14, %v14704_v2, 0.0 }
 0xdc8   : > { %6308 = vadd.xlane.f32.xlu1 %v6307_v45  ;;  %10721 = vpow2.f32 %v6280_v50  ;;  %v6286_v45 = vmul.f32 1.442695, %v6260_v24 }
 0xdc9   : > { %10723 = vpow2.f32 %v6284_v29 }
 0xdca   : > { %10725 = vpow2.f32 %v6278_v17 }
 0xdcb   : > { %v6246_v4 = vpop.xlane.xlu0 %6245  ;;  %v6240_v43 = vpop.xlane.xlu1 %6239 }
 0xdcc   : > { %v6262_v57 = vsub.f32 %v14635_v28, %v6240_v43  ;;  %v14732_v43 = vpop.permute.xlu2 %7186 }
 0xdce   : > { %v14708_v47 = vpop.eup %10721  ;;  %v6290_v52 = vmul.f32 1.442695, %v6262_v57 }
 0xdcf   : > { %v6319_v60 = vsel %vm3145_vm14, %v14708_v47, 0.0  ;;  %v14714_v46 = vpop.eup %10723 }
 0xdd0   : > { %6320 = vadd.xlane.f32.xlu0 %v6319_v60  ;;  %v6325_v50 = vsel %vm3145_vm14, %v14714_v46, 0.0  ;;  %v14719_v26 = vpop.eup %10725 }
 0xdd1   : > { %v6316_v21 = vsel %vm3145_vm14, %v14719_v26, 0.0 }
 0xdea   : > { %6326 = vadd.xlane.f32.xlu2 %v6325_v50  ;;  %v6312_v50 = vpop.xlane.xlu1 %6311 }
 0xdeb   : > { %v6303_v60 = vpop.xlane.xlu0 %6302 }
 0xdec   : > { %10727 = vrcp.f32 %v6303_v60 }
 0xded   : > { %10729 = vpow2.f32 %v6286_v45 }
 0xdee   : > { %10731 = vpow2.f32 %v6290_v52 }
 0xdf2   : > { %6317 = vadd.xlane.f32.xlu2 %v6316_v21  ;;  %v10728_v56 = vpop.eup %10727  ;;  %v14742_v52 = vpop.permute.xlu1 %7145 }
 0xdf3   : > { %v6363_v59 = vmul.f32 %v10728_v56, %v14656_v3  ;;  %v14725_v29 = vpop.eup %10729  ;;  %v6249_v3 = vpop.xlane.xlu0 %6248  ;;  %v6264_v56 = vsub.f32 %v14637_v11, %v6246_v4 }
 0xdf4   : > { %v6328_v62 = vsel %vm3145_vm14, %v14725_v29, 0.0  ;;  %v14734_v28 = vpop.eup %10731 }
 0xdf5   : > { %10304 = vmatmul.msk.f32.vlgmr.msra.gmra.mxu1 %vm4344_vm1, %v6363_v59  ;;  %v6334_v17 = vsel %vm3145_vm14, %v14734_v28, 0.0 }
 0xdf6   : > { %10319 = vmatpush.msk.msra.mxu1 %vm4348_vm8, %v14649_v37  ;;  %v6265_v37 = vsub.f32 %v14662_v13, %v6249_v3  ;;  %v6294_v13 = vmul.f32 1.442695, %v6264_v56 }
 0xdf8   : > { %v6296_v60 = vmul.f32 1.442695, %v6265_v37 }
 0xdfa   : > { %6329 = vadd.xlane.f32.xlu2 %v6328_v62 }
 0xe02   : > { %6335 = vadd.xlane.f32.xlu2 %v6334_v17 }
 0xe04   : > { %v6237_v41 = vpop.xlane.xlu2 %6236 }
 0xe05   : > { %v6261_v24 = vsub.f32 %v14654_v16, %v6237_v41 }
 0xe07   : > { %v6288_v45 = vmul.f32 1.442695, %v6261_v24 }
 0xe09   : > { %10733 = vpow2.f32 %v6288_v45 }
 0xe0a   : > { %10735 = vpow2.f32 %v6296_v60 }
 0xe0c   : > { %v6243_v57 = vpop.xlane.xlu2 %6242 }
 0xe0d   : > { %v6263_v21 = vsub.f32 %v14672_v49, %v6243_v57 }
 0xe0f   : > { %v14744_v59 = vpop.eup %10733  ;;  %v6292_v62 = vmul.f32 1.442695, %v6263_v21 }
 0xe10   : > { %v6331_v16 = vsel %vm3145_vm14, %v14744_v59, 0.0  ;;  %v14748_v3 = vpop.eup %10735 }
 0xe11   : > { %10737 = vpow2.f32 %v6292_v62  ;;  %6332 = vadd.xlane.f32.xlu0 %v6331_v16  ;;  %v6343_v11 = vsel %vm3145_vm14, %v14748_v3, 0.0 }
 0xe14   : > { %v6300_v17 = vpop.xlane.xlu2 %6299 }
 0xe15   : > { %10739 = vrcp.f32 %v6300_v17 }
 0xe16   : > { %10741 = vpow2.f32 %v6294_v13  ;;  %v6315_v49 = vpop.xlane.xlu1 %6314 }
 0xe17   : > { %v14750_v41 = vpop.eup %10737  ;;  %10743 = vrcp.f32 %v6315_v49 }
 0xe18   : > { %v6337_v4 = vsel %vm3145_vm14, %v14750_v41, 0.0  ;;  %10745 = vrcp.f32 %v6312_v50 }
 0xe19   : > { %6344 = vadd.xlane.f32.xlu0 %v6343_v11  ;;  %6338 = vadd.xlane.f32.xlu1 %v6337_v4 }
 0xe1a   : > { %7309 = vrot.lane.b32.xlu2 %v14258_v55, %s10895_s0 }
 0xe1b   : > { %v10740_v24 = vpop.eup %10739 }
 0xe1c   : > { %v14758_v37 = vpop.eup %10741  ;;  %v6362_v45 = vmul.f32 %v10740_v24, %v14679_v1  ;;  %v16777_v24 = vld [vmem:[#allocation117_spill] sm:$0xff] }
 0xe1d   : > { %v10744_v60 = vpop.eup %10743  ;;  %v6340_v55 = vsel %vm3145_vm14, %v14758_v37, 0.0 }
 0xe1e   : > { %v6367_v57 = vmul.f32 %v10744_v60, %v14681_v42  ;;  %10302 = vmatmul.msk.f32.vlgmr.msrb.gmra.mxu0 %vm4344_vm1, %v6362_v45  ;;  %v6324_v21 = vpop.xlane.xlu1 %6323  ;;  %v10746_v56 = vpop.eup %10745 }
 0xe1f   : > { %10317 = vmatpush.msk.msrb.mxu0 %vm4348_vm8, %v14643_v36  ;;  %10747 = vrcp.f32 %v6324_v21  ;;  %v6366_v1 = vmul.f32 %v10746_v56, %v14645_v15  ;;  %v7718_v15 = vld.sshfl [vmem:[#allocation1] sm:$0xff pattern:$0x73625140] }
 0xe20   : > { %10312 = vmatmul.msk.f32.vlgmr.msrb.gmra.mxu1 %vm4344_vm1, %v6367_v57 }
 0xe21   : > { %10327 = vmatpush.msk.msrb.mxu1 %vm4348_vm8, %v14616_v9  ;;  %6341 = vadd.xlane.f32.xlu1 %v6340_v55  ;;  %v7105_v9 = vpop.permute.xlu2 %7104 }
 0xe22   : > { %7432 = vrot.lane.b32.xlu2 %v14351_v18, %s10895_s0 }
 0xe25   : > { %v10748_v36 = vpop.eup %10747 }
 0xe26   : > { %10310 = vmatmul.msk.f32.vlgmr.msra.gmra.mxu0 %vm4344_vm1, %v6366_v1  ;;  %v6370_v42 = vmul.f32 %v10748_v36, %v14687_v25  ;;  %v6988_v25 = vpop.permute.xlu0 %6987 }
 0xe27   : > { %10325 = vmatpush.msk.msra.mxu0 %vm4348_vm8, %v14608_v32 }
 0xe2a   : > { %7678 = vrot.lane.b32.xlu2 %v14569_v38, %s10895_s0 }
 0xe2d   : > { %7268 = vrot.lane.b32.xlu0 %v14228_v58, %s10895_s0 }
 0xe2e   : > { %10318 = vmatmul.msk.f32.vlgmr.msrb.gmra.mxu0 %vm4344_vm1, %v6370_v42  ;;  %v16778_v42 = vld [vmem:[#allocation19_spill] sm:$0xff] }
 0xe2f   : > { %10334 = vmatpush.xpose.msk.msrb.mxu0 %vm2104_vm0, %v7105_v9 }
 0xe32   : > { %7719 = vrot.lane.b32.xlu2 %v7718_v15, %s10895_s0 }
 0xe33   : > { %v6306_v18 = vpop.xlane.xlu1 %6305 }
 0xe34   : > { %10749 = vrcp.f32 %v6306_v18 }
 0xe35   : > { %7514 = vrot.lane.b32.xlu0 %v14440_v44, %s10895_s0 }
 0xe3a   : > { %v10750_v32 = vpop.eup %10749  ;;  %7350 = vrot.lane.b32.xlu1 %v14300_v30, %s10895_s0 }
 0xe3b   : > { %v6364_v38 = vmul.f32 %v10750_v32, %v14697_v48  ;;  %v6309_v58 = vpop.xlane.xlu1 %6308  ;;  %v16776_v48 = vld [vmem:[#allocation3_spill] sm:$0xff] }
 0xe3c   : > { %10751 = vrcp.f32 %v6309_v58  ;;  %v16782_v58 = vld [vmem:[#allocation22_spill] sm:$0xff] }
 0xe3d   : > { %10306 = vmatmul.msk.f32.vlgmr.msra.gmra.mxu2 %vm4344_vm1, %v6364_v38  ;;  %7555 = vrot.lane.b32.xlu0 %v14487_v61, %s10895_s0  ;;  %v7923_v61 = vrot.slane %v16776_v48, 4 }
 0xe3e   : > { %10321 = vmatpush.msk.msra.mxu2 %vm4348_vm8, %v14666_v10 }
 0xe42   : > { %v10752_v50 = vpop.eup %10751  ;;  %7391 = vrot.lane.b32.xlu1 %v14328_v40, %s10895_s0 }
 0xe43   : > { %v6365_v44 = vmul.f32 %v10752_v50, %v14704_v2  ;;  %v6321_v30 = vpop.xlane.xlu0 %6320  ;;  %v16783_v50 = vld [vmem:[#allocation23_spill] sm:$0xff] }
 0xe44   : > { %10753 = vrcp.f32 %v6321_v30  ;;  %v16784_v30 = vld [vmem:[#allocation24_spill] sm:$0xff] }
 0xe45   : > { %10308 = vmatmul.msk.f32.vlgmr.msra.gmra.mxu3 %vm4344_vm1, %v6365_v44  ;;  %7637 = vrot.lane.b32.xlu0 %v14538_v53, %s10895_s0  ;;  %v7922_v53 = vrot.slane %v16776_v48, 2 }
 0xe46   : > { %10323 = vmatpush.msk.msra.mxu3 %vm4348_vm8, %v14602_v12  ;;  %v7228_v12 = vpop.permute.xlu2 %7227 }
 0xe47   : > { %v10517_v2 = vpack.i.bf16 %v7922_v53, %v16776_v48 }
 0xe4a   : > { %7473 = vrot.lane.b32.xlu1 %v14399_v34, %s10895_s0  ;;  %v10754_v10 = vpop.eup %10753 }
 0xe4b   : > { %v6369_v40 = vmul.f32 %v10754_v10, %v14708_v47 }
 0xe4d   : > { %7928 = vrot.lane.b32.xlu0 %v7923_v61, %s10893_s23  ;;  %10316 = vmatmul.msk.f32.vlgmr.msrb.gmra.mxu3 %vm4344_vm1, %v6369_v40  ;;  %v16786_v40 = vld [vmem:[#allocation26_spill] sm:$0xff] }
 0xe4e   : > { %10331 = vmatpush.msk.msrb.mxu3 %vm4348_vm8, %v6988_v25 }
 0xe52   : > { %7596 = vrot.lane.b32.xlu1 %v14519_v51, %s10895_s0 }
 0xe5a   : > { %10518 = vrot.lane.b32.xlu1 %v10517_v2, %s10893_s23  ;;  %s16040_s23 = scalar_lea.vmem %s16127_s17, %s10479_s21 }
 0xe5d   : > { %v6327_v34 = vpop.xlane.xlu2 %6326 }
 0xe5e   : > { %10755 = vrcp.f32 %v6327_v34 }
 0xe64   : > { %v10756_v62 = vpop.eup %10755 }
 0xe65   : > { %v6371_v47 = vmul.f32 %v10756_v62, %v14714_v46  ;;  %v6318_v16 = vpop.xlane.xlu2 %6317  ;;  %v16788_v62 = vld [vmem:[#allocation28_spill] sm:$0xff] }
 0xe66   : > { %10757 = vrcp.f32 %v6318_v16  ;;  %v16789_v16 = vld [vmem:[#allocation29_spill] sm:$0xff] }
 0xe67   : > { %10320 = vmatmul.msk.f32.vlgmr.msra.gmra.mxu1 %vm4344_vm1, %v6371_v47 }
 0xe68   : > { %10336 = vmatpush.xpose.msk.msra.mxu1 %vm2104_vm0, %v14742_v52 }
 0xe6c   : > { %v10758_v51 = vpop.eup %10757 }
 0xe6d   : > { %v6368_v13 = vmul.f32 %v10758_v51, %v14719_v26  ;;  %v6330_v17 = vpop.xlane.xlu2 %6329 }
 0xe6e   : > { %10759 = vrcp.f32 %v6330_v17 }
 0xe6f   : > { %10314 = vmatmul.msk.f32.vlgmr.msrb.gmra.mxu2 %vm4344_vm1, %v6368_v13  ;;  %v16790_v13 = vld [vmem:[#allocation30_spill] sm:$0xff] }
 0xe70   : > { %10329 = vmatpush.msk.msrb.mxu2 %vm4348_vm8, %v14691_v5 }
 0xe74   : > { %v10760_v49 = vpop.eup %10759 }
 0xe75   : > { %v6372_v46 = vmul.f32 %v10760_v49, %v14725_v29  ;;  %v6336_v11 = vpop.xlane.xlu2 %6335 }
 0xe76   : > { %10761 = vrcp.f32 %v6336_v11 }
 0xe77   : > { %10322 = vmatmul.msk.f32.vlgmr.msra.gmra.mxu2 %vm4344_vm1, %v6372_v46  ;;  %v16791_v46 = vld [vmem:[#allocation31_spill] sm:$0xff] }
 0xe78   : > { %10338 = vmatpush.xpose.msk.msra.mxu2 %vm2104_vm0, %v14732_v43 }
 0xe7c   : > { %v10762_v52 = vpop.eup %10761 }
 0xe7d   : > { %v6374_v26 = vmul.f32 %v10762_v52, %v14734_v28  ;;  %v7310_v56 = vpop.permute.xlu2 %7309  ;;  %v16792_v52 = vld [vmem:[#allocation33_spill] sm:$0xff] }
 0xe7f   : > { %10326 = vmatmul.msk.f32.vlgmr.msra.gmra.mxu0 %vm4344_vm1, %v6374_v26 }
 0xe84   : > { %v6333_v4 = vpop.xlane.xlu0 %6332 }
 0xe85   : > { %10763 = vrcp.f32 %v6333_v4  ;;  %v16793_v4 = vld [vmem:[#allocation32_spill] sm:$0xff] }
 0xe87   : > { %10335 = vmatmul.msk.f32.vlgmr.msrb.gmra.mxu0 %vm2104_vm0, %v16777_v24 }
 0xe8b   : > { %v10764_v5 = vpop.eup %10763 }
 0xe8c   : > { %v6373_v29 = vmul.f32 %v10764_v5, %v14744_v59  ;;  %v6345_v45 = vpop.xlane.xlu0 %6344  ;;  %v6339_v60 = vpop.xlane.xlu1 %6338 }
 0xe8d   : > { %10765 = vrcp.f32 %v6345_v45 }
 0xe8e   : > { %10767 = vrcp.f32 %v6339_v60  ;;  %10324 = vmatmul.msk.f32.vlgmr.msra.gmra.mxu3 %vm4344_vm1, %v6373_v29  ;;  %v16794_v29 = vld [vmem:[#allocation34_spill] sm:$0xff] }
 0xe8f   : > { %10340 = vmatpush.xpose.msk.msra.mxu3 %vm2104_vm0, %v7228_v12  ;;  %v16787_v12 = vld [vmem:[#allocation27_spill] sm:$0xff] }
 0xe93   : > { %v10766_v43 = vpop.eup %10765 }
 0xe94   : > { %v10768_v28 = vpop.eup %10767  ;;  %v6377_v57 = vmul.f32 %v10766_v43, %v14748_v3  ;;  %v6342_v21 = vpop.xlane.xlu1 %6341  ;;  %v16795_v43 = vld [vmem:[#allocation35_spill] sm:$0xff] }
 0xe95   : > { %v6375_v55 = vmul.f32 %v10768_v28, %v14750_v41  ;;  %10769 = vrcp.f32 %v6342_v21  ;;  %v7433_v41 = vpop.permute.xlu2 %7432 }
 0xe96   : > { %10332 = vmatmul.msk.f32.vlgmr.msrb.gmra.mxu3 %vm4344_vm1, %v6377_v57  ;;  %v16796_v57 = vld [vmem:[#allocation36_spill] sm:$0xff] }
 0xe97   : > { %10328 = vmatmul.msk.f32.vlgmr.msrb.gmra.mxu1 %vm4344_vm1, %v6375_v55 }
 0xe98   : > { %10344 = vmatpush.xpose.msk.msrb.mxu1 %vm2104_vm0, %v7310_v56  ;;  %v16797_v56 = vld [vmem:[#allocation37_spill] sm:$0xff] }
 0xe9b   : > { %v10770_v59 = vpop.eup %10769  ;;  %v14928_v60 = vpop.f32.mrf.mxu0 }
 0xe9c   : > { %v6376_v1 = vmul.f32 %v10770_v59, %v14758_v37 }
 0xe9e   : > { %10330 = vmatmul.msk.f32.vlgmr.msrb.gmra.mxu2 %vm4344_vm1, %v6376_v1  ;;  %10341 = vmatmul.msk.f32.vlgmr.msra.gmra.mxu3 %vm2104_vm0, %v14182_v35  ;;  %v7679_v35 = vpop.permute.xlu2 %7678 }
 0xe9f   : > { %10337 = vmatmul.msk.f32.vlgmr.msra.gmra.mxu1 %vm2104_vm0, %v14127_v8  ;;  %v7269_v3 = vpop.permute.xlu0 %7268 }
 0xea0   : > { %10342 = vmatpush.xpose.msk.msra.mxu0 %vm2104_vm0, %v7269_v3  ;;  %v16798_v3 = vld [vmem:[#allocation38_spill] sm:$0xff] }
 0xea3   : > { %10343 = vmatmul.msk.f32.vlgmr.msra.gmra.mxu0 %vm2104_vm0, %v14211_v6  ;;  %v14937_v1 = vpop.f32.mrf.mxu0 }
 0xea4   : > { %10350 = vmatpush.xpose.msk.msrb.mxu0 %vm2104_vm0, %v7433_v41 }
 0xea6   : > { %10339 = vmatmul.msk.f32.vlgmr.msra.gmra.mxu2 %vm2104_vm0, %v14160_v27  ;;  %v7720_v6 = vpop.permute.xlu2 %7719 }
 0xea7   : > { %10345 = vmatmul.msk.f32.vlgmr.msrb.gmra.mxu1 %vm2104_vm0, %v14239_v23  ;;  %v7515_v37 = vpop.permute.xlu0 %7514 }
 0xeab   : > { %10351 = vmatmul.msk.f32.vlgmr.msrb.gmra.mxu0 %vm2104_vm0, %v14335_v22 }
 0xeac   : > { %v7351_v8 = vpop.permute.xlu1 %7350 }
 0xead   : > { %10346 = vmatpush.xpose.msk.msrb.mxu2 %vm2104_vm0, %v7351_v8 }
 0xeaf   : > { %v7556_v36 = vpop.permute.xlu0 %7555 }
 0xeb0   : > { %10347 = vmatmul.msk.f32.vlgmr.msrb.gmra.mxu2 %vm2104_vm0, %v14279_v0 }
 0xeb1   : > { %10354 = vmatpush.xpose.msk.msra.mxu2 %vm2104_vm0, %v7515_v37  ;;  %v16799_v37 = vld [vmem:[#allocation39_spill] sm:$0xff] }
 0xeb4   : > { %v7392_v27 = vpop.permute.xlu1 %7391 }
 0xeb5   : > { %10362 = vmatpush.xpose.msk.msrb.mxu2 %vm2104_vm0, %v7679_v35  ;;  %10348 = vmatpush.xpose.msk.msrb.mxu3 %vm2104_vm0, %v7392_v27 }
 0xeb7   : > { %v7638_v23 = vpop.permute.xlu0 %7637 }
 0xeb8   : > { %10349 = vmatmul.msk.f32.vlgmr.msrb.gmra.mxu3 %vm2104_vm0, %v14314_v14  ;;  %10355 = vmatmul.msk.f32.vlgmr.msra.gmra.mxu2 %vm2104_vm0, %v14415_v31 }
 0xeb9   : > { %10356 = vmatpush.xpose.msk.msra.mxu3 %vm2104_vm0, %v7556_v36  ;;  %v16800_v36 = vld [vmem:[#allocation40_spill] sm:$0xff] }
 0xebc   : > { %v7474_v22 = vpop.permute.xlu1 %7473 }
 0xebd   : > { %10364 = vmatpush.xpose.msk.msrb.mxu3 %vm2104_vm0, %v7720_v6  ;;  %10352 = vmatpush.xpose.msk.msra.mxu1 %vm2104_vm0, %v7474_v22  ;;  %v14948_v6 = vpop.f32.mrf.mxu0  ;;  %v16801_v22 = vld [vmem:[#allocation41_spill] sm:$0xff] }
 0xebf   : > { %v14868_v0 = vpop.permute.xlu0 %7928 }
 0xec0   : > { %v7935_v9 = vmul.f32 %v14868_v0, %v16778_v42  ;;  %10353 = vmatmul.msk.f32.vlgmr.msra.gmra.mxu1 %vm2104_vm0, %v14372_v19  ;;  %10357 = vmatmul.msk.f32.vlgmr.msra.gmra.mxu3 %vm2104_vm0, %v14462_v33  ;;  %v16779_v33 = vld [vmem:[#allocation18_spill] sm:$0xff]  ;;  %v7938_v25 = vmul.f32 %v14868_v0, %v16782_v58  ;;  %v7944_v47 = vmul.f32 %v14868_v0, %v16788_v62 }
 0xec1   : > { %10360 = vmatpush.xpose.msk.msrb.mxu1 %vm2104_vm0, %v7638_v23  ;;  %10363 = vmatmul.msk.f32.vlgmr.msrb.gmra.mxu2 %vm2104_vm0, %v14550_v7  ;;  %v16780_v7 = vld [vmem:[#allocation17_spill] sm:$0xff]  ;;  %v7947_v11 = vmul.f32 %v14868_v0, %v16791_v46  ;;  %v7950_v45 = vmul.f32 %v14868_v0, %v16794_v29  ;;  %v7953_v59 = vmul.f32 %v14868_v0, %v16797_v56  ;;  %v14946_v23 = vpop.f32.mrf.mxu1  ;;  %v16807_v29 = vld [vmem:[#allocation47_spill] sm:$0xff] }
 0xec2   : > { %7988 = vst [vmem:[#allocation1 + $0x2] ss:$4 sm:$0xff] %v7935_v9  ;;  %v7956_v27 = vmul.f32 %v14868_v0, %v16800_v36 }
 0xec4   : > { %v7597_v14 = vpop.permute.xlu1 %7596 }
 0xec5   : > { %10358 = vmatpush.xpose.msk.msra.mxu0 %vm2104_vm0, %v7597_v14  ;;  %v16802_v14 = vld [vmem:[#allocation42_spill] sm:$0xff] }
 0xec8   : > { %10359 = vmatmul.msk.f32.vlgmr.msra.gmra.mxu0 %vm2104_vm0, %v14505_v39  ;;  %10361 = vmatmul.msk.f32.vlgmr.msrb.gmra.mxu1 %vm2104_vm0, %v14527_v54  ;;  %v16781_v54 = vld [vmem:[#allocation20_spill] sm:$0xff] }
 0xec9   : > { %10365 = vmatmul.msk.f32.vlgmr.msrb.gmra.mxu3 %vm2104_vm0, %v14581_v63  ;;  %v14952_v9 = vpop.f32.mrf.mxu1 }
 0xecc   : > { %v10519_v19 = vpop.permute.xlu1 %10518 }
 0xecd   : > { %v14885_v31 = vunpack.i.h.bf16 %v10519_v19  ;;  %v14889_v18 = vunpack.i.l.bf16 %v10519_v19 }
 0xecf   : > { %v7934_v15 = vmul.f32 %v14885_v31, %v16779_v33  ;;  %v7933_v32 = vmul.f32 %v14889_v18, %v16780_v7  ;;  %v7936_v39 = vmul.f32 %v14889_v18, %v16652_v20  ;;  %v7937_v38 = vmul.f32 %v14885_v31, %v16781_v54  ;;  %v16785_v20 = vld [vmem:[#allocation25_spill] sm:$0xff] }
 0xed0   : > { %v7939_v44 = vmul.f32 %v14889_v18, %v16783_v50  ;;  %v7940_v48 = vmul.f32 %v14885_v31, %v16784_v30  ;;  %v7941_v10 = vmul.f32 %v14868_v0, %v16785_v20  ;;  %v7942_v53 = vmul.f32 %v14889_v18, %v16786_v40  ;;  %v16804_v54 = vld [vmem:[#allocation45_spill] sm:$0xff]  ;;  %v16806_v50 = vld [vmem:[#allocation46_spill] sm:$0xff]  ;;  %v14969_v30 = vpop.f32.mrf.mxu2 }
 0xed1   : > { %7986 = vst [vmem:[#allocation1 + $0x1] ss:$4 sm:$0xff] %v7934_v15  ;;  %v7943_v2 = vmul.f32 %v14885_v31, %v16787_v12  ;;  %v7945_v51 = vmul.f32 %v14889_v18, %v16789_v16  ;;  %v7946_v17 = vmul.f32 %v14885_v31, %v16790_v13  ;;  %v7948_v26 = vmul.f32 %v14889_v18, %v16792_v52  ;;  %v16803_v15 = vld [vmem:[#allocation43_spill] sm:$0xff] }
 0xed2   : > { %7984 = vst [vmem:[#allocation1] ss:$4 sm:$0xff] %v7933_v32  ;;  %v7949_v24 = vmul.f32 %v14885_v31, %v16793_v4  ;;  %v7951_v28 = vmul.f32 %v14889_v18, %v16795_v43  ;;  %v7952_v21 = vmul.f32 %v14885_v31, %v16796_v57  ;;  %v7954_v41 = vmul.f32 %v14889_v18, %v16798_v3 }
 0xed3   : > { %v7955_v8 = vmul.f32 %v14885_v31, %v16799_v37  ;;  %v7957_v42 = vmul.f32 %v14889_v18, %v16801_v22  ;;  %v7958_v19 = vmul.f32 %v14885_v31, %v16802_v14  ;;  %v7959_v7 = vmul.f32 %v14868_v0, %v16803_v15  ;;  %v16810_v22 = vld [vmem:[#allocation50_spill] sm:$0xff]  ;;  %v16811_v14 = vld [vmem:[#allocation51_spill] sm:$0xff]  ;;  %v16812_v15 = vld [vmem:[#allocation52_spill] sm:$0xff] }
 0xed9   : > { %v7989_v63 = vld.sshfl [vmem:[#allocation1] sm:$0xff pattern:$0x73625140] }
 0xeda   : > { %7990 = vrot.lane.b32.xlu2 %v7989_v63, %s10891_s27  ;;  %8020 = vst [vmem:[#allocation1] ss:$4 sm:$0xff] %v7936_v39  ;;  %v16805_v63 = vld [vmem:[#allocation44_spill] sm:$0xff] }
 0xedb   : > { %8022 = vst [vmem:[#allocation1 + $0x1] ss:$4 sm:$0xff] %v7937_v38  ;;  %v7960_v38 = vmul.f32 %v14889_v18, %v16804_v54  ;;  %v7961_v58 = vmul.f32 %v14885_v31, %v16805_v63 }
 0xedc   : > { %8024 = vst [vmem:[#allocation1 + $0x2] ss:$4 sm:$0xff] %v7938_v25 }
 0xee3   : > { %v8025_v61 = vld.sshfl [vmem:[#allocation1] sm:$0xff pattern:$0x73625140] }
 0xee4   : > { %8026 = vrot.lane.b32.xlu0 %v8025_v61, %s10891_s27  ;;  %8056 = vst [vmem:[#allocation1] ss:$4 sm:$0xff] %v7939_v44  ;;  %v14961_v39 = vpop.f32.mrf.mxu1  ;;  %v7962_v44 = vmul.f32 %v14868_v0, %v16806_v50  ;;  %v16813_v50 = vld [vmem:[#allocation53_spill] sm:$0xff] }
 0xee5   : > { %8058 = vst [vmem:[#allocation1 + $0x1] ss:$4 sm:$0xff] %v7940_v48 }
 0xee6   : > { %8060 = vst [vmem:[#allocation1 + $0x2] ss:$4 sm:$0xff] %v7941_v10 }
 0xeed   : > { %v8061_v34 = vld.sshfl [vmem:[#allocation1] sm:$0xff pattern:$0x73625140] }
 0xeee   : > { %8062 = vrot.lane.b32.xlu1 %v8061_v34, %s10891_s27  ;;  %8092 = vst [vmem:[#allocation1] ss:$4 sm:$0xff] %v7942_v53  ;;  %v14981_v53 = vpop.f32.mrf.mxu3 }
 0xeef   : > { %8094 = vst [vmem:[#allocation1 + $0x1] ss:$4 sm:$0xff] %v7943_v2 }
 0xef0   : > { %8096 = vst [vmem:[#allocation1 + $0x2] ss:$4 sm:$0xff] %v7944_v47 }
 0xef2   : > { %v14976_v20 = vpop.f32.mrf.mxu2 }
 0xef6   : > { %v14991_v47 = vpop.f32.mrf.mxu3 }
 0xef7   : > { %v8097_v49 = vld.sshfl [vmem:[#allocation1] sm:$0xff pattern:$0x73625140] }
 0xef8   : > { %8098 = vrot.lane.b32.xlu2 %v8097_v49, %s10891_s27  ;;  %8128 = vst [vmem:[#allocation1] ss:$4 sm:$0xff] %v7945_v51 }
 0xef9   : > { %8130 = vst [vmem:[#allocation1 + $0x1] ss:$4 sm:$0xff] %v7946_v17 }
 0xefa   : > { %8132 = vst [vmem:[#allocation1 + $0x2] ss:$4 sm:$0xff] %v7947_v11  ;;  %v14985_v2 = vpop.f32.mrf.mxu2 }
 0xefc   : > { %v14958_v32 = vpop.f32.mrf.mxu0 }
 0xf01   : > { %v8133_v5 = vld.sshfl [vmem:[#allocation1] sm:$0xff pattern:$0x73625140] }
 0xf02   : > { %8134 = vrot.lane.b32.xlu2 %v8133_v5, %s10891_s27  ;;  %8164 = vst [vmem:[#allocation1] ss:$4 sm:$0xff] %v7948_v26 }
 0xf03   : > { %8166 = vst [vmem:[#allocation1 + $0x1] ss:$4 sm:$0xff] %v7949_v24 }
 0xf04   : > { %8168 = vst [vmem:[#allocation1 + $0x2] ss:$4 sm:$0xff] %v7950_v45  ;;  %v14971_v48 = vpop.f32.mrf.mxu0  ;;  %v7963_v45 = vmul.f32 %v14889_v18, %v16807_v29 }
 0xf05   : > { %v7745_v49 = vsel %vm3145_vm14, %v14971_v48, -inf }
 0xf0b   : > { %v8169_v55 = vld.sshfl [vmem:[#allocation1] sm:$0xff pattern:$0x73625140] }
 0xf0c   : > { %8170 = vrot.lane.b32.xlu1 %v8169_v55, %s10891_s27  ;;  %8200 = vst [vmem:[#allocation1] ss:$4 sm:$0xff] %v7951_v28  ;;  %v16808_v28 = vld [vmem:[#allocation48_spill] sm:$0xff]  ;;  %v16809_v55 = vld [vmem:[#allocation49_spill] sm:$0xff] }
 0xf0d   : > { %8202 = vst [vmem:[#allocation1 + $0x1] ss:$4 sm:$0xff] %v7952_v21  ;;  %v7964_v57 = vmul.f32 %v14885_v31, %v16808_v28  ;;  %v7965_v56 = vmul.f32 %v14868_v0, %v16809_v55 }
 0xf0e   : > { %8204 = vst [vmem:[#allocation1 + $0x2] ss:$4 sm:$0xff] %v7953_v59 }
 0xf11   : > { %v14999_v17 = vpop.f32.mrf.mxu3 }
 0xf14   : > { %v14974_v61 = vpop.f32.mrf.mxu1 }
 0xf15   : > { %v8205_v35 = vld.sshfl [vmem:[#allocation1] sm:$0xff pattern:$0x73625140] }
 0xf16   : > { %8206 = vrot.lane.b32.xlu0 %v8205_v35, %s10891_s27  ;;  %8236 = vst [vmem:[#allocation1] ss:$4 sm:$0xff] %v7954_v41 }
 0xf17   : > { %8238 = vst [vmem:[#allocation1 + $0x1] ss:$4 sm:$0xff] %v7955_v8 }
 0xf18   : > { %8240 = vst [vmem:[#allocation1 + $0x2] ss:$4 sm:$0xff] %v7956_v27 }
 0xf19   : > { %v15013_v24 = vpop.f32.mrf.mxu3 }
 0xf1c   : > { %v14983_v12 = vpop.f32.mrf.mxu1 }
 0xf1d   : > { %v7748_v35 = vsel %vm3145_vm14, %v14983_v12, -inf }
 0xf1f   : > { %v8241_v33 = vld.sshfl [vmem:[#allocation1] sm:$0xff pattern:$0x73625140] }
 0xf20   : > { %8242 = vrot.lane.b32.xlu2 %v8241_v33, %s10891_s27  ;;  %8272 = vst [vmem:[#allocation1] ss:$4 sm:$0xff] %v7957_v42  ;;  %v14978_v10 = vpop.f32.mrf.mxu0  ;;  %v7966_v42 = vmul.f32 %v14889_v18, %v16810_v22 }
 0xf21   : > { %8274 = vst [vmem:[#allocation1 + $0x1] ss:$4 sm:$0xff] %v7958_v19  ;;  %v14995_v51 = vpop.f32.mrf.mxu2  ;;  %v7757_v43 = vsel %vm3145_vm14, %v14978_v10, -inf  ;;  %v15037_v36 = vpop.f32.mrf.mxu3  ;;  %v7967_v19 = vmul.f32 %v14885_v31, %v16811_v14 }
 0xf22   : > { %8276 = vst [vmem:[#allocation1 + $0x2] ss:$4 sm:$0xff] %v7959_v7  ;;  %v7968_v7 = vmul.f32 %v14868_v0, %v16812_v15 }
 0xf24   : > { %v14993_v16 = vpop.f32.mrf.mxu1 }
 0xf25   : > { %v7760_v13 = vsel %vm3145_vm14, %v14993_v16, -inf }
 0xf28   : > { %v14987_v34 = vpop.f32.mrf.mxu0 }
 0xf29   : > { %v8277_v25 = vld.sshfl [vmem:[#allocation1] sm:$0xff pattern:$0x73625140]  ;;  %v7769_v62 = vsel %vm3145_vm14, %v14987_v34, -inf  ;;  %v15009_v26 = vpop.f32.mrf.mxu2 }
 0xf2a   : > { %8278 = vrot.lane.b32.xlu1 %v8277_v25, %s10891_s27  ;;  %8308 = vst [vmem:[#allocation1] ss:$4 sm:$0xff] %v7960_v38  ;;  %v7751_v37 = vsel %vm3145_vm14, %v15009_v26, -inf }
 0xf2b   : > { %8310 = vst [vmem:[#allocation1 + $0x1] ss:$4 sm:$0xff] %v7961_v58 }
 0xf2c   : > { %8312 = vst [vmem:[#allocation1 + $0x2] ss:$4 sm:$0xff] %v7962_v44  ;;  %v7969_v44 = vmul.f32 %v14889_v18, %v16813_v50 }
 0xf33   : > { %v15022_v21 = vld.sshfl [vmem:[#allocation1] sm:$0xff pattern:$0x73625140]  ;;  %v15028_v3 = vpop.f32.mrf.mxu2 }
 0xf34   : > { %v7991_v40 = vpop.permute.xlu2 %7990  ;;  %8344 = vst [vmem:[#allocation1] ss:$4 sm:$0xff] %v7963_v45  ;;  %v7763_v38 = vsel %vm3145_vm14, %v15028_v3, -inf }
 0xf35   : > { %10366 = vmatpush.msk.msrb.mxu0 %vm4348_vm8, %v7991_v40  ;;  %8346 = vst [vmem:[#allocation1 + $0x1] ss:$4 sm:$0xff] %v7964_v57  ;;  %v7754_v40 = vsel %vm3145_vm14, %v15037_v36, -inf  ;;  %v16817_v57 = vld [vmem:[#allocation57_spill] sm:$0xff] }
 0xf36   : > { %8348 = vst [vmem:[#allocation1 + $0x2] ss:$4 sm:$0xff] %v7965_v56  ;;  %v7973_v55 = vmul.f32 %v14885_v31, %v16817_v57 }
 0xf3b   : > { %v15046_v54 = vpop.f32.mrf.mxu2  ;;  %v15053_v25 = vpop.f32.mrf.mxu3 }
 0xf3c   : > { %v7775_v58 = vsel %vm3145_vm14, %v15046_v54, -inf }
 0xf3d   : > { %v15005_v11 = vpop.f32.mrf.mxu1  ;;  %v8349_v33 = vld.sshfl [vmem:[#allocation1] sm:$0xff pattern:$0x73625140] }
 0xf3e   : > { %v7772_v4 = vsel %vm3145_vm14, %v15005_v11, -inf  ;;  %8380 = vst [vmem:[#allocation1] ss:$4 sm:$0xff] %v7966_v42  ;;  %v16819_v42 = vld [vmem:[#allocation61_spill] sm:$0xff] }
 0xf3f   : > { %8382 = vst [vmem:[#allocation1 + $0x1] ss:$4 sm:$0xff] %v7967_v19  ;;  %v7975_v14 = vmul.f32 %v14889_v18, %v16819_v42  ;;  %v16820_v19 = vld [vmem:[#allocation62_spill] sm:$0xff] }
 0xf40   : > { %7770 = vmax.xlane.f32.xlu0 %v7769_v62  ;;  %8384 = vst [vmem:[#allocation1 + $0x2] ss:$4 sm:$0xff] %v7968_v7  ;;  %v16814_v62 = vld [vmem:[#allocation54_spill] sm:$0xff]  ;;  %v16821_v7 = vld [vmem:[#allocation63_spill] sm:$0xff] }
 0xf43   : > { %v15068_v29 = vpop.f32.mrf.mxu3 }
 0xf44   : > { %v15070_v45 = vpop.f32.mrf.mxu2 }
 0xf45   : > { %v15003_v46 = vpop.f32.mrf.mxu0  ;;  %v15026_v59 = vpop.f32.mrf.mxu1  ;;  %v7787_v56 = vsel %vm3145_vm14, %v15070_v45, -inf }
 0xf46   : > { %v7781_v52 = vsel %vm3145_vm14, %v15003_v46, -inf  ;;  %v7784_v8 = vsel %vm3145_vm14, %v15026_v59, -inf }
 0xf48   : > { %7761 = vmax.xlane.f32.xlu0 %v7760_v13  ;;  %v7970_v13 = vmul.f32 %v14885_v31, %v16814_v62 }
 0xf49   : > { %7746 = vmax.xlane.f32.xlu2 %v7745_v49  ;;  %v15061_v49 = vld.sshfl [vmem:[#allocation1] sm:$0xff pattern:$0x73625140] }
 0xf4a   : > { %8416 = vst [vmem:[#allocation1] ss:$4 sm:$0xff] %v7969_v44  ;;  %v16823_v44 = vld [vmem:[#allocation66_spill] sm:$0xff] }
 0xf4b   : > { %8418 = vst [vmem:[#allocation1 + $0x1] ss:$4 sm:$0xff] %v7970_v13  ;;  %v16824_v13 = vld [vmem:[#allocation67_spill] sm:$0xff] }
 0xf50   : > { %7782 = vmax.xlane.f32.xlu0 %v7781_v52  ;;  %v16815_v52 = vld [vmem:[#allocation55_spill] sm:$0xff] }
 0xf51   : > { %7773 = vmax.xlane.f32.xlu2 %v7772_v4  ;;  %v7971_v4 = vmul.f32 %v14868_v0, %v16815_v52  ;;  %v7980_v52 = vmul.f32 %v14868_v0, %v16824_v13 }
 0xf52   : > { %v8099_v5 = vpop.permute.xlu2 %8098 }
 0xf53   : > { %10372 = vmatpush.msk.msra.mxu3 %vm4348_vm8, %v8099_v5  ;;  %v7766_v5 = vsel %vm3145_vm14, %v15053_v25, -inf  ;;  %8420 = vst [vmem:[#allocation1 + $0x2] ss:$4 sm:$0xff] %v7971_v4 }
 0xf54   : > { %7758 = vmax.xlane.f32.xlu1 %v7757_v43  ;;  %v16816_v43 = vld [vmem:[#allocation58_spill] sm:$0xff] }
 0xf55   : > { %v7972_v28 = vmul.f32 %v14889_v18, %v16816_v43 }
 0xf56   : > { %v8027_v41 = vpop.permute.xlu0 %8026 }
 0xf57   : > { %10368 = vmatpush.msk.msra.mxu1 %vm4348_vm8, %v8027_v41 }
 0xf58   : > { %7752 = vmax.xlane.f32.xlu0 %v7751_v37  ;;  %v16818_v37 = vld [vmem:[#allocation59_spill] sm:$0xff] }
 0xf59   : > { %7785 = vmax.xlane.f32.xlu2 %v7784_v8  ;;  %v7974_v8 = vmul.f32 %v14868_v0, %v16818_v37 }
 0xf5a   : > { %v15078_v41 = vld.sshfl [vmem:[#allocation1] sm:$0xff pattern:$0x73625140] }
 0xf5b   : > { %8452 = vst [vmem:[#allocation1] ss:$4 sm:$0xff] %v7972_v28 }
 0xf5c   : > { %7749 = vmax.xlane.f32.xlu1 %v7748_v35  ;;  %v8135_v27 = vpop.permute.xlu2 %8134  ;;  %8454 = vst [vmem:[#allocation1 + $0x1] ss:$4 sm:$0xff] %v7973_v55  ;;  %v15082_v35 = vpop.f32.mrf.mxu3 }
 0xf5d   : > { %10374 = vmatpush.msk.msra.mxu0 %vm4348_vm8, %v8135_v27  ;;  %8456 = vst [vmem:[#allocation1 + $0x2] ss:$4 sm:$0xff] %v7974_v8  ;;  %v7790_v22 = vsel %vm3145_vm14, %v15082_v35, -inf }
 0xf60   : > { %v8063_v63 = vpop.permute.xlu1 %8062 }
 0xf61   : > { %7764 = vmax.xlane.f32.xlu2 %v7763_v38  ;;  %10370 = vmatpush.msk.msra.mxu2 %vm4348_vm8, %v8063_v63  ;;  %v7977_v38 = vmul.f32 %v14868_v0, %v16821_v7 }
 0xf64   : > { %7776 = vmax.xlane.f32.xlu1 %v7775_v58  ;;  %v15091_v15 = vld.sshfl [vmem:[#allocation1] sm:$0xff pattern:$0x73625140] }
 0xf65   : > { %8488 = vst [vmem:[#allocation1] ss:$4 sm:$0xff] %v7975_v14  ;;  %v16822_v58 = vld [vmem:[#allocation65_spill] sm:$0xff] }
 0xf66   : > { %8492 = vst [vmem:[#allocation1 + $0x2] ss:$4 sm:$0xff] %v7977_v38  ;;  %v7978_v50 = vmul.f32 %v14889_v18, %v16822_v58 }
 0xf69   : > { %7755 = vmax.xlane.f32.xlu2 %v7754_v40  ;;  %v7979_v40 = vmul.f32 %v14885_v31, %v16823_v44 }
 0xf6c   : > { %7767 = vmax.xlane.f32.xlu1 %v7766_v5  ;;  %8350 = vrot.lane.b32.xlu0 %v8349_v33, %s10891_s27  ;;  %v7976_v33 = vmul.f32 %v14885_v31, %v16820_v19 }
 0xf6e   : > { %8490 = vst [vmem:[#allocation1 + $0x1] ss:$4 sm:$0xff] %v7976_v33 }
 0xf74   : > { %7788 = vmax.xlane.f32.xlu1 %v7787_v56 }
 0xf75   : > { %v15102_v62 = vld.sshfl [vmem:[#allocation1] sm:$0xff pattern:$0x73625140] }
 0xf76   : > { %8524 = vst [vmem:[#allocation1] ss:$4 sm:$0xff] %v7978_v50 }
 0xf77   : > { %8526 = vst [vmem:[#allocation1 + $0x1] ss:$4 sm:$0xff] %v7979_v40 }
 0xf78   : > { %8528 = vst [vmem:[#allocation1 + $0x2] ss:$4 sm:$0xff] %v7980_v52 }
 0xf7a   : > { %v8243_v27 = vpop.permute.xlu2 %8242 }
 0xf7b   : > { %10380 = vmatpush.msk.msrb.mxu3 %vm4348_vm8, %v8243_v27 }
 0xf7c   : > { %7791 = vmax.xlane.f32.xlu1 %v7790_v22 }
 0xf7e   : > { %v8171_v63 = vpop.permute.xlu1 %8170 }
 0xf7f   : > { %10376 = vmatpush.msk.msrb.mxu1 %vm4348_vm8, %v8171_v63 }
 0xf81   : > { %8314 = vrot.lane.b32.xlu2 %v15022_v21, %s10891_s27  ;;  %v7778_v21 = vsel %vm3145_vm14, %v15068_v29, -inf }
 0xf88   : > { %v8207_v4 = vpop.permute.xlu0 %8206 }
 0xf89   : > { %10378 = vmatpush.msk.msrb.mxu2 %vm4348_vm8, %v8207_v4 }
 0xf96   : > { %7779 = vmax.xlane.f32.xlu0 %v7778_v21 }
 0xf9c   : > { %v15113_v55 = vpop.permute.xlu1 %8278 }
 0xfb3   : > { %v7771_v5 = vpop.xlane.xlu0 %7770 }
 0xfb4   : > { %v7801_v18 = vsub.f32 %v14987_v34, %v7771_v5 }
 0xfb6   : > { %v7825_v43 = vmul.f32 1.442695, %v7801_v18 }
 0xfb8   : > { %10771 = vpow2.f32 %v7825_v43 }
 0xfbb   : > { %v7762_v31 = vpop.xlane.xlu0 %7761 }
 0xfbc   : > { %v7747_v28 = vpop.xlane.xlu2 %7746 }
 0xfbd   : > { %v7793_v57 = vsub.f32 %v14971_v48, %v7747_v28 }
 0xfbe   : > { %v15111_v0 = vpop.eup %10771 }
 0xfbf   : > { %v7809_v56 = vmul.f32 1.442695, %v7793_v57  ;;  %v7865_v37 = vsel %vm3145_vm14, %v15111_v0, 0.0 }
 0xfc0   : > { %7866 = vadd.xlane.f32.xlu1 %v7865_v37 }
 0xfc1   : > { %10773 = vpow2.f32 %v7809_v56 }
 0xfc3   : > { %v7783_v8 = vpop.xlane.xlu0 %7782 }
 0xfc4   : > { %v7774_v27 = vpop.xlane.xlu2 %7773  ;;  %v7805_v43 = vsub.f32 %v15003_v46, %v7783_v8 }
 0xfc5   : > { %v7802_v14 = vsub.f32 %v15005_v11, %v7774_v27 }
 0xfc6   : > { %v7833_v56 = vmul.f32 1.442695, %v7805_v43 }
 0xfc7   : > { %v15117_v22 = vpop.eup %10773  ;;  %v7759_v34 = vpop.xlane.xlu1 %7758  ;;  %v7827_v63 = vmul.f32 1.442695, %v7802_v14 }
 0xfc8   : > { %v7797_v42 = vsub.f32 %v14978_v10, %v7759_v34  ;;  %v7841_v48 = vsel %vm3145_vm14, %v15117_v22, 0.0  ;;  %v7798_v10 = vsub.f32 %v14993_v16, %v7762_v31 }
 0xfc9   : > { %7842 = vadd.xlane.f32.xlu0 %v7841_v48 }
 0xfca   : > { %v7817_v19 = vmul.f32 1.442695, %v7797_v42  ;;  %v7819_v21 = vmul.f32 1.442695, %v7798_v10 }
 0xfcb   : > { %v7753_v33 = vpop.xlane.xlu0 %7752 }
 0xfcc   : > { %10775 = vpow2.f32 %v7817_v19  ;;  %v7786_v7 = vpop.xlane.xlu2 %7785  ;;  %v7795_v38 = vsub.f32 %v15009_v26, %v7753_v33 }
 0xfce   : > { %v7813_v58 = vmul.f32 1.442695, %v7795_v38 }
 0xfcf   : > { %v7750_v50 = vpop.xlane.xlu1 %7749 }
 0xfd0   : > { %v7794_v44 = vsub.f32 %v14983_v12, %v7750_v50  ;;  %10777 = vpow2.f32 %v7813_v58 }
 0xfd1   : > { %10779 = vpow2.f32 %v7827_v63 }
 0xfd2   : > { %v15125_v40 = vpop.eup %10775  ;;  %v7811_v13 = vmul.f32 1.442695, %v7794_v44 }
 0xfd3   : > { %v7853_v11 = vsel %vm3145_vm14, %v15125_v40, 0.0 }
 0xfd4   : > { %10781 = vpow2.f32 %v7811_v13  ;;  %7854 = vadd.xlane.f32.xlu0 %v7853_v11  ;;  %v7765_v52 = vpop.xlane.xlu2 %7764 }
 0xfd5   : > { %v7799_v26 = vsub.f32 %v15028_v3, %v7765_v52  ;;  %v7806_v3 = vsub.f32 %v15026_v59, %v7786_v7 }
 0xfd6   : > { %v15131_v4 = vpop.eup %10777 }
 0xfd7   : > { %v7821_v5 = vmul.f32 1.442695, %v7799_v26  ;;  %v15133_v12 = vpop.xlane.xlu1 %7776  ;;  %v7847_v18 = vsel %vm3145_vm14, %v15131_v4, 0.0  ;;  %v15137_v16 = vpop.eup %10779  ;;  %v7835_v46 = vmul.f32 1.442695, %v7806_v3 }
 0xfd8   : > { %7848 = vadd.xlane.f32.xlu1 %v7847_v18  ;;  %v7868_v57 = vsel %vm3145_vm14, %v15137_v16, 0.0 }
 0xfd9   : > { %10783 = vpow2.f32 %v7821_v5 }
 0xfda   : > { %v15140_v31 = vpop.eup %10781  ;;  %10785 = vpow2.f32 %v7819_v21 }
 0xfdb   : > { %v7844_v28 = vsel %vm3145_vm14, %v15140_v31, 0.0  ;;  %10787 = vpow2.f32 %v7833_v56 }
 0xfdc   : > { %7845 = vadd.xlane.f32.xlu2 %v7844_v28  ;;  %7869 = vadd.xlane.f32.xlu0 %v7868_v57  ;;  %v7756_v37 = vpop.xlane.xlu2 %7755  ;;  %v7803_v28 = vsub.f32 %v15046_v54, %v15133_v12 }
 0xfdd   : > { %v7796_v27 = vsub.f32 %v15037_v36, %v7756_v37 }
 0xfde   : > { %v8351_v13 = vpop.permute.xlu0 %8350  ;;  %v7829_v57 = vmul.f32 1.442695, %v7803_v28 }
 0xfdf   : > { %v15148_v8 = vpop.eup %10783  ;;  %v7815_v34 = vmul.f32 1.442695, %v7796_v27  ;;  %v7768_v42 = vpop.xlane.xlu1 %7767 }
 0xfe0   : > { %v15150_v48 = vpop.eup %10785  ;;  %v7859_v59 = vsel %vm3145_vm14, %v15148_v8, 0.0  ;;  %v7800_v14 = vsub.f32 %v15053_v25, %v7768_v42  ;;  %v8529_v42 = vld.sshfl [vmem:[#allocation1] sm:$0xff pattern:$0x73625140] }
 0xfe1   : > { %10789 = vpow2.f32 %v7815_v34  ;;  %v7856_v19 = vsel %vm3145_vm14, %v15150_v48, 0.0  ;;  %v15157_v36 = vpop.eup %10787 }
 0xfe2   : > { %10791 = vpow2.f32 %v7835_v46  ;;  %v7823_v33 = vmul.f32 1.442695, %v7800_v14  ;;  %v7877_v25 = vsel %vm3145_vm14, %v15157_v36, 0.0 }
 0xfe4   : > { %7857 = vadd.xlane.f32.xlu2 %v7856_v19  ;;  %7860 = vadd.xlane.f32.xlu0 %v7859_v59  ;;  %10793 = vpow2.f32 %v7823_v33  ;;  %v8315_v59 = vpop.permute.xlu2 %8314 }
 0xfe7   : > { %v15159_v7 = vpop.eup %10789  ;;  %v7789_v10 = vpop.xlane.xlu1 %7788 }
 0xfe8   : > { %v15161_v38 = vpop.eup %10791  ;;  %v7850_v63 = vsel %vm3145_vm14, %v15159_v7, 0.0 }
 0xfe9   : > { %7851 = vadd.xlane.f32.xlu1 %v7850_v63  ;;  %v7880_v58 = vsel %vm3145_vm14, %v15161_v38, 0.0 }
 0xfea   : > { %v15169_v50 = vpop.eup %10793 }
 0xfeb   : > { %v7862_v44 = vsel %vm3145_vm14, %v15169_v50, 0.0 }
 0xfec   : > { %7878 = vadd.xlane.f32.xlu2 %v7877_v25  ;;  %7881 = vadd.xlane.f32.xlu0 %v7880_v58 }
 0xfef   : > { %v7792_v11 = vpop.xlane.xlu1 %7791 }
 0xff0   : > { %v7808_v21 = vsub.f32 %v15082_v35, %v7792_v11 }
 0xff2   : > { %v7839_v18 = vmul.f32 1.442695, %v7808_v21 }
 0xff4   : > { %7863 = vadd.xlane.f32.xlu0 %v7862_v44 }
0x1002   : > { %8386 = vrot.lane.b32.xlu1 %v15061_v49, %s10891_s27 }
0x1004   : > { %8422 = vrot.lane.b32.xlu2 %v15078_v41, %s10891_s27  ;;  %v7807_v41 = vsub.f32 %v15070_v45, %v7789_v10 }
0x1006   : > { %v7837_v35 = vmul.f32 1.442695, %v7807_v41 }
0x1009   : > { %v7780_v52 = vpop.xlane.xlu0 %7779 }
0x100a   : > { %v7804_v26 = vsub.f32 %v15068_v29, %v7780_v52 }
0x100c   : > { %v7831_v5 = vmul.f32 1.442695, %v7804_v26 }
0x100e   : > { %10795 = vpow2.f32 %v7831_v5 }
0x100f   : > { %10797 = vpow2.f32 %v7839_v18 }
0x1010   : > { %10799 = vpow2.f32 %v7837_v35 }
0x1011   : > { %10801 = vpow2.f32 %v7829_v57 }
0x1014   : > { %v15179_v43 = vpop.eup %10795 }
0x1015   : > { %v7874_v3 = vsel %vm3145_vm14, %v15179_v43, 0.0  ;;  %v15183_v49 = vpop.eup %10797 }
0x1016   : > { %7875 = vadd.xlane.f32.xlu0 %v7874_v3  ;;  %v7886_v29 = vsel %vm3145_vm14, %v15183_v49, 0.0  ;;  %v15190_v56 = vpop.eup %10799 }
0x1017   : > { %v15192_v37 = vpop.eup %10801  ;;  %v7883_v27 = vsel %vm3145_vm14, %v15190_v56, 0.0 }
0x1018   : > { %v7871_v45 = vsel %vm3145_vm14, %v15192_v37, 0.0 }
0x101e   : > { %7887 = vadd.xlane.f32.xlu0 %v7886_v29 }
0x102c   : > { %7884 = vadd.xlane.f32.xlu1 %v7883_v27 }
0x102d   : > { %7872 = vadd.xlane.f32.xlu2 %v7871_v45 }
0x1032   : > { %8494 = vrot.lane.b32.xlu0 %v15102_v62, %s10891_s27 }
0x1033   : > { %v7867_v46 = vpop.xlane.xlu1 %7866 }
0x103c   : > { %v7843_v54 = vpop.xlane.xlu0 %7842 }
0x103d   : > { %10803 = vrcp.f32 %v7843_v54 }
0x1043   : > { %v10804_v12 = vpop.eup %10803 }
0x1044   : > { %v7905_v34 = vmul.f32 %v10804_v12, %v15117_v22 }
0x1045   : > { %8530 = vrot.lane.b32.xlu2 %v8529_v42, %s10891_s27  ;;  %8458 = vrot.lane.b32.xlu1 %v15091_v15, %s10891_s27 }
0x1046   : > { %10367 = vmatmul.msk.f32.vlgmr.msrb.gmra.mxu0 %vm4344_vm1, %v7905_v34 }
0x1047   : > { %v7855_v14 = vpop.xlane.xlu0 %7854  ;;  %10382 = vmatpush.msk.msrb.mxu0 %vm4348_vm8, %v15113_v55 }
0x1048   : > { %10805 = vrcp.f32 %v7855_v14 }
0x104b   : > { %v7849_v62 = vpop.xlane.xlu1 %7848 }
0x104c   : > { %10807 = vrcp.f32 %v7849_v62 }
0x104d   : > { %10809 = vrcp.f32 %v7867_v46 }
0x104e   : > { %v10806_v19 = vpop.eup %10805 }
0x104f   : > { %v7909_v22 = vmul.f32 %v10806_v19, %v15125_v40  ;;  %v7846_v33 = vpop.xlane.xlu2 %7845  ;;  %v7870_v63 = vpop.xlane.xlu0 %7869 }
0x1050   : > { %10811 = vrcp.f32 %v7846_v33 }
0x1051   : > { %10375 = vmatmul.msk.f32.vlgmr.msra.gmra.mxu0 %vm4344_vm1, %v7909_v22 }
0x1052   : > { %v10808_v15 = vpop.eup %10807 }
0x1053   : > { %v7907_v25 = vmul.f32 %v10808_v15, %v15131_v4  ;;  %v10810_v58 = vpop.eup %10809 }
0x1054   : > { %v7913_v55 = vmul.f32 %v10810_v58, %v15111_v0 }
0x1055   : > { %10371 = vmatmul.msk.f32.vlgmr.msra.gmra.mxu2 %vm4344_vm1, %v7907_v25 }
0x1056   : > { %v10812_v44 = vpop.eup %10811  ;;  %10386 = vmatpush.msk.msra.mxu2 %vm4348_vm8, %v8351_v13 }
0x1057   : > { %v7906_v10 = vmul.f32 %v10812_v44, %v15140_v31  ;;  %v7858_v11 = vpop.xlane.xlu2 %7857  ;;  %v7861_v40 = vpop.xlane.xlu0 %7860 }
0x1058   : > { %10813 = vrcp.f32 %v7858_v11 }
0x1059   : > { %10815 = vrcp.f32 %v7861_v40  ;;  %10369 = vmatmul.msk.f32.vlgmr.msra.gmra.mxu1 %vm4344_vm1, %v7906_v10  ;;  %10383 = vmatmul.msk.f32.vlgmr.msrb.gmra.mxu0 %vm4344_vm1, %v7913_v55  ;;  %v16828_v10 = vld [vmem:[#allocation56_spill] sm:$0xff] }
0x105a   : > { %10384 = vmatpush.msk.msra.mxu1 %vm4348_vm8, %v8315_v59 }
0x105c   : > { %v7852_v4 = vpop.xlane.xlu1 %7851 }
0x105d   : > { %10817 = vrcp.f32 %v7852_v4  ;;  %v16829_v4 = vld [vmem:[#allocation76_spill] sm:$0xff] }
0x105e   : > { %v10814_v52 = vpop.eup %10813  ;;  %10819 = vrcp.f32 %v7870_v63 }
0x105f   : > { %v10816_v26 = vpop.eup %10815  ;;  %v7910_v13 = vmul.f32 %v10814_v52, %v15150_v48  ;;  %v7879_v0 = vpop.xlane.xlu2 %7878  ;;  %v16830_v52 = vld [vmem:[#allocation113_spill] sm:$0xff] }
0x1060   : > { %v7882_v21 = vpop.xlane.xlu0 %7881  ;;  %v7911_v31 = vmul.f32 %v10816_v26, %v15148_v8  ;;  %10821 = vrcp.f32 %v7879_v0 }
0x1061   : > { %10377 = vmatmul.msk.f32.vlgmr.msrb.gmra.mxu1 %vm4344_vm1, %v7910_v13 }
0x1062   : > { %10379 = vmatmul.msk.f32.vlgmr.msrb.gmra.mxu2 %vm4344_vm1, %v7911_v31 }
0x1063   : > { %v10818_v5 = vpop.eup %10817 }
0x1064   : > { %v10820_v18 = vpop.eup %10819  ;;  %v7908_v3 = vmul.f32 %v10818_v5, %v15159_v7 }
0x1065   : > { %v7914_v28 = vmul.f32 %v10820_v18, %v15137_v16 }
0x1066   : > { %v10822_v41 = vpop.eup %10821  ;;  %10373 = vmatmul.msk.f32.vlgmr.msra.gmra.mxu3 %vm4344_vm1, %v7908_v3 }
0x1067   : > { %v7917_v48 = vmul.f32 %v10822_v41, %v15157_v36  ;;  %v8423_v35 = vpop.permute.xlu2 %8422  ;;  %v16831_v41 = vld [vmem:[#allocation107_spill] sm:$0xff] }
0x1068   : > { %v7864_v29 = vpop.xlane.xlu0 %7863  ;;  %10390 = vmatpush.msk.msra.mxu0 %vm4348_vm8, %v8423_v35 }
0x1069   : > { %10823 = vrcp.f32 %v7864_v29  ;;  %10385 = vmatmul.msk.f32.vlgmr.msra.gmra.mxu1 %vm4344_vm1, %v7914_v28  ;;  %10391 = vmatmul.msk.f32.vlgmr.msra.gmra.mxu0 %vm4344_vm1, %v7917_v48  ;;  %v16832_v28 = vld [vmem:[#allocation131_spill] sm:$0xff] }
0x106a   : > { %v5089_v48 = vadd.f32 %v16832_v28, %v16831_v41 }
0x106c   : > { %v7018_v35 = vadd.f32 %v14937_v1, %v5089_v48  ;;  %v16838_v1 = vld [vmem:[#allocation94_spill] sm:$0xff] }
0x106f   : > { %v10824_v8 = vpop.eup %10823 }
0x1070   : > { %v7912_v57 = vmul.f32 %v10824_v8, %v15169_v50 }
0x1072   : > { %10381 = vmatmul.msk.f32.vlgmr.msrb.gmra.mxu3 %vm4344_vm1, %v7912_v57 }
0x1074   : > { %v8387_v7 = vpop.permute.xlu1 %8386 }
0x1075   : > { %10388 = vmatpush.msk.msra.mxu3 %vm4348_vm8, %v8387_v7  ;;  %v16834_v7 = vld [vmem:[#allocation77_spill] sm:$0xff] }
0x1089   : > { %v7876_v16 = vpop.xlane.xlu0 %7875 }
0x108a   : > { %10825 = vrcp.f32 %v7876_v16 }
0x1090   : > { %v10826_v36 = vpop.eup %10825 }
0x1091   : > { %v7916_v27 = vmul.f32 %v10826_v36, %v15179_v43  ;;  %v7888_v45 = vpop.xlane.xlu0 %7887 }
0x1092   : > { %10827 = vrcp.f32 %v7888_v45 }
0x1093   : > { %10389 = vmatmul.msk.f32.vlgmr.msra.gmra.mxu3 %vm4344_vm1, %v7916_v27 }
0x1098   : > { %v10828_v34 = vpop.eup %10827 }
0x1099   : > { %v7920_v42 = vmul.f32 %v10828_v34, %v15183_v49  ;;  %v16825_v49 = vld [vmem:[#allocation128_spill] sm:$0xff] }
0x109f   : > { %v7885_v12 = vpop.xlane.xlu1 %7884 }
0x10a0   : > { %v7873_v54 = vpop.xlane.xlu2 %7872 }
0x10a1   : > { %10829 = vrcp.f32 %v7873_v54 }
0x10a2   : > { %10831 = vrcp.f32 %v7885_v12  ;;  %v16835_v12 = vld [vmem:[#allocation70_spill] sm:$0xff] }
0x10a3   : > { %10833 = vrcp.f32 %v7882_v21 }
0x10a4   : > { %v8495_v46 = vpop.permute.xlu0 %8494 }
0x10a5   : > { %10394 = vmatpush.msk.msrb.mxu2 %vm4348_vm8, %v8495_v46  ;;  %v16836_v46 = vld [vmem:[#allocation133_spill] sm:$0xff] }
0x10a6   : > { %v5053_v34 = vadd.f32 %v16836_v46, %v16835_v12  ;;  %v16848_v12 = vld [vmem:[#allocation103_spill] sm:$0xff] }
0x10a7   : > { %v10830_v50 = vpop.eup %10829 }
0x10a8   : > { %v7915_v59 = vmul.f32 %v10830_v50, %v15192_v37  ;;  %v8531_v14 = vpop.permute.xlu2 %8530  ;;  %v10832_v43 = vpop.eup %10831  ;;  %v16826_v37 = vld [vmem:[#allocation122_spill] sm:$0xff] }
0x10a9   : > { %10396 = vmatpush.msk.msrb.mxu3 %vm4348_vm8, %v8531_v14  ;;  %v7919_v62 = vmul.f32 %v10832_v43, %v15190_v56  ;;  %v10834_v19 = vpop.eup %10833  ;;  %v4945_v63 = vadd.f32 %v16826_v37, %v16825_v49  ;;  %v16827_v56 = vld [vmem:[#allocation86_spill] sm:$0xff]  ;;  %v7017_v43 = vadd.f32 %v14981_v53, %v5053_v34 }
0x10aa   : > { %10387 = vmatmul.msk.f32.vlgmr.msra.gmra.mxu2 %vm4344_vm1, %v7915_v59  ;;  %10397 = vmatmul.msk.f32.vlgmr.msrb.gmra.mxu3 %vm4344_vm1, %v7920_v42  ;;  %v7918_v22 = vmul.f32 %v10834_v19, %v15161_v38  ;;  %v8621_v38 = vld [vmem:[%s16120_s10] sm:$0xff]  ;;  %v4981_v11 = vadd.f32 %v16828_v10, %v16827_v56  ;;  %v16837_v42 = vld [vmem:[#allocation87_spill] sm:$0xff] }
0x10ab   : > { %v7014_v15 = vadd.f32 %v14928_v60, %v4945_v63  ;;  %8732 = vmatpush.msrb.mxu0 %v8621_v38  ;;  %v5017_v60 = vadd.f32 %v16830_v52, %v16829_v4  ;;  %v5161_v59 = vadd.f32 %v16838_v1, %v16837_v42  ;;  %v16842_v4 = vld [vmem:[#allocation138_spill] sm:$0xff]  ;;  %v16849_v1 = vld [vmem:[#allocation127_spill] sm:$0xff] }
0x10ac   : > { %v7015_v40 = vadd.f32 %v14946_v23, %v4981_v11 }
0x10ad   : > { %v7016_v0 = vadd.f32 %v14969_v30, %v5017_v60  ;;  %v16833_v30 = vld [vmem:[#allocation79_spill] sm:$0xff]  ;;  %v7020_v19 = vadd.f32 %v14976_v20, %v5161_v59 }
0x10ae   : > { %v5125_v16 = vadd.f32 %v16834_v7, %v16833_v30  ;;  %v16850_v59 = vld [vmem:[#allocation75_spill] sm:$0xff] }
0x10b0   : > { %v7019_v27 = vadd.f32 %v14952_v9, %v5125_v16 }
0x10b2   : > { %10395 = vmatmul.msk.f32.vlgmr.msrb.gmra.mxu2 %vm4344_vm1, %v7919_v62 }
0x10b7   : > { %v8459_v33 = vpop.permute.xlu1 %8458 }
0x10b8   : > { %10392 = vmatpush.msk.msrb.mxu1 %vm4348_vm8, %v8459_v33 }
0x10b9   : > { %10393 = vmatmul.msk.f32.vlgmr.msrb.gmra.mxu1 %vm4344_vm1, %v7918_v22 }
0x10c3   : > { %v8014_v25 = vpop.f32.mrf.mxu0 }
0x10c4   : > { %v8557_v58 = vadd.f32 %v8014_v25, %v7014_v15  ;;  %v16839_v25 = vld [vmem:[#allocation89_spill] sm:$0xff] }
0x10c6   : > { %v8589_v44 = vrot.slane %v8557_v58, 2  ;;  %v8590_v55 = vrot.slane %v8557_v58, 4  ;;  %8626 = vst [vmem:[#allocation1] ss:$4 sm:$0xff] %v8557_v58  ;;  %v16840_v58 = vld [vmem:[#allocation137_spill] sm:$0xff] }
0x10c7   : > { %v5197_v53 = vadd.f32 %v16840_v58, %v16839_v25 }
0x10c8   : > { %8628 = vst [vmem:[#allocation1 + $0x1] ss:$4 sm:$0xff] %v8589_v44 }
0x10c9   : > { %8630 = vst [vmem:[#allocation1 + $0x2] ss:$4 sm:$0xff] %v8590_v55  ;;  %v7021_v44 = vadd.f32 %v14991_v47, %v5197_v53 }
0x10ce   : > { %v8158_v23 = vpop.f32.mrf.mxu0 }
0x10cf   : > { %v8561_v57 = vadd.f32 %v8158_v23, %v7018_v35 }
0x10d1   : > { %v8597_v45 = vrot.slane %v8561_v57, 2  ;;  %v8598_v50 = vrot.slane %v8561_v57, 4 }
0x10d6   : > { %v8050_v26 = vpop.f32.mrf.mxu1 }
0x10d7   : > { %v8558_v13 = vadd.f32 %v8050_v26, %v7015_v40  ;;  %v16841_v40 = vld [vmem:[#allocation60_spill] sm:$0xff] }
0x10d8   : > { %v8086_v21 = vpop.f32.mrf.mxu2  ;;  %v5269_v52 = vadd.f32 %v16842_v4, %v16841_v40  ;;  %v16856_v40 = vld [vmem:[#allocation71_spill] sm:$0xff] }
0x10d9   : > { %v8591_v31 = vrot.slane %v8558_v13, 2  ;;  %v8592_v5 = vrot.slane %v8558_v13, 4  ;;  %8632 = vst [vmem:[#allocation1 + $0x3] ss:$4 sm:$0xff] %v8558_v13  ;;  %v8559_v18 = vadd.f32 %v8086_v21, %v7016_v0  ;;  %v16843_v0 = vld [vmem:[#allocation119_spill] sm:$0xff]  ;;  %v16844_v21 = vld [vmem:[#allocation21_spill] sm:$0xff] }
0x10da   : > { %v7023_v13 = vadd.f32 %v14961_v39, %v5269_v52 }
0x10db   : > { %8634 = vst [vmem:[#allocation1 + $0x20] ss:$4 sm:$0xff] %v8591_v31  ;;  %v8593_v3 = vrot.slane %v8559_v18, 2  ;;  %v8594_v29 = vrot.slane %v8559_v18, 4  ;;  %v5233_v31 = vadd.f32 %v16844_v21, %v16843_v0 }
0x10dc   : > { %8636 = vst [vmem:[#allocation1 + $0x21] ss:$4 sm:$0xff] %v8592_v5 }
0x10dd   : > { %8638 = vst [vmem:[#allocation1 + $0x22] ss:$4 sm:$0xff] %v8559_v18  ;;  %v8302_v18 = vpop.f32.mrf.mxu0 }
0x10de   : > { %8640 = vst [vmem:[#allocation1 + $0x23] ss:$4 sm:$0xff] %v8593_v3  ;;  %v8194_v36 = vpop.f32.mrf.mxu1  ;;  %v7022_v3 = vadd.f32 %v14948_v6, %v5233_v31  ;;  %v16845_v6 = vld [vmem:[#allocation74_spill] sm:$0xff] }
0x10df   : > { %v8562_v14 = vadd.f32 %v8194_v36, %v7019_v27 }
0x10e0   : > { %v8641_v8 = vld.sshfl [vmem:[#allocation1] sm:$0xff pattern:$0x73625140]  ;;  %v8565_v41 = vadd.f32 %v8302_v18, %v7022_v3 }
0x10e1   : > { %10398 = vmatmul.msk.f32.vlgmr.msrb.gmra.mxu0 %vm2104_vm0, %v8641_v8  ;;  %8643 = vst [vmem:[#allocation1] ss:$4 sm:$0xff] %v8594_v29  ;;  %v8599_v38 = vrot.slane %v8562_v14, 2  ;;  %v8600_v60 = vrot.slane %v8562_v14, 4  ;;  %v16846_v8 = vld [vmem:[#allocation139_spill] sm:$0xff] }
0x10e2   : > { %v8605_v39 = vrot.slane %v8565_v41, 2  ;;  %v8606_v35 = vrot.slane %v8565_v41, 4 }
0x10e5   : > { %v8642_v54 = vld.sshfl [vmem:[#allocation1 + $0x20] sm:$0xff pattern:$0x73625140]  ;;  %v8230_v62 = vpop.f32.mrf.mxu2 }
0x10e6   : > { %8647 = vst [vmem:[#allocation1 + $0x20] ss:$4 sm:$0xff] %v8561_v57  ;;  %v8563_v33 = vadd.f32 %v8230_v62, %v7020_v19  ;;  %v8338_v26 = vpop.f32.mrf.mxu1  ;;  %v5341_v57 = vadd.f32 %v16846_v8, %v16845_v6  ;;  %v8446_v62 = vpop.f32.mrf.mxu0 }
0x10e7   : > { %8648 = vst [vmem:[#allocation1 + $0x21] ss:$4 sm:$0xff] %v8597_v45  ;;  %v8566_v5 = vadd.f32 %v8338_v26, %v7023_v13 }
0x10e8   : > { %8649 = vst [vmem:[#allocation1 + $0x22] ss:$4 sm:$0xff] %v8598_v50  ;;  %v8602_v63 = vrot.slane %v8563_v33, 4  ;;  %v8601_v47 = vrot.slane %v8563_v33, 2  ;;  %v7025_v30 = vadd.f32 %v14999_v17, %v5341_v57  ;;  %v5377_v17 = vadd.f32 %v16850_v59, %v16849_v1 }
0x10e9   : > { %8650 = vst [vmem:[#allocation1 + $0x23] ss:$4 sm:$0xff] %v8562_v14  ;;  %v8122_v9 = vpop.f32.mrf.mxu3  ;;  %10399 = vmatmul.msk.f32.gmra.mxu0 %vm2104_vm0, %v8642_v54  ;;  %v8608_v28 = vrot.slane %v8566_v5, 4  ;;  %v8607_v48 = vrot.slane %v8566_v5, 2  ;;  %v16847_v54 = vld [vmem:[#allocation78_spill] sm:$0xff] }
0x10ea   : > { %v8560_v22 = vadd.f32 %v8122_v9, %v7017_v43  ;;  %v5305_v46 = vadd.f32 %v16848_v12, %v16847_v54  ;;  %v7026_v19 = vadd.f32 %v14958_v32, %v5377_v17  ;;  %v16851_v9 = vld [vmem:[#allocation132_spill] sm:$0xff]  ;;  %v16860_v54 = vld [vmem:[#allocation6_spill] sm:$0xff] }
0x10eb   : > { %v16861_v12 = vmax.f32 %v16860_v54, 0.0 }
0x10ec   : > { %v8595_v49 = vrot.slane %v8560_v22, 2  ;;  %v8596_v37 = vrot.slane %v8560_v22, 4  ;;  %8644 = vst [vmem:[#allocation1 + $0x1] ss:$4 sm:$0xff] %v8560_v22  ;;  %v7024_v34 = vadd.f32 %v14985_v2, %v5305_v46  ;;  %v16852_v22 = vld [vmem:[#allocation134_spill] sm:$0xff] }
0x10ee   : > { %8645 = vst [vmem:[#allocation1 + $0x2] ss:$4 sm:$0xff] %v8595_v49  ;;  %v8569_v49 = vadd.f32 %v8446_v62, %v7026_v19 }
0x10ef   : > { %8646 = vst [vmem:[#allocation1 + $0x3] ss:$4 sm:$0xff] %v8596_v37  ;;  %v16853_v37 = vld [vmem:[#allocation124_spill] sm:$0xff] }
0x10f0   : > { %v8652_v15 = vld.sshfl [vmem:[#allocation1 + $0x20] sm:$0xff pattern:$0x73625140]  ;;  %v8613_v32 = vrot.slane %v8569_v49, 2 }
0x10f1   : > { %8657 = vst [vmem:[#allocation1 + $0x20] ss:$4 sm:$0xff] %v8602_v63  ;;  %v16854_v63 = vld [vmem:[#allocation68_spill] sm:$0xff] }
0x10f2   : > { %v5449_v2 = vadd.f32 %v16854_v63, %v16853_v37  ;;  %v16862_v37 = vld [vmem:[#allocation7_spill] sm:$0xff] }
0x10f3   : > { %v16863_v63 = vmax.f32 %v16862_v37, 0.0 }
0x10f4   : > { %v7028_v53 = vadd.f32 %v14995_v51, %v5449_v2 }
0x10f5   : > { %v8266_v20 = vpop.f32.mrf.mxu3 }
0x10f6   : > { %v8564_v55 = vadd.f32 %v8266_v20, %v7021_v44  ;;  %v8651_v56 = vld.sshfl [vmem:[#allocation1] sm:$0xff pattern:$0x73625140]  ;;  %v8614_v20 = vrot.slane %v8569_v49, 4 }
0x10f7   : > { %10400 = vmatmul.msk.f32.gmra.mxu0 %vm2104_vm0, %v8651_v56  ;;  %8653 = vst [vmem:[#allocation1] ss:$4 sm:$0xff] %v8599_v38 }
0x10f8   : > { %v8603_v10 = vrot.slane %v8564_v55, 2  ;;  %v8604_v11 = vrot.slane %v8564_v55, 4  ;;  %8658 = vst [vmem:[#allocation1 + $0x21] ss:$4 sm:$0xff] %v8564_v55 }
0x10f9   : > { %8654 = vst [vmem:[#allocation1 + $0x1] ss:$4 sm:$0xff] %v8600_v60 }
0x10fa   : > { %8659 = vst [vmem:[#allocation1 + $0x22] ss:$4 sm:$0xff] %v8603_v10 }
0x10fb   : > { %8660 = vst [vmem:[#allocation1 + $0x23] ss:$4 sm:$0xff] %v8604_v11  ;;  %v16855_v11 = vld [vmem:[#allocation123_spill] sm:$0xff] }
0x10fc   : > { %8655 = vst [vmem:[#allocation1 + $0x2] ss:$4 sm:$0xff] %v8563_v33  ;;  %v5413_v33 = vadd.f32 %v16852_v22, %v16851_v9  ;;  %v5485_v4 = vadd.f32 %v16856_v40, %v16855_v11 }
0x10fd   : > { %8656 = vst [vmem:[#allocation1 + $0x3] ss:$4 sm:$0xff] %v8601_v47 }
0x10fe   : > { %v7029_v51 = vadd.f32 %v15013_v24, %v5485_v4 }
0x10ff   : > { %10401 = vmatmul.msk.f32.gmra.mxu0 %vm2104_vm0, %v8652_v15  ;;  %v7027_v15 = vadd.f32 %v14974_v61, %v5413_v33 }
0x1102   : > { %v8662_v29 = vld.sshfl [vmem:[#allocation1 + $0x20] sm:$0xff pattern:$0x73625140] }
0x1103   : > { %8668 = vst [vmem:[#allocation1 + $0x21] ss:$4 sm:$0xff] %v8608_v28 }
0x1104   : > { %8667 = vst [vmem:[#allocation1 + $0x20] ss:$4 sm:$0xff] %v8607_v48  ;;  %v8661_v23 = vld.sshfl [vmem:[#allocation1] sm:$0xff pattern:$0x73625140] }
0x1105   : > { %8663 = vst [vmem:[#allocation1] ss:$4 sm:$0xff] %v8565_v41  ;;  %v16857_v41 = vld [vmem:[#allocation5_spill] sm:$0xff] }
0x1106   : > { %8664 = vst [vmem:[#allocation1 + $0x1] ss:$4 sm:$0xff] %v8605_v39  ;;  %v16858_v28 = vmax.f32 %v16857_v41, 0.0 }
0x1107   : > { %10402 = vmatmul.msk.f32.gmra.mxu0 %vm2104_vm0, %v8661_v23  ;;  %8665 = vst [vmem:[#allocation1 + $0x2] ss:$4 sm:$0xff] %v8606_v35 }
0x1108   : > { %8666 = vst [vmem:[#allocation1 + $0x3] ss:$4 sm:$0xff] %v8566_v5  ;;  %v15310_v5 = vld [vmem:[%s16121_s11] ss:$0 sm:$0xff] }
0x110f   : > { %10403 = vmatmul.msk.f32.gmra.mxu0 %vm2104_vm0, %v8662_v29  ;;  %v8671_v7 = vld.sshfl [vmem:[#allocation1] sm:$0xff pattern:$0x73625140] }
0x1116   : > { %v8410_v16 = vpop.f32.mrf.mxu3 }
0x1117   : > { %10404 = vmatmul.msk.f32.gmra.mxu0 %vm2104_vm0, %v8671_v7  ;;  %v8568_v36 = vadd.f32 %v8410_v16, %v7025_v30 }
0x1119   : > { %v8611_v27 = vrot.slane %v8568_v36, 2  ;;  %v8612_v45 = vrot.slane %v8568_v36, 4  ;;  %8674 = vst [vmem:[#allocation1 + $0x1] ss:$4 sm:$0xff] %v8568_v36 }
0x111b   : > { %8675 = vst [vmem:[#allocation1 + $0x2] ss:$4 sm:$0xff] %v8611_v27  ;;  %v10426_v27 = vld [vmem:[%s16122_s12 + $0x8] sm:$0xff] }
0x111c   : > { %8676 = vst [vmem:[#allocation1 + $0x3] ss:$4 sm:$0xff] %v8612_v45  ;;  %9023 = vmatpush.msra.mxu1 %v10426_v27 }
0x112d   : > { %v8374_v50 = vpop.f32.mrf.mxu2  ;;  %v8554_v60 = vpop.f32.mrf.mxu3 }
0x112e   : > { %v8567_v42 = vadd.f32 %v8374_v50, %v7024_v34  ;;  %v8572_v26 = vadd.f32 %v8554_v60, %v7029_v51 }
0x1130   : > { %v8609_v14 = vrot.slane %v8567_v42, 2  ;;  %v8610_v43 = vrot.slane %v8567_v42, 4  ;;  %8669 = vst [vmem:[#allocation1 + $0x22] ss:$4 sm:$0xff] %v8567_v42  ;;  %v8619_v0 = vrot.slane %v8572_v26, 2  ;;  %v8620_v21 = vrot.slane %v8572_v26, 4 }
0x1132   : > { %8670 = vst [vmem:[#allocation1 + $0x23] ss:$4 sm:$0xff] %v8609_v14 }
0x1133   : > { %8673 = vst [vmem:[#allocation1] ss:$4 sm:$0xff] %v8610_v43 }
0x1135   : > { %v8518_v25 = vpop.f32.mrf.mxu2 }
0x1136   : > { %v8482_v58 = vpop.f32.mrf.mxu1  ;;  %v8571_v38 = vadd.f32 %v8518_v25, %v7028_v53 }
0x1137   : > { %v8570_v44 = vadd.f32 %v8482_v58, %v7027_v15 }
0x1138   : > { %v8617_v61 = vrot.slane %v8571_v38, 2  ;;  %v8618_v13 = vrot.slane %v8571_v38, 4 }
0x1139   : > { %v8672_v55 = vld.sshfl [vmem:[#allocation1 + $0x20] sm:$0xff pattern:$0x73625140]  ;;  %v8615_v56 = vrot.slane %v8570_v44, 2  ;;  %v8616_v10 = vrot.slane %v8570_v44, 4 }
0x113a   : > { %8679 = vst [vmem:[#allocation1 + $0x22] ss:$4 sm:$0xff] %v8614_v20  ;;  %10405 = vmatmul.msk.f32.gmra.mxu0 %vm2104_vm0, %v8672_v55  ;;  %v8681_v52 = vld.sshfl [vmem:[#allocation1] sm:$0xff pattern:$0x73625140] }
0x113b   : > { %8677 = vst [vmem:[#allocation1 + $0x20] ss:$4 sm:$0xff] %v8569_v49 }
0x113c   : > { %8678 = vst [vmem:[#allocation1 + $0x21] ss:$4 sm:$0xff] %v8613_v32 }
0x113d   : > { %8680 = vst [vmem:[#allocation1 + $0x23] ss:$4 sm:$0xff] %v8570_v44 }
0x113e   : > { %8683 = vst [vmem:[#allocation1] ss:$4 sm:$0xff] %v8615_v56 }
0x113f   : > { %8684 = vst [vmem:[#allocation1 + $0x1] ss:$4 sm:$0xff] %v8616_v10 }
0x1140   : > { %8685 = vst [vmem:[#allocation1 + $0x2] ss:$4 sm:$0xff] %v8571_v38 }
0x1141   : > { %8686 = vst [vmem:[#allocation1 + $0x3] ss:$4 sm:$0xff] %v8617_v61 }
0x1142   : > { %10406 = vmatmul.msk.f32.gmra.mxu0 %vm2104_vm0, %v8681_v52  ;;  %v16864_v52 = vld [vmem:[#allocation8_spill] sm:$0xff] }
0x1143   : > { %v16865_v60 = vmax.f32 %v16864_v52, 0.0  ;;  %v16870_v52 = vld [vmem:[#allocation11_spill] sm:$0xff] }
0x1144   : > { %v8682_v47 = vld.sshfl [vmem:[#allocation1 + $0x20] sm:$0xff pattern:$0x73625140] }
0x1145   : > { %8687 = vst [vmem:[#allocation1 + $0x20] ss:$4 sm:$0xff] %v8618_v13 }
0x1146   : > { %8688 = vst [vmem:[#allocation1 + $0x21] ss:$4 sm:$0xff] %v8572_v26 }
0x1147   : > { %8689 = vst [vmem:[#allocation1 + $0x22] ss:$4 sm:$0xff] %v8619_v0 }
0x1148   : > { %8690 = vst [vmem:[#allocation1 + $0x23] ss:$4 sm:$0xff] %v8620_v21  ;;  %v8691_v31 = vld.sshfl [vmem:[#allocation1] sm:$0xff pattern:$0x73625140] }
0x114a   : > { %10407 = vmatmul.msk.f32.gmra.mxu0 %vm2104_vm0, %v8682_v47 }
0x114f   : > { %v8692_v24 = vld.sshfl [vmem:[#allocation1 + $0x20] sm:$0xff pattern:$0x73625140] }
0x1152   : > { %10408 = vmatmul.msk.f32.gmra.mxu0 %vm2104_vm0, %v8691_v31 }
0x115a   : > { %10409 = vmatmul.msk.f32.gmra.mxu0 %vm2104_vm0, %v8692_v24 }
0x115e   : > { %v8734_v18 = vpop.f32.mrf.mxu0 }
0x115f   : > { %v8735_v3 = vadd.f32 %v15310_v5, %v8734_v18 }
0x1161   : > { %v15315_v48 = vadd.f32 %v8735_v3, %v16858_v28 }
0x1163   : > { %v15318_v29 = vrot.slane %v15315_v48, 2  ;;  %v15321_v39 = vrot.slane %v15315_v48, 4  ;;  %v10410_v23 = vrot.slane %v15315_v48, 9  ;;  %v8796_v6 = vrot.slane %v15315_v48, 6 }
0x1165   : > { %v8833_v35 = vrot.slane %v15318_v29, 7  ;;  %v8836_v16 = vrot.slane %v15321_v39, 7  ;;  %v10411_v34 = vrot.slane %v8796_v6, 9 }
0x1166   : > { %v8737_v8 = vpop.f32.mrf.mxu0 }
0x1167   : > { %v8834_v30 = vsel %vm11020_vm7, %v10410_v23, %v8833_v35  ;;  %v8835_v7 = vrot.slane %v8833_v35, 2  ;;  %v8738_v36 = vadd.f32 %v15310_v5, %v8737_v8  ;;  %v16866_v35 = vld [vmem:[#allocation9_spill] sm:$0xff] }
0x1168   : > { %8945 = vst [vmem:[#allocation1] ss:$4 sm:$0xff] %v8834_v30  ;;  %v16867_v8 = vmax.f32 %v16866_v35, 0.0 }
0x1169   : > { %v8837_v45 = vsel %vm11020_vm7, %v8835_v7, %v8836_v16  ;;  %v15337_v46 = vadd.f32 %v8738_v36, %v16861_v12 }
0x116a   : > { %8947 = vst [vmem:[#allocation1 + $0x1] ss:$4 sm:$0xff] %v8837_v45 }
0x116b   : > { %v15342_v50 = vrot.slane %v15337_v46, 2  ;;  %v8798_v42 = vrot.slane %v15337_v46, 4  ;;  %v15346_v1 = vrot.slane %v15337_v46, 6  ;;  %v8840_v59 = vrot.slane %v15337_v46, 7 }
0x116d   : > { %v8841_v17 = vsel %vm11020_vm7, %v10411_v34, %v8840_v59  ;;  %v8842_v14 = vrot.slane %v8840_v59, 2  ;;  %v8843_v43 = vrot.slane %v15342_v50, 7  ;;  %v10412_v62 = vrot.slane %v8798_v42, 9 }
0x116e   : > { %8949 = vst [vmem:[#allocation1 + $0x2] ss:$4 sm:$0xff] %v8841_v17  ;;  %v8847_v19 = vrot.slane %v15346_v1, 7 }
0x116f   : > { %v8844_v9 = vsel %vm11020_vm7, %v8842_v14, %v8843_v43 }
0x1170   : > { %8951 = vst [vmem:[#allocation1 + $0x3] ss:$4 sm:$0xff] %v8844_v9  ;;  %v8848_v22 = vsel %vm11020_vm7, %v10412_v62, %v8847_v19  ;;  %v8849_v25 = vrot.slane %v8847_v19, 2  ;;  %v16868_v9 = vld [vmem:[#allocation10_spill] sm:$0xff] }
0x1171   : > { %8953 = vst [vmem:[#allocation1 + $0x20] ss:$4 sm:$0xff] %v8848_v22  ;;  %v16869_v22 = vmax.f32 %v16868_v9, 0.0 }
0x1174   : > { %v8740_v33 = vpop.f32.mrf.mxu0 }
0x1175   : > { %v8741_v49 = vadd.f32 %v15310_v5, %v8740_v33 }
0x1177   : > { %v15362_v2 = vadd.f32 %v8741_v49, %v16863_v63  ;;  %v8960_v15 = vld.sshfl [vmem:[#allocation1] sm:$0xff pattern:$0x73625140] }
0x1178   : > { %10427 = vmatmul.msk.f32.vlgmr.msra.gmra.mxu1 %vm2104_vm0, %v8960_v15 }
0x1179   : > { %v8800_v58 = vrot.slane %v15362_v2, 2  ;;  %v15367_v53 = vrot.slane %v15362_v2, 4  ;;  %v15370_v44 = vrot.slane %v15362_v2, 6  ;;  %v8850_v20 = vrot.slane %v15362_v2, 7 }
0x117b   : > { %v8851_v55 = vsel %vm11020_vm7, %v8849_v25, %v8850_v20  ;;  %v10413_v38 = vrot.slane %v8800_v58, 9  ;;  %v8854_v32 = vrot.slane %v15367_v53, 7  ;;  %v8857_v40 = vrot.slane %v15370_v44, 7 }
0x117c   : > { %8955 = vst [vmem:[#allocation1 + $0x21] ss:$4 sm:$0xff] %v8851_v55  ;;  %v8743_v56 = vpop.f32.mrf.mxu0 }
0x117d   : > { %v8855_v10 = vsel %vm11020_vm7, %v10413_v38, %v8854_v32  ;;  %v8856_v11 = vrot.slane %v8854_v32, 2  ;;  %v8744_v4 = vadd.f32 %v15310_v5, %v8743_v56 }
0x117e   : > { %8957 = vst [vmem:[#allocation1 + $0x22] ss:$4 sm:$0xff] %v8855_v10 }
0x117f   : > { %v8858_v61 = vsel %vm11020_vm7, %v8856_v11, %v8857_v40  ;;  %v15386_v51 = vadd.f32 %v8744_v4, %v16865_v60  ;;  %v16871_v60 = vmax.f32 %v16870_v52, 0.0 }
0x1180   : > { %8959 = vst [vmem:[#allocation1 + $0x23] ss:$4 sm:$0xff] %v8858_v61 }
0x1181   : > { %v15389_v26 = vrot.slane %v15386_v51, 2  ;;  %v15392_v13 = vrot.slane %v15386_v51, 4  ;;  %v10414_v47 = vrot.slane %v15386_v51, 9  ;;  %v8805_v21 = vrot.slane %v15386_v51, 6 }
0x1183   : > { %v8861_v0 = vrot.slane %v15389_v26, 7  ;;  %v8864_v3 = vrot.slane %v15392_v13, 7  ;;  %v10415_v7 = vrot.slane %v8805_v21, 9 }
0x1184   : > { %v8746_v31 = vpop.f32.mrf.mxu0 }
0x1185   : > { %v8862_v24 = vsel %vm11020_vm7, %v10414_v47, %v8861_v0  ;;  %v8863_v18 = vrot.slane %v8861_v0, 2  ;;  %v8747_v41 = vadd.f32 %v15310_v5, %v8746_v31 }
0x1186   : > { %8962 = vst [vmem:[#allocation1] ss:$4 sm:$0xff] %v8862_v24 }
0x1187   : > { %v8961_v28 = vld.sshfl [vmem:[#allocation1 + $0x20] sm:$0xff pattern:$0x73625140]  ;;  %v8865_v23 = vsel %vm11020_vm7, %v8863_v18, %v8864_v3  ;;  %v15405_v30 = vadd.f32 %v8747_v41, %v16867_v8 }
0x1188   : > { %8963 = vst [vmem:[#allocation1 + $0x1] ss:$4 sm:$0xff] %v8865_v23  ;;  %10428 = vmatmul.msk.f32.gmra.mxu1 %vm2104_vm0, %v8961_v28 }
0x1189   : > { %v15411_v16 = vrot.slane %v15405_v30, 2  ;;  %v8807_v36 = vrot.slane %v15405_v30, 4  ;;  %v15415_v27 = vrot.slane %v15405_v30, 6  ;;  %v8868_v45 = vrot.slane %v15405_v30, 7 }
0x118b   : > { %v8869_v54 = vsel %vm11020_vm7, %v10415_v7, %v8868_v45  ;;  %v8870_v12 = vrot.slane %v8868_v45, 2  ;;  %v8871_v34 = vrot.slane %v15411_v16, 7  ;;  %v10416_v59 = vrot.slane %v8807_v36, 9 }
0x118c   : > { %8964 = vst [vmem:[#allocation1 + $0x2] ss:$4 sm:$0xff] %v8869_v54  ;;  %v8749_v17 = vpop.f32.mrf.mxu0  ;;  %v8875_v14 = vrot.slane %v15415_v27, 7  ;;  %v16872_v54 = vld [vmem:[#allocation12_spill] sm:$0xff] }
0x118d   : > { %v8872_v43 = vsel %vm11020_vm7, %v8870_v12, %v8871_v34  ;;  %v8750_v62 = vadd.f32 %v15310_v5, %v8749_v17  ;;  %v16873_v12 = vmax.f32 %v16872_v54, 0.0 }
0x118e   : > { %8965 = vst [vmem:[#allocation1 + $0x3] ss:$4 sm:$0xff] %v8872_v43  ;;  %v8876_v19 = vsel %vm11020_vm7, %v10416_v59, %v8875_v14  ;;  %v8877_v49 = vrot.slane %v8875_v14, 2 }
0x118f   : > { %v15431_v33 = vadd.f32 %v8750_v62, %v16869_v22  ;;  %8966 = vst [vmem:[#allocation1 + $0x20] ss:$4 sm:$0xff] %v8876_v19 }
0x1191   : > { %v8809_v37 = vrot.slane %v15431_v33, 2  ;;  %v15435_v63 = vrot.slane %v15431_v33, 4  ;;  %v15438_v15 = vrot.slane %v15431_v33, 6  ;;  %v8878_v25 = vrot.slane %v15431_v33, 7 }
0x1193   : > { %v8879_v20 = vsel %vm11020_vm7, %v8877_v49, %v8878_v25  ;;  %v10417_v55 = vrot.slane %v8809_v37, 9  ;;  %v8882_v38 = vrot.slane %v15435_v63, 7  ;;  %v8885_v11 = vrot.slane %v15438_v15, 7 }
0x1194   : > { %8967 = vst [vmem:[#allocation1 + $0x21] ss:$4 sm:$0xff] %v8879_v20  ;;  %v8752_v32 = vpop.f32.mrf.mxu0 }
0x1195   : > { %v8883_v56 = vsel %vm11020_vm7, %v10417_v55, %v8882_v38  ;;  %v8884_v10 = vrot.slane %v8882_v38, 2  ;;  %v8753_v40 = vadd.f32 %v15310_v5, %v8752_v32  ;;  %v8970_v4 = vld.sshfl [vmem:[#allocation1] sm:$0xff pattern:$0x73625140] }
0x1196   : > { %8968 = vst [vmem:[#allocation1 + $0x22] ss:$4 sm:$0xff] %v8883_v56  ;;  %10429 = vmatmul.msk.f32.gmra.mxu1 %vm2104_vm0, %v8970_v4  ;;  %v16874_v56 = vld [vmem:[#allocation13_spill] sm:$0xff] }
0x1197   : > { %v8886_v61 = vsel %vm11020_vm7, %v8884_v10, %v8885_v11  ;;  %v15455_v47 = vadd.f32 %v8753_v40, %v16871_v60  ;;  %v16875_v10 = vmax.f32 %v16874_v56, 0.0 }
0x1198   : > { %8969 = vst [vmem:[#allocation1 + $0x23] ss:$4 sm:$0xff] %v8886_v61 }
0x1199   : > { %v15458_v0 = vrot.slane %v15455_v47, 2  ;;  %v15461_v31 = vrot.slane %v15455_v47, 4  ;;  %v10418_v24 = vrot.slane %v15455_v47, 9  ;;  %v8814_v8 = vrot.slane %v15455_v47, 6 }
0x119b   : > { %v8889_v18 = vrot.slane %v15458_v0, 7  ;;  %v8892_v28 = vrot.slane %v15461_v31, 7  ;;  %v10419_v59 = vrot.slane %v8814_v8, 9 }
0x119d   : > { %v8890_v3 = vsel %vm11020_vm7, %v10418_v24, %v8889_v18  ;;  %v8891_v41 = vrot.slane %v8889_v18, 2 }
0x119e   : > { %8972 = vst [vmem:[#allocation1] ss:$4 sm:$0xff] %v8890_v3 }
0x119f   : > { %v8971_v23 = vld.sshfl [vmem:[#allocation1 + $0x20] sm:$0xff pattern:$0x73625140]  ;;  %v8893_v35 = vsel %vm11020_vm7, %v8891_v41, %v8892_v28 }
0x11a0   : > { %8973 = vst [vmem:[#allocation1 + $0x1] ss:$4 sm:$0xff] %v8893_v35  ;;  %10430 = vmatmul.msk.f32.gmra.mxu1 %vm2104_vm0, %v8971_v23 }
0x11b7   : > { %v8755_v7 = vpop.f32.mrf.mxu0 }
0x11b8   : > { %v8756_v45 = vadd.f32 %v15310_v5, %v8755_v7 }
0x11ba   : > { %v15475_v34 = vadd.f32 %v8756_v45, %v16873_v12  ;;  %v16876_v12 = vld [vmem:[#allocation14_spill] sm:$0xff] }
0x11bc   : > { %v15480_v17 = vrot.slane %v15475_v34, 2  ;;  %v8816_v14 = vrot.slane %v15475_v34, 4  ;;  %v15484_v43 = vrot.slane %v15475_v34, 6  ;;  %v8896_v62 = vrot.slane %v15475_v34, 7 }
0x11be   : > { %v8897_v19 = vsel %vm11020_vm7, %v10419_v59, %v8896_v62  ;;  %v8898_v9 = vrot.slane %v8896_v62, 2  ;;  %v8899_v22 = vrot.slane %v15480_v17, 7  ;;  %v10420_v49 = vrot.slane %v8816_v14, 9 }
0x11bf   : > { %8974 = vst [vmem:[#allocation1 + $0x2] ss:$4 sm:$0xff] %v8897_v19  ;;  %v8758_v25 = vpop.f32.mrf.mxu0  ;;  %v8903_v20 = vrot.slane %v15484_v43, 7  ;;  %v16877_v59 = vmax.f32 %v16876_v12, 0.0 }
0x11c0   : > { %v8900_v55 = vsel %vm11020_vm7, %v8898_v9, %v8899_v22  ;;  %v8759_v38 = vadd.f32 %v15310_v5, %v8758_v25 }
0x11c1   : > { %8975 = vst [vmem:[#allocation1 + $0x3] ss:$4 sm:$0xff] %v8900_v55  ;;  %v8904_v32 = vsel %vm11020_vm7, %v10420_v49, %v8903_v20  ;;  %v8905_v40 = vrot.slane %v8903_v20, 2 }
0x11c2   : > { %v15500_v11 = vadd.f32 %v8759_v38, %v16875_v10  ;;  %8976 = vst [vmem:[#allocation1 + $0x20] ss:$4 sm:$0xff] %v8904_v32 }
0x11c4   : > { %v8818_v4 = vrot.slane %v15500_v11, 2  ;;  %v15504_v61 = vrot.slane %v15500_v11, 4  ;;  %v15507_v52 = vrot.slane %v15500_v11, 6  ;;  %v8906_v60 = vrot.slane %v15500_v11, 7 }
0x11c6   : > { %v8907_v24 = vsel %vm11020_vm7, %v8905_v40, %v8906_v60  ;;  %v10421_v18 = vrot.slane %v8818_v4, 9  ;;  %v8910_v3 = vrot.slane %v15504_v61, 7  ;;  %v8913_v35 = vrot.slane %v15507_v52, 7  ;;  %v16878_v60 = vld [vmem:[#allocation15_spill] sm:$0xff] }
0x11c7   : > { %8977 = vst [vmem:[#allocation1 + $0x21] ss:$4 sm:$0xff] %v8907_v24  ;;  %v8761_v41 = vpop.f32.mrf.mxu0  ;;  %v16879_v24 = vmax.f32 %v16878_v60, 0.0 }
0x11c8   : > { %v8911_v28 = vsel %vm11020_vm7, %v10421_v18, %v8910_v3  ;;  %v8912_v23 = vrot.slane %v8910_v3, 2  ;;  %v8762_v7 = vadd.f32 %v15310_v5, %v8761_v41  ;;  %v8980_v45 = vld.sshfl [vmem:[#allocation1] sm:$0xff pattern:$0x73625140] }
0x11c9   : > { %8978 = vst [vmem:[#allocation1 + $0x22] ss:$4 sm:$0xff] %v8911_v28  ;;  %10431 = vmatmul.msk.f32.gmra.mxu1 %vm2104_vm0, %v8980_v45 }
0x11ca   : > { %v8914_v54 = vsel %vm11020_vm7, %v8912_v23, %v8913_v35  ;;  %v15524_v62 = vadd.f32 %v8762_v7, %v16877_v59 }
0x11cb   : > { %8979 = vst [vmem:[#allocation1 + $0x23] ss:$4 sm:$0xff] %v8914_v54 }
0x11cc   : > { %v15527_v19 = vrot.slane %v15524_v62, 2  ;;  %v15530_v9 = vrot.slane %v15524_v62, 4  ;;  %v10422_v22 = vrot.slane %v15524_v62, 9  ;;  %v8823_v25 = vrot.slane %v15524_v62, 6 }
0x11ce   : > { %v8917_v49 = vrot.slane %v15527_v19, 7  ;;  %v8920_v32 = vrot.slane %v15530_v9, 7  ;;  %v10423_v3 = vrot.slane %v8823_v25, 9 }
0x11cf   : > { %v8764_v20 = vpop.f32.mrf.mxu0 }
0x11d0   : > { %v8918_v55 = vsel %vm11020_vm7, %v10422_v22, %v8917_v49  ;;  %v8919_v38 = vrot.slane %v8917_v49, 2  ;;  %v8765_v56 = vadd.f32 %v15310_v5, %v8764_v20 }
0x11d1   : > { %8982 = vst [vmem:[#allocation1] ss:$4 sm:$0xff] %v8918_v55 }
0x11d2   : > { %v8981_v10 = vld.sshfl [vmem:[#allocation1 + $0x20] sm:$0xff pattern:$0x73625140]  ;;  %v8921_v40 = vsel %vm11020_vm7, %v8919_v38, %v8920_v32  ;;  %v15543_v18 = vadd.f32 %v8765_v56, %v16879_v24  ;;  %v16880_v32 = vld [vmem:[#allocation16_spill] sm:$0xff] }
0x11d3   : > { %8983 = vst [vmem:[#allocation1 + $0x1] ss:$4 sm:$0xff] %v8921_v40  ;;  %10432 = vmatmul.msk.f32.gmra.mxu1 %vm2104_vm0, %v8981_v10  ;;  %v8830_v38 = vld [vmem:[%s16122_s12] sm:$0xff]  ;;  %v16881_v56 = vmax.f32 %v16880_v32, 0.0 }
0x11d4   : > { %v15549_v41 = vrot.slane %v15543_v18, 2  ;;  %v8825_v28 = vrot.slane %v15543_v18, 4  ;;  %v15553_v23 = vrot.slane %v15543_v18, 6  ;;  %v8924_v35 = vrot.slane %v15543_v18, 7  ;;  %9127 = vmatpush.msra.mxu2 %v8830_v38 }
0x11d6   : > { %v8925_v7 = vsel %vm11020_vm7, %v10423_v3, %v8924_v35  ;;  %v8926_v45 = vrot.slane %v8924_v35, 2  ;;  %v8927_v54 = vrot.slane %v15549_v41, 7  ;;  %v10424_v12 = vrot.slane %v8825_v28, 9 }
0x11d7   : > { %8984 = vst [vmem:[#allocation1 + $0x2] ss:$4 sm:$0xff] %v8925_v7  ;;  %v8767_v59 = vpop.f32.mrf.mxu0  ;;  %v8931_v22 = vrot.slane %v15553_v23, 7 }
0x11d8   : > { %v8928_v49 = vsel %vm11020_vm7, %v8926_v45, %v8927_v54  ;;  %v8768_v20 = vadd.f32 %v15310_v5, %v8767_v59 }
0x11d9   : > { %8985 = vst [vmem:[#allocation1 + $0x3] ss:$4 sm:$0xff] %v8928_v49  ;;  %v8932_v55 = vsel %vm11020_vm7, %v10424_v12, %v8931_v22  ;;  %v8933_v40 = vrot.slane %v8931_v22, 2 }
0x11da   : > { %v15572_v10 = vadd.f32 %v8768_v20, %v16881_v56  ;;  %8986 = vst [vmem:[#allocation1 + $0x20] ss:$4 sm:$0xff] %v8932_v55  ;;  %v10443_v20 = vld [vmem:[%s16122_s12 + $0x10] sm:$0xff] }
0x11db   : > { %9233 = vmatpush.msra.mxu3 %v10443_v20 }
0x11dc   : > { %v8827_v60 = vrot.slane %v15572_v10, 2  ;;  %v15576_v24 = vrot.slane %v15572_v10, 4  ;;  %v15579_v5 = vrot.slane %v15572_v10, 6  ;;  %v8934_v3 = vrot.slane %v15572_v10, 7 }
0x11de   : > { %v8935_v35 = vsel %vm11020_vm7, %v8933_v40, %v8934_v3  ;;  %v10425_v7 = vrot.slane %v8827_v60, 9  ;;  %v8938_v45 = vrot.slane %v15576_v24, 7  ;;  %v8941_v59 = vrot.slane %v15579_v5, 7 }
0x11df   : > { %8987 = vst [vmem:[#allocation1 + $0x21] ss:$4 sm:$0xff] %v8935_v35 }
0x11e0   : > { %v8939_v54 = vsel %vm11020_vm7, %v10425_v7, %v8938_v45  ;;  %v8940_v12 = vrot.slane %v8938_v45, 2  ;;  %v8990_v22 = vld.sshfl [vmem:[#allocation1] sm:$0xff pattern:$0x73625140] }
0x11e1   : > { %8988 = vst [vmem:[#allocation1 + $0x22] ss:$4 sm:$0xff] %v8939_v54  ;;  %10433 = vmatmul.msk.f32.gmra.mxu1 %vm2104_vm0, %v8990_v22 }
0x11e2   : > { %v8942_v49 = vsel %vm11020_vm7, %v8940_v12, %v8941_v59  ;;  %9049 = vst [vmem:[#allocation1] ss:$4 sm:$0xff] %v15315_v48 }
0x11e3   : > { %8989 = vst [vmem:[#allocation1 + $0x23] ss:$4 sm:$0xff] %v8942_v49 }
0x11e4   : > { %9051 = vst [vmem:[#allocation1 + $0x1] ss:$4 sm:$0xff] %v15318_v29 }
0x11e5   : > { %9053 = vst [vmem:[#allocation1 + $0x2] ss:$4 sm:$0xff] %v8796_v6 }
0x11e6   : > { %9055 = vst [vmem:[#allocation1 + $0x3] ss:$4 sm:$0xff] %v15337_v46 }
0x11ea   : > { %v8991_v55 = vld.sshfl [vmem:[#allocation1 + $0x20] sm:$0xff pattern:$0x73625140] }
0x11eb   : > { %9057 = vst [vmem:[#allocation1 + $0x20] ss:$4 sm:$0xff] %v8798_v42  ;;  %10434 = vmatmul.msk.f32.gmra.mxu1 %vm2104_vm0, %v8991_v55 }
0x11ec   : > { %9059 = vst [vmem:[#allocation1 + $0x21] ss:$4 sm:$0xff] %v15346_v1 }
0x11ed   : > { %9061 = vst [vmem:[#allocation1 + $0x22] ss:$4 sm:$0xff] %v8800_v58  ;;  %v9064_v48 = vld.sshfl [vmem:[#allocation1] sm:$0xff pattern:$0x73625140] }
0x11ee   : > { %9063 = vst [vmem:[#allocation1 + $0x23] ss:$4 sm:$0xff] %v15367_v53  ;;  %10435 = vmatmul.msk.f32.vlgmr.msra.gmra.mxu2 %vm2104_vm0, %v9064_v48 }
0x11ef   : > { %9066 = vst [vmem:[#allocation1] ss:$4 sm:$0xff] %v15386_v51 }
0x11f0   : > { %9067 = vst [vmem:[#allocation1 + $0x1] ss:$4 sm:$0xff] %v15389_v26 }
0x11f1   : > { %9068 = vst [vmem:[#allocation1 + $0x2] ss:$4 sm:$0xff] %v8805_v21 }
0x11f2   : > { %9069 = vst [vmem:[#allocation1 + $0x3] ss:$4 sm:$0xff] %v15405_v30 }
0x11f5   : > { %v9065_v6 = vld.sshfl [vmem:[#allocation1 + $0x20] sm:$0xff pattern:$0x73625140] }
0x11f6   : > { %9070 = vst [vmem:[#allocation1 + $0x20] ss:$4 sm:$0xff] %v8807_v36  ;;  %10436 = vmatmul.msk.f32.gmra.mxu2 %vm2104_vm0, %v9065_v6 }
0x11f7   : > { %9071 = vst [vmem:[#allocation1 + $0x21] ss:$4 sm:$0xff] %v15415_v27 }
0x11f8   : > { %9072 = vst [vmem:[#allocation1 + $0x22] ss:$4 sm:$0xff] %v8809_v37 }
0x11f9   : > { %9073 = vst [vmem:[#allocation1 + $0x23] ss:$4 sm:$0xff] %v15435_v63  ;;  %v9074_v57 = vld.sshfl [vmem:[#allocation1] sm:$0xff pattern:$0x73625140] }
0x11fa   : > { %9076 = vst [vmem:[#allocation1] ss:$4 sm:$0xff] %v15455_v47 }
0x11fb   : > { %9077 = vst [vmem:[#allocation1 + $0x1] ss:$4 sm:$0xff] %v15458_v0 }
0x11fc   : > { %9078 = vst [vmem:[#allocation1 + $0x2] ss:$4 sm:$0xff] %v8814_v8 }
0x11fd   : > { %9079 = vst [vmem:[#allocation1 + $0x3] ss:$4 sm:$0xff] %v15475_v34 }
0x11fe   : > { %10437 = vmatmul.msk.f32.gmra.mxu2 %vm2104_vm0, %v9074_v57 }
0x1200   : > { %v9075_v42 = vld.sshfl [vmem:[#allocation1 + $0x20] sm:$0xff pattern:$0x73625140] }
0x1201   : > { %9080 = vst [vmem:[#allocation1 + $0x20] ss:$4 sm:$0xff] %v8816_v14 }
0x1202   : > { %9081 = vst [vmem:[#allocation1 + $0x21] ss:$4 sm:$0xff] %v15484_v43 }
0x1203   : > { %9082 = vst [vmem:[#allocation1 + $0x22] ss:$4 sm:$0xff] %v8818_v4 }
0x1204   : > { %9083 = vst [vmem:[#allocation1 + $0x23] ss:$4 sm:$0xff] %v15504_v61  ;;  %v9084_v58 = vld.sshfl [vmem:[#allocation1] sm:$0xff pattern:$0x73625140] }
0x1205   : > { %9086 = vst [vmem:[#allocation1] ss:$4 sm:$0xff] %v15524_v62 }
0x1206   : > { %10438 = vmatmul.msk.f32.gmra.mxu2 %vm2104_vm0, %v9075_v42  ;;  %9087 = vst [vmem:[#allocation1 + $0x1] ss:$4 sm:$0xff] %v15527_v19 }
0x1207   : > { %9088 = vst [vmem:[#allocation1 + $0x2] ss:$4 sm:$0xff] %v8823_v25 }
0x1208   : > { %9089 = vst [vmem:[#allocation1 + $0x3] ss:$4 sm:$0xff] %v15543_v18 }
0x120b   : > { %v9085_v51 = vld.sshfl [vmem:[#allocation1 + $0x20] sm:$0xff pattern:$0x73625140] }
0x120c   : > { %9090 = vst [vmem:[#allocation1 + $0x20] ss:$4 sm:$0xff] %v8825_v28 }
0x120d   : > { %9091 = vst [vmem:[#allocation1 + $0x21] ss:$4 sm:$0xff] %v15553_v23 }
0x120e   : > { %10439 = vmatmul.msk.f32.gmra.mxu2 %vm2104_vm0, %v9084_v58  ;;  %9092 = vst [vmem:[#allocation1 + $0x22] ss:$4 sm:$0xff] %v8827_v60 }
0x120f   : > { %v9094_v21 = vld.sshfl [vmem:[#allocation1] sm:$0xff pattern:$0x73625140]  ;;  %9093 = vst [vmem:[#allocation1 + $0x23] ss:$4 sm:$0xff] %v15576_v24 }
0x1210   : > { %9155 = vst [vmem:[#allocation1] ss:$4 sm:$0xff] %v15318_v29 }
0x1211   : > { %9157 = vst [vmem:[#allocation1 + $0x1] ss:$4 sm:$0xff] %v15321_v39 }
0x1212   : > { %9159 = vst [vmem:[#allocation1 + $0x2] ss:$4 sm:$0xff] %v15337_v46 }
0x1213   : > { %9161 = vst [vmem:[#allocation1 + $0x3] ss:$4 sm:$0xff] %v15342_v50 }
0x1216   : > { %10440 = vmatmul.msk.f32.gmra.mxu2 %vm2104_vm0, %v9085_v51  ;;  %v9095_v36 = vld.sshfl [vmem:[#allocation1 + $0x20] sm:$0xff pattern:$0x73625140] }
0x1217   : > { %9163 = vst [vmem:[#allocation1 + $0x20] ss:$4 sm:$0xff] %v15346_v1 }
0x1218   : > { %9165 = vst [vmem:[#allocation1 + $0x21] ss:$4 sm:$0xff] %v15362_v2 }
0x1219   : > { %9167 = vst [vmem:[#allocation1 + $0x22] ss:$4 sm:$0xff] %v15367_v53 }
0x121a   : > { %v9170_v37 = vld.sshfl [vmem:[#allocation1] sm:$0xff pattern:$0x73625140]  ;;  %9169 = vst [vmem:[#allocation1 + $0x23] ss:$4 sm:$0xff] %v15370_v44 }
0x121b   : > { %10444 = vmatmul.msk.f32.vlgmr.msra.gmra.mxu3 %vm2104_vm0, %v9170_v37  ;;  %9172 = vst [vmem:[#allocation1] ss:$4 sm:$0xff] %v15389_v26 }
0x121c   : > { %9173 = vst [vmem:[#allocation1 + $0x1] ss:$4 sm:$0xff] %v15392_v13 }
0x121d   : > { %9174 = vst [vmem:[#allocation1 + $0x2] ss:$4 sm:$0xff] %v15405_v30 }
0x121e   : > { %9175 = vst [vmem:[#allocation1 + $0x3] ss:$4 sm:$0xff] %v15411_v16  ;;  %10441 = vmatmul.msk.f32.gmra.mxu2 %vm2104_vm0, %v9094_v21 }
0x1221   : > { %v9171_v47 = vld.sshfl [vmem:[#allocation1 + $0x20] sm:$0xff pattern:$0x73625140] }
0x1222   : > { %9176 = vst [vmem:[#allocation1 + $0x20] ss:$4 sm:$0xff] %v15415_v27 }
0x1223   : > { %10445 = vmatmul.msk.f32.gmra.mxu3 %vm2104_vm0, %v9171_v47  ;;  %9177 = vst [vmem:[#allocation1 + $0x21] ss:$4 sm:$0xff] %v15431_v33 }
0x1224   : > { %9178 = vst [vmem:[#allocation1 + $0x22] ss:$4 sm:$0xff] %v15435_v63 }
0x1225   : > { %9179 = vst [vmem:[#allocation1 + $0x23] ss:$4 sm:$0xff] %v15438_v15  ;;  %v9180_v8 = vld.sshfl [vmem:[#allocation1] sm:$0xff pattern:$0x73625140] }
0x1226   : > { %9182 = vst [vmem:[#allocation1] ss:$4 sm:$0xff] %v15458_v0  ;;  %10442 = vmatmul.msk.f32.gmra.mxu2 %vm2104_vm0, %v9095_v36 }
0x1227   : > { %9183 = vst [vmem:[#allocation1 + $0x1] ss:$4 sm:$0xff] %v15461_v31 }
0x1228   : > { %9184 = vst [vmem:[#allocation1 + $0x2] ss:$4 sm:$0xff] %v15475_v34 }
0x1229   : > { %9185 = vst [vmem:[#allocation1 + $0x3] ss:$4 sm:$0xff] %v15480_v17 }
0x122b   : > { %10446 = vmatmul.msk.f32.gmra.mxu3 %vm2104_vm0, %v9180_v8 }
0x122c   : > { %v9181_v14 = vld.sshfl [vmem:[#allocation1 + $0x20] sm:$0xff pattern:$0x73625140] }
0x122d   : > { %9186 = vst [vmem:[#allocation1 + $0x20] ss:$4 sm:$0xff] %v15484_v43 }
0x122e   : > { %9187 = vst [vmem:[#allocation1 + $0x21] ss:$4 sm:$0xff] %v15500_v11 }
0x122f   : > { %9188 = vst [vmem:[#allocation1 + $0x22] ss:$4 sm:$0xff] %v15504_v61 }
0x1230   : > { %9189 = vst [vmem:[#allocation1 + $0x23] ss:$4 sm:$0xff] %v15507_v52  ;;  %v9190_v4 = vld.sshfl [vmem:[#allocation1] sm:$0xff pattern:$0x73625140] }
0x1231   : > { %9192 = vst [vmem:[#allocation1] ss:$4 sm:$0xff] %v15527_v19 }
0x1232   : > { %9193 = vst [vmem:[#allocation1 + $0x1] ss:$4 sm:$0xff] %v15530_v9 }
0x1233   : > { %10447 = vmatmul.msk.f32.gmra.mxu3 %vm2104_vm0, %v9181_v14  ;;  %9194 = vst [vmem:[#allocation1 + $0x2] ss:$4 sm:$0xff] %v15543_v18 }
0x1234   : > { %9195 = vst [vmem:[#allocation1 + $0x3] ss:$4 sm:$0xff] %v15549_v41 }
0x1237   : > { %v9191_v62 = vld.sshfl [vmem:[#allocation1 + $0x20] sm:$0xff pattern:$0x73625140] }
0x1238   : > { %9196 = vst [vmem:[#allocation1 + $0x20] ss:$4 sm:$0xff] %v15553_v23 }
0x1239   : > { %9197 = vst [vmem:[#allocation1 + $0x21] ss:$4 sm:$0xff] %v15572_v10 }
0x123a   : > { %9198 = vst [vmem:[#allocation1 + $0x22] ss:$4 sm:$0xff] %v15576_v24 }
0x123b   : > { %10448 = vmatmul.msk.f32.gmra.mxu3 %vm2104_vm0, %v9190_v4  ;;  %9199 = vst [vmem:[#allocation1 + $0x23] ss:$4 sm:$0xff] %v15579_v5  ;;  %v9200_v25 = vld.sshfl [vmem:[#allocation1] sm:$0xff pattern:$0x73625140] }
0x123c   : > { %9279 = vst [vmem:[#allocation1] ss:$4 sm:$0xff] %v15318_v29 }
0x123d   : > { %9281 = vst [vmem:[#allocation1 + $0x1] ss:$4 sm:$0xff] %v15321_v39 }
0x123e   : > { %9283 = vst [vmem:[#allocation1 + $0x2] ss:$4 sm:$0xff] %v15337_v46 }
0x123f   : > { %9285 = vst [vmem:[#allocation1 + $0x3] ss:$4 sm:$0xff] %v15342_v50 }
0x1242   : > { %v9201_v28 = vld.sshfl [vmem:[#allocation1 + $0x20] sm:$0xff pattern:$0x73625140] }
0x1243   : > { %10449 = vmatmul.msk.f32.gmra.mxu3 %vm2104_vm0, %v9191_v62  ;;  %9287 = vst [vmem:[#allocation1 + $0x20] ss:$4 sm:$0xff] %v15346_v1 }
0x1244   : > { %9289 = vst [vmem:[#allocation1 + $0x21] ss:$4 sm:$0xff] %v15362_v2  ;;  %v9025_v2 = vpop.f32.mrf.mxu1 }
0x1245   : > { %9291 = vst [vmem:[#allocation1 + $0x22] ss:$4 sm:$0xff] %v15367_v53 }
0x1246   : > { %v15690_v38 = vld.sshfl [vmem:[#allocation1] sm:$0xff pattern:$0x73625140]  ;;  %9293 = vst [vmem:[#allocation1 + $0x23] ss:$4 sm:$0xff] %v15370_v44 }
0x1247   : > { %9296 = vst [vmem:[#allocation1] ss:$4 sm:$0xff] %v15389_v26 }
0x1248   : > { %9297 = vst [vmem:[#allocation1 + $0x1] ss:$4 sm:$0xff] %v15392_v13 }
0x1249   : > { %9298 = vst [vmem:[#allocation1 + $0x2] ss:$4 sm:$0xff] %v15405_v30 }
0x124a   : > { %9299 = vst [vmem:[#allocation1 + $0x3] ss:$4 sm:$0xff] %v15411_v16 }
0x124b   : > { %10450 = vmatmul.msk.f32.gmra.mxu3 %vm2104_vm0, %v9200_v25 }
0x124c   : > { %v9028_v26 = vpop.f32.mrf.mxu1 }
0x124d   : > { %v15702_v39 = vld.sshfl [vmem:[#allocation1 + $0x20] sm:$0xff pattern:$0x73625140] }
0x124e   : > { %9300 = vst [vmem:[#allocation1 + $0x20] ss:$4 sm:$0xff] %v15415_v27 }
0x124f   : > { %9301 = vst [vmem:[#allocation1 + $0x21] ss:$4 sm:$0xff] %v15431_v33 }
0x1250   : > { %9302 = vst [vmem:[#allocation1 + $0x22] ss:$4 sm:$0xff] %v15435_v63 }
0x1251   : > { %v15699_v29 = vld.sshfl [vmem:[#allocation1] sm:$0xff pattern:$0x73625140]  ;;  %9303 = vst [vmem:[#allocation1 + $0x23] ss:$4 sm:$0xff] %v15438_v15 }
0x1252   : > { %9306 = vst [vmem:[#allocation1] ss:$4 sm:$0xff] %v15458_v0 }
0x1253   : > { %10451 = vmatmul.msk.f32.gmra.mxu3 %vm2104_vm0, %v9201_v28  ;;  %9307 = vst [vmem:[#allocation1 + $0x1] ss:$4 sm:$0xff] %v15461_v31 }
0x1254   : > { %9308 = vst [vmem:[#allocation1 + $0x2] ss:$4 sm:$0xff] %v15475_v34  ;;  %v9031_v31 = vpop.f32.mrf.mxu1 }
0x1255   : > { %9309 = vst [vmem:[#allocation1 + $0x3] ss:$4 sm:$0xff] %v15480_v17 }
0x1258   : > { %v15711_v46 = vld.sshfl [vmem:[#allocation1 + $0x20] sm:$0xff pattern:$0x73625140] }
0x1259   : > { %9310 = vst [vmem:[#allocation1 + $0x20] ss:$4 sm:$0xff] %v15484_v43 }
0x125a   : > { %9311 = vst [vmem:[#allocation1 + $0x21] ss:$4 sm:$0xff] %v15500_v11 }
0x125b   : > { %9312 = vst [vmem:[#allocation1 + $0x22] ss:$4 sm:$0xff] %v15504_v61 }
0x125c   : > { %v15715_v50 = vld.sshfl [vmem:[#allocation1] sm:$0xff pattern:$0x73625140]  ;;  %9313 = vst [vmem:[#allocation1 + $0x23] ss:$4 sm:$0xff] %v15507_v52  ;;  %v9034_v17 = vpop.f32.mrf.mxu1 }
0x125d   : > { %9316 = vst [vmem:[#allocation1] ss:$4 sm:$0xff] %v15527_v19  ;;  %v10530_v19 = vld [vmem:[%s16123_s13] ss:$0 sm:$0xff] }
0x125e   : > { %9317 = vst [vmem:[#allocation1 + $0x1] ss:$4 sm:$0xff] %v15530_v9 }
0x125f   : > { %9318 = vst [vmem:[#allocation1 + $0x2] ss:$4 sm:$0xff] %v15543_v18 }
0x1260   : > { %9319 = vst [vmem:[#allocation1 + $0x3] ss:$4 sm:$0xff] %v15549_v41 }
0x1263   : > { %v15723_v1 = vld.sshfl [vmem:[#allocation1 + $0x20] sm:$0xff pattern:$0x73625140] }
0x1264   : > { %9320 = vst [vmem:[#allocation1 + $0x20] ss:$4 sm:$0xff] %v15553_v23  ;;  %v9037_v9 = vpop.f32.mrf.mxu1 }
0x1265   : > { %9321 = vst [vmem:[#allocation1 + $0x21] ss:$4 sm:$0xff] %v15572_v10 }
0x1266   : > { %9322 = vst [vmem:[#allocation1 + $0x22] ss:$4 sm:$0xff] %v15576_v24 }
0x1267   : > { %9323 = vst [vmem:[#allocation1 + $0x23] ss:$4 sm:$0xff] %v15579_v5 }
0x126c   : > { %v9040_v40 = vpop.f32.mrf.mxu1 }
0x1271   : > { %v9129_v53 = vpop.f32.mrf.mxu2 }
0x1272   : > { %v9130_v44 = vadd.f32 %v9129_v53, %v9025_v2 }
0x1274   : > { %v9043_v20 = vpop.f32.mrf.mxu1 }
0x1279   : > { %v9132_v13 = vpop.f32.mrf.mxu2 }
0x127a   : > { %v9133_v30 = vadd.f32 %v9132_v13, %v9028_v26 }
0x127c   : > { %v9046_v4 = vpop.f32.mrf.mxu1 }
0x1281   : > { %v9135_v33 = vpop.f32.mrf.mxu2 }
0x1282   : > { %v9136_v11 = vadd.f32 %v9135_v33, %v9031_v31 }
0x1289   : > { %v9138_v0 = vpop.f32.mrf.mxu2 }
0x128a   : > { %v9139_v41 = vadd.f32 %v9138_v0, %v9034_v17 }
0x1291   : > { %v9141_v43 = vpop.f32.mrf.mxu2 }
0x1292   : > { %v9142_v5 = vadd.f32 %v9141_v43, %v9037_v9 }
0x1299   : > { %v9144_v23 = vpop.f32.mrf.mxu2 }
0x129a   : > { %v9145_v24 = vadd.f32 %v9144_v23, %v9040_v40 }
0x129e   : > { %v9235_v16 = vpop.f32.mrf.mxu3 }
0x129f   : > { %v9259_v27 = vadd.f32 %v9235_v16, %v9130_v44 }
0x12a1   : > { %v9147_v7 = vpop.f32.mrf.mxu2  ;;  %v15740_v22 = vadd.f32 %v10530_v19, %v9259_v27 }
0x12a2   : > { %v9148_v48 = vadd.f32 %v9147_v7, %v9043_v20 }
0x12a3   : > { %v10452_v42 = vmul.f32 -1.442695, %v15740_v22 }
0x12a6   : > { %v9238_v63 = vpop.f32.mrf.mxu3 }
0x12a7   : > { %v9260_v15 = vadd.f32 %v9238_v63, %v9133_v30 }
0x12a9   : > { %v9150_v37 = vpop.f32.mrf.mxu2  ;;  %v15752_v8 = vadd.f32 %v10530_v19, %v9260_v15 }
0x12aa   : > { %v9151_v25 = vadd.f32 %v9150_v37, %v9046_v4 }
0x12ab   : > { %v10453_v44 = vmul.f32 -1.442695, %v15752_v8 }
0x12ae   : > { %v9241_v34 = vpop.f32.mrf.mxu3 }
0x12af   : > { %v9261_v52 = vadd.f32 %v9241_v34, %v9136_v11 }
0x12b1   : > { %v15732_v18 = vadd.f32 %v10530_v19, %v9261_v52 }
0x12b3   : > { %v10454_v56 = vmul.f32 -1.442695, %v15732_v18 }
0x12b5   : > { %10835 = vpow2.f32 %v10454_v56 }
0x12b6   : > { %v9244_v61 = vpop.f32.mrf.mxu3 }
0x12b7   : > { %v9262_v10 = vadd.f32 %v9244_v61, %v9139_v41 }
0x12b9   : > { %v15735_v60 = vadd.f32 %v10530_v19, %v9262_v10 }
0x12bb   : > { %v10455_v45 = vmul.f32 -1.442695, %v15735_v60  ;;  %v10836_v59 = vpop.eup %10835 }
0x12bc   : > { %v15745_v6 = vadd.f32 1.0, %v10836_v59 }
0x12bd   : > { %10837 = vpow2.f32 %v10455_v45 }
0x12be   : > { %v9247_v32 = vpop.f32.mrf.mxu3  ;;  %vm9417_vm6 = vweird.f32 %v15745_v6 }
0x12bf   : > { %v9263_v54 = vadd.f32 %v9247_v32, %v9142_v5 }
0x12c1   : > { %v15743_v55 = vadd.f32 %v10530_v19, %v9263_v54 }
0x12c3   : > { %v10456_v51 = vmul.f32 -1.442695, %v15743_v55  ;;  %v10838_v36 = vpop.eup %10837 }
0x12c4   : > { %v15755_v28 = vadd.f32 1.0, %v10838_v36 }
0x12c6   : > { %v9250_v3 = vpop.f32.mrf.mxu3  ;;  %vm9432_vm1 = vweird.f32 %v15755_v28 }
0x12c7   : > { %v9264_v35 = vadd.f32 %v9250_v3, %v9145_v24 }
0x12c9   : > { %v15738_v12 = vadd.f32 %v10530_v19, %v9264_v35 }
0x12cb   : > { %v10457_v49 = vmul.f32 -1.442695, %v15738_v12 }
0x12cd   : > { %10839 = vpow2.f32 %v10457_v49 }
0x12ce   : > { %v9253_v57 = vpop.f32.mrf.mxu3  ;;  %10841 = vrcp.f32 %v15745_v6 }
0x12cf   : > { %v9265_v58 = vadd.f32 %v9253_v57, %v9148_v48  ;;  %10843 = vpow2.f32 %v10452_v42  ;;  %v9423_v57 = vand.u32 2147483648, %v15745_v6 }
0x12d0   : > { %10845 = vpow2.f32 %v10456_v51  ;;  %v9421_v51 = vand.u32 2147483647, %v15745_v6 }
0x12d1   : > { %v15750_v21 = vadd.f32 %v10530_v19, %v9265_v58 }
0x12d2   : > { %vm9422_vm13 = vcmp.eq.f32.partialorder %v9421_v51, 8.507059e+37 }
0x12d3   : > { %v10840_v47 = vpop.eup %10839  ;;  %v10458_v14 = vmul.f32 -1.442695, %v15750_v21 }
0x12d4   : > { %v9379_v62 = vadd.f32 1.0, %v10840_v47  ;;  %v15757_v53 = vpop.eup %10841 }
0x12d5   : > { %10847 = vpow2.f32 %v10458_v14  ;;  %v10844_v13 = vpop.eup %10843  ;;  %v9413_v27 = vmul.f32 %v15757_v53, %v15745_v6  ;;  %vm9418_vm5 = vweird.f32 %v15757_v53 }
0x12d6   : > { %10849 = vrcp.f32 %v9379_v62  ;;  %v9256_v2 = vpop.f32.mrf.mxu3  ;;  %v10846_v16 = vpop.eup %10845  ;;  %v15766_v31 = vadd.f32 1.0, %v10844_v13  ;;  %v9468_v52 = vand.u32 2147483648, %v9379_v62  ;;  %v9466_v41 = vand.u32 2147483647, %v9379_v62  ;;  %vm15792_vm9 = vmor %vm9417_vm6, %vm9418_vm5 }
0x12d7   : > { %v9266_v26 = vadd.f32 %v9256_v2, %v9151_v25  ;;  %10851 = vrcp.f32 %v15755_v28  ;;  %v15768_v17 = vadd.f32 1.0, %v10846_v16  ;;  %v9414_v43 = vsub.f32 1.0, %v9413_v27 }
0x12d8   : > { %10853 = vpow2.f32 %v10453_v44  ;;  %vm9462_vm2 = vweird.f32 %v9379_v62  ;;  %v9469_v3 = vor.u32 1.1754944e-38, %v9468_v52  ;;  %vm9467_vm4 = vcmp.eq.f32.partialorder %v9466_v41, 8.507059e+37 }
0x12d9   : > { %v15760_v30 = vadd.f32 %v10530_v19, %v9266_v26  ;;  %v9415_v23 = vmul.f32 %v15757_v53, %v9414_v43  ;;  %v9424_v44 = vor.u32 1.1754944e-38, %v9423_v57 }
0x12db   : > { %v10848_v33 = vpop.eup %10847  ;;  %v10459_v63 = vmul.f32 -1.442695, %v15760_v30  ;;  %v9416_v54 = vadd.f32 %v15757_v53, %v9415_v23 }
0x12dc   : > { %v10850_v15 = vpop.eup %10849  ;;  %v9380_v0 = vadd.f32 1.0, %v10848_v33 }
0x12dd   : > { %10855 = vpow2.f32 %v10459_v63  ;;  %v9458_v34 = vmul.f32 %v10850_v15, %v9379_v62  ;;  %v15770_v61 = vpop.eup %10851  ;;  %vm9463_vm7 = vweird.f32 %v10850_v15  ;;  %v9420_v47 = vsel %vm15792_vm9, %v15757_v53, %v9416_v54 }
0x12de   : > { %10857 = vrcp.f32 %v9380_v0  ;;  %v10854_v19 = vpop.eup %10853  ;;  %v9428_v10 = vmul.f32 %v15770_v61, %v15755_v28  ;;  %vm9464_vm3 = vmor %vm9462_vm2, %vm9463_vm7  ;;  %v9483_v42 = vand.u32 2147483648, %v9380_v0  ;;  %v9481_v37 = vand.u32 2147483647, %v9380_v0 }
0x12df   : > { %v9459_v11 = vsub.f32 1.0, %v9458_v34  ;;  %10859 = vrcp.f32 %v15766_v31  ;;  %v15777_v24 = vadd.f32 1.0, %v10854_v19  ;;  %vm9477_vm11 = vweird.f32 %v9380_v0 }
0x12e0   : > { %10861 = vrcp.f32 %v15768_v17  ;;  %v9429_v20 = vsub.f32 1.0, %v9428_v10  ;;  %v9484_v6 = vor.u32 1.1754944e-38, %v9483_v42  ;;  %vm9482_vm14 = vcmp.eq.f32.partialorder %v9481_v37, 8.507059e+37 }
0x12e1   : > { %v9460_v9 = vmul.f32 %v10850_v15, %v9459_v11  ;;  %v9425_v16 = vsel %vm9422_vm13, %v9424_v44, %v9420_v47  ;;  %vm9433_vm8 = vweird.f32 %v15770_v61  ;;  %v9438_v34 = vand.u32 2147483648, %v15755_v28 }
0x12e2   : > { %v9430_v62 = vmul.f32 %v15770_v61, %v9429_v20  ;;  %v9436_v11 = vand.u32 2147483647, %v15755_v28  ;;  %vm9434_vm2 = vmor %vm9432_vm1, %vm9433_vm8  ;;  %v9453_v54 = vand.u32 2147483648, %v15768_v17  ;;  %vm9447_vm13 = vweird.f32 %v15768_v17 }
0x12e3   : > { %v10856_v32 = vpop.eup %10855  ;;  %v9461_v56 = vadd.f32 %v10850_v15, %v9460_v9  ;;  %v9439_v10 = vor.u32 1.1754944e-38, %v9438_v34  ;;  %v9451_v20 = vand.u32 2147483647, %v15768_v17 }
0x12e4   : > { %v10858_v40 = vpop.eup %10857  ;;  %v15779_v5 = vadd.f32 1.0, %v10856_v32  ;;  %v9431_v63 = vadd.f32 %v15770_v61, %v9430_v62  ;;  %vm9437_vm5 = vcmp.eq.f32.partialorder %v9436_v11, 8.507059e+37  ;;  %v9325_v62 = vld.sshfl [vmem:[#allocation1 + $0x20] sm:$0xff pattern:$0x73625140] }
0x12e5   : > { %v9465_v35 = vsel %vm9464_vm3, %v10850_v15, %v9461_v56  ;;  %v9473_v7 = vmul.f32 %v10858_v40, %v9380_v0  ;;  %v15784_v59 = vpop.eup %10859  ;;  %vm9478_vm10 = vweird.f32 %v10858_v40  ;;  %vm9452_vm1 = vcmp.eq.f32.partialorder %v9451_v20, 8.507059e+37 }
0x12e6   : > { %10863 = vrcp.f32 %v15779_v5  ;;  %v9470_v45 = vsel %vm9467_vm4, %v9469_v3, %v9465_v35  ;;  %v15787_v48 = vpop.eup %10861  ;;  %v9383_v14 = vmul.f32 %v15784_v59, %v15766_v31  ;;  %vm9479_vm12 = vmor %vm9477_vm11, %vm9478_vm10  ;;  %v9498_v43 = vand.u32 2147483648, %v15779_v5 }
0x12e7   : > { %9520 = vrot.lane.b32.xlu1 %v9470_v45, %s10891_s27  ;;  %v9474_v49 = vsub.f32 1.0, %v9473_v7  ;;  %10865 = vrcp.f32 %v15777_v24  ;;  %v9443_v25 = vmul.f32 %v15787_v48, %v15768_v17  ;;  %v9496_v19 = vand.u32 2147483647, %v15779_v5 }
0x12e8   : > { %v9384_v33 = vsub.f32 1.0, %v9383_v14  ;;  %v9435_v23 = vsel %vm9434_vm2, %v15770_v61, %v9431_v63  ;;  %vm9492_vm3 = vweird.f32 %v15779_v5  ;;  %v9499_v28 = vor.u32 1.1754944e-38, %v9498_v43 }
0x12e9   : > { %v9475_v36 = vmul.f32 %v10858_v40, %v9474_v49  ;;  %v9444_v0 = vsub.f32 1.0, %v9443_v25  ;;  %vm9497_vm6 = vcmp.eq.f32.partialorder %v9496_v19, 8.507059e+37  ;;  %v9440_v3 = vsel %vm9437_vm5, %v9439_v10, %v9435_v23 }
0x12ea   : > { %v9385_v9 = vmul.f32 %v15784_v59, %v9384_v33  ;;  %vm9388_vm9 = vweird.f32 %v15784_v59  ;;  %vm9448_vm10 = vweird.f32 %v15787_v48  ;;  %vm9387_vm11 = vweird.f32 %v15766_v31 }
0x12eb   : > { %v9476_v4 = vadd.f32 %v10858_v40, %v9475_v36  ;;  %v9445_v56 = vmul.f32 %v15787_v48, %v9444_v0  ;;  %v9393_v45 = vand.u32 2147483648, %v15766_v31  ;;  %v9391_v49 = vand.u32 2147483647, %v15766_v31  ;;  %v9324_v0 = vld.sshfl [vmem:[#allocation1] sm:$0xff pattern:$0x73625140] }
0x12ec   : > { %v10864_v2 = vpop.eup %10863  ;;  %v9386_v61 = vadd.f32 %v15784_v59, %v9385_v9  ;;  %v9454_v36 = vor.u32 1.1754944e-38, %v9453_v54  ;;  %v9408_v17 = vand.u32 2147483648, %v15777_v24  ;;  %vm9402_vm2 = vweird.f32 %v15777_v24 }
0x12ed   : > { %v9480_v26 = vsel %vm9479_vm12, %v10858_v40, %v9476_v4  ;;  %v9488_v13 = vmul.f32 %v10864_v2, %v15779_v5  ;;  %v15806_v53 = vpop.eup %10865  ;;  %vm9493_vm7 = vweird.f32 %v10864_v2  ;;  %v9446_v5 = vadd.f32 %v15787_v48, %v9445_v56  ;;  %vm9389_vm12 = vmor %vm9387_vm11, %vm9388_vm9 }
0x12ee   : > { %v9485_v27 = vsel %vm9482_vm14, %v9484_v6, %v9480_v26  ;;  %v9398_v41 = vmul.f32 %v15806_v53, %v15777_v24  ;;  %vm9494_vm4 = vmor %vm9492_vm3, %vm9493_vm7  ;;  %v9390_v57 = vsel %vm9389_vm12, %v15784_v59, %v9386_v61  ;;  %v9394_v51 = vor.u32 1.1754944e-38, %v9393_v45 }
0x12ef   : > { %9514 = vrot.lane.b32.xlu1 %v9425_v16, %s10891_s27  ;;  %9522 = vrot.lane.b32.xlu0 %v9485_v27, %s10891_s27  ;;  %v9489_v15 = vsub.f32 1.0, %v9488_v13  ;;  %vm9449_vm14 = vmor %vm9447_vm13, %vm9448_vm10  ;;  %vm9392_vm8 = vcmp.eq.f32.partialorder %v9391_v49, 8.507059e+37  ;;  %vm9403_vm7 = vweird.f32 %v15806_v53  ;;  %v9406_v59 = vand.u32 2147483647, %v15777_v24  ;;  %v15912_v49 = vld [vmem:[%s16124_s14] sm:$0xff] }
0x12f0   : > { %v9399_v7 = vsub.f32 1.0, %v9398_v41  ;;  %v9450_v42 = vsel %vm9449_vm14, %v15787_v48, %v9446_v5  ;;  %v9395_v37 = vsel %vm9392_vm8, %v9394_v51, %v9390_v57  ;;  %vm9404_vm3 = vmor %vm9402_vm2, %vm9403_vm7  ;;  %v9409_v14 = vor.u32 1.1754944e-38, %v9408_v17  ;;  %v15919_v57 = vld [vmem:[%s16124_s14 + $0x8] sm:$0xff]  ;;  %v15940_v51 = vld [vmem:[%s16124_s14 + $0x20] sm:$0xff] }
0x12f1   : > { %v9490_v52 = vmul.f32 %v10864_v2, %v9489_v15  ;;  %v9455_v47 = vsel %vm9452_vm1, %v9454_v36, %v9450_v42  ;;  %v9341_v25 = vadd.f32 %v9325_v62, %v15760_v30  ;;  %v9339_v26 = vadd.f32 %v15723_v1, %v15738_v12  ;;  %v15926_v42 = vld [vmem:[%s16124_s14 + $0x10] sm:$0xff]  ;;  %v15947_v36 = vld [vmem:[%s16124_s14 + $0x28] sm:$0xff] }
0x12f2   : > { %v9400_v58 = vmul.f32 %v15806_v53, %v9399_v7  ;;  %v9338_v13 = vadd.f32 %v15715_v50, %v15743_v55  ;;  %v9336_v50 = vadd.f32 %v15699_v29, %v15732_v18  ;;  %v10896_v17 = vmov 0  }
0x12f3   : > { %v9491_v32 = vadd.f32 %v10864_v2, %v9490_v52  ;;  %v9349_v44 = vsel %vm2104_vm0, %v9341_v25, %v15760_v30  ;;  %v9347_v16 = vsel %vm2104_vm0, %v9339_v26, %v15738_v12  ;;  %v9340_v12 = vadd.f32 %v9324_v0, %v15750_v21  ;;  %10524 = vset.pattern.permute.xlu2 %v10896_v17 }
0x12f4   : > { %v9401_v31 = vadd.f32 %v15806_v53, %v9400_v58  ;;  %v9346_v27 = vsel %vm2104_vm0, %v9338_v13, %v15743_v55  ;;  %v9335_v55 = vadd.f32 %v15702_v39, %v15752_v8  ;;  %v9344_v43 = vsel %vm2104_vm0, %v9336_v50, %v15732_v18  ;;  %v15933_v58 = vld [vmem:[%s16124_s14 + $0x18] sm:$0xff]  ;;  %10523 = vset.pattern.permute.xlu1 %v10896_v17 }
0x12f5   : > { %v9495_v40 = vsel %vm9494_vm4, %v10864_v2, %v9491_v32  ;;  %vm9407_vm4 = vcmp.eq.f32.partialorder %v9406_v59, 8.507059e+37  ;;  %v9348_v52 = vsel %vm2104_vm0, %v9340_v12, %v15750_v21  ;;  %v9337_v32 = vadd.f32 %v15711_v46, %v15735_v60  ;;  %10522 = vset.pattern.permute.xlu0 %v10896_v17 }
0x12f6   : > { %v9500_v35 = vsel %vm9497_vm6, %v9499_v28, %v9495_v40  ;;  %v9405_v48 = vsel %vm9404_vm3, %v15806_v53, %v9401_v31  ;;  %v9343_v29 = vsel %vm2104_vm0, %v9335_v55, %v15752_v8  ;;  %v9334_v40 = vadd.f32 %v15690_v38, %v15740_v22 }
0x12f7   : > { %9516 = vrot.lane.b32.xlu0 %v9440_v3, %s10891_s27  ;;  %9524 = vrot.lane.b32.xlu2 %v9500_v35, %s10891_s27  ;;  %v9410_v4 = vsel %vm9407_vm4, %v9409_v14, %v9405_v48  ;;  %v9345_v8 = vsel %vm2104_vm0, %v9337_v32, %v15735_v60 }
0x12f8   : > { %v9342_v3 = vsel %vm2104_vm0, %v9334_v40, %v15740_v22  ;;  %vm9574_vm0 = vcmask 523264  }
0x12ff   : > { %9510 = vrot.lane.b32.xlu0 %v9395_v37, %s10891_s27  ;;  %9518 = vrot.lane.b32.xlu2 %v9455_v47, %s10891_s27  ;;  %v15954_v37 = vld [vmem:[%s16124_s14 + $0x30] sm:$0xff]  ;;  %v15961_v47 = vld [vmem:[%s16124_s14 + $0x38] sm:$0xff] }
0x1307   : > { %9512 = vrot.lane.b32.xlu2 %v9410_v4, %s10891_s27 }
0x1351   : > { %v9525_v2 = vpop.permute.xlu2 %9524 }
0x1352   : > { %v15850_v6 = vmul.f32 %v9525_v2, %v9349_v44 }
0x1354   : > { %v9563_v24 = vsel %vm1739_vm15, %v15850_v6, 0.0 }
0x1355   : > { %9564 = vadd.xlane.f32.xlu1 %v9563_v24 }
0x1359   : > { %v9521_v53 = vpop.permute.xlu1 %9520  ;;  %v9519_v30 = vpop.permute.xlu2 %9518 }
0x135a   : > { %v15862_v33 = vmul.f32 %v9521_v53, %v9347_v16  ;;  %v15864_v63 = vmul.f32 %v9519_v30, %v9346_v27 }
0x135c   : > { %v9557_v15 = vsel %vm1739_vm15, %v15862_v33, 0.0  ;;  %v9554_v1 = vsel %vm1739_vm15, %v15864_v63, 0.0 }
0x135d   : > { %9558 = vadd.xlane.f32.xlu0 %v9557_v15  ;;  %9555 = vadd.xlane.f32.xlu1 %v9554_v1 }
0x1361   : > { %v9515_v34 = vpop.permute.xlu1 %9514  ;;  %v9523_v11 = vpop.permute.xlu0 %9522 }
0x1362   : > { %v15879_v19 = vmul.f32 %v9515_v34, %v9344_v43  ;;  %v15881_v9 = vmul.f32 %v9523_v11, %v9348_v52  ;;  %v9513_v41 = vpop.permute.xlu2 %9512 }
0x1363   : > { %v15885_v23 = vmul.f32 %v9513_v41, %v9343_v29 }
0x1364   : > { %v9548_v39 = vsel %vm1739_vm15, %v15879_v19, 0.0  ;;  %v9560_v18 = vsel %vm1739_vm15, %v15881_v9, 0.0 }
0x1365   : > { %9549 = vadd.xlane.f32.xlu0 %v9548_v39  ;;  %9561 = vadd.xlane.f32.xlu2 %v9560_v18  ;;  %v9545_v21 = vsel %vm1739_vm15, %v15885_v23, 0.0 }
0x1366   : > { %9546 = vadd.xlane.f32.xlu1 %v9545_v21 }
0x1369   : > { %v9517_v56 = vpop.permute.xlu0 %9516 }
0x136a   : > { %v15897_v10 = vmul.f32 %v9517_v56, %v9345_v8 }
0x136c   : > { %v9551_v28 = vsel %vm1739_vm15, %v15897_v10, 0.0 }
0x136d   : > { %9552 = vadd.xlane.f32.xlu2 %v9551_v28 }
0x1371   : > { %v9511_v35 = vpop.permute.xlu0 %9510 }
0x1372   : > { %v15905_v61 = vmul.f32 %v9511_v35, %v9342_v3 }
0x1374   : > { %v9542_v46 = vsel %vm1739_vm15, %v15905_v61, 0.0 }
0x1375   : > { %9543 = vadd.xlane.f32.xlu2 %v9542_v46 }
0x13c8   : > { %v9565_v60 = vpop.xlane.xlu1 %9564 }
0x13c9   : > { %9607 = vmatpush.msrb.mxu1 %v9565_v60 }
0x13d0   : > { %v9559_v5 = vpop.xlane.xlu0 %9558  ;;  %v9556_v45 = vpop.xlane.xlu1 %9555 }
0x13d8   : > { %v9562_v7 = vpop.xlane.xlu2 %9561  ;;  %v9550_v38 = vpop.xlane.xlu0 %9549 }
0x13d9   : > { %9608 = vmatpush.msrb.mxu1 %v9562_v7  ;;  %v9547_v22 = vpop.xlane.xlu1 %9546 }
0x13db   : > { %9609 = vmatpush.msrb.mxu1 %v9559_v5 }
0x13dd   : > { %9610 = vmatpush.msrb.mxu1 %v9556_v45 }
0x13e0   : > { %v9553_v54 = vpop.xlane.xlu2 %9552 }
0x13e1   : > { %9611 = vmatpush.msrb.mxu1 %v9553_v54 }
0x13e3   : > { %9612 = vmatpush.msrb.mxu1 %v9550_v38 }
0x13e5   : > { %9613 = vmatpush.msrb.mxu1 %v9547_v22 }
0x13e8   : > { %v9544_v20 = vpop.xlane.xlu2 %9543 }
0x13e9   : > { %9614 = vmatpush.msrb.mxu1 %v9544_v20 }
0x13ea   : > { %10460 = vmatmul.msk.f32.vlgmr.msrb.gmra.mxu1 %vm9574_vm0, %v15912_v49 }
0x13f2   : > { %10461 = vmatmul.msk.f32.gmra.mxu1 %vm9574_vm0, %v15919_v57 }
0x13fa   : > { %10462 = vmatmul.msk.f32.gmra.mxu1 %vm9574_vm0, %v15926_v42 }
0x1402   : > { %10463 = vmatmul.msk.f32.gmra.mxu1 %vm9574_vm0, %v15933_v58 }
0x140a   : > { %10464 = vmatmul.msk.f32.gmra.mxu1 %vm9574_vm0, %v15940_v51 }
0x1412   : > { %10465 = vmatmul.msk.f32.gmra.mxu1 %vm9574_vm0, %v15947_v36 }
0x141a   : > { %10466 = vmatmul.msk.f32.gmra.mxu1 %vm9574_vm0, %v15954_v37 }
0x1422   : > { %10467 = vmatmul.msk.f32.gmra.mxu1 %vm9574_vm0, %v15961_v47 }
0x1467   : > { %v9616_v31 = vpop.f32.mrf.mxu1 }
0x146f   : > { %v9619_v59 = vpop.f32.mrf.mxu1 }
0x1477   : > { %v9622_v48 = vpop.f32.mrf.mxu1 }
0x147f   : > { %v9625_v14 = vpop.f32.mrf.mxu1 }
0x1487   : > { %v9628_v4 = vpop.f32.mrf.mxu1 }
0x148f   : > { %v9631_v62 = vpop.f32.mrf.mxu1 }
0x1490   : > { %9667 = vperm.xlu2 %10524, %v9631_v62  }
0x1497   : > { %v9634_v25 = vpop.f32.mrf.mxu1 }
0x1498   : > { %9657 = vperm.xlu2 %10524, %v9625_v14   ;;  %9672 = vperm.xlu1 %10523, %v9634_v25  }
0x149f   : > { %v9637_v2 = vpop.f32.mrf.mxu1 }
0x14a0   : > { %9647 = vperm.xlu2 %10524, %v9619_v59   ;;  %9662 = vperm.xlu1 %10523, %v9628_v4  }
0x14a1   : > { %9677 = vperm.xlu0 %10522, %v9637_v2  }
0x14a8   : > { %9652 = vperm.xlu1 %10523, %v9622_v48  }
0x14a9   : > { %9642 = vperm.xlu0 %10522, %v9616_v31  }
0x14ea   : > { %v9668_v44 = vpop.permute.xlu2 %9667 }
0x14eb   : > { %v15966_v24 = vsub.f32 %v15862_v33, %v9668_v44 }
0x14ed   : > { %v9693_v26 = vmul.f32 %v15966_v24, %v15966_v24 }
0x14ef   : > { %v9711_v13 = vsel %vm1739_vm15, %v9693_v26, 0.0 }
0x14f0   : > { %9712 = vadd.xlane.f32.xlu0 %v9711_v13 }
0x14f2   : > { %v9658_v27 = vpop.permute.xlu2 %9657 }
0x14f3   : > { %v15977_v15 = vsub.f32 %v15897_v10, %v9658_v27 }
0x14f5   : > { %v9691_v0 = vmul.f32 %v15977_v15, %v15977_v15 }
0x14f7   : > { %v9705_v34 = vsel %vm1739_vm15, %v9691_v0, 0.0 }
0x14fa   : > { %v9648_v39 = vpop.permute.xlu2 %9647 }
0x14fb   : > { %v16006_v32 = vsub.f32 %v15885_v23, %v9648_v39 }
0x14fd   : > { %v9689_v56 = vmul.f32 %v16006_v32, %v16006_v32 }
0x14ff   : > { %v9699_v10 = vsel %vm1739_vm15, %v9689_v56, 0.0 }
0x150a   : > { %v9673_v53 = vpop.permute.xlu1 %9672 }
0x150b   : > { %v15972_v16 = vsub.f32 %v15881_v9, %v9673_v53 }
0x150d   : > { %v9694_v30 = vmul.f32 %v15972_v16, %v15972_v16 }
0x150f   : > { %v9714_v33 = vsel %vm1739_vm15, %v9694_v30, 0.0 }
0x1510   : > { %9715 = vadd.xlane.f32.xlu2 %v9714_v33 }
0x1512   : > { %v9663_v1 = vpop.permute.xlu1 %9662 }
0x1513   : > { %v9678_v50 = vpop.permute.xlu0 %9677  ;;  %v15989_v43 = vsub.f32 %v15864_v63, %v9663_v1 }
0x1514   : > { %v15983_v12 = vsub.f32 %v15850_v6, %v9678_v50 }
0x1515   : > { %v9692_v6 = vmul.f32 %v15989_v43, %v15989_v43 }
0x1516   : > { %v9695_v55 = vmul.f32 %v15983_v12, %v15983_v12 }
0x1518   : > { %9706 = vadd.xlane.f32.xlu2 %v9705_v34  ;;  %v9717_v11 = vsel %vm1739_vm15, %v9695_v55, 0.0 }
0x1519   : > { %9718 = vadd.xlane.f32.xlu1 %v9717_v11 }
0x151a   : > { %v9653_v52 = vpop.permute.xlu1 %9652 }
0x151b   : > { %v15993_v9 = vsub.f32 %v15879_v19, %v9653_v52  ;;  %v9643_v29 = vpop.permute.xlu0 %9642  ;;  %v9708_v19 = vsel %vm1739_vm15, %v9692_v6, 0.0 }
0x151c   : > { %v15998_v41 = vsub.f32 %v15905_v61, %v9643_v29 }
0x151d   : > { %v9690_v63 = vmul.f32 %v15993_v9, %v15993_v9 }
0x151e   : > { %v9688_v18 = vmul.f32 %v15998_v41, %v15998_v41 }
0x151f   : > { %v9702_v21 = vsel %vm1739_vm15, %v9690_v63, 0.0 }
0x1520   : > { %9703 = vadd.xlane.f32.xlu0 %v9702_v21  ;;  %v9696_v8 = vsel %vm1739_vm15, %v9688_v18, 0.0 }
0x1521   : > { %9709 = vadd.xlane.f32.xlu1 %v9708_v19  ;;  %9697 = vadd.xlane.f32.xlu2 %v9696_v8 }
0x1529   : > { %9700 = vadd.xlane.f32.xlu1 %v9699_v10 }
0x1563   : > { %v9713_v3 = vpop.xlane.xlu0 %9712 }
0x1583   : > { %v9716_v28 = vpop.xlane.xlu2 %9715 }
0x158b   : > { %v9707_v23 = vpop.xlane.xlu2 %9706 }
0x158c   : > { %v9719_v40 = vpop.xlane.xlu1 %9718 }
0x158d   : > { %9728 = vmatpush.msrb.mxu2 %v9719_v40 }
0x158f   : > { %9729 = vmatpush.msrb.mxu2 %v9716_v28 }
0x1591   : > { %9730 = vmatpush.msrb.mxu2 %v9713_v3 }
0x1593   : > { %v9704_v61 = vpop.xlane.xlu0 %9703 }
0x1594   : > { %v9710_v35 = vpop.xlane.xlu1 %9709  ;;  %v9698_v60 = vpop.xlane.xlu2 %9697 }
0x1595   : > { %9731 = vmatpush.msrb.mxu2 %v9710_v35 }
0x1597   : > { %9732 = vmatpush.msrb.mxu2 %v9707_v23 }
0x1599   : > { %9733 = vmatpush.msrb.mxu2 %v9704_v61 }
0x159c   : > { %v9701_v46 = vpop.xlane.xlu1 %9700 }
0x159d   : > { %9734 = vmatpush.msrb.mxu2 %v9701_v46 }
0x159f   : > { %9735 = vmatpush.msrb.mxu2 %v9698_v60 }
0x15a0   : > { %10468 = vmatmul.msk.f32.vlgmr.msrb.gmra.mxu2 %vm9574_vm0, %v15912_v49 }
0x15a8   : > { %10469 = vmatmul.msk.f32.gmra.mxu2 %vm9574_vm0, %v15919_v57 }
0x15b0   : > { %10470 = vmatmul.msk.f32.gmra.mxu2 %vm9574_vm0, %v15926_v42 }
0x15b8   : > { %10471 = vmatmul.msk.f32.gmra.mxu2 %vm9574_vm0, %v15933_v58 }
0x15c0   : > { %10472 = vmatmul.msk.f32.gmra.mxu2 %vm9574_vm0, %v15940_v51 }
0x15c8   : > { %10473 = vmatmul.msk.f32.gmra.mxu2 %vm9574_vm0, %v15947_v36 }
0x15d0   : > { %10474 = vmatmul.msk.f32.gmra.mxu2 %vm9574_vm0, %v15954_v37 }
0x15d8   : > { %10475 = vmatmul.msk.f32.gmra.mxu2 %vm9574_vm0, %v15961_v47 }
0x1623   : > { %v9737_v5 = vpop.f32.mrf.mxu2 }
0x1624   : > { %v9738_v7 = vadd.f32 1e-05, %v9737_v5 }
0x1626   : > { %10867 = vrsqrt.f32 %v9738_v7  ;;  %vm9767_vm6 = vweird.f32 %v9738_v7 }
0x162b   : > { %v9740_v45 = vpop.f32.mrf.mxu2 }
0x162c   : > { %v10868_v54 = vpop.eup %10867  ;;  %v9741_v38 = vadd.f32 1e-05, %v9740_v45 }
0x162d   : > { %v9762_v22 = vmul.f32 %v10868_v54, %v9738_v7  ;;  %vm9768_vm5 = vweird.f32 %v10868_v54 }
0x162e   : > { %10869 = vrsqrt.f32 %v9741_v38  ;;  %vm9769_vm9 = vmor %vm9767_vm6, %vm9768_vm5  ;;  %vm9777_vm11 = vweird.f32 %v9741_v38 }
0x162f   : > { %v9763_v49 = vmul.f32 %v10868_v54, %v9762_v22 }
0x1631   : > { %v9764_v20 = vmul.f32 0.5, %v9763_v49 }
0x1633   : > { %v9765_v57 = vsub.f32 1.5, %v9764_v20  ;;  %v9743_v42 = vpop.f32.mrf.mxu2 }
0x1634   : > { %v10870_v58 = vpop.eup %10869  ;;  %v9744_v51 = vadd.f32 1e-05, %v9743_v42 }
0x1635   : > { %v9772_v36 = vmul.f32 %v10870_v58, %v9741_v38  ;;  %v9766_v37 = vmul.f32 %v10868_v54, %v9765_v57  ;;  %vm9778_vm10 = vweird.f32 %v10870_v58 }
0x1636   : > { %10871 = vrsqrt.f32 %v9744_v51  ;;  %vm9779_vm12 = vmor %vm9777_vm11, %vm9778_vm10  ;;  %vm9787_vm14 = vweird.f32 %v9744_v51 }
0x1637   : > { %v9773_v47 = vmul.f32 %v10870_v58, %v9772_v36  ;;  %v9770_v31 = vsel %vm9769_vm9, %v10868_v54, %v9766_v37 }
0x1638   : > { %9843 = vperm.xlu0 %10522, %v9770_v31  }
0x1639   : > { %v9774_v17 = vmul.f32 0.5, %v9773_v47 }
0x163b   : > { %v9775_v59 = vsub.f32 1.5, %v9774_v17  ;;  %v9746_v48 = vpop.f32.mrf.mxu2  ;;  %v9891_v17 = vld [vmem:[%s16125_s15 + $0x10] sm:$0xff] }
0x163c   : > { %v10872_v14 = vpop.eup %10871  ;;  %v9747_v4 = vadd.f32 1e-05, %v9746_v48 }
0x163d   : > { %v9782_v62 = vmul.f32 %v10872_v14, %v9744_v51  ;;  %v9776_v25 = vmul.f32 %v10870_v58, %v9775_v59  ;;  %vm9788_vm13 = vweird.f32 %v10872_v14 }
0x163e   : > { %10873 = vrsqrt.f32 %v9747_v4  ;;  %vm9789_vm8 = vmor %vm9787_vm14, %vm9788_vm13  ;;  %vm9797_vm7 = vweird.f32 %v9747_v4 }
0x163f   : > { %v9783_v2 = vmul.f32 %v10872_v14, %v9782_v62  ;;  %v9780_v44 = vsel %vm9779_vm12, %v10870_v58, %v9776_v25 }
0x1640   : > { %9848 = vperm.xlu1 %10523, %v9780_v44   ;;  %v9905_v44 = vld [vmem:[%s16126_s16] sm:$0xff] }
0x1641   : > { %v9784_v26 = vmul.f32 0.5, %v9783_v2 }
0x1643   : > { %v9785_v13 = vsub.f32 1.5, %v9784_v26  ;;  %v9749_v53 = vpop.f32.mrf.mxu2 }
0x1644   : > { %v10874_v27 = vpop.eup %10873  ;;  %v9750_v30 = vadd.f32 1e-05, %v9749_v53  ;;  %v9890_v53 = vld [vmem:[%s16125_s15 + $0x8] sm:$0xff] }
0x1645   : > { %v9792_v33 = vmul.f32 %v10874_v27, %v9747_v4  ;;  %v9786_v1 = vmul.f32 %v10872_v14, %v9785_v13  ;;  %vm9798_vm1 = vweird.f32 %v10874_v27 }
0x1646   : > { %10875 = vrsqrt.f32 %v9750_v30  ;;  %vm9799_vm2 = vmor %vm9797_vm7, %vm9798_vm1  ;;  %vm9807_vm4 = vweird.f32 %v9750_v30 }
0x1647   : > { %v9793_v0 = vmul.f32 %v10874_v27, %v9792_v33  ;;  %v9790_v50 = vsel %vm9789_vm8, %v10872_v14, %v9786_v1  ;;  %v9907_v14 = vld [vmem:[%s16126_s16 + $0x10] sm:$0xff]  ;;  %v9906_v33 = vld [vmem:[%s16126_s16 + $0x8] sm:$0xff] }
0x1648   : > { %9853 = vperm.xlu2 %10524, %v9790_v50  }
0x1649   : > { %v9794_v55 = vmul.f32 0.5, %v9793_v0  ;;  %v9895_v0 = vld [vmem:[%s16125_s15 + $0x30] sm:$0xff] }
0x164b   : > { %v9795_v34 = vsub.f32 1.5, %v9794_v55  ;;  %v9752_v11 = vpop.f32.mrf.mxu2  ;;  %v9892_v55 = vld [vmem:[%s16125_s15 + $0x18] sm:$0xff] }
0x164c   : > { %v10876_v52 = vpop.eup %10875  ;;  %v9753_v29 = vadd.f32 1e-05, %v9752_v11 }
0x164d   : > { %v9802_v6 = vmul.f32 %v10876_v52, %v9750_v30  ;;  %v9796_v39 = vmul.f32 %v10874_v27, %v9795_v34  ;;  %vm9808_vm3 = vweird.f32 %v10876_v52 }
0x164e   : > { %10877 = vrsqrt.f32 %v9753_v29  ;;  %vm9809_vm0 = vmor %vm9807_vm4, %vm9808_vm3  ;;  %vm9817_vm6 = vweird.f32 %v9753_v29 }
0x164f   : > { %v9803_v63 = vmul.f32 %v10876_v52, %v9802_v6  ;;  %v9800_v18 = vsel %vm9799_vm2, %v10874_v27, %v9796_v39 }
0x1650   : > { %9858 = vperm.xlu0 %10522, %v9800_v18  }
0x1651   : > { %v9804_v21 = vmul.f32 0.5, %v9803_v63 }
0x1653   : > { %v9805_v19 = vsub.f32 1.5, %v9804_v21  ;;  %v9755_v8 = vpop.f32.mrf.mxu2 }
0x1654   : > { %v10878_v56 = vpop.eup %10877  ;;  %v9756_v10 = vadd.f32 1e-05, %v9755_v8 }
0x1655   : > { %v9812_v28 = vmul.f32 %v10878_v56, %v9753_v29  ;;  %v9806_v40 = vmul.f32 %v10876_v52, %v9805_v19  ;;  %vm9818_vm5 = vweird.f32 %v10878_v56  ;;  %v9908_v29 = vld [vmem:[%s16126_s16 + $0x18] sm:$0xff]  ;;  %v9909_v19 = vld [vmem:[%s16126_s16 + $0x20] sm:$0xff] }
0x1656   : > { %10879 = vrsqrt.f32 %v9756_v10  ;;  %vm9819_vm9 = vmor %vm9817_vm6, %vm9818_vm5  ;;  %vm9827_vm11 = vweird.f32 %v9756_v10 }
0x1657   : > { %v9813_v3 = vmul.f32 %v10878_v56, %v9812_v28  ;;  %v9810_v23 = vsel %vm9809_vm0, %v10876_v52, %v9806_v40  ;;  %v9911_v52 = vld [vmem:[%s16126_s16 + $0x30] sm:$0xff] }
0x1658   : > { %9863 = vperm.xlu1 %10523, %v9810_v23  }
0x1659   : > { %v9814_v35 = vmul.f32 0.5, %v9813_v3 }
0x165b   : > { %v9815_v61 = vsub.f32 1.5, %v9814_v35  ;;  %v9758_v46 = vpop.f32.mrf.mxu2  ;;  %v9896_v35 = vld [vmem:[%s16125_s15 + $0x38] sm:$0xff] }
0x165c   : > { %v10880_v60 = vpop.eup %10879  ;;  %v9759_v5 = vadd.f32 1e-05, %v9758_v46 }
0x165d   : > { %v9822_v7 = vmul.f32 %v10880_v60, %v9756_v10  ;;  %v9816_v45 = vmul.f32 %v10878_v56, %v9815_v61  ;;  %vm9828_vm10 = vweird.f32 %v10880_v60  ;;  %v9894_v10 = vld [vmem:[%s16125_s15 + $0x28] sm:$0xff] }
0x165e   : > { %10881 = vrsqrt.f32 %v9759_v5  ;;  %vm9829_vm12 = vmor %vm9827_vm11, %vm9828_vm10  ;;  %vm9837_vm14 = vweird.f32 %v9759_v5 }
0x165f   : > { %v9823_v54 = vmul.f32 %v10880_v60, %v9822_v7  ;;  %v9820_v38 = vsel %vm9819_vm9, %v10878_v56, %v9816_v45 }
0x1660   : > { %9868 = vperm.xlu0 %10522, %v9820_v38  }
0x1661   : > { %v9824_v22 = vmul.f32 0.5, %v9823_v54 }
0x1663   : > { %v9825_v49 = vsub.f32 1.5, %v9824_v22 }
0x1664   : > { %v10882_v20 = vpop.eup %10881 }
0x1665   : > { %v9832_v57 = vmul.f32 %v10882_v20, %v9759_v5  ;;  %v9826_v42 = vmul.f32 %v10880_v60, %v9825_v49  ;;  %vm9838_vm13 = vweird.f32 %v10882_v20 }
0x1666   : > { %vm9839_vm8 = vmor %vm9837_vm14, %vm9838_vm13 }
0x1667   : > { %v9833_v58 = vmul.f32 %v10882_v20, %v9832_v57  ;;  %v9830_v51 = vsel %vm9829_vm12, %v10880_v60, %v9826_v42  ;;  %v9912_v60 = vld [vmem:[%s16126_s16 + $0x38] sm:$0xff] }
0x1668   : > { %9873 = vperm.xlu2 %10524, %v9830_v51  }
0x1669   : > { %v9834_v36 = vmul.f32 0.5, %v9833_v58 }
0x166b   : > { %v9835_v37 = vsub.f32 1.5, %v9834_v36 }
0x166d   : > { %v9836_v47 = vmul.f32 %v10882_v20, %v9835_v37 }
0x166f   : > { %v9840_v31 = vsel %vm9839_vm8, %v10882_v20, %v9836_v47 }
0x1670   : > { %9878 = vperm.xlu1 %10523, %v9840_v31  }
0x16a2   : > { %v9854_v59 = vpop.permute.xlu2 %9853 }
0x16a3   : > { %v9883_v48 = vmul.f32 %v9854_v59, %v15993_v9  ;;  %v9889_v9 = vld [vmem:[%s16125_s15] sm:$0xff] }
0x16a5   : > { %v9899_v4 = vmul.f32 %v9891_v17, %v9883_v48 }
0x16a7   : > { %v9915_v62 = vadd.f32 %v9907_v14, %v9899_v4 }
0x16a9   : > { %9923 = vst.msk [vmem:[%s16040_s23 + $0x10] sm:$0xff] %vm1739_vm15, %v9915_v62 }
0x16aa   : > { %v9844_v25 = vpop.permute.xlu0 %9843 }
0x16ab   : > { %v9881_v2 = vmul.f32 %v9844_v25, %v15998_v41 }
0x16ad   : > { %v9897_v26 = vmul.f32 %v9889_v9, %v9881_v2 }
0x16af   : > { %v9913_v13 = vadd.f32 %v9905_v44, %v9897_v26 }
0x16b1   : > { %9921 = vst.msk [vmem:[%s16040_s23] sm:$0xff] %vm1739_vm15, %v9913_v13 }
0x16b2   : > { %v9849_v27 = vpop.permute.xlu1 %9848 }
0x16b3   : > { %v9882_v30 = vmul.f32 %v9849_v27, %v16006_v32 }
0x16b5   : > { %v9898_v41 = vmul.f32 %v9890_v53, %v9882_v30 }
0x16b7   : > { %v9914_v1 = vadd.f32 %v9906_v33, %v9898_v41 }
0x16b9   : > { %9922 = vst.msk [vmem:[%s16040_s23 + $0x8] sm:$0xff] %vm1739_vm15, %v9914_v1 }
0x16c2   : > { %v9874_v50 = vpop.permute.xlu2 %9873  ;;  %v9859_v32 = vpop.permute.xlu0 %9858 }
0x16c3   : > { %v9887_v34 = vmul.f32 %v9874_v50, %v15972_v16  ;;  %v9884_v11 = vmul.f32 %v9859_v32, %v15977_v15  ;;  %v9893_v16 = vld [vmem:[%s16125_s15 + $0x20] sm:$0xff] }
0x16c5   : > { %v9903_v6 = vmul.f32 %v9895_v0, %v9887_v34  ;;  %v9900_v39 = vmul.f32 %v9892_v55, %v9884_v11 }
0x16c7   : > { %v9919_v63 = vadd.f32 %v9911_v52, %v9903_v6  ;;  %v9916_v18 = vadd.f32 %v9908_v29, %v9900_v39 }
0x16c9   : > { %9927 = vst.msk [vmem:[%s16040_s23 + $0x30] sm:$0xff] %vm1739_vm15, %v9919_v63 }
0x16ca   : > { %9924 = vst.msk [vmem:[%s16040_s23 + $0x18] sm:$0xff] %vm1739_vm15, %v9916_v18  ;;  %v9864_v15 = vpop.permute.xlu1 %9863 }
0x16cb   : > { %v9885_v21 = vmul.f32 %v9864_v15, %v15989_v43  ;;  %v9910_v43 = vld [vmem:[%s16126_s16 + $0x28] sm:$0xff] }
0x16cd   : > { %v9901_v8 = vmul.f32 %v9893_v16, %v9885_v21 }
0x16cf   : > { %v9917_v56 = vadd.f32 %v9909_v19, %v9901_v8 }
0x16d1   : > { %9925 = vst.msk [vmem:[%s16040_s23 + $0x20] sm:$0xff] %vm1739_vm15, %v9917_v56 }
0x16d2   : > { %v9869_v28 = vpop.permute.xlu0 %9868 }
0x16d3   : > { %v9886_v40 = vmul.f32 %v9869_v28, %v15966_v24 }
0x16d5   : > { %v9902_v3 = vmul.f32 %v9894_v10, %v9886_v40 }
0x16d7   : > { %v9918_v23 = vadd.f32 %v9910_v43, %v9902_v3 }
0x16d9   : > { %9926 = vst.msk [vmem:[%s16040_s23 + $0x28] sm:$0xff] %vm1739_vm15, %v9918_v23 }
0x16e2   : > { %v9879_v61 = vpop.permute.xlu1 %9878 }
0x16e3   : > { %v9888_v46 = vmul.f32 %v9879_v61, %v15983_v12 }
0x16e5   : > { %v9904_v24 = vmul.f32 %v9896_v35, %v9888_v46 }
0x16e7   : > { %v9920_v5 = vadd.f32 %v9912_v60, %v9904_v24 }
0x16e9   : > { %9928 = vst.msk [vmem:[%s16040_s23 + $0x38] sm:$0xff] %vm1739_vm15, %v9920_v5 }
0x16ea PF: > { %s27_s24 = sadd.s32 1, %s10889_s24  }
0x16eb   : > { %p24_p4 = scmp.ge.s32.totalorder %s27_s24, 4  }
0x16ed   :  { %26 = sbr.rel (!%p24_p4) target bundleno = 3 (0x3), region = 575 }

</bundles_post_ra>
